<compile_context>
chip_gen: v7x
topology: tpu7x:2x2x1
jax: 0.10.0
libtpu: 0.0.40
codegen_flags: <defaults>
</compile_context>

<pallas_src>
import jax
import jax.numpy as jnp
from jax.experimental import pallas as pl
from jax.experimental.pallas import tpu as pltpu


_B_DEFAULT = 16  # images per grid step (must be a multiple of 16)


# ------------------------------ fused kernel --------------------------------
#
# Per grid step (one block of B images):
#   lhs1_ref: (48B, 300) bf16  conv1 im2col LHS, rows = (pool-tap, row-phase,
#                              Y, image), K = (i, j, col-phase, W)
#   m1_ref  : (300, 128) bf16  conv1 block-diagonal RHS, lanes = q*60+V*10+c
#                              (column v = 2V+q), lanes 120..127 are zero pad
#   b1p_ref : (1, 128)   f32   conv1 bias tiled over the packed lanes
#   m2_ref  : (1000, 80) bf16  conv2 block-diagonal RHS, K=(k, X, ci),
#                              lanes = x*20 + co
#   b2p_ref : (1, 80)    f32   conv2 bias tiled over the packed lanes
#   w3_ref  : (320, 50)  bf16  fc1 weight, rows permuted to (y, x*20 + d)
#   b3_ref  : (1, 50)    f32
#   w4_ref  : (50, 10)   bf16  fc2 weight (in, out)
#   b4_ref  : (1, 10)    f32
#   out_ref : (B, 10)    f32   log-probabilities for this block
# Scratch:
#   p1s_ref : (12B, 128) bf16  pooled conv1 output, rows = (rq*6+Y, image),
#                              lanes = q*60+V*10+c
#   lhs2_ref: (16B, 1000) bf16 conv2 im2col LHS, rows = (pool-tap, y, image)


def _net_fused_kernel(lhs1_ref, m1_ref, b1p_ref, m2_ref, b2p_ref,
                      w3_ref, b3_ref, w4_ref, b4_ref,
                      out_ref, p1s_ref, lhs2_ref):
    f32 = jnp.float32
    bf16 = jnp.bfloat16
    B = out_ref.shape[0]
    M1 = 12 * B        # rows per pooling tap in the conv1 GEMM output
    M2 = 4 * B         # rows per pooling tap in the conv2 GEMM output

    # --------- conv1 (5x5, 1->10): ONE GEMM, pool taps folded into M ---------
    y1 = jnp.dot(lhs1_ref[...], m1_ref[...],
                 preferred_element_type=f32)                     # (48B, 128)
    p1 = jnp.maximum(jnp.maximum(y1[0 * M1:1 * M1], y1[1 * M1:2 * M1]),
                     jnp.maximum(y1[2 * M1:3 * M1], y1[3 * M1:4 * M1]))
    p1 = jnp.maximum(p1 + b1p_ref[...], 0.0)                     # (12B, 128)
    p1s_ref[...] = p1.astype(bf16)       # single lane-dense 128-wide store

    # --------- conv2 LHS assembly: 100 static (4B, 40) slice copies ----------
    # lhs2[tap*4B + y*B + n, k*40 + X*10 + ci] = p1[n, 2y+a+i, 2X+b+j, ci]
    for t, (a, b) in enumerate([(0, 0), (0, 1), (1, 0), (1, 1)]):
        for i in range(5):
            rq, dr = (a + i) % 2, (a + i) // 2
            for j in range(5):
                q, dc = (b + j) % 2, (b + j) // 2
                k = 5 * i + j
                r0 = (rq * 6 + dr) * B
                c0 = q * 60 + dc * 10
                lhs2_ref[t * 4 * B:(t + 1) * 4 * B, 40 * k:40 * k + 40] = (
                    p1s_ref[r0:r0 + 4 * B, c0:c0 + 40])

    # --------- conv2 (5x5, 10->20): ONE GEMM, pool taps folded into M --------
    y2 = jnp.dot(lhs2_ref[...], m2_ref[...],
                 preferred_element_type=f32)                     # (16B, 80)
    p2 = jnp.maximum(jnp.maximum(y2[0 * M2:1 * M2], y2[1 * M2:2 * M2]),
                     jnp.maximum(y2[2 * M2:3 * M2], y2[3 * M2:4 * M2]))
    p2 = jnp.maximum(p2 + b2p_ref[...], 0.0)                     # (4B, 80)
    p2 = p2.astype(bf16)                 # rows = (y, image), lanes = x*20 + d

    # --------- fc1 + ReLU: contract (y, x, d) directly, no scratch -----------
    h = jnp.dot(p2[0:B], w3_ref[0:80], preferred_element_type=f32)
    h = h + jnp.dot(p2[B:2 * B], w3_ref[80:160], preferred_element_type=f32)
    h = h + jnp.dot(p2[2 * B:3 * B], w3_ref[160:240], preferred_element_type=f32)
    h = h + jnp.dot(p2[3 * B:4 * B], w3_ref[240:320], preferred_element_type=f32)
    h = jnp.maximum(h + b3_ref[...], 0.0)                        # (B, 50)

    # --------- fc2 + log_softmax ---------------------------------------------
    o = jnp.dot(h.astype(bf16), w4_ref[...],
                preferred_element_type=f32) + b4_ref[...]        # (B, 10)
    m = jnp.max(o, axis=-1, keepdims=True)
    z = o - m
    lse = jnp.log(jnp.sum(jnp.exp(z), axis=-1, keepdims=True))
    out_ref[...] = (z - lse).astype(out_ref.dtype)


# ------------------------------ parameters -----------------------------------

def init_params(key):
    """Deterministic synthetic parameters in PyTorch layouts."""
    ks = jax.random.split(key, 8)
    return {
        "conv1_w": 0.1 * jax.random.normal(ks[0], (10, 1, 5, 5), jnp.float32),
        "conv1_b": 0.1 * jax.random.normal(ks[1], (10,), jnp.float32),
        "conv2_w": 0.1 * jax.random.normal(ks[2], (20, 10, 5, 5), jnp.float32),
        "conv2_b": 0.1 * jax.random.normal(ks[3], (20,), jnp.float32),
        "fc1_w": 0.1 * jax.random.normal(ks[4], (50, 320), jnp.float32),
        "fc1_b": 0.1 * jax.random.normal(ks[5], (50,), jnp.float32),
        "fc2_w": 0.1 * jax.random.normal(ks[6], (10, 50), jnp.float32),
        "fc2_b": 0.1 * jax.random.normal(ks[7], (10,), jnp.float32),
    }


def prepare_kernel_params(p):
    """One-time transform of PyTorch-layout weights into GEMM-ready layouts."""
    f32 = jnp.float32
    bf16 = jnp.bfloat16

    # conv1 (10,1,5,5) -> block-diagonal RHS (300, 128); K = (k=5i+j, qp*6+W),
    # lanes = (q*6+V)*10 + c (column v = 2V+q), last 8 lanes zero pad.
    w1t = p["conv1_w"].reshape(10, 25).T.astype(f32)                  # [k, c]
    m1 = jnp.einsum("mp,kc->kmpc", jnp.eye(12, dtype=f32), w1t)       # (25,12,12,10)
    m1 = jnp.pad(m1.reshape(300, 120), ((0, 0), (0, 8))).astype(bf16)
    b1p = jnp.pad(jnp.tile(p["conv1_b"], 12), (0, 8)).reshape(1, 128).astype(f32)

    # conv2 (20,10,5,5) -> block-diagonal RHS (1000, 80); K = (k, X, ci),
    # lanes = x*20 + co.
    w2t = jnp.transpose(p["conv2_w"], (2, 3, 1, 0)).reshape(25, 10, 20)  # [k,ci,co]
    m2 = jnp.einsum("Xx,kcd->kXcxd", jnp.eye(4, dtype=f32), w2t)
    m2 = m2.reshape(1000, 80).astype(bf16)
    b2p = jnp.tile(p["conv2_b"], 4).reshape(1, 80).astype(f32)

    # fc1: PyTorch flatten feature f = d*16 + y*4 + x  ->  packed row y*80 + x*20 + d
    w3 = p["fc1_w"].T.reshape(20, 4, 4, 50)                            # [d, y, x, h]
    w3 = jnp.transpose(w3, (1, 2, 0, 3)).reshape(320, 50).astype(bf16)
    b3 = p["fc1_b"].reshape(1, 50).astype(f32)

    w4 = p["fc2_w"].T.astype(bf16)                                     # (50, 10)
    b4 = p["fc2_b"].reshape(1, 10).astype(f32)
    return dict(m1=m1, b1p=b1p, m2=m2, b2p=b2p, w3=w3, b3=b3, w4=w4, b4=b4)


# ------------------------ wrapper-side conv1 im2col ---------------------------

def _conv1_im2col(x_nchw, B):
    """(Npad,1,28,28) f32 -> (G*48*B, 300) bf16 conv1 GEMM LHS (input glue).

    Row order per block: (pool-tap (a,b), row-phase rq, Y, image), with the
    pooled output row u = 2Y + rq.  K order: (i, j, col-phase qp, W) with the
    image column = 4W + 2qp + b + j.
    """
    n_pad = x_nchw.shape[0]
    G = n_pad // B
    img = x_nchw[:, 0]                                           # (Npad, 28, 28)

    a_ = jnp.arange(2)[:, None, None]
    u_ = jnp.arange(12)[None, :, None]
    i_ = jnp.arange(5)[None, None, :]
    rows = 2 * u_ + a_ + i_                                      # (2, 12, 5)

    b_ = jnp.arange(2)[:, None, None, None]
    j_ = jnp.arange(5)[None, :, None, None]
    q_ = jnp.arange(2)[None, None, :, None]
    w_ = jnp.arange(6)[None, None, None, :]
    cols = 4 * w_ + 2 * q_ + b_ + j_                             # (2, 5, 2, 6)

    c = img[:, rows, :]                                          # (N,2,12,5,28)
    c = c[..., cols]                                             # (N,2,12,5,2,5,2,6)
    # split u -> (Y, rq), then reorder to [a, b, rq, Y, n, i, j, qp, W]
    c = c.reshape(n_pad, 2, 6, 2, 5, 2, 5, 2, 6)
    c = jnp.transpose(c, (1, 5, 3, 2, 0, 4, 6, 7, 8))
    # split n -> (G, B) and bring the grid-block axis to the front
    c = c.reshape(2, 2, 2, 6, G, B, 5, 5, 2, 6)
    c = jnp.transpose(c, (4, 0, 1, 2, 3, 5, 6, 7, 8, 9))
    return c.reshape(G * 48 * B, 300).astype(jnp.bfloat16)


# ------------------------------ forward pass ----------------------------------

def net_forward(kparams, x_nchw, block_b=_B_DEFAULT):
    """Forward pass. x_nchw: (N, 1, 28, 28) f32. Returns (N, 10) log-probs."""
    N = x_nchw.shape[0]
    assert x_nchw.shape[1:] == (1, 28, 28), "Net expects (N, 1, 28, 28) inputs"
    B = block_b
    assert B % 16 == 0, "block_b must be a multiple of 16 (bf16 sublane packing)"

    G = -(-N // B)
    n_pad = G * B
    if n_pad != N:   # ragged final block: zero-pad, slice off after the kernel
        x_nchw = jnp.pad(x_nchw, ((0, n_pad - N), (0, 0), (0, 0), (0, 0)))

    lhs1 = _conv1_im2col(x_nchw, B)                              # (G*48B, 300) bf16

    const = lambda g: (0, 0)
    kern = pl.pallas_call(
        _net_fused_kernel,
        out_shape=jax.ShapeDtypeStruct((n_pad, 10), jnp.float32),
        grid_spec=pltpu.PrefetchScalarGridSpec(
            num_scalar_prefetch=0,
            grid=(G,),
            in_specs=[
                pl.BlockSpec((48 * B, 300), lambda g: (g, 0)),   # conv1 im2col LHS
                pl.BlockSpec((300, 128), const),                 # m1  (VMEM-resident)
                pl.BlockSpec((1, 128), const),                   # b1p
                pl.BlockSpec((1000, 80), const),                 # m2
                pl.BlockSpec((1, 80), const),                    # b2p
                pl.BlockSpec((320, 50), const),                  # w3
                pl.BlockSpec((1, 50), const),                    # b3
                pl.BlockSpec((50, 10), const),                   # w4
                pl.BlockSpec((1, 10), const),                    # b4
            ],
            out_specs=pl.BlockSpec((B, 10), lambda g: (g, 0)),
            scratch_shapes=[
                pltpu.VMEM((12 * B, 128), jnp.bfloat16),         # pooled conv1 (p1)
                pltpu.VMEM((16 * B, 1000), jnp.bfloat16),        # conv2 im2col LHS
            ],
        ),
        compiler_params=pltpu.CompilerParams(
            dimension_semantics=("parallel",),
            vmem_limit_bytes=32 * 1024 * 1024,
        ),
    )
    out = kern(lhs1, kparams["m1"], kparams["b1p"], kparams["m2"], kparams["b2p"],
               kparams["w3"], kparams["b3"], kparams["w4"], kparams["b4"])
    return out[:N]


# --------------------------- pure-JAX reference -------------------------------

def net_reference(params, x_nchw):
    """Pure-JAX (no Pallas) reference matching the PyTorch module in eval mode."""
    x = jnp.transpose(x_nchw, (0, 2, 3, 1)).astype(jnp.float32)      # NHWC

    def conv_valid(x, w_oihw, bias):
        w = jnp.transpose(w_oihw, (2, 3, 1, 0))                      # (kh,kw,cin,cout)
        kh, kw, cin, cout = w.shape
        n, h, wdt, _ = x.shape
        oh, ow = h - kh + 1, wdt - kw + 1
        cols = jnp.stack([x[:, i:i + oh, j:j + ow, :]
                          for i in range(kh) for j in range(kw)], axis=3)
        cols = cols.reshape(n, oh, ow, kh * kw * cin)
        return jnp.einsum("nhwk,kc->nhwc", cols,
                          w.reshape(kh * kw * cin, cout)) + bias

    def pool2_relu(x):
        m = jnp.maximum(jnp.maximum(x[:, 0::2, 0::2, :], x[:, 0::2, 1::2, :]),
                        jnp.maximum(x[:, 1::2, 0::2, :], x[:, 1::2, 1::2, :]))
        return jnp.maximum(m, 0.0)

    y = pool2_relu(conv_valid(x, params["conv1_w"], params["conv1_b"]))
    y = pool2_relu(conv_valid(y, params["conv2_w"], params["conv2_b"]))
    y = jnp.transpose(y, (0, 3, 1, 2)).reshape(x.shape[0], 320)      # view(-1, 320)
    y = jnp.maximum(y @ params["fc1_w"].T + params["fc1_b"], 0.0)
    o = y @ params["fc2_w"].T + params["fc2_b"]
    return jax.nn.log_softmax(o, axis=-1)


# ----------------------------------- main -------------------------------------

if __name__ == "__main__":
    key = jax.random.PRNGKey(0)
    k_param, k_input = jax.random.split(key)

    params = init_params(k_param)               # PyTorch-layout parameters
    kparams = prepare_kernel_params(params)     # GEMM-ready layouts (done once)

    # MNIST-style input: batch=2, 1 channel, 28x28 (required by fc1's 320 = 20*4*4)
    x = jax.random.normal(k_input, (2, 1, 28, 28), jnp.float32)

    fwd = jax.jit(net_forward)
    logp = jax.block_until_ready(fwd(kparams, x))

    assert logp.shape == (2, 10)
    assert bool(jnp.all(jnp.isfinite(logp)))

    # Check against the pure-JAX reference (loose tol: bf16 MXU operands).
    ref = net_reference(params, x)
    max_err = float(jnp.max(jnp.abs(logp - ref)))
    assert max_err < 0.25, f"kernel deviates from reference: max|err| = {max_err}"

    print("KERNEL_OK")
</pallas_src>

<mosaic_0001>
module attributes {stable_mosaic.version = 11 : i64} {
  func.func @_net_fused_kernel(%arg0: i32, %arg1: memref<768x300xbf16, #tpu.memory_space<vmem>>, %arg2: memref<300x128xbf16, #tpu.memory_space<vmem>>, %arg3: memref<1x128xf32, #tpu.memory_space<vmem>>, %arg4: memref<1000x80xbf16, #tpu.memory_space<vmem>>, %arg5: memref<1x80xf32, #tpu.memory_space<vmem>>, %arg6: memref<320x50xbf16, #tpu.memory_space<vmem>>, %arg7: memref<1x50xf32, #tpu.memory_space<vmem>>, %arg8: memref<50x10xbf16, #tpu.memory_space<vmem>>, %arg9: memref<1x10xf32, #tpu.memory_space<vmem>>, %arg10: memref<16x10xf32, #tpu.memory_space<vmem>>, %arg11: memref<192x128xbf16, #tpu.memory_space<vmem>>, %arg12: memref<256x1000xbf16, #tpu.memory_space<vmem>>) attributes {dimension_semantics = [#tpu.dimension_semantics<parallel>], iteration_bounds = array<i64: 1>, scalar_prefetch = 0 : i64, scratch_operands = 2 : i64, tpu.core_type = #tpu.core_type<tc>, window_params = [{transform_indices = @transform_0, window_bounds = array<i64: 768, 300>}, {pipeline_mode = #tpu.pipeline_mode<synchronous>, transform_indices = @transform_1, window_bounds = array<i64: 300, 128>}, {pipeline_mode = #tpu.pipeline_mode<synchronous>, transform_indices = @transform_2, window_bounds = array<i64: 1, 128>}, {pipeline_mode = #tpu.pipeline_mode<synchronous>, transform_indices = @transform_3, window_bounds = array<i64: 1000, 80>}, {pipeline_mode = #tpu.pipeline_mode<synchronous>, transform_indices = @transform_4, window_bounds = array<i64: 1, 80>}, {pipeline_mode = #tpu.pipeline_mode<synchronous>, transform_indices = @transform_5, window_bounds = array<i64: 320, 50>}, {pipeline_mode = #tpu.pipeline_mode<synchronous>, transform_indices = @transform_6, window_bounds = array<i64: 1, 50>}, {pipeline_mode = #tpu.pipeline_mode<synchronous>, transform_indices = @transform_7, window_bounds = array<i64: 50, 10>}, {pipeline_mode = #tpu.pipeline_mode<synchronous>, transform_indices = @transform_8, window_bounds = array<i64: 1, 10>}, {transform_indices = @transform_9, window_bounds = array<i64: 16, 10>}]} {
    %c0 = arith.constant 0 : index
    %c0_0 = arith.constant 0 : index
    %0 = vector.load %arg1[%c0, %c0_0] : memref<768x300xbf16, #tpu.memory_space<vmem>>, vector<768x300xbf16>
    %c0_1 = arith.constant 0 : index
    %c0_2 = arith.constant 0 : index
    %1 = vector.load %arg2[%c0_1, %c0_2] : memref<300x128xbf16, #tpu.memory_space<vmem>>, vector<300x128xbf16>
    %cst = arith.constant dense<0.000000e+00> : vector<768x128xf32>
    %2 = tpu.matmul %0, %1, %cst {dimension_numbers = #tpu.dot_dimension_numbers<[1], [0], [0], [1], [0, 0, 1, 1], [], []>} : vector<768x300xbf16>, vector<300x128xbf16>, vector<768x128xf32> -> vector<768x128xf32>
    %3 = vector.extract_strided_slice %2 {offsets = [0, 0], sizes = [192, 128], strides = [1, 1]} : vector<768x128xf32> to vector<192x128xf32>
    %4 = vector.extract_strided_slice %2 {offsets = [192, 0], sizes = [192, 128], strides = [1, 1]} : vector<768x128xf32> to vector<192x128xf32>
    %5 = arith.maximumf %3, %4 : vector<192x128xf32>
    %6 = vector.extract_strided_slice %2 {offsets = [384, 0], sizes = [192, 128], strides = [1, 1]} : vector<768x128xf32> to vector<192x128xf32>
    %7 = vector.extract_strided_slice %2 {offsets = [576, 0], sizes = [192, 128], strides = [1, 1]} : vector<768x128xf32> to vector<192x128xf32>
    %8 = arith.maximumf %6, %7 : vector<192x128xf32>
    %9 = arith.maximumf %5, %8 : vector<192x128xf32>
    %c0_3 = arith.constant 0 : index
    %c0_4 = arith.constant 0 : index
    %10 = vector.load %arg3[%c0_3, %c0_4] : memref<1x128xf32, #tpu.memory_space<vmem>>, vector<1x128xf32>
    %11 = vector.broadcast %10 : vector<1x128xf32> to vector<192x128xf32>
    %12 = arith.addf %9, %11 : vector<192x128xf32>
    %cst_5 = arith.constant 0.000000e+00 : f32
    %13 = vector.broadcast %cst_5 : f32 to vector<192x128xf32>
    %14 = arith.maximumf %12, %13 : vector<192x128xf32>
    %15 = arith.truncf %14 : vector<192x128xf32> to vector<192x128xbf16>
    %c0_6 = arith.constant 0 : index
    %c0_7 = arith.constant 0 : index
    %16 = vector.load %arg11[%c0_6, %c0_7] : memref<192x128xbf16, #tpu.memory_space<vmem>>, vector<192x128xbf16>
    tpu.vector_store %arg11[%c0_6, %c0_7], %15 {strides = array<i32>} : memref<192x128xbf16, #tpu.memory_space<vmem>>, vector<192x128xbf16>,
    %c0_8 = arith.constant 0 : index
    %c0_9 = arith.constant 0 : index
    %17 = vector.load %arg11[%c0_8, %c0_9] : memref<192x128xbf16, #tpu.memory_space<vmem>>, vector<64x40xbf16>
    %c0_10 = arith.constant 0 : index
    %c0_11 = arith.constant 0 : index
    %18 = vector.load %arg12[%c0_10, %c0_11] : memref<256x1000xbf16, #tpu.memory_space<vmem>>, vector<64x40xbf16>
    tpu.vector_store %arg12[%c0_10, %c0_11], %17 {strides = array<i32>} : memref<256x1000xbf16, #tpu.memory_space<vmem>>, vector<64x40xbf16>,
    %c0_12 = arith.constant 0 : index
    %c60 = arith.constant 60 : index
    %19 = vector.load %arg11[%c0_12, %c60] : memref<192x128xbf16, #tpu.memory_space<vmem>>, vector<64x40xbf16>
    %c0_13 = arith.constant 0 : index
    %c40 = arith.constant 40 : index
    %20 = vector.load %arg12[%c0_13, %c40] : memref<256x1000xbf16, #tpu.memory_space<vmem>>, vector<64x40xbf16>
    tpu.vector_store %arg12[%c0_13, %c40], %19 {strides = array<i32>} : memref<256x1000xbf16, #tpu.memory_space<vmem>>, vector<64x40xbf16>,
    %c0_14 = arith.constant 0 : index
    %c10 = arith.constant 10 : index
    %21 = vector.load %arg11[%c0_14, %c10] : memref<192x128xbf16, #tpu.memory_space<vmem>>, vector<64x40xbf16>
    %c0_15 = arith.constant 0 : index
    %c80 = arith.constant 80 : index
    %22 = vector.load %arg12[%c0_15, %c80] : memref<256x1000xbf16, #tpu.memory_space<vmem>>, vector<64x40xbf16>
    tpu.vector_store %arg12[%c0_15, %c80], %21 {strides = array<i32>} : memref<256x1000xbf16, #tpu.memory_space<vmem>>, vector<64x40xbf16>,
    %c0_16 = arith.constant 0 : index
    %c70 = arith.constant 70 : index
    %23 = vector.load %arg11[%c0_16, %c70] : memref<192x128xbf16, #tpu.memory_space<vmem>>, vector<64x40xbf16>
    %c0_17 = arith.constant 0 : index
    %c120 = arith.constant 120 : index
    %24 = vector.load %arg12[%c0_17, %c120] : memref<256x1000xbf16, #tpu.memory_space<vmem>>, vector<64x40xbf16>
    tpu.vector_store %arg12[%c0_17, %c120], %23 {strides = array<i32>} : memref<256x1000xbf16, #tpu.memory_space<vmem>>, vector<64x40xbf16>,
    %c0_18 = arith.constant 0 : index
    %c20 = arith.constant 20 : index
    %25 = vector.load %arg11[%c0_18, %c20] : memref<192x128xbf16, #tpu.memory_space<vmem>>, vector<64x40xbf16>
    %c0_19 = arith.constant 0 : index
    %c160 = arith.constant 160 : index
    %26 = vector.load %arg12[%c0_19, %c160] : memref<256x1000xbf16, #tpu.memory_space<vmem>>, vector<64x40xbf16>
    tpu.vector_store %arg12[%c0_19, %c160], %25 {strides = array<i32>} : memref<256x1000xbf16, #tpu.memory_space<vmem>>, vector<64x40xbf16>,
    %c96 = arith.constant 96 : index
    %c0_20 = arith.constant 0 : index
    %27 = vector.load %arg11[%c96, %c0_20] : memref<192x128xbf16, #tpu.memory_space<vmem>>, vector<64x40xbf16>
    %c0_21 = arith.constant 0 : index
    %c200 = arith.constant 200 : index
    %28 = vector.load %arg12[%c0_21, %c200] : memref<256x1000xbf16, #tpu.memory_space<vmem>>, vector<64x40xbf16>
    tpu.vector_store %arg12[%c0_21, %c200], %27 {strides = array<i32>} : memref<256x1000xbf16, #tpu.memory_space<vmem>>, vector<64x40xbf16>,
    %c96_22 = arith.constant 96 : index
    %c60_23 = arith.constant 60 : index
    %29 = vector.load %arg11[%c96_22, %c60_23] : memref<192x128xbf16, #tpu.memory_space<vmem>>, vector<64x40xbf16>
    %c0_24 = arith.constant 0 : index
    %c240 = arith.constant 240 : index
    %30 = vector.load %arg12[%c0_24, %c240] : memref<256x1000xbf16, #tpu.memory_space<vmem>>, vector<64x40xbf16>
    tpu.vector_store %arg12[%c0_24, %c240], %29 {strides = array<i32>} : memref<256x1000xbf16, #tpu.memory_space<vmem>>, vector<64x40xbf16>,
    %c96_25 = arith.constant 96 : index
    %c10_26 = arith.constant 10 : index
    %31 = vector.load %arg11[%c96_25, %c10_26] : memref<192x128xbf16, #tpu.memory_space<vmem>>, vector<64x40xbf16>
    %c0_27 = arith.constant 0 : index
    %c280 = arith.constant 280 : index
    %32 = vector.load %arg12[%c0_27, %c280] : memref<256x1000xbf16, #tpu.memory_space<vmem>>, vector<64x40xbf16>
    tpu.vector_store %arg12[%c0_27, %c280], %31 {strides = array<i32>} : memref<256x1000xbf16, #tpu.memory_space<vmem>>, vector<64x40xbf16>,
    %c96_28 = arith.constant 96 : index
    %c70_29 = arith.constant 70 : index
    %33 = vector.load %arg11[%c96_28, %c70_29] : memref<192x128xbf16, #tpu.memory_space<vmem>>, vector<64x40xbf16>
    %c0_30 = arith.constant 0 : index
    %c320 = arith.constant 320 : index
    %34 = vector.load %arg12[%c0_30, %c320] : memref<256x1000xbf16, #tpu.memory_space<vmem>>, vector<64x40xbf16>
    tpu.vector_store %arg12[%c0_30, %c320], %33 {strides = array<i32>} : memref<256x1000xbf16, #tpu.memory_space<vmem>>, vector<64x40xbf16>,
    %c96_31 = arith.constant 96 : index
    %c20_32 = arith.constant 20 : index
    %35 = vector.load %arg11[%c96_31, %c20_32] : memref<192x128xbf16, #tpu.memory_space<vmem>>, vector<64x40xbf16>
    %c0_33 = arith.constant 0 : index
    %c360 = arith.constant 360 : index
    %36 = vector.load %arg12[%c0_33, %c360] : memref<256x1000xbf16, #tpu.memory_space<vmem>>, vector<64x40xbf16>
    tpu.vector_store %arg12[%c0_33, %c360], %35 {strides = array<i32>} : memref<256x1000xbf16, #tpu.memory_space<vmem>>, vector<64x40xbf16>,
    %c16 = arith.constant 16 : index
    %c0_34 = arith.constant 0 : index
    %37 = vector.load %arg11[%c16, %c0_34] : memref<192x128xbf16, #tpu.memory_space<vmem>>, vector<64x40xbf16>
    %c0_35 = arith.constant 0 : index
    %c400 = arith.constant 400 : index
    %38 = vector.load %arg12[%c0_35, %c400] : memref<256x1000xbf16, #tpu.memory_space<vmem>>, vector<64x40xbf16>
    tpu.vector_store %arg12[%c0_35, %c400], %37 {strides = array<i32>} : memref<256x1000xbf16, #tpu.memory_space<vmem>>, vector<64x40xbf16>,
    %c16_36 = arith.constant 16 : index
    %c60_37 = arith.constant 60 : index
    %39 = vector.load %arg11[%c16_36, %c60_37] : memref<192x128xbf16, #tpu.memory_space<vmem>>, vector<64x40xbf16>
    %c0_38 = arith.constant 0 : index
    %c440 = arith.constant 440 : index
    %40 = vector.load %arg12[%c0_38, %c440] : memref<256x1000xbf16, #tpu.memory_space<vmem>>, vector<64x40xbf16>
    tpu.vector_store %arg12[%c0_38, %c440], %39 {strides = array<i32>} : memref<256x1000xbf16, #tpu.memory_space<vmem>>, vector<64x40xbf16>,
    %c16_39 = arith.constant 16 : index
    %c10_40 = arith.constant 10 : index
    %41 = vector.load %arg11[%c16_39, %c10_40] : memref<192x128xbf16, #tpu.memory_space<vmem>>, vector<64x40xbf16>
    %c0_41 = arith.constant 0 : index
    %c480 = arith.constant 480 : index
    %42 = vector.load %arg12[%c0_41, %c480] : memref<256x1000xbf16, #tpu.memory_space<vmem>>, vector<64x40xbf16>
    tpu.vector_store %arg12[%c0_41, %c480], %41 {strides = array<i32>} : memref<256x1000xbf16, #tpu.memory_space<vmem>>, vector<64x40xbf16>,
    %c16_42 = arith.constant 16 : index
    %c70_43 = arith.constant 70 : index
    %43 = vector.load %arg11[%c16_42, %c70_43] : memref<192x128xbf16, #tpu.memory_space<vmem>>, vector<64x40xbf16>
    %c0_44 = arith.constant 0 : index
    %c520 = arith.constant 520 : index
    %44 = vector.load %arg12[%c0_44, %c520] : memref<256x1000xbf16, #tpu.memory_space<vmem>>, vector<64x40xbf16>
    tpu.vector_store %arg12[%c0_44, %c520], %43 {strides = array<i32>} : memref<256x1000xbf16, #tpu.memory_space<vmem>>, vector<64x40xbf16>,
    %c16_45 = arith.constant 16 : index
    %c20_46 = arith.constant 20 : index
    %45 = vector.load %arg11[%c16_45, %c20_46] : memref<192x128xbf16, #tpu.memory_space<vmem>>, vector<64x40xbf16>
    %c0_47 = arith.constant 0 : index
    %c560 = arith.constant 560 : index
    %46 = vector.load %arg12[%c0_47, %c560] : memref<256x1000xbf16, #tpu.memory_space<vmem>>, vector<64x40xbf16>
    tpu.vector_store %arg12[%c0_47, %c560], %45 {strides = array<i32>} : memref<256x1000xbf16, #tpu.memory_space<vmem>>, vector<64x40xbf16>,
    %c112 = arith.constant 112 : index
    %c0_48 = arith.constant 0 : index
    %47 = vector.load %arg11[%c112, %c0_48] : memref<192x128xbf16, #tpu.memory_space<vmem>>, vector<64x40xbf16>
    %c0_49 = arith.constant 0 : index
    %c600 = arith.constant 600 : index
    %48 = vector.load %arg12[%c0_49, %c600] : memref<256x1000xbf16, #tpu.memory_space<vmem>>, vector<64x40xbf16>
    tpu.vector_store %arg12[%c0_49, %c600], %47 {strides = array<i32>} : memref<256x1000xbf16, #tpu.memory_space<vmem>>, vector<64x40xbf16>,
    %c112_50 = arith.constant 112 : index
    %c60_51 = arith.constant 60 : index
    %49 = vector.load %arg11[%c112_50, %c60_51] : memref<192x128xbf16, #tpu.memory_space<vmem>>, vector<64x40xbf16>
    %c0_52 = arith.constant 0 : index
    %c640 = arith.constant 640 : index
    %50 = vector.load %arg12[%c0_52, %c640] : memref<256x1000xbf16, #tpu.memory_space<vmem>>, vector<64x40xbf16>
    tpu.vector_store %arg12[%c0_52, %c640], %49 {strides = array<i32>} : memref<256x1000xbf16, #tpu.memory_space<vmem>>, vector<64x40xbf16>,
    %c112_53 = arith.constant 112 : index
    %c10_54 = arith.constant 10 : index
    %51 = vector.load %arg11[%c112_53, %c10_54] : memref<192x128xbf16, #tpu.memory_space<vmem>>, vector<64x40xbf16>
    %c0_55 = arith.constant 0 : index
    %c680 = arith.constant 680 : index
    %52 = vector.load %arg12[%c0_55, %c680] : memref<256x1000xbf16, #tpu.memory_space<vmem>>, vector<64x40xbf16>
    tpu.vector_store %arg12[%c0_55, %c680], %51 {strides = array<i32>} : memref<256x1000xbf16, #tpu.memory_space<vmem>>, vector<64x40xbf16>,
    %c112_56 = arith.constant 112 : index
    %c70_57 = arith.constant 70 : index
    %53 = vector.load %arg11[%c112_56, %c70_57] : memref<192x128xbf16, #tpu.memory_space<vmem>>, vector<64x40xbf16>
    %c0_58 = arith.constant 0 : index
    %c720 = arith.constant 720 : index
    %54 = vector.load %arg12[%c0_58, %c720] : memref<256x1000xbf16, #tpu.memory_space<vmem>>, vector<64x40xbf16>
    tpu.vector_store %arg12[%c0_58, %c720], %53 {strides = array<i32>} : memref<256x1000xbf16, #tpu.memory_space<vmem>>, vector<64x40xbf16>,
    %c112_59 = arith.constant 112 : index
    %c20_60 = arith.constant 20 : index
    %55 = vector.load %arg11[%c112_59, %c20_60] : memref<192x128xbf16, #tpu.memory_space<vmem>>, vector<64x40xbf16>
    %c0_61 = arith.constant 0 : index
    %c760 = arith.constant 760 : index
    %56 = vector.load %arg12[%c0_61, %c760] : memref<256x1000xbf16, #tpu.memory_space<vmem>>, vector<64x40xbf16>
    tpu.vector_store %arg12[%c0_61, %c760], %55 {strides = array<i32>} : memref<256x1000xbf16, #tpu.memory_space<vmem>>, vector<64x40xbf16>,
    %c32 = arith.constant 32 : index
    %c0_62 = arith.constant 0 : index
    %57 = vector.load %arg11[%c32, %c0_62] : memref<192x128xbf16, #tpu.memory_space<vmem>>, vector<64x40xbf16>
    %c0_63 = arith.constant 0 : index
    %c800 = arith.constant 800 : index
    %58 = vector.load %arg12[%c0_63, %c800] : memref<256x1000xbf16, #tpu.memory_space<vmem>>, vector<64x40xbf16>
    tpu.vector_store %arg12[%c0_63, %c800], %57 {strides = array<i32>} : memref<256x1000xbf16, #tpu.memory_space<vmem>>, vector<64x40xbf16>,
    %c32_64 = arith.constant 32 : index
    %c60_65 = arith.constant 60 : index
    %59 = vector.load %arg11[%c32_64, %c60_65] : memref<192x128xbf16, #tpu.memory_space<vmem>>, vector<64x40xbf16>
    %c0_66 = arith.constant 0 : index
    %c840 = arith.constant 840 : index
    %60 = vector.load %arg12[%c0_66, %c840] : memref<256x1000xbf16, #tpu.memory_space<vmem>>, vector<64x40xbf16>
    tpu.vector_store %arg12[%c0_66, %c840], %59 {strides = array<i32>} : memref<256x1000xbf16, #tpu.memory_space<vmem>>, vector<64x40xbf16>,
    %c32_67 = arith.constant 32 : index
    %c10_68 = arith.constant 10 : index
    %61 = vector.load %arg11[%c32_67, %c10_68] : memref<192x128xbf16, #tpu.memory_space<vmem>>, vector<64x40xbf16>
    %c0_69 = arith.constant 0 : index
    %c880 = arith.constant 880 : index
    %62 = vector.load %arg12[%c0_69, %c880] : memref<256x1000xbf16, #tpu.memory_space<vmem>>, vector<64x40xbf16>
    tpu.vector_store %arg12[%c0_69, %c880], %61 {strides = array<i32>} : memref<256x1000xbf16, #tpu.memory_space<vmem>>, vector<64x40xbf16>,
    %c32_70 = arith.constant 32 : index
    %c70_71 = arith.constant 70 : index
    %63 = vector.load %arg11[%c32_70, %c70_71] : memref<192x128xbf16, #tpu.memory_space<vmem>>, vector<64x40xbf16>
    %c0_72 = arith.constant 0 : index
    %c920 = arith.constant 920 : index
    %64 = vector.load %arg12[%c0_72, %c920] : memref<256x1000xbf16, #tpu.memory_space<vmem>>, vector<64x40xbf16>
    tpu.vector_store %arg12[%c0_72, %c920], %63 {strides = array<i32>} : memref<256x1000xbf16, #tpu.memory_space<vmem>>, vector<64x40xbf16>,
    %c32_73 = arith.constant 32 : index
    %c20_74 = arith.constant 20 : index
    %65 = vector.load %arg11[%c32_73, %c20_74] : memref<192x128xbf16, #tpu.memory_space<vmem>>, vector<64x40xbf16>
    %c0_75 = arith.constant 0 : index
    %c960 = arith.constant 960 : index
    %66 = vector.load %arg12[%c0_75, %c960] : memref<256x1000xbf16, #tpu.memory_space<vmem>>, vector<64x40xbf16>
    tpu.vector_store %arg12[%c0_75, %c960], %65 {strides = array<i32>} : memref<256x1000xbf16, #tpu.memory_space<vmem>>, vector<64x40xbf16>,
    %c0_76 = arith.constant 0 : index
    %c60_77 = arith.constant 60 : index
    %67 = vector.load %arg11[%c0_76, %c60_77] : memref<192x128xbf16, #tpu.memory_space<vmem>>, vector<64x40xbf16>
    %c64 = arith.constant 64 : index
    %c0_78 = arith.constant 0 : index
    %68 = vector.load %arg12[%c64, %c0_78] : memref<256x1000xbf16, #tpu.memory_space<vmem>>, vector<64x40xbf16>
    tpu.vector_store %arg12[%c64, %c0_78], %67 {strides = array<i32>} : memref<256x1000xbf16, #tpu.memory_space<vmem>>, vector<64x40xbf16>,
    %c0_79 = arith.constant 0 : index
    %c10_80 = arith.constant 10 : index
    %69 = vector.load %arg11[%c0_79, %c10_80] : memref<192x128xbf16, #tpu.memory_space<vmem>>, vector<64x40xbf16>
    %c64_81 = arith.constant 64 : index
    %c40_82 = arith.constant 40 : index
    %70 = vector.load %arg12[%c64_81, %c40_82] : memref<256x1000xbf16, #tpu.memory_space<vmem>>, vector<64x40xbf16>
    tpu.vector_store %arg12[%c64_81, %c40_82], %69 {strides = array<i32>} : memref<256x1000xbf16, #tpu.memory_space<vmem>>, vector<64x40xbf16>,
    %c0_83 = arith.constant 0 : index
    %c70_84 = arith.constant 70 : index
    %71 = vector.load %arg11[%c0_83, %c70_84] : memref<192x128xbf16, #tpu.memory_space<vmem>>, vector<64x40xbf16>
    %c64_85 = arith.constant 64 : index
    %c80_86 = arith.constant 80 : index
    %72 = vector.load %arg12[%c64_85, %c80_86] : memref<256x1000xbf16, #tpu.memory_space<vmem>>, vector<64x40xbf16>
    tpu.vector_store %arg12[%c64_85, %c80_86], %71 {strides = array<i32>} : memref<256x1000xbf16, #tpu.memory_space<vmem>>, vector<64x40xbf16>,
    %c0_87 = arith.constant 0 : index
    %c20_88 = arith.constant 20 : index
    %73 = vector.load %arg11[%c0_87, %c20_88] : memref<192x128xbf16, #tpu.memory_space<vmem>>, vector<64x40xbf16>
    %c64_89 = arith.constant 64 : index
    %c120_90 = arith.constant 120 : index
    %74 = vector.load %arg12[%c64_89, %c120_90] : memref<256x1000xbf16, #tpu.memory_space<vmem>>, vector<64x40xbf16>
    tpu.vector_store %arg12[%c64_89, %c120_90], %73 {strides = array<i32>} : memref<256x1000xbf16, #tpu.memory_space<vmem>>, vector<64x40xbf16>,
    %c0_91 = arith.constant 0 : index
    %c80_92 = arith.constant 80 : index
    %75 = vector.load %arg11[%c0_91, %c80_92] : memref<192x128xbf16, #tpu.memory_space<vmem>>, vector<64x40xbf16>
    %c64_93 = arith.constant 64 : index
    %c160_94 = arith.constant 160 : index
    %76 = vector.load %arg12[%c64_93, %c160_94] : memref<256x1000xbf16, #tpu.memory_space<vmem>>, vector<64x40xbf16>
    tpu.vector_store %arg12[%c64_93, %c160_94], %75 {strides = array<i32>} : memref<256x1000xbf16, #tpu.memory_space<vmem>>, vector<64x40xbf16>,
    %c96_95 = arith.constant 96 : index
    %c60_96 = arith.constant 60 : index
    %77 = vector.load %arg11[%c96_95, %c60_96] : memref<192x128xbf16, #tpu.memory_space<vmem>>, vector<64x40xbf16>
    %c64_97 = arith.constant 64 : index
    %c200_98 = arith.constant 200 : index
    %78 = vector.load %arg12[%c64_97, %c200_98] : memref<256x1000xbf16, #tpu.memory_space<vmem>>, vector<64x40xbf16>
    tpu.vector_store %arg12[%c64_97, %c200_98], %77 {strides = array<i32>} : memref<256x1000xbf16, #tpu.memory_space<vmem>>, vector<64x40xbf16>,
    %c96_99 = arith.constant 96 : index
    %c10_100 = arith.constant 10 : index
    %79 = vector.load %arg11[%c96_99, %c10_100] : memref<192x128xbf16, #tpu.memory_space<vmem>>, vector<64x40xbf16>
    %c64_101 = arith.constant 64 : index
    %c240_102 = arith.constant 240 : index
    %80 = vector.load %arg12[%c64_101, %c240_102] : memref<256x1000xbf16, #tpu.memory_space<vmem>>, vector<64x40xbf16>
    tpu.vector_store %arg12[%c64_101, %c240_102], %79 {strides = array<i32>} : memref<256x1000xbf16, #tpu.memory_space<vmem>>, vector<64x40xbf16>,
    %c96_103 = arith.constant 96 : index
    %c70_104 = arith.constant 70 : index
    %81 = vector.load %arg11[%c96_103, %c70_104] : memref<192x128xbf16, #tpu.memory_space<vmem>>, vector<64x40xbf16>
    %c64_105 = arith.constant 64 : index
    %c280_106 = arith.constant 280 : index
    %82 = vector.load %arg12[%c64_105, %c280_106] : memref<256x1000xbf16, #tpu.memory_space<vmem>>, vector<64x40xbf16>
    tpu.vector_store %arg12[%c64_105, %c280_106], %81 {strides = array<i32>} : memref<256x1000xbf16, #tpu.memory_space<vmem>>, vector<64x40xbf16>,
    %c96_107 = arith.constant 96 : index
    %c20_108 = arith.constant 20 : index
    %83 = vector.load %arg11[%c96_107, %c20_108] : memref<192x128xbf16, #tpu.memory_space<vmem>>, vector<64x40xbf16>
    %c64_109 = arith.constant 64 : index
    %c320_110 = arith.constant 320 : index
    %84 = vector.load %arg12[%c64_109, %c320_110] : memref<256x1000xbf16, #tpu.memory_space<vmem>>, vector<64x40xbf16>
    tpu.vector_store %arg12[%c64_109, %c320_110], %83 {strides = array<i32>} : memref<256x1000xbf16, #tpu.memory_space<vmem>>, vector<64x40xbf16>,
    %c96_111 = arith.constant 96 : index
    %c80_112 = arith.constant 80 : index
    %85 = vector.load %arg11[%c96_111, %c80_112] : memref<192x128xbf16, #tpu.memory_space<vmem>>, vector<64x40xbf16>
    %c64_113 = arith.constant 64 : index
    %c360_114 = arith.constant 360 : index
    %86 = vector.load %arg12[%c64_113, %c360_114] : memref<256x1000xbf16, #tpu.memory_space<vmem>>, vector<64x40xbf16>
    tpu.vector_store %arg12[%c64_113, %c360_114], %85 {strides = array<i32>} : memref<256x1000xbf16, #tpu.memory_space<vmem>>, vector<64x40xbf16>,
    %c16_115 = arith.constant 16 : index
    %c60_116 = arith.constant 60 : index
    %87 = vector.load %arg11[%c16_115, %c60_116] : memref<192x128xbf16, #tpu.memory_space<vmem>>, vector<64x40xbf16>
    %c64_117 = arith.constant 64 : index
    %c400_118 = arith.constant 400 : index
    %88 = vector.load %arg12[%c64_117, %c400_118] : memref<256x1000xbf16, #tpu.memory_space<vmem>>, vector<64x40xbf16>
    tpu.vector_store %arg12[%c64_117, %c400_118], %87 {strides = array<i32>} : memref<256x1000xbf16, #tpu.memory_space<vmem>>, vector<64x40xbf16>,
    %c16_119 = arith.constant 16 : index
    %c10_120 = arith.constant 10 : index
    %89 = vector.load %arg11[%c16_119, %c10_120] : memref<192x128xbf16, #tpu.memory_space<vmem>>, vector<64x40xbf16>
    %c64_121 = arith.constant 64 : index
    %c440_122 = arith.constant 440 : index
    %90 = vector.load %arg12[%c64_121, %c440_122] : memref<256x1000xbf16, #tpu.memory_space<vmem>>, vector<64x40xbf16>
    tpu.vector_store %arg12[%c64_121, %c440_122], %89 {strides = array<i32>} : memref<256x1000xbf16, #tpu.memory_space<vmem>>, vector<64x40xbf16>,
    %c16_123 = arith.constant 16 : index
    %c70_124 = arith.constant 70 : index
    %91 = vector.load %arg11[%c16_123, %c70_124] : memref<192x128xbf16, #tpu.memory_space<vmem>>, vector<64x40xbf16>
    %c64_125 = arith.constant 64 : index
    %c480_126 = arith.constant 480 : index
    %92 = vector.load %arg12[%c64_125, %c480_126] : memref<256x1000xbf16, #tpu.memory_space<vmem>>, vector<64x40xbf16>
    tpu.vector_store %arg12[%c64_125, %c480_126], %91 {strides = array<i32>} : memref<256x1000xbf16, #tpu.memory_space<vmem>>, vector<64x40xbf16>,
    %c16_127 = arith.constant 16 : index
    %c20_128 = arith.constant 20 : index
    %93 = vector.load %arg11[%c16_127, %c20_128] : memref<192x128xbf16, #tpu.memory_space<vmem>>, vector<64x40xbf16>
    %c64_129 = arith.constant 64 : index
    %c520_130 = arith.constant 520 : index
    %94 = vector.load %arg12[%c64_129, %c520_130] : memref<256x1000xbf16, #tpu.memory_space<vmem>>, vector<64x40xbf16>
    tpu.vector_store %arg12[%c64_129, %c520_130], %93 {strides = array<i32>} : memref<256x1000xbf16, #tpu.memory_space<vmem>>, vector<64x40xbf16>,
    %c16_131 = arith.constant 16 : index
    %c80_132 = arith.constant 80 : index
    %95 = vector.load %arg11[%c16_131, %c80_132] : memref<192x128xbf16, #tpu.memory_space<vmem>>, vector<64x40xbf16>
    %c64_133 = arith.constant 64 : index
    %c560_134 = arith.constant 560 : index
    %96 = vector.load %arg12[%c64_133, %c560_134] : memref<256x1000xbf16, #tpu.memory_space<vmem>>, vector<64x40xbf16>
    tpu.vector_store %arg12[%c64_133, %c560_134], %95 {strides = array<i32>} : memref<256x1000xbf16, #tpu.memory_space<vmem>>, vector<64x40xbf16>,
    %c112_135 = arith.constant 112 : index
    %c60_136 = arith.constant 60 : index
    %97 = vector.load %arg11[%c112_135, %c60_136] : memref<192x128xbf16, #tpu.memory_space<vmem>>, vector<64x40xbf16>
    %c64_137 = arith.constant 64 : index
    %c600_138 = arith.constant 600 : index
    %98 = vector.load %arg12[%c64_137, %c600_138] : memref<256x1000xbf16, #tpu.memory_space<vmem>>, vector<64x40xbf16>
    tpu.vector_store %arg12[%c64_137, %c600_138], %97 {strides = array<i32>} : memref<256x1000xbf16, #tpu.memory_space<vmem>>, vector<64x40xbf16>,
    %c112_139 = arith.constant 112 : index
    %c10_140 = arith.constant 10 : index
    %99 = vector.load %arg11[%c112_139, %c10_140] : memref<192x128xbf16, #tpu.memory_space<vmem>>, vector<64x40xbf16>
    %c64_141 = arith.constant 64 : index
    %c640_142 = arith.constant 640 : index
    %100 = vector.load %arg12[%c64_141, %c640_142] : memref<256x1000xbf16, #tpu.memory_space<vmem>>, vector<64x40xbf16>
    tpu.vector_store %arg12[%c64_141, %c640_142], %99 {strides = array<i32>} : memref<256x1000xbf16, #tpu.memory_space<vmem>>, vector<64x40xbf16>,
    %c112_143 = arith.constant 112 : index
    %c70_144 = arith.constant 70 : index
    %101 = vector.load %arg11[%c112_143, %c70_144] : memref<192x128xbf16, #tpu.memory_space<vmem>>, vector<64x40xbf16>
    %c64_145 = arith.constant 64 : index
    %c680_146 = arith.constant 680 : index
    %102 = vector.load %arg12[%c64_145, %c680_146] : memref<256x1000xbf16, #tpu.memory_space<vmem>>, vector<64x40xbf16>
    tpu.vector_store %arg12[%c64_145, %c680_146], %101 {strides = array<i32>} : memref<256x1000xbf16, #tpu.memory_space<vmem>>, vector<64x40xbf16>,
    %c112_147 = arith.constant 112 : index
    %c20_148 = arith.constant 20 : index
    %103 = vector.load %arg11[%c112_147, %c20_148] : memref<192x128xbf16, #tpu.memory_space<vmem>>, vector<64x40xbf16>
    %c64_149 = arith.constant 64 : index
    %c720_150 = arith.constant 720 : index
    %104 = vector.load %arg12[%c64_149, %c720_150] : memref<256x1000xbf16, #tpu.memory_space<vmem>>, vector<64x40xbf16>
    tpu.vector_store %arg12[%c64_149, %c720_150], %103 {strides = array<i32>} : memref<256x1000xbf16, #tpu.memory_space<vmem>>, vector<64x40xbf16>,
    %c112_151 = arith.constant 112 : index
    %c80_152 = arith.constant 80 : index
    %105 = vector.load %arg11[%c112_151, %c80_152] : memref<192x128xbf16, #tpu.memory_space<vmem>>, vector<64x40xbf16>
    %c64_153 = arith.constant 64 : index
    %c760_154 = arith.constant 760 : index
    %106 = vector.load %arg12[%c64_153, %c760_154] : memref<256x1000xbf16, #tpu.memory_space<vmem>>, vector<64x40xbf16>
    tpu.vector_store %arg12[%c64_153, %c760_154], %105 {strides = array<i32>} : memref<256x1000xbf16, #tpu.memory_space<vmem>>, vector<64x40xbf16>,
    %c32_155 = arith.constant 32 : index
    %c60_156 = arith.constant 60 : index
    %107 = vector.load %arg11[%c32_155, %c60_156] : memref<192x128xbf16, #tpu.memory_space<vmem>>, vector<64x40xbf16>
    %c64_157 = arith.constant 64 : index
    %c800_158 = arith.constant 800 : index
    %108 = vector.load %arg12[%c64_157, %c800_158] : memref<256x1000xbf16, #tpu.memory_space<vmem>>, vector<64x40xbf16>
    tpu.vector_store %arg12[%c64_157, %c800_158], %107 {strides = array<i32>} : memref<256x1000xbf16, #tpu.memory_space<vmem>>, vector<64x40xbf16>,
    %c32_159 = arith.constant 32 : index
    %c10_160 = arith.constant 10 : index
    %109 = vector.load %arg11[%c32_159, %c10_160] : memref<192x128xbf16, #tpu.memory_space<vmem>>, vector<64x40xbf16>
    %c64_161 = arith.constant 64 : index
    %c840_162 = arith.constant 840 : index
    %110 = vector.load %arg12[%c64_161, %c840_162] : memref<256x1000xbf16, #tpu.memory_space<vmem>>, vector<64x40xbf16>
    tpu.vector_store %arg12[%c64_161, %c840_162], %109 {strides = array<i32>} : memref<256x1000xbf16, #tpu.memory_space<vmem>>, vector<64x40xbf16>,
    %c32_163 = arith.constant 32 : index
    %c70_164 = arith.constant 70 : index
    %111 = vector.load %arg11[%c32_163, %c70_164] : memref<192x128xbf16, #tpu.memory_space<vmem>>, vector<64x40xbf16>
    %c64_165 = arith.constant 64 : index
    %c880_166 = arith.constant 880 : index
    %112 = vector.load %arg12[%c64_165, %c880_166] : memref<256x1000xbf16, #tpu.memory_space<vmem>>, vector<64x40xbf16>
    tpu.vector_store %arg12[%c64_165, %c880_166], %111 {strides = array<i32>} : memref<256x1000xbf16, #tpu.memory_space<vmem>>, vector<64x40xbf16>,
    %c32_167 = arith.constant 32 : index
    %c20_168 = arith.constant 20 : index
    %113 = vector.load %arg11[%c32_167, %c20_168] : memref<192x128xbf16, #tpu.memory_space<vmem>>, vector<64x40xbf16>
    %c64_169 = arith.constant 64 : index
    %c920_170 = arith.constant 920 : index
    %114 = vector.load %arg12[%c64_169, %c920_170] : memref<256x1000xbf16, #tpu.memory_space<vmem>>, vector<64x40xbf16>
    tpu.vector_store %arg12[%c64_169, %c920_170], %113 {strides = array<i32>} : memref<256x1000xbf16, #tpu.memory_space<vmem>>, vector<64x40xbf16>,
    %c32_171 = arith.constant 32 : index
    %c80_172 = arith.constant 80 : index
    %115 = vector.load %arg11[%c32_171, %c80_172] : memref<192x128xbf16, #tpu.memory_space<vmem>>, vector<64x40xbf16>
    %c64_173 = arith.constant 64 : index
    %c960_174 = arith.constant 960 : index
    %116 = vector.load %arg12[%c64_173, %c960_174] : memref<256x1000xbf16, #tpu.memory_space<vmem>>, vector<64x40xbf16>
    tpu.vector_store %arg12[%c64_173, %c960_174], %115 {strides = array<i32>} : memref<256x1000xbf16, #tpu.memory_space<vmem>>, vector<64x40xbf16>,
    %c96_175 = arith.constant 96 : index
    %c0_176 = arith.constant 0 : index
    %117 = vector.load %arg11[%c96_175, %c0_176] : memref<192x128xbf16, #tpu.memory_space<vmem>>, vector<64x40xbf16>
    %c128 = arith.constant 128 : index
    %c0_177 = arith.constant 0 : index
    %118 = vector.load %arg12[%c128, %c0_177] : memref<256x1000xbf16, #tpu.memory_space<vmem>>, vector<64x40xbf16>
    tpu.vector_store %arg12[%c128, %c0_177], %117 {strides = array<i32>} : memref<256x1000xbf16, #tpu.memory_space<vmem>>, vector<64x40xbf16>,
    %c96_178 = arith.constant 96 : index
    %c60_179 = arith.constant 60 : index
    %119 = vector.load %arg11[%c96_178, %c60_179] : memref<192x128xbf16, #tpu.memory_space<vmem>>, vector<64x40xbf16>
    %c128_180 = arith.constant 128 : index
    %c40_181 = arith.constant 40 : index
    %120 = vector.load %arg12[%c128_180, %c40_181] : memref<256x1000xbf16, #tpu.memory_space<vmem>>, vector<64x40xbf16>
    tpu.vector_store %arg12[%c128_180, %c40_181], %119 {strides = array<i32>} : memref<256x1000xbf16, #tpu.memory_space<vmem>>, vector<64x40xbf16>,
    %c96_182 = arith.constant 96 : index
    %c10_183 = arith.constant 10 : index
    %121 = vector.load %arg11[%c96_182, %c10_183] : memref<192x128xbf16, #tpu.memory_space<vmem>>, vector<64x40xbf16>
    %c128_184 = arith.constant 128 : index
    %c80_185 = arith.constant 80 : index
    %122 = vector.load %arg12[%c128_184, %c80_185] : memref<256x1000xbf16, #tpu.memory_space<vmem>>, vector<64x40xbf16>
    tpu.vector_store %arg12[%c128_184, %c80_185], %121 {strides = array<i32>} : memref<256x1000xbf16, #tpu.memory_space<vmem>>, vector<64x40xbf16>,
    %c96_186 = arith.constant 96 : index
    %c70_187 = arith.constant 70 : index
    %123 = vector.load %arg11[%c96_186, %c70_187] : memref<192x128xbf16, #tpu.memory_space<vmem>>, vector<64x40xbf16>
    %c128_188 = arith.constant 128 : index
    %c120_189 = arith.constant 120 : index
    %124 = vector.load %arg12[%c128_188, %c120_189] : memref<256x1000xbf16, #tpu.memory_space<vmem>>, vector<64x40xbf16>
    tpu.vector_store %arg12[%c128_188, %c120_189], %123 {strides = array<i32>} : memref<256x1000xbf16, #tpu.memory_space<vmem>>, vector<64x40xbf16>,
    %c96_190 = arith.constant 96 : index
    %c20_191 = arith.constant 20 : index
    %125 = vector.load %arg11[%c96_190, %c20_191] : memref<192x128xbf16, #tpu.memory_space<vmem>>, vector<64x40xbf16>
    %c128_192 = arith.constant 128 : index
    %c160_193 = arith.constant 160 : index
    %126 = vector.load %arg12[%c128_192, %c160_193] : memref<256x1000xbf16, #tpu.memory_space<vmem>>, vector<64x40xbf16>
    tpu.vector_store %arg12[%c128_192, %c160_193], %125 {strides = array<i32>} : memref<256x1000xbf16, #tpu.memory_space<vmem>>, vector<64x40xbf16>,
    %c16_194 = arith.constant 16 : index
    %c0_195 = arith.constant 0 : index
    %127 = vector.load %arg11[%c16_194, %c0_195] : memref<192x128xbf16, #tpu.memory_space<vmem>>, vector<64x40xbf16>
    %c128_196 = arith.constant 128 : index
    %c200_197 = arith.constant 200 : index
    %128 = vector.load %arg12[%c128_196, %c200_197] : memref<256x1000xbf16, #tpu.memory_space<vmem>>, vector<64x40xbf16>
    tpu.vector_store %arg12[%c128_196, %c200_197], %127 {strides = array<i32>} : memref<256x1000xbf16, #tpu.memory_space<vmem>>, vector<64x40xbf16>,
    %c16_198 = arith.constant 16 : index
    %c60_199 = arith.constant 60 : index
    %129 = vector.load %arg11[%c16_198, %c60_199] : memref<192x128xbf16, #tpu.memory_space<vmem>>, vector<64x40xbf16>
    %c128_200 = arith.constant 128 : index
    %c240_201 = arith.constant 240 : index
    %130 = vector.load %arg12[%c128_200, %c240_201] : memref<256x1000xbf16, #tpu.memory_space<vmem>>, vector<64x40xbf16>
    tpu.vector_store %arg12[%c128_200, %c240_201], %129 {strides = array<i32>} : memref<256x1000xbf16, #tpu.memory_space<vmem>>, vector<64x40xbf16>,
    %c16_202 = arith.constant 16 : index
    %c10_203 = arith.constant 10 : index
    %131 = vector.load %arg11[%c16_202, %c10_203] : memref<192x128xbf16, #tpu.memory_space<vmem>>, vector<64x40xbf16>
    %c128_204 = arith.constant 128 : index
    %c280_205 = arith.constant 280 : index
    %132 = vector.load %arg12[%c128_204, %c280_205] : memref<256x1000xbf16, #tpu.memory_space<vmem>>, vector<64x40xbf16>
    tpu.vector_store %arg12[%c128_204, %c280_205], %131 {strides = array<i32>} : memref<256x1000xbf16, #tpu.memory_space<vmem>>, vector<64x40xbf16>,
    %c16_206 = arith.constant 16 : index
    %c70_207 = arith.constant 70 : index
    %133 = vector.load %arg11[%c16_206, %c70_207] : memref<192x128xbf16, #tpu.memory_space<vmem>>, vector<64x40xbf16>
    %c128_208 = arith.constant 128 : index
    %c320_209 = arith.constant 320 : index
    %134 = vector.load %arg12[%c128_208, %c320_209] : memref<256x1000xbf16, #tpu.memory_space<vmem>>, vector<64x40xbf16>
    tpu.vector_store %arg12[%c128_208, %c320_209], %133 {strides = array<i32>} : memref<256x1000xbf16, #tpu.memory_space<vmem>>, vector<64x40xbf16>,
    %c16_210 = arith.constant 16 : index
    %c20_211 = arith.constant 20 : index
    %135 = vector.load %arg11[%c16_210, %c20_211] : memref<192x128xbf16, #tpu.memory_space<vmem>>, vector<64x40xbf16>
    %c128_212 = arith.constant 128 : index
    %c360_213 = arith.constant 360 : index
    %136 = vector.load %arg12[%c128_212, %c360_213] : memref<256x1000xbf16, #tpu.memory_space<vmem>>, vector<64x40xbf16>
    tpu.vector_store %arg12[%c128_212, %c360_213], %135 {strides = array<i32>} : memref<256x1000xbf16, #tpu.memory_space<vmem>>, vector<64x40xbf16>,
    %c112_214 = arith.constant 112 : index
    %c0_215 = arith.constant 0 : index
    %137 = vector.load %arg11[%c112_214, %c0_215] : memref<192x128xbf16, #tpu.memory_space<vmem>>, vector<64x40xbf16>
    %c128_216 = arith.constant 128 : index
    %c400_217 = arith.constant 400 : index
    %138 = vector.load %arg12[%c128_216, %c400_217] : memref<256x1000xbf16, #tpu.memory_space<vmem>>, vector<64x40xbf16>
    tpu.vector_store %arg12[%c128_216, %c400_217], %137 {strides = array<i32>} : memref<256x1000xbf16, #tpu.memory_space<vmem>>, vector<64x40xbf16>,
    %c112_218 = arith.constant 112 : index
    %c60_219 = arith.constant 60 : index
    %139 = vector.load %arg11[%c112_218, %c60_219] : memref<192x128xbf16, #tpu.memory_space<vmem>>, vector<64x40xbf16>
    %c128_220 = arith.constant 128 : index
    %c440_221 = arith.constant 440 : index
    %140 = vector.load %arg12[%c128_220, %c440_221] : memref<256x1000xbf16, #tpu.memory_space<vmem>>, vector<64x40xbf16>
    tpu.vector_store %arg12[%c128_220, %c440_221], %139 {strides = array<i32>} : memref<256x1000xbf16, #tpu.memory_space<vmem>>, vector<64x40xbf16>,
    %c112_222 = arith.constant 112 : index
    %c10_223 = arith.constant 10 : index
    %141 = vector.load %arg11[%c112_222, %c10_223] : memref<192x128xbf16, #tpu.memory_space<vmem>>, vector<64x40xbf16>
    %c128_224 = arith.constant 128 : index
    %c480_225 = arith.constant 480 : index
    %142 = vector.load %arg12[%c128_224, %c480_225] : memref<256x1000xbf16, #tpu.memory_space<vmem>>, vector<64x40xbf16>
    tpu.vector_store %arg12[%c128_224, %c480_225], %141 {strides = array<i32>} : memref<256x1000xbf16, #tpu.memory_space<vmem>>, vector<64x40xbf16>,
    %c112_226 = arith.constant 112 : index
    %c70_227 = arith.constant 70 : index
    %143 = vector.load %arg11[%c112_226, %c70_227] : memref<192x128xbf16, #tpu.memory_space<vmem>>, vector<64x40xbf16>
    %c128_228 = arith.constant 128 : index
    %c520_229 = arith.constant 520 : index
    %144 = vector.load %arg12[%c128_228, %c520_229] : memref<256x1000xbf16, #tpu.memory_space<vmem>>, vector<64x40xbf16>
    tpu.vector_store %arg12[%c128_228, %c520_229], %143 {strides = array<i32>} : memref<256x1000xbf16, #tpu.memory_space<vmem>>, vector<64x40xbf16>,
    %c112_230 = arith.constant 112 : index
    %c20_231 = arith.constant 20 : index
    %145 = vector.load %arg11[%c112_230, %c20_231] : memref<192x128xbf16, #tpu.memory_space<vmem>>, vector<64x40xbf16>
    %c128_232 = arith.constant 128 : index
    %c560_233 = arith.constant 560 : index
    %146 = vector.load %arg12[%c128_232, %c560_233] : memref<256x1000xbf16, #tpu.memory_space<vmem>>, vector<64x40xbf16>
    tpu.vector_store %arg12[%c128_232, %c560_233], %145 {strides = array<i32>} : memref<256x1000xbf16, #tpu.memory_space<vmem>>, vector<64x40xbf16>,
    %c32_234 = arith.constant 32 : index
    %c0_235 = arith.constant 0 : index
    %147 = vector.load %arg11[%c32_234, %c0_235] : memref<192x128xbf16, #tpu.memory_space<vmem>>, vector<64x40xbf16>
    %c128_236 = arith.constant 128 : index
    %c600_237 = arith.constant 600 : index
    %148 = vector.load %arg12[%c128_236, %c600_237] : memref<256x1000xbf16, #tpu.memory_space<vmem>>, vector<64x40xbf16>
    tpu.vector_store %arg12[%c128_236, %c600_237], %147 {strides = array<i32>} : memref<256x1000xbf16, #tpu.memory_space<vmem>>, vector<64x40xbf16>,
    %c32_238 = arith.constant 32 : index
    %c60_239 = arith.constant 60 : index
    %149 = vector.load %arg11[%c32_238, %c60_239] : memref<192x128xbf16, #tpu.memory_space<vmem>>, vector<64x40xbf16>
    %c128_240 = arith.constant 128 : index
    %c640_241 = arith.constant 640 : index
    %150 = vector.load %arg12[%c128_240, %c640_241] : memref<256x1000xbf16, #tpu.memory_space<vmem>>, vector<64x40xbf16>
    tpu.vector_store %arg12[%c128_240, %c640_241], %149 {strides = array<i32>} : memref<256x1000xbf16, #tpu.memory_space<vmem>>, vector<64x40xbf16>,
    %c32_242 = arith.constant 32 : index
    %c10_243 = arith.constant 10 : index
    %151 = vector.load %arg11[%c32_242, %c10_243] : memref<192x128xbf16, #tpu.memory_space<vmem>>, vector<64x40xbf16>
    %c128_244 = arith.constant 128 : index
    %c680_245 = arith.constant 680 : index
    %152 = vector.load %arg12[%c128_244, %c680_245] : memref<256x1000xbf16, #tpu.memory_space<vmem>>, vector<64x40xbf16>
    tpu.vector_store %arg12[%c128_244, %c680_245], %151 {strides = array<i32>} : memref<256x1000xbf16, #tpu.memory_space<vmem>>, vector<64x40xbf16>,
    %c32_246 = arith.constant 32 : index
    %c70_247 = arith.constant 70 : index
    %153 = vector.load %arg11[%c32_246, %c70_247] : memref<192x128xbf16, #tpu.memory_space<vmem>>, vector<64x40xbf16>
    %c128_248 = arith.constant 128 : index
    %c720_249 = arith.constant 720 : index
    %154 = vector.load %arg12[%c128_248, %c720_249] : memref<256x1000xbf16, #tpu.memory_space<vmem>>, vector<64x40xbf16>
    tpu.vector_store %arg12[%c128_248, %c720_249], %153 {strides = array<i32>} : memref<256x1000xbf16, #tpu.memory_space<vmem>>, vector<64x40xbf16>,
    %c32_250 = arith.constant 32 : index
    %c20_251 = arith.constant 20 : index
    %155 = vector.load %arg11[%c32_250, %c20_251] : memref<192x128xbf16, #tpu.memory_space<vmem>>, vector<64x40xbf16>
    %c128_252 = arith.constant 128 : index
    %c760_253 = arith.constant 760 : index
    %156 = vector.load %arg12[%c128_252, %c760_253] : memref<256x1000xbf16, #tpu.memory_space<vmem>>, vector<64x40xbf16>
    tpu.vector_store %arg12[%c128_252, %c760_253], %155 {strides = array<i32>} : memref<256x1000xbf16, #tpu.memory_space<vmem>>, vector<64x40xbf16>,
    %c128_254 = arith.constant 128 : index
    %c0_255 = arith.constant 0 : index
    %157 = vector.load %arg11[%c128_254, %c0_255] : memref<192x128xbf16, #tpu.memory_space<vmem>>, vector<64x40xbf16>
    %c128_256 = arith.constant 128 : index
    %c800_257 = arith.constant 800 : index
    %158 = vector.load %arg12[%c128_256, %c800_257] : memref<256x1000xbf16, #tpu.memory_space<vmem>>, vector<64x40xbf16>
    tpu.vector_store %arg12[%c128_256, %c800_257], %157 {strides = array<i32>} : memref<256x1000xbf16, #tpu.memory_space<vmem>>, vector<64x40xbf16>,
    %c128_258 = arith.constant 128 : index
    %c60_259 = arith.constant 60 : index
    %159 = vector.load %arg11[%c128_258, %c60_259] : memref<192x128xbf16, #tpu.memory_space<vmem>>, vector<64x40xbf16>
    %c128_260 = arith.constant 128 : index
    %c840_261 = arith.constant 840 : index
    %160 = vector.load %arg12[%c128_260, %c840_261] : memref<256x1000xbf16, #tpu.memory_space<vmem>>, vector<64x40xbf16>
    tpu.vector_store %arg12[%c128_260, %c840_261], %159 {strides = array<i32>} : memref<256x1000xbf16, #tpu.memory_space<vmem>>, vector<64x40xbf16>,
    %c128_262 = arith.constant 128 : index
    %c10_263 = arith.constant 10 : index
    %161 = vector.load %arg11[%c128_262, %c10_263] : memref<192x128xbf16, #tpu.memory_space<vmem>>, vector<64x40xbf16>
    %c128_264 = arith.constant 128 : index
    %c880_265 = arith.constant 880 : index
    %162 = vector.load %arg12[%c128_264, %c880_265] : memref<256x1000xbf16, #tpu.memory_space<vmem>>, vector<64x40xbf16>
    tpu.vector_store %arg12[%c128_264, %c880_265], %161 {strides = array<i32>} : memref<256x1000xbf16, #tpu.memory_space<vmem>>, vector<64x40xbf16>,
    %c128_266 = arith.constant 128 : index
    %c70_267 = arith.constant 70 : index
    %163 = vector.load %arg11[%c128_266, %c70_267] : memref<192x128xbf16, #tpu.memory_space<vmem>>, vector<64x40xbf16>
    %c128_268 = arith.constant 128 : index
    %c920_269 = arith.constant 920 : index
    %164 = vector.load %arg12[%c128_268, %c920_269] : memref<256x1000xbf16, #tpu.memory_space<vmem>>, vector<64x40xbf16>
    tpu.vector_store %arg12[%c128_268, %c920_269], %163 {strides = array<i32>} : memref<256x1000xbf16, #tpu.memory_space<vmem>>, vector<64x40xbf16>,
    %c128_270 = arith.constant 128 : index
    %c20_271 = arith.constant 20 : index
    %165 = vector.load %arg11[%c128_270, %c20_271] : memref<192x128xbf16, #tpu.memory_space<vmem>>, vector<64x40xbf16>
    %c128_272 = arith.constant 128 : index
    %c960_273 = arith.constant 960 : index
    %166 = vector.load %arg12[%c128_272, %c960_273] : memref<256x1000xbf16, #tpu.memory_space<vmem>>, vector<64x40xbf16>
    tpu.vector_store %arg12[%c128_272, %c960_273], %165 {strides = array<i32>} : memref<256x1000xbf16, #tpu.memory_space<vmem>>, vector<64x40xbf16>,
    %c96_274 = arith.constant 96 : index
    %c60_275 = arith.constant 60 : index
    %167 = vector.load %arg11[%c96_274, %c60_275] : memref<192x128xbf16, #tpu.memory_space<vmem>>, vector<64x40xbf16>
    %c192 = arith.constant 192 : index
    %c0_276 = arith.constant 0 : index
    %168 = vector.load %arg12[%c192, %c0_276] : memref<256x1000xbf16, #tpu.memory_space<vmem>>, vector<64x40xbf16>
    tpu.vector_store %arg12[%c192, %c0_276], %167 {strides = array<i32>} : memref<256x1000xbf16, #tpu.memory_space<vmem>>, vector<64x40xbf16>,
    %c96_277 = arith.constant 96 : index
    %c10_278 = arith.constant 10 : index
    %169 = vector.load %arg11[%c96_277, %c10_278] : memref<192x128xbf16, #tpu.memory_space<vmem>>, vector<64x40xbf16>
    %c192_279 = arith.constant 192 : index
    %c40_280 = arith.constant 40 : index
    %170 = vector.load %arg12[%c192_279, %c40_280] : memref<256x1000xbf16, #tpu.memory_space<vmem>>, vector<64x40xbf16>
    tpu.vector_store %arg12[%c192_279, %c40_280], %169 {strides = array<i32>} : memref<256x1000xbf16, #tpu.memory_space<vmem>>, vector<64x40xbf16>,
    %c96_281 = arith.constant 96 : index
    %c70_282 = arith.constant 70 : index
    %171 = vector.load %arg11[%c96_281, %c70_282] : memref<192x128xbf16, #tpu.memory_space<vmem>>, vector<64x40xbf16>
    %c192_283 = arith.constant 192 : index
    %c80_284 = arith.constant 80 : index
    %172 = vector.load %arg12[%c192_283, %c80_284] : memref<256x1000xbf16, #tpu.memory_space<vmem>>, vector<64x40xbf16>
    tpu.vector_store %arg12[%c192_283, %c80_284], %171 {strides = array<i32>} : memref<256x1000xbf16, #tpu.memory_space<vmem>>, vector<64x40xbf16>,
    %c96_285 = arith.constant 96 : index
    %c20_286 = arith.constant 20 : index
    %173 = vector.load %arg11[%c96_285, %c20_286] : memref<192x128xbf16, #tpu.memory_space<vmem>>, vector<64x40xbf16>
    %c192_287 = arith.constant 192 : index
    %c120_288 = arith.constant 120 : index
    %174 = vector.load %arg12[%c192_287, %c120_288] : memref<256x1000xbf16, #tpu.memory_space<vmem>>, vector<64x40xbf16>
    tpu.vector_store %arg12[%c192_287, %c120_288], %173 {strides = array<i32>} : memref<256x1000xbf16, #tpu.memory_space<vmem>>, vector<64x40xbf16>,
    %c96_289 = arith.constant 96 : index
    %c80_290 = arith.constant 80 : index
    %175 = vector.load %arg11[%c96_289, %c80_290] : memref<192x128xbf16, #tpu.memory_space<vmem>>, vector<64x40xbf16>
    %c192_291 = arith.constant 192 : index
    %c160_292 = arith.constant 160 : index
    %176 = vector.load %arg12[%c192_291, %c160_292] : memref<256x1000xbf16, #tpu.memory_space<vmem>>, vector<64x40xbf16>
    tpu.vector_store %arg12[%c192_291, %c160_292], %175 {strides = array<i32>} : memref<256x1000xbf16, #tpu.memory_space<vmem>>, vector<64x40xbf16>,
    %c16_293 = arith.constant 16 : index
    %c60_294 = arith.constant 60 : index
    %177 = vector.load %arg11[%c16_293, %c60_294] : memref<192x128xbf16, #tpu.memory_space<vmem>>, vector<64x40xbf16>
    %c192_295 = arith.constant 192 : index
    %c200_296 = arith.constant 200 : index
    %178 = vector.load %arg12[%c192_295, %c200_296] : memref<256x1000xbf16, #tpu.memory_space<vmem>>, vector<64x40xbf16>
    tpu.vector_store %arg12[%c192_295, %c200_296], %177 {strides = array<i32>} : memref<256x1000xbf16, #tpu.memory_space<vmem>>, vector<64x40xbf16>,
    %c16_297 = arith.constant 16 : index
    %c10_298 = arith.constant 10 : index
    %179 = vector.load %arg11[%c16_297, %c10_298] : memref<192x128xbf16, #tpu.memory_space<vmem>>, vector<64x40xbf16>
    %c192_299 = arith.constant 192 : index
    %c240_300 = arith.constant 240 : index
    %180 = vector.load %arg12[%c192_299, %c240_300] : memref<256x1000xbf16, #tpu.memory_space<vmem>>, vector<64x40xbf16>
    tpu.vector_store %arg12[%c192_299, %c240_300], %179 {strides = array<i32>} : memref<256x1000xbf16, #tpu.memory_space<vmem>>, vector<64x40xbf16>,
    %c16_301 = arith.constant 16 : index
    %c70_302 = arith.constant 70 : index
    %181 = vector.load %arg11[%c16_301, %c70_302] : memref<192x128xbf16, #tpu.memory_space<vmem>>, vector<64x40xbf16>
    %c192_303 = arith.constant 192 : index
    %c280_304 = arith.constant 280 : index
    %182 = vector.load %arg12[%c192_303, %c280_304] : memref<256x1000xbf16, #tpu.memory_space<vmem>>, vector<64x40xbf16>
    tpu.vector_store %arg12[%c192_303, %c280_304], %181 {strides = array<i32>} : memref<256x1000xbf16, #tpu.memory_space<vmem>>, vector<64x40xbf16>,
    %c16_305 = arith.constant 16 : index
    %c20_306 = arith.constant 20 : index
    %183 = vector.load %arg11[%c16_305, %c20_306] : memref<192x128xbf16, #tpu.memory_space<vmem>>, vector<64x40xbf16>
    %c192_307 = arith.constant 192 : index
    %c320_308 = arith.constant 320 : index
    %184 = vector.load %arg12[%c192_307, %c320_308] : memref<256x1000xbf16, #tpu.memory_space<vmem>>, vector<64x40xbf16>
    tpu.vector_store %arg12[%c192_307, %c320_308], %183 {strides = array<i32>} : memref<256x1000xbf16, #tpu.memory_space<vmem>>, vector<64x40xbf16>,
    %c16_309 = arith.constant 16 : index
    %c80_310 = arith.constant 80 : index
    %185 = vector.load %arg11[%c16_309, %c80_310] : memref<192x128xbf16, #tpu.memory_space<vmem>>, vector<64x40xbf16>
    %c192_311 = arith.constant 192 : index
    %c360_312 = arith.constant 360 : index
    %186 = vector.load %arg12[%c192_311, %c360_312] : memref<256x1000xbf16, #tpu.memory_space<vmem>>, vector<64x40xbf16>
    tpu.vector_store %arg12[%c192_311, %c360_312], %185 {strides = array<i32>} : memref<256x1000xbf16, #tpu.memory_space<vmem>>, vector<64x40xbf16>,
    %c112_313 = arith.constant 112 : index
    %c60_314 = arith.constant 60 : index
    %187 = vector.load %arg11[%c112_313, %c60_314] : memref<192x128xbf16, #tpu.memory_space<vmem>>, vector<64x40xbf16>
    %c192_315 = arith.constant 192 : index
    %c400_316 = arith.constant 400 : index
    %188 = vector.load %arg12[%c192_315, %c400_316] : memref<256x1000xbf16, #tpu.memory_space<vmem>>, vector<64x40xbf16>
    tpu.vector_store %arg12[%c192_315, %c400_316], %187 {strides = array<i32>} : memref<256x1000xbf16, #tpu.memory_space<vmem>>, vector<64x40xbf16>,
    %c112_317 = arith.constant 112 : index
    %c10_318 = arith.constant 10 : index
    %189 = vector.load %arg11[%c112_317, %c10_318] : memref<192x128xbf16, #tpu.memory_space<vmem>>, vector<64x40xbf16>
    %c192_319 = arith.constant 192 : index
    %c440_320 = arith.constant 440 : index
    %190 = vector.load %arg12[%c192_319, %c440_320] : memref<256x1000xbf16, #tpu.memory_space<vmem>>, vector<64x40xbf16>
    tpu.vector_store %arg12[%c192_319, %c440_320], %189 {strides = array<i32>} : memref<256x1000xbf16, #tpu.memory_space<vmem>>, vector<64x40xbf16>,
    %c112_321 = arith.constant 112 : index
    %c70_322 = arith.constant 70 : index
    %191 = vector.load %arg11[%c112_321, %c70_322] : memref<192x128xbf16, #tpu.memory_space<vmem>>, vector<64x40xbf16>
    %c192_323 = arith.constant 192 : index
    %c480_324 = arith.constant 480 : index
    %192 = vector.load %arg12[%c192_323, %c480_324] : memref<256x1000xbf16, #tpu.memory_space<vmem>>, vector<64x40xbf16>
    tpu.vector_store %arg12[%c192_323, %c480_324], %191 {strides = array<i32>} : memref<256x1000xbf16, #tpu.memory_space<vmem>>, vector<64x40xbf16>,
    %c112_325 = arith.constant 112 : index
    %c20_326 = arith.constant 20 : index
    %193 = vector.load %arg11[%c112_325, %c20_326] : memref<192x128xbf16, #tpu.memory_space<vmem>>, vector<64x40xbf16>
    %c192_327 = arith.constant 192 : index
    %c520_328 = arith.constant 520 : index
    %194 = vector.load %arg12[%c192_327, %c520_328] : memref<256x1000xbf16, #tpu.memory_space<vmem>>, vector<64x40xbf16>
    tpu.vector_store %arg12[%c192_327, %c520_328], %193 {strides = array<i32>} : memref<256x1000xbf16, #tpu.memory_space<vmem>>, vector<64x40xbf16>,
    %c112_329 = arith.constant 112 : index
    %c80_330 = arith.constant 80 : index
    %195 = vector.load %arg11[%c112_329, %c80_330] : memref<192x128xbf16, #tpu.memory_space<vmem>>, vector<64x40xbf16>
    %c192_331 = arith.constant 192 : index
    %c560_332 = arith.constant 560 : index
    %196 = vector.load %arg12[%c192_331, %c560_332] : memref<256x1000xbf16, #tpu.memory_space<vmem>>, vector<64x40xbf16>
    tpu.vector_store %arg12[%c192_331, %c560_332], %195 {strides = array<i32>} : memref<256x1000xbf16, #tpu.memory_space<vmem>>, vector<64x40xbf16>,
    %c32_333 = arith.constant 32 : index
    %c60_334 = arith.constant 60 : index
    %197 = vector.load %arg11[%c32_333, %c60_334] : memref<192x128xbf16, #tpu.memory_space<vmem>>, vector<64x40xbf16>
    %c192_335 = arith.constant 192 : index
    %c600_336 = arith.constant 600 : index
    %198 = vector.load %arg12[%c192_335, %c600_336] : memref<256x1000xbf16, #tpu.memory_space<vmem>>, vector<64x40xbf16>
    tpu.vector_store %arg12[%c192_335, %c600_336], %197 {strides = array<i32>} : memref<256x1000xbf16, #tpu.memory_space<vmem>>, vector<64x40xbf16>,
    %c32_337 = arith.constant 32 : index
    %c10_338 = arith.constant 10 : index
    %199 = vector.load %arg11[%c32_337, %c10_338] : memref<192x128xbf16, #tpu.memory_space<vmem>>, vector<64x40xbf16>
    %c192_339 = arith.constant 192 : index
    %c640_340 = arith.constant 640 : index
    %200 = vector.load %arg12[%c192_339, %c640_340] : memref<256x1000xbf16, #tpu.memory_space<vmem>>, vector<64x40xbf16>
    tpu.vector_store %arg12[%c192_339, %c640_340], %199 {strides = array<i32>} : memref<256x1000xbf16, #tpu.memory_space<vmem>>, vector<64x40xbf16>,
    %c32_341 = arith.constant 32 : index
    %c70_342 = arith.constant 70 : index
    %201 = vector.load %arg11[%c32_341, %c70_342] : memref<192x128xbf16, #tpu.memory_space<vmem>>, vector<64x40xbf16>
    %c192_343 = arith.constant 192 : index
    %c680_344 = arith.constant 680 : index
    %202 = vector.load %arg12[%c192_343, %c680_344] : memref<256x1000xbf16, #tpu.memory_space<vmem>>, vector<64x40xbf16>
    tpu.vector_store %arg12[%c192_343, %c680_344], %201 {strides = array<i32>} : memref<256x1000xbf16, #tpu.memory_space<vmem>>, vector<64x40xbf16>,
    %c32_345 = arith.constant 32 : index
    %c20_346 = arith.constant 20 : index
    %203 = vector.load %arg11[%c32_345, %c20_346] : memref<192x128xbf16, #tpu.memory_space<vmem>>, vector<64x40xbf16>
    %c192_347 = arith.constant 192 : index
    %c720_348 = arith.constant 720 : index
    %204 = vector.load %arg12[%c192_347, %c720_348] : memref<256x1000xbf16, #tpu.memory_space<vmem>>, vector<64x40xbf16>
    tpu.vector_store %arg12[%c192_347, %c720_348], %203 {strides = array<i32>} : memref<256x1000xbf16, #tpu.memory_space<vmem>>, vector<64x40xbf16>,
    %c32_349 = arith.constant 32 : index
    %c80_350 = arith.constant 80 : index
    %205 = vector.load %arg11[%c32_349, %c80_350] : memref<192x128xbf16, #tpu.memory_space<vmem>>, vector<64x40xbf16>
    %c192_351 = arith.constant 192 : index
    %c760_352 = arith.constant 760 : index
    %206 = vector.load %arg12[%c192_351, %c760_352] : memref<256x1000xbf16, #tpu.memory_space<vmem>>, vector<64x40xbf16>
    tpu.vector_store %arg12[%c192_351, %c760_352], %205 {strides = array<i32>} : memref<256x1000xbf16, #tpu.memory_space<vmem>>, vector<64x40xbf16>,
    %c128_353 = arith.constant 128 : index
    %c60_354 = arith.constant 60 : index
    %207 = vector.load %arg11[%c128_353, %c60_354] : memref<192x128xbf16, #tpu.memory_space<vmem>>, vector<64x40xbf16>
    %c192_355 = arith.constant 192 : index
    %c800_356 = arith.constant 800 : index
    %208 = vector.load %arg12[%c192_355, %c800_356] : memref<256x1000xbf16, #tpu.memory_space<vmem>>, vector<64x40xbf16>
    tpu.vector_store %arg12[%c192_355, %c800_356], %207 {strides = array<i32>} : memref<256x1000xbf16, #tpu.memory_space<vmem>>, vector<64x40xbf16>,
    %c128_357 = arith.constant 128 : index
    %c10_358 = arith.constant 10 : index
    %209 = vector.load %arg11[%c128_357, %c10_358] : memref<192x128xbf16, #tpu.memory_space<vmem>>, vector<64x40xbf16>
    %c192_359 = arith.constant 192 : index
    %c840_360 = arith.constant 840 : index
    %210 = vector.load %arg12[%c192_359, %c840_360] : memref<256x1000xbf16, #tpu.memory_space<vmem>>, vector<64x40xbf16>
    tpu.vector_store %arg12[%c192_359, %c840_360], %209 {strides = array<i32>} : memref<256x1000xbf16, #tpu.memory_space<vmem>>, vector<64x40xbf16>,
    %c128_361 = arith.constant 128 : index
    %c70_362 = arith.constant 70 : index
    %211 = vector.load %arg11[%c128_361, %c70_362] : memref<192x128xbf16, #tpu.memory_space<vmem>>, vector<64x40xbf16>
    %c192_363 = arith.constant 192 : index
    %c880_364 = arith.constant 880 : index
    %212 = vector.load %arg12[%c192_363, %c880_364] : memref<256x1000xbf16, #tpu.memory_space<vmem>>, vector<64x40xbf16>
    tpu.vector_store %arg12[%c192_363, %c880_364], %211 {strides = array<i32>} : memref<256x1000xbf16, #tpu.memory_space<vmem>>, vector<64x40xbf16>,
    %c128_365 = arith.constant 128 : index
    %c20_366 = arith.constant 20 : index
    %213 = vector.load %arg11[%c128_365, %c20_366] : memref<192x128xbf16, #tpu.memory_space<vmem>>, vector<64x40xbf16>
    %c192_367 = arith.constant 192 : index
    %c920_368 = arith.constant 920 : index
    %214 = vector.load %arg12[%c192_367, %c920_368] : memref<256x1000xbf16, #tpu.memory_space<vmem>>, vector<64x40xbf16>
    tpu.vector_store %arg12[%c192_367, %c920_368], %213 {strides = array<i32>} : memref<256x1000xbf16, #tpu.memory_space<vmem>>, vector<64x40xbf16>,
    %c128_369 = arith.constant 128 : index
    %c80_370 = arith.constant 80 : index
    %215 = vector.load %arg11[%c128_369, %c80_370] : memref<192x128xbf16, #tpu.memory_space<vmem>>, vector<64x40xbf16>
    %c192_371 = arith.constant 192 : index
    %c960_372 = arith.constant 960 : index
    %216 = vector.load %arg12[%c192_371, %c960_372] : memref<256x1000xbf16, #tpu.memory_space<vmem>>, vector<64x40xbf16>
    tpu.vector_store %arg12[%c192_371, %c960_372], %215 {strides = array<i32>} : memref<256x1000xbf16, #tpu.memory_space<vmem>>, vector<64x40xbf16>,
    %c0_373 = arith.constant 0 : index
    %c0_374 = arith.constant 0 : index
    %217 = vector.load %arg12[%c0_373, %c0_374] : memref<256x1000xbf16, #tpu.memory_space<vmem>>, vector<256x1000xbf16>
    %c0_375 = arith.constant 0 : index
    %c0_376 = arith.constant 0 : index
    %218 = vector.load %arg4[%c0_375, %c0_376] : memref<1000x80xbf16, #tpu.memory_space<vmem>>, vector<1000x80xbf16>
    %cst_377 = arith.constant dense<0.000000e+00> : vector<256x80xf32>
    %219 = tpu.matmul %217, %218, %cst_377 {dimension_numbers = #tpu.dot_dimension_numbers<[1], [0], [0], [1], [0, 0, 1, 1], [], []>} : vector<256x1000xbf16>, vector<1000x80xbf16>, vector<256x80xf32> -> vector<256x80xf32>
    %220 = vector.extract_strided_slice %219 {offsets = [0, 0], sizes = [64, 80], strides = [1, 1]} : vector<256x80xf32> to vector<64x80xf32>
    %221 = vector.extract_strided_slice %219 {offsets = [64, 0], sizes = [64, 80], strides = [1, 1]} : vector<256x80xf32> to vector<64x80xf32>
    %222 = arith.maximumf %220, %221 : vector<64x80xf32>
    %223 = vector.extract_strided_slice %219 {offsets = [128, 0], sizes = [64, 80], strides = [1, 1]} : vector<256x80xf32> to vector<64x80xf32>
    %224 = vector.extract_strided_slice %219 {offsets = [192, 0], sizes = [64, 80], strides = [1, 1]} : vector<256x80xf32> to vector<64x80xf32>
    %225 = arith.maximumf %223, %224 : vector<64x80xf32>
    %226 = arith.maximumf %222, %225 : vector<64x80xf32>
    %c0_378 = arith.constant 0 : index
    %c0_379 = arith.constant 0 : index
    %227 = vector.load %arg5[%c0_378, %c0_379] : memref<1x80xf32, #tpu.memory_space<vmem>>, vector<1x80xf32>
    %228 = vector.broadcast %227 : vector<1x80xf32> to vector<64x80xf32>
    %229 = arith.addf %226, %228 : vector<64x80xf32>
    %cst_380 = arith.constant 0.000000e+00 : f32
    %230 = vector.broadcast %cst_380 : f32 to vector<64x80xf32>
    %231 = arith.maximumf %229, %230 : vector<64x80xf32>
    %232 = arith.truncf %231 : vector<64x80xf32> to vector<64x80xbf16>
    %233 = vector.extract_strided_slice %232 {offsets = [0, 0], sizes = [16, 80], strides = [1, 1]} : vector<64x80xbf16> to vector<16x80xbf16>
    %c0_381 = arith.constant 0 : index
    %c0_382 = arith.constant 0 : index
    %234 = vector.load %arg6[%c0_381, %c0_382] : memref<320x50xbf16, #tpu.memory_space<vmem>>, vector<80x50xbf16>
    %cst_383 = arith.constant dense<0.000000e+00> : vector<16x50xf32>
    %235 = tpu.matmul %233, %234, %cst_383 {dimension_numbers = #tpu.dot_dimension_numbers<[1], [0], [0], [1], [0, 0, 1, 1], [], []>} : vector<16x80xbf16>, vector<80x50xbf16>, vector<16x50xf32> -> vector<16x50xf32>
    %236 = vector.extract_strided_slice %232 {offsets = [16, 0], sizes = [16, 80], strides = [1, 1]} : vector<64x80xbf16> to vector<16x80xbf16>
    %c80_384 = arith.constant 80 : index
    %c0_385 = arith.constant 0 : index
    %237 = vector.load %arg6[%c80_384, %c0_385] : memref<320x50xbf16, #tpu.memory_space<vmem>>, vector<80x50xbf16>
    %cst_386 = arith.constant dense<0.000000e+00> : vector<16x50xf32>
    %238 = tpu.matmul %236, %237, %cst_386 {dimension_numbers = #tpu.dot_dimension_numbers<[1], [0], [0], [1], [0, 0, 1, 1], [], []>} : vector<16x80xbf16>, vector<80x50xbf16>, vector<16x50xf32> -> vector<16x50xf32>
    %239 = arith.addf %235, %238 : vector<16x50xf32>
    %240 = vector.extract_strided_slice %232 {offsets = [32, 0], sizes = [16, 80], strides = [1, 1]} : vector<64x80xbf16> to vector<16x80xbf16>
    %c160_387 = arith.constant 160 : index
    %c0_388 = arith.constant 0 : index
    %241 = vector.load %arg6[%c160_387, %c0_388] : memref<320x50xbf16, #tpu.memory_space<vmem>>, vector<80x50xbf16>
    %cst_389 = arith.constant dense<0.000000e+00> : vector<16x50xf32>
    %242 = tpu.matmul %240, %241, %cst_389 {dimension_numbers = #tpu.dot_dimension_numbers<[1], [0], [0], [1], [0, 0, 1, 1], [], []>} : vector<16x80xbf16>, vector<80x50xbf16>, vector<16x50xf32> -> vector<16x50xf32>
    %243 = arith.addf %239, %242 : vector<16x50xf32>
    %244 = vector.extract_strided_slice %232 {offsets = [48, 0], sizes = [16, 80], strides = [1, 1]} : vector<64x80xbf16> to vector<16x80xbf16>
    %c240_390 = arith.constant 240 : index
    %c0_391 = arith.constant 0 : index
    %245 = vector.load %arg6[%c240_390, %c0_391] : memref<320x50xbf16, #tpu.memory_space<vmem>>, vector<80x50xbf16>
    %cst_392 = arith.constant dense<0.000000e+00> : vector<16x50xf32>
    %246 = tpu.matmul %244, %245, %cst_392 {dimension_numbers = #tpu.dot_dimension_numbers<[1], [0], [0], [1], [0, 0, 1, 1], [], []>} : vector<16x80xbf16>, vector<80x50xbf16>, vector<16x50xf32> -> vector<16x50xf32>
    %247 = arith.addf %243, %246 : vector<16x50xf32>
    %c0_393 = arith.constant 0 : index
    %c0_394 = arith.constant 0 : index
    %248 = vector.load %arg7[%c0_393, %c0_394] : memref<1x50xf32, #tpu.memory_space<vmem>>, vector<1x50xf32>
    %249 = vector.broadcast %248 : vector<1x50xf32> to vector<16x50xf32>
    %250 = arith.addf %247, %249 : vector<16x50xf32>
    %cst_395 = arith.constant 0.000000e+00 : f32
    %251 = vector.broadcast %cst_395 : f32 to vector<16x50xf32>
    %252 = arith.maximumf %250, %251 : vector<16x50xf32>
    %253 = arith.truncf %252 : vector<16x50xf32> to vector<16x50xbf16>
    %c0_396 = arith.constant 0 : index
    %c0_397 = arith.constant 0 : index
    %254 = vector.load %arg8[%c0_396, %c0_397] : memref<50x10xbf16, #tpu.memory_space<vmem>>, vector<50x10xbf16>
    %cst_398 = arith.constant dense<0.000000e+00> : vector<16x10xf32>
    %255 = tpu.matmul %253, %254, %cst_398 {dimension_numbers = #tpu.dot_dimension_numbers<[1], [0], [0], [1], [0, 0, 1, 1], [], []>} : vector<16x50xbf16>, vector<50x10xbf16>, vector<16x10xf32> -> vector<16x10xf32>
    %c0_399 = arith.constant 0 : index
    %c0_400 = arith.constant 0 : index
    %256 = vector.load %arg9[%c0_399, %c0_400] : memref<1x10xf32, #tpu.memory_space<vmem>>, vector<1x10xf32>
    %257 = vector.broadcast %256 : vector<1x10xf32> to vector<16x10xf32>
    %258 = arith.addf %255, %257 : vector<16x10xf32>
    %cst_401 = arith.constant dense<0xFF800000> : vector<16xf32>
    %259 = vector.multi_reduction <maximumf>, %258, %cst_401 [1] : vector<16x10xf32> to vector<16xf32>
    %260 = vector.shape_cast %259 : vector<16xf32> to vector<16x1xf32>
    %261 = vector.broadcast %260 : vector<16x1xf32> to vector<16x10xf32>
    %262 = arith.subf %258, %261 : vector<16x10xf32>
    %263 = math.exp %262 : vector<16x10xf32>
    %cst_402 = arith.constant dense<0.000000e+00> : vector<16xf32>
    %264 = vector.multi_reduction <add>, %263, %cst_402 [1] : vector<16x10xf32> to vector<16xf32>
    %265 = vector.shape_cast %264 : vector<16xf32> to vector<16x1xf32>
    %266 = math.log %265 : vector<16x1xf32>
    %267 = vector.broadcast %266 : vector<16x1xf32> to vector<16x10xf32>
    %268 = arith.subf %262, %267 : vector<16x10xf32>
    %c0_403 = arith.constant 0 : index
    %c0_404 = arith.constant 0 : index
    %269 = vector.load %arg10[%c0_403, %c0_404] : memref<16x10xf32, #tpu.memory_space<vmem>>, vector<16x10xf32>
    tpu.vector_store %arg10[%c0_403, %c0_404], %268 {strides = array<i32>} : memref<16x10xf32, #tpu.memory_space<vmem>>, vector<16x10xf32>,
    return
  }
  func.func @transform_0(%arg0: i32) -> (i32, i32) {
    %c0_i32 = arith.constant 0 : i32
    %c0_i32_0 = arith.constant 0 : i32
    return %arg0, %c0_i32 : i32, i32
  }
  func.func @transform_1(%arg0: i32) -> (i32, i32) {
    %c0_i32 = arith.constant 0 : i32
    %c0_i32_0 = arith.constant 0 : i32
    %c0_i32_1 = arith.constant 0 : i32
    return %c0_i32, %c0_i32_0 : i32, i32
  }
  func.func @transform_2(%arg0: i32) -> (i32, i32) {
    %c0_i32 = arith.constant 0 : i32
    %c0_i32_0 = arith.constant 0 : i32
    %c0_i32_1 = arith.constant 0 : i32
    return %c0_i32, %c0_i32_0 : i32, i32
  }
  func.func @transform_3(%arg0: i32) -> (i32, i32) {
    %c0_i32 = arith.constant 0 : i32
    %c0_i32_0 = arith.constant 0 : i32
    %c0_i32_1 = arith.constant 0 : i32
    return %c0_i32, %c0_i32_0 : i32, i32
  }
  func.func @transform_4(%arg0: i32) -> (i32, i32) {
    %c0_i32 = arith.constant 0 : i32
    %c0_i32_0 = arith.constant 0 : i32
    %c0_i32_1 = arith.constant 0 : i32
    return %c0_i32, %c0_i32_0 : i32, i32
  }
  func.func @transform_5(%arg0: i32) -> (i32, i32) {
    %c0_i32 = arith.constant 0 : i32
    %c0_i32_0 = arith.constant 0 : i32
    %c0_i32_1 = arith.constant 0 : i32
    return %c0_i32, %c0_i32_0 : i32, i32
  }
  func.func @transform_6(%arg0: i32) -> (i32, i32) {
    %c0_i32 = arith.constant 0 : i32
    %c0_i32_0 = arith.constant 0 : i32
    %c0_i32_1 = arith.constant 0 : i32
    return %c0_i32, %c0_i32_0 : i32, i32
  }
  func.func @transform_7(%arg0: i32) -> (i32, i32) {
    %c0_i32 = arith.constant 0 : i32
    %c0_i32_0 = arith.constant 0 : i32
    %c0_i32_1 = arith.constant 0 : i32
    return %c0_i32, %c0_i32_0 : i32, i32
  }
  func.func @transform_8(%arg0: i32) -> (i32, i32) {
    %c0_i32 = arith.constant 0 : i32
    %c0_i32_0 = arith.constant 0 : i32
    %c0_i32_1 = arith.constant 0 : i32
    return %c0_i32, %c0_i32_0 : i32, i32
  }
  func.func @transform_9(%arg0: i32) -> (i32, i32) {
    %c0_i32 = arith.constant 0 : i32
    %c0_i32_0 = arith.constant 0 : i32
    return %arg0, %c0_i32 : i32, i32
  }
}

</mosaic_0001>

<bundles_post_ra>
// kernel: net_forward.1
= control target key start
LH: loop header
LB: loop body
LE: loop exit
PB: predicated region body
PF: predicated region fallthrough
CT: control target
= control target key end

     0   :  { %v11322_v0 = vmov 0   ;;  %vm1241_vm0 = vcmask 1045504   ;;  %vm1096_vm1 = vcmask 359424   ;;  %vm2234_vm2 = vcmask 326656   ;;  %s11379_s30 = smov 50   ;;  %s11363_s10 = smov 68   ;;  %s11312_s1 = inlined_call_operand.vmem [shape: bf16[300,128], index: 1, kind: input, shape index: {}]   ;;  %s11313_s0 = inlined_call_operand.vmem [shape: bf16[768,300], index: 0, kind: input, shape index: {}]   ;;  %s11314_s2 = inlined_call_operand.vmem [shape: f32[1,128], index: 2, kind: input, shape index: {}]   ;;  %s11315_s3 = inlined_call_operand.vmem [shape: bf16[1000,80], index: 3, kind: input, shape index: {}]   ;;  %s11316_s5 = inlined_call_operand.vmem [shape: bf16[320,50], index: 5, kind: input, shape index: {}]   ;;  %s11317_s4 = inlined_call_operand.vmem [shape: f32[1,80], index: 4, kind: input, shape index: {}]   ;;  %s11318_s7 = inlined_call_operand.vmem [shape: bf16[50,10], index: 7, kind: input, shape index: {}]   ;;  %s11319_s6 = inlined_call_operand.vmem [shape: f32[1,50], index: 6, kind: input, shape index: {}]   ;;  %s11320_s8 = inlined_call_operand.vmem [shape: f32[1,10], index: 8, kind: input, shape index: {}]   ;;  %s11321_s9 = inlined_call_operand.vmem [shape: f32[16,10], index: 9, kind: output, shape index: {}]  }
   0x1   :  { %11442 = sst [smem:[#allocation50_spill]] %s11316_s5  ;;  %1245 = vmatprep.subr.bf16.mxu0 %v11322_v0  ;;  %v7508_v1 = vld [vmem:[%s11312_s1] sm:$0xff]   ;;  %v7509_v2 = vld [vmem:[%s11312_s1 + $0x8] sm:$0xff]   ;;  %v7510_v3 = vld [vmem:[%s11312_s1 + $0x10] sm:$0xff]   ;;  %s11418_s11 = smov 12   ;;  %vm2259_vm3 = vcmask 654656  }
   0x2   :  { %11443 = sst [smem:[#allocation51_spill]] %s11317_s4  ;;  %1246 = vmatpush1.bf16.msra.mxu0 %v7508_v1  ;;  %v7511_v4 = vld [vmem:[%s11312_s1 + $0x18] sm:$0xff]   ;;  %v7521_v5 = vld [vmem:[%s11312_s1 + $0x80] sm:$0xff]   ;;  %v7523_v7 = vld [vmem:[%s11312_s1 + $0x88] sm:$0xff]   ;;  %s11361_s12 = smov 30   ;;  %vm2311_vm4 = vcmask 261120  }
   0x3   :  { %11444 = sst [smem:[#allocation52_spill]] %s11318_s7  ;;  %1247 = vmatprep.subr.bf16.mxu0 %v11322_v0  ;;  %v7512_v6 = vld [vmem:[%s11312_s1 + $0x20] sm:$0xff]   ;;  %7297 = vmatprep.subr.bf16.mxu1 %v7521_v5  ;;  %v7525_v8 = vld [vmem:[%s11312_s1 + $0x90] sm:$0x3f]   ;;  %v7513_v9 = vld [vmem:[%s11312_s1 + $0x28] sm:$0xff]   ;;  %s11375_s13 = smov 70  }
   0x4   :  { %11445 = sst [smem:[#allocation53_spill]] %s11319_s6  ;;  %7298 = vmatpush3.bf16.msra.mxu1 %v7521_v5  ;;  %v1243_v10 = vsel %vm1241_vm0, %v7525_v8, 0  ;;  %v7527_v11 = vld [vmem:[%s11313_s0 + $0x8] ss:$12 sps:$4 sm:$0xff]   ;;  %v7530_v12 = vld [vmem:[%s11313_s0 + $0x4] ss:$12 sps:$4 sm:$0xff]  }
   0x5   :  { %11446 = sst [smem:[#allocation54_spill]] %s11320_s8  ;;  %7299 = vmatprep.subr.bf16.mxu1 %v7523_v7  ;;  %v7514_v13 = vld [vmem:[%s11312_s1 + $0x30] sm:$0xff]   ;;  %7303 = vmatprep.mubr.msk.bf16.mxu1 %vm1096_vm1, %v7527_v11  ;;  %v7531_v14 = vld [vmem:[%s11313_s0 + $0x20] ss:$12 sps:$4 sm:$0xff]   ;;  %v7535_v15 = vld [vmem:[%s11313_s0 + $0x38] ss:$12 sps:$4 sm:$0xff]  }
   0x6   :  { %11447 = sst [smem:[#allocation55_spill]] %s11321_s9  ;;  %1248 = vmatpush1.bf16.msra.mxu0 %v7509_v2  ;;  %1277 = vmatprep.mubr.bf16.mxu0 %v7530_v12  ;;  %v7515_v16 = vld [vmem:[%s11312_s1 + $0x38] sm:$0xff]   ;;  %v7516_v17 = vld [vmem:[%s11312_s1 + $0x40] sm:$0xff]   ;;  %v7543_v19 = vld [vmem:[%s11313_s0 + $0x68] ss:$12 sps:$4 sm:$0xff]   ;;  %s11373_s14 = smov 100  }
   0x7   :  { %1249 = vmatprep.subr.bf16.mxu0 %v11322_v0  ;;  %v7538_v18 = vld [vmem:[%s11313_s0 + $0x50] ss:$12 sps:$4 sm:$0xff]   ;;  %v7517_v20 = vld [vmem:[%s11312_s1 + $0x48] sm:$0xff]   ;;  %v7551_v23 = vld [vmem:[%s11313_s0 + $0x98] ss:$12 sps:$4 sm:$0xff]   ;;  %s11371_s15 = smov 80  }
   0x8   :  { %7300 = vmatpush3.bf16.msra.mxu1 %v7523_v7  ;;  %v7518_v21 = vld [vmem:[%s11312_s1 + $0x50] sm:$0xff]   ;;  %v7546_v22 = vld [vmem:[%s11313_s0 + $0x80] ss:$12 sps:$4 sm:$0xff]   ;;  %v7519_v24 = vld [vmem:[%s11312_s1 + $0x58] sm:$0xff]   ;;  %s7824_s16 = smov 72   ;;  %s11381_s17 = smov 52  }
   0x9   :  { %7467 = vmatprep.subr.msk.bf16.mxu1 %vm1241_vm0, %v7525_v8  ;;  %v7520_v25 = vld [vmem:[%s11312_s1 + $0x60] sm:$0xff]   ;;  %v7554_v26 = vld [vmem:[%s11313_s0 + $0xb0] ss:$12 sps:$4 sm:$0xff]   ;;  %v7559_v27 = vld [vmem:[%s11313_s0 + $0xc8] ss:$12 sps:$4 sm:$0xff]   ;;  %s11399_s18 = smov 16  }
   0xa   :  { %1250 = vmatpush1.bf16.msra.mxu0 %v7510_v3  ;;  %v7522_v28 = vld [vmem:[%s11312_s1 + $0x68] sm:$0xff]   ;;  %v7524_v29 = vld [vmem:[%s11312_s1 + $0x70] sm:$0xff]   ;;  %v7567_v31 = vld [vmem:[%s11313_s0 + $0xf8] ss:$12 sps:$4 sm:$0xff]   ;;  %s11397_s19 = smov 124   ;;  %s11395_s20 = smov 86  }
   0xb   :  { %1251 = vmatprep.subr.bf16.mxu0 %v11322_v0  ;;  %v7562_v30 = vld [vmem:[%s11313_s0 + $0xe0] ss:$12 sps:$4 sm:$0xff]   ;;  %v7526_v32 = vld [vmem:[%s11312_s1 + $0x78] sm:$0xff]   ;;  %v7575_v36 = vld [vmem:[%s11313_s0 + $0x128] ss:$12 sps:$4 sm:$0xff]   ;;  %s11359_s1 = smov 10  }
   0xc   :  { %7302 = vmatpush3.bf16.msra.mxu1 %v1243_v10  ;;  %v7528_v33 = vld [vmem:[%s11313_s0] ss:$12 sps:$4 sm:$0xff]   ;;  %v7532_v34 = vld [vmem:[%s11313_s0 + $0x1c] ss:$12 sps:$4 sm:$0xff]   ;;  %v7534_v37 = vld [vmem:[%s11313_s0 + $0x18] ss:$12 sps:$4 sm:$0xff]  }
   0xd   :  { %v7570_v35 = vld [vmem:[%s11313_s0 + $0x110] ss:$12 sps:$4 sm:$0xff]   ;;  %v7536_v38 = vld [vmem:[%s11313_s0 + $0x34] ss:$12 sps:$4 sm:$0xff]   ;;  %v7583_v40 = vld [vmem:[%s11313_s0 + $0x158] ss:$12 sps:$4 sm:$0xff]  }
   0xe   :  { %1252 = vmatpush1.bf16.msra.mxu0 %v7511_v4  ;;  %v7578_v39 = vld [vmem:[%s11313_s0 + $0x140] ss:$12 sps:$4 sm:$0xff]   ;;  %v7539_v41 = vld [vmem:[%s11313_s0 + $0x30] ss:$12 sps:$4 sm:$0xff]   ;;  %v7591_v44 = vld [vmem:[%s11313_s0 + $0x188] ss:$12 sps:$4 sm:$0xff]  }
   0xf   :  { %1253 = vmatprep.subr.bf16.mxu0 %v11322_v0  ;;  %7304 = vmatmul.mubr.msk.bf16.vlgmr.msra.gmra.mrb[0].mxu1 %vm1096_vm1, %v7531_v14  ;;  %v7540_v42 = vld [vmem:[%s11313_s0 + $0x4c] ss:$12 sps:$4 sm:$0xff]   ;;  %v7586_v43 = vld [vmem:[%s11313_s0 + $0x170] ss:$12 sps:$4 sm:$0xff]   ;;  %v7542_v45 = vld [vmem:[%s11313_s0 + $0x48] ss:$12 sps:$4 sm:$0xff]  }
  0x10   :  { %7307 = vmatprep.mubr.msk.bf16.mxu1 %vm1096_vm1, %v7535_v15  ;;  %v7544_v46 = vld [vmem:[%s11313_s0 + $0x64] ss:$12 sps:$4 sm:$0xff]   ;;  %v7594_v47 = vld [vmem:[%s11313_s0 + $0x1a0] ss:$12 sps:$4 sm:$0xff]   ;;  %v7548_v50 = vld [vmem:[%s11313_s0 + $0x7c] ss:$12 sps:$4 sm:$0xff]  }
  0x11   :  { %v7599_v48 = vld [vmem:[%s11313_s0 + $0x1b8] ss:$12 sps:$4 sm:$0xff]   ;;  %v7547_v49 = vld [vmem:[%s11313_s0 + $0x60] ss:$12 sps:$4 sm:$0xff]   ;;  %v7602_v51 = vld [vmem:[%s11313_s0 + $0x1d0] ss:$12 sps:$4 sm:$0xff]  }
  0x12   :  { %1254 = vmatpush1.bf16.msra.mxu0 %v7512_v6  ;;  %v7607_v52 = vld [vmem:[%s11313_s0 + $0x1e8] ss:$12 sps:$4 sm:$0xff]   ;;  %v7550_v53 = vld [vmem:[%s11313_s0 + $0x78] ss:$12 sps:$4 sm:$0xff]   ;;  %v7610_v55 = vld [vmem:[%s11313_s0 + $0x200] ss:$12 sps:$4 sm:$0xff]  }
  0x13   :  { %1255 = vmatprep.subr.bf16.mxu0 %v11322_v0  ;;  %v7552_v54 = vld [vmem:[%s11313_s0 + $0x94] ss:$12 sps:$4 sm:$0xff]   ;;  %v7615_v56 = vld [vmem:[%s11313_s0 + $0x218] ss:$12 sps:$4 sm:$0xff]   ;;  %v7555_v57 = vld [vmem:[%s11313_s0 + $0x90] ss:$12 sps:$4 sm:$0xff]  }
  0x14   :  { %v7556_v58 = vld [vmem:[%s11313_s0 + $0xac] ss:$12 sps:$4 sm:$0xff]   ;;  %v7618_v59 = vld [vmem:[%s11313_s0 + $0x230] ss:$12 sps:$4 sm:$0xff]   ;;  %v7558_v60 = vld [vmem:[%s11313_s0 + $0xa8] ss:$12 sps:$4 sm:$0xff]  }
  0x15   :  { %v7560_v61 = vld [vmem:[%s11313_s0 + $0xc4] ss:$12 sps:$4 sm:$0xff]   ;;  %v7623_v62 = vld [vmem:[%s11313_s0 + $0x248] ss:$12 sps:$4 sm:$0xff]   ;;  %v7626_v63 = vld [vmem:[%s11313_s0 + $0x260] ss:$12 sps:$4 sm:$0xff]  }
  0x16   :  { %1256 = vmatpush1.bf16.msra.mxu0 %v7513_v9  ;;  %v7563_v1 = vld [vmem:[%s11313_s0 + $0xc0] ss:$12 sps:$4 sm:$0xff]   ;;  %v7564_v2 = vld [vmem:[%s11313_s0 + $0xdc] ss:$12 sps:$4 sm:$0xff]   ;;  %v7566_v3 = vld [vmem:[%s11313_s0 + $0xd8] ss:$12 sps:$4 sm:$0xff]  }
  0x17   :  { %1257 = vmatprep.subr.bf16.mxu0 %v11322_v0  ;;  %7308 = vmatmul.mubr.msk.bf16.gmra.mrb[4].mxu1 %vm1096_vm1, %v7538_v18  ;;  %v7568_v4 = vld [vmem:[%s11313_s0 + $0xf4] ss:$12 sps:$4 sm:$0xff]   ;;  %v7631_v5 = vld [vmem:[%s11313_s0 + $0x278] ss:$12 sps:$4 sm:$0xff]   ;;  %v7634_v6 = vld [vmem:[%s11313_s0 + $0x290] ss:$12 sps:$4 sm:$0xff]  }
  0x18   :  { %7311 = vmatprep.mubr.msk.bf16.mxu1 %vm1096_vm1, %v7543_v19  ;;  %v7571_v7 = vld [vmem:[%s11313_s0 + $0xf0] ss:$12 sps:$4 sm:$0xff]   ;;  %v7572_v8 = vld [vmem:[%s11313_s0 + $0x10c] ss:$12 sps:$4 sm:$0xff]   ;;  %v7574_v9 = vld [vmem:[%s11313_s0 + $0x108] ss:$12 sps:$4 sm:$0xff]  }
  0x19   :  { %v7576_v10 = vld [vmem:[%s11313_s0 + $0x124] ss:$12 sps:$4 sm:$0xff]   ;;  %v7579_v11 = vld [vmem:[%s11313_s0 + $0x120] ss:$12 sps:$4 sm:$0xff]   ;;  %v7639_v12 = vld [vmem:[%s11313_s0 + $0x2a8] ss:$12 sps:$4 sm:$0xff]  }
  0x1a   :  { %1258 = vmatpush1.bf16.msra.mxu0 %v7514_v13  ;;  %v7580_v13 = vld [vmem:[%s11313_s0 + $0x13c] ss:$12 sps:$4 sm:$0xff]   ;;  %v7642_v14 = vld [vmem:[%s11313_s0 + $0x2c0] ss:$12 sps:$4 sm:$0xff]   ;;  %v7582_v15 = vld [vmem:[%s11313_s0 + $0x138] ss:$12 sps:$4 sm:$0xff]  }
  0x1b   :  { %1259 = vmatprep.subr.bf16.mxu0 %v11322_v0  ;;  %v7647_v18 = vld [vmem:[%s11313_s0 + $0x2d8] ss:$12 sps:$4 sm:$0xff]   ;;  %s11427_s21 = smov 84   ;;  %s11391_s22 = smov 102   ;;  %vm11438_vm5 = vcmask 589056   ;;  %vm2284_vm6 = vcmask 982656  }
  0x1c   :  { %v7588_v19 = vld [vmem:[%s11313_s0 + $0x16c] ss:$12 sps:$4 sm:$0xff]   ;;  %s11385_s23 = smov 46   ;;  %s11383_s24 = smov 26   ;;  %vm2309_vm7 = vcmask 1048512   ;;  %vm11424_vm8 = vcmask 195584  }
  0x1d   :  { %s11426_s25 = smov 14   ;;  %s11425_s26 = smov 122   ;;  %vm11440_vm9 = vcmask 64512   ;;  %vm2471_vm10 = vcmask 130048   ;;  %vm2419_vm11 = vcmask 523456   ;;  %vm2444_vm12 = vcmask 851456  }
  0x1e   :  { %1260 = vmatpush1.bf16.msra.mxu0 %v7515_v16  ;;  %v7584_v16 = vld [vmem:[%s11313_s0 + $0x154] ss:$12 sps:$4 sm:$0xff]   ;;  %s11409_s27 = smov 24   ;;  %s11420_s28 = smov 82   ;;  %vm11441_vm13 = vcmask 1048384   ;;  %vm11423_vm14 = vcmask 392256  }
  0x1f   :  { %1261 = vmatprep.subr.bf16.mxu0 %v11322_v0  ;;  %7312 = vmatmul.mubr.msk.bf16.gmra.mrb[8].mxu1 %vm1096_vm1, %v7546_v22  ;;  %v7592_v22 = vld [vmem:[%s11313_s0 + $0x184] ss:$12 sps:$4 sm:$0xff]   ;;  %s11389_s29 = smov 66   ;;  %vm11422_vm15 = vcmask 720256   ;;  %vm2364_vm0 = vcmask 917056   ;;  %s11610_s6 = smov 12  }
  0x20   :  { %7315 = vmatprep.mubr.msk.bf16.mxu1 %vm1096_vm1, %v7551_v23  ;;  %v7595_v23 = vld [vmem:[%s11313_s0 + $0x180] ss:$12 sps:$4 sm:$0xff]   ;;  %s11434_s8 = smov 112   ;;  %s11611_s9 = smov 116  }
  0x21   :  { %s11613_s5 = smov 96   ;;  %s11615_s4 = smov 112  }
  0x22   :  { %1262 = vmatpush1.bf16.msra.mxu0 %v7516_v17  ;;  %v7587_v17 = vld [vmem:[%s11313_s0 + $0x150] ss:$12 sps:$4 sm:$0xff]   ;;  %s11635_s7 = smov 60  }
  0x23   :  { %1263 = vmatprep.subr.bf16.mxu0 %v11322_v0 }
  0x26   :  { %1264 = vmatpush1.bf16.msra.mxu0 %v7517_v20  ;;  %v7650_v20 = vld [vmem:[%s11313_s0 + $0x2f0] ss:$12 sps:$4 sm:$0xff]  }
  0x27   :  { %1265 = vmatprep.subr.bf16.mxu0 %v11322_v0  ;;  %7316 = vmatmul.mubr.msk.bf16.gmra.mrb[12].mxu1 %vm1096_vm1, %v7554_v26  ;;  %v7658_v26 = vld [vmem:[%s11313_s0 + $0x320] ss:$12 sps:$4 sm:$0xff]  }
  0x28   :  { %7319 = vmatprep.mubr.msk.bf16.mxu1 %vm1096_vm1, %v7559_v27  ;;  %v7598_v27 = vld [vmem:[%s11313_s0 + $0x198] ss:$12 sps:$4 sm:$0xff]  }
  0x2a   :  { %1266 = vmatpush1.bf16.msra.mxu0 %v7518_v21  ;;  %v7590_v21 = vld [vmem:[%s11313_s0 + $0x168] ss:$12 sps:$4 sm:$0xff]  }
  0x2b   :  { %1267 = vmatprep.subr.bf16.mxu0 %v11322_v0 }
  0x2e   :  { %1268 = vmatpush1.bf16.msra.mxu0 %v7519_v24  ;;  %v7655_v24 = vld [vmem:[%s11313_s0 + $0x308] ss:$12 sps:$4 sm:$0xff]  }
  0x2f   :  { %1269 = vmatprep.subr.bf16.mxu0 %v11322_v0  ;;  %7320 = vmatmul.mubr.msk.bf16.gmra.mrb[16].mxu1 %vm1096_vm1, %v7562_v30  ;;  %v7663_v30 = vld [vmem:[%s11313_s0 + $0x338] ss:$12 sps:$4 sm:$0xff]  }
  0x30   :  { %7323 = vmatprep.mubr.msk.bf16.mxu1 %vm1096_vm1, %v7567_v31  ;;  %v7604_v31 = vld [vmem:[%s11313_s0 + $0x1cc] ss:$12 sps:$4 sm:$0xff]  }
  0x32   :  { %1270 = vmatpush1.bf16.msra.mxu0 %v7520_v25  ;;  %v7596_v25 = vld [vmem:[%s11313_s0 + $0x19c] ss:$12 sps:$4 sm:$0xff]  }
  0x33   :  { %1271 = vmatprep.subr.bf16.mxu0 %v11322_v0 }
  0x36   :  { %1272 = vmatpush1.bf16.msra.mxu0 %v7522_v28  ;;  %v7600_v28 = vld [vmem:[%s11313_s0 + $0x1b4] ss:$12 sps:$4 sm:$0xff]  }
  0x37   :  { %1273 = vmatprep.subr.bf16.mxu0 %v11322_v0  ;;  %7324 = vmatmul.mubr.msk.bf16.gmra.mrb[20].mxu1 %vm1096_vm1, %v7570_v35  ;;  %v7671_v35 = vld [vmem:[%s11313_s0 + $0x368] ss:$12 sps:$4 sm:$0xff]  }
  0x38   :  { %7327 = vmatprep.mubr.msk.bf16.mxu1 %vm1096_vm1, %v7575_v36  ;;  %v7672_v36 = vld [vmem:[%s11313_s0 + $0x380] ss:$12 sps:$4 sm:$0xff]  }
  0x3a   :  { %1274 = vmatpush1.bf16.msra.mxu0 %v7524_v29  ;;  %v7603_v29 = vld [vmem:[%s11313_s0 + $0x1b0] ss:$12 sps:$4 sm:$0xff]  }
  0x3b   :  { %1275 = vmatprep.subr.bf16.mxu0 %v11322_v0 }
  0x3e   :  { %1276 = vmatpush1.bf16.msra.mxu0 %v7526_v32  ;;  %v7666_v32 = vld [vmem:[%s11313_s0 + $0x350] ss:$12 sps:$4 sm:$0xff]  }
  0x3f   :  { %7328 = vmatmul.mubr.msk.bf16.gmra.mrb[24].mxu1 %vm1096_vm1, %v7578_v39  ;;  %v7614_v39 = vld [vmem:[%s11313_s0 + $0x1f8] ss:$12 sps:$4 sm:$0xff]  }
  0x40   :  { %7331 = vmatprep.mubr.msk.bf16.mxu1 %vm1096_vm1, %v7583_v40  ;;  %v7616_v40 = vld [vmem:[%s11313_s0 + $0x214] ss:$12 sps:$4 sm:$0xff]  }
  0x41   :  { %1278 = vmatmul.mubr.bf16.vlgmr.msra.gmra.mrb[0].mxu0 %v7528_v33  ;;  %v7606_v33 = vld [vmem:[%s11313_s0 + $0x1c8] ss:$12 sps:$4 sm:$0xff]  }
  0x42   :  { %1285 = vmatprep.mubr.bf16.mxu0 %v7532_v34  ;;  %v7608_v34 = vld [vmem:[%s11313_s0 + $0x1e4] ss:$12 sps:$4 sm:$0xff]  }
  0x47   :  { %7332 = vmatmul.mubr.msk.bf16.gmra.mrb[28].mxu1 %vm1096_vm1, %v7586_v43  ;;  %v7620_v43 = vld [vmem:[%s11313_s0 + $0x22c] ss:$12 sps:$4 sm:$0xff]  }
  0x48   :  { %7335 = vmatprep.mubr.msk.bf16.mxu1 %vm1096_vm1, %v7591_v44 }
  0x49   :  { %1286 = vmatmul.mubr.bf16.gmra.mrb[4].mxu0 %v7534_v37  ;;  %v7611_v37 = vld [vmem:[%s11313_s0 + $0x1e0] ss:$12 sps:$4 sm:$0xff]  }
  0x4a   :  { %1293 = vmatprep.mubr.bf16.mxu0 %v7536_v38  ;;  %v7612_v38 = vld [vmem:[%s11313_s0 + $0x1fc] ss:$12 sps:$4 sm:$0xff]  }
  0x4f   :  { %7336 = vmatmul.mubr.msk.bf16.gmra.mrb[32].mxu1 %vm1096_vm1, %v7594_v47 }
  0x50   :  { %7339 = vmatprep.mubr.msk.bf16.mxu1 %vm1096_vm1, %v7599_v48 }
  0x51   :  { %1294 = vmatmul.mubr.bf16.gmra.mrb[8].mxu0 %v7539_v41  ;;  %v7619_v41 = vld [vmem:[%s11313_s0 + $0x210] ss:$12 sps:$4 sm:$0xff]  }
  0x52   :  { %1301 = vmatprep.mubr.bf16.mxu0 %v7540_v42  ;;  %v7679_v42 = vld [vmem:[%s11313_s0 + $0x398] ss:$12 sps:$4 sm:$0xff]  }
  0x57   :  { %7340 = vmatmul.mubr.msk.bf16.gmra.mrb[36].mxu1 %vm1096_vm1, %v7602_v51 }
  0x58   :  { %7343 = vmatprep.mubr.msk.bf16.mxu1 %vm1096_vm1, %v7607_v52 }
  0x59   :  { %1302 = vmatmul.mubr.bf16.gmra.mrb[12].mxu0 %v7542_v45  ;;  %v7682_v45 = vld [vmem:[%s11313_s0 + $0x3b0] ss:$12 sps:$4 sm:$0xff]  }
  0x5a   :  { %1309 = vmatprep.mubr.bf16.mxu0 %v7544_v46 }
  0x5f   :  { %7344 = vmatmul.mubr.msk.bf16.gmra.mrb[40].mxu1 %vm1096_vm1, %v7610_v55  ;;  %v7627_v55 = vld [vmem:[%s11313_s0 + $0x240] ss:$12 sps:$4 sm:$0xff]  }
  0x60   :  { %7347 = vmatprep.mubr.msk.bf16.mxu1 %vm1096_vm1, %v7615_v56  ;;  %v7687_v56 = vld [vmem:[%s11313_s0 + $0x3c8] ss:$12 sps:$4 sm:$0xff]  }
  0x61   :  { %1310 = vmatmul.mubr.bf16.gmra.mrb[16].mxu0 %v7547_v49  ;;  %v7622_v49 = vld [vmem:[%s11313_s0 + $0x228] ss:$12 sps:$4 sm:$0xff]  }
  0x62   :  { %1317 = vmatprep.mubr.bf16.mxu0 %v7548_v50  ;;  %v7624_v50 = vld [vmem:[%s11313_s0 + $0x244] ss:$12 sps:$4 sm:$0xff]  }
  0x67   :  { %7348 = vmatmul.mubr.msk.bf16.gmra.mrb[44].mxu1 %vm1096_vm1, %v7618_v59  ;;  %v7690_v59 = vld [vmem:[%s11313_s0 + $0x3e0] ss:$12 sps:$4 sm:$0xff]  }
  0x68   :  { %7351 = vmatprep.mubr.msk.bf16.mxu1 %vm1096_vm1, %v7623_v62 }
  0x69   :  { %1318 = vmatmul.mubr.bf16.gmra.mrb[20].mxu0 %v7550_v53 }
  0x6a   :  { %1325 = vmatprep.mubr.bf16.mxu0 %v7552_v54 }
  0x6f   :  { %7352 = vmatmul.mubr.msk.bf16.gmra.mrb[48].mxu1 %vm1096_vm1, %v7626_v63  ;;  %v7630_v63 = vld [vmem:[%s11313_s0 + $0x258] ss:$12 sps:$4 sm:$0xff]  }
  0x70   :  { %7355 = vmatprep.mubr.msk.bf16.mxu1 %vm1096_vm1, %v7631_v5 }
  0x71   :  { %1326 = vmatmul.mubr.bf16.gmra.mrb[24].mxu0 %v7555_v57  ;;  %v7628_v57 = vld [vmem:[%s11313_s0 + $0x25c] ss:$12 sps:$4 sm:$0xff]  }
  0x72   :  { %1333 = vmatprep.mubr.bf16.mxu0 %v7556_v58 }
  0x77   :  { %7356 = vmatmul.mubr.msk.bf16.gmra.mrb[52].mxu1 %vm1096_vm1, %v7634_v6  ;;  %v7635_v6 = vld [vmem:[%s11313_s0 + $0x270] ss:$12 sps:$4 sm:$0xff]  }
  0x78   :  { %7359 = vmatprep.mubr.msk.bf16.mxu1 %vm1096_vm1, %v7639_v12 }
  0x79   :  { %1334 = vmatmul.mubr.bf16.gmra.mrb[28].mxu0 %v7558_v60 }
  0x7a   :  { %1341 = vmatprep.mubr.bf16.mxu0 %v7560_v61 }
  0x7f   :  { %7360 = vmatmul.mubr.msk.bf16.gmra.mrb[56].mxu1 %vm1096_vm1, %v7642_v14 }
  0x80   :  { %7363 = vmatprep.mubr.msk.bf16.mxu1 %vm1096_vm1, %v7647_v18 }
  0x81   :  { %1342 = vmatmul.mubr.bf16.gmra.mrb[32].mxu0 %v7563_v1  ;;  %v7632_v1 = vld [vmem:[%s11313_s0 + $0x274] ss:$12 sps:$4 sm:$0xff]  }
  0x82   :  { %1349 = vmatprep.mubr.bf16.mxu0 %v7564_v2 }
  0x87   :  { %7364 = vmatmul.mubr.msk.bf16.gmra.mrb[60].mxu1 %vm1096_vm1, %v7650_v20 }
  0x88   :  { %7367 = vmatprep.mubr.msk.bf16.mxu1 %vm1096_vm1, %v7655_v24 }
  0x89   :  { %1350 = vmatmul.mubr.bf16.gmra.mrb[36].mxu0 %v7566_v3 }
  0x8a   :  { %1357 = vmatprep.mubr.bf16.mxu0 %v7568_v4 }
  0x8f   :  { %7368 = vmatmul.mubr.msk.bf16.gmra.mrb[64].mxu1 %vm1096_vm1, %v7658_v26 }
  0x90   :  { %7371 = vmatprep.mubr.msk.bf16.mxu1 %vm1096_vm1, %v7663_v30  ;;  %v7703_v30 = vld [vmem:[%s11313_s0 + $0x428] ss:$12 sps:$4 sm:$0xff]  }
  0x91   :  { %1358 = vmatmul.mubr.bf16.gmra.mrb[40].mxu0 %v7571_v7  ;;  %v7695_v7 = vld [vmem:[%s11313_s0 + $0x3f8] ss:$12 sps:$4 sm:$0xff]  }
  0x92   :  { %1365 = vmatprep.mubr.bf16.mxu0 %v7572_v8  ;;  %v7636_v8 = vld [vmem:[%s11313_s0 + $0x28c] ss:$12 sps:$4 sm:$0xff]  }
  0x97   :  { %7372 = vmatmul.mubr.msk.bf16.gmra.mrb[68].mxu1 %vm1096_vm1, %v7666_v32  ;;  %v7644_v32 = vld [vmem:[%s11313_s0 + $0x2bc] ss:$12 sps:$4 sm:$0xff]  }
  0x98   :  { %7375 = vmatprep.mubr.msk.bf16.mxu1 %vm1096_vm1, %v7671_v35 }
  0x99   :  { %1366 = vmatmul.mubr.bf16.gmra.mrb[44].mxu0 %v7574_v9 }
  0x9a   :  { %1373 = vmatprep.mubr.bf16.mxu0 %v7576_v10  ;;  %v7698_v10 = vld [vmem:[%s11313_s0 + $0x410] ss:$12 sps:$4 sm:$0xff]  }
  0x9f   :  { %7376 = vmatmul.mubr.msk.bf16.gmra.mrb[72].mxu1 %vm1096_vm1, %v7672_v36 }
  0xa0   :  { %7379 = vmatprep.mubr.msk.bf16.mxu1 %vm1096_vm1, %v7679_v42 }
  0xa1   :  { %1374 = vmatmul.mubr.bf16.gmra.mrb[48].mxu0 %v7579_v11 }
  0xa2   :  { %1381 = vmatprep.mubr.bf16.mxu0 %v7580_v13 }
  0xa7   :  { %7380 = vmatmul.mubr.msk.bf16.gmra.mrb[76].mxu1 %vm1096_vm1, %v7682_v45  ;;  %v7648_v45 = vld [vmem:[%s11313_s0 + $0x2d4] ss:$12 sps:$4 sm:$0xff]  }
  0xa8   :  { %7383 = vmatprep.mubr.msk.bf16.mxu1 %vm1096_vm1, %v7687_v56 }
  0xa9   :  { %1382 = vmatmul.mubr.bf16.gmra.mrb[52].mxu0 %v7582_v15 }
  0xaa   :  { %1389 = vmatprep.mubr.bf16.mxu0 %v7584_v16 }
  0xaf   :  { %7384 = vmatmul.mubr.msk.bf16.gmra.mrb[80].mxu1 %vm1096_vm1, %v7690_v59  ;;  %v7651_v59 = vld [vmem:[%s11313_s0 + $0x2d0] ss:$12 sps:$4 sm:$0xff]  }
  0xb0   :  { %7387 = vmatprep.mubr.msk.bf16.mxu1 %vm1096_vm1, %v7695_v7 }
  0xb1   :  { %1390 = vmatmul.mubr.bf16.gmra.mrb[56].mxu0 %v7587_v17  ;;  %v7638_v17 = vld [vmem:[%s11313_s0 + $0x288] ss:$12 sps:$4 sm:$0xff]  }
  0xb2   :  { %1397 = vmatprep.mubr.bf16.mxu0 %v7588_v19  ;;  %v7640_v19 = vld [vmem:[%s11313_s0 + $0x2a4] ss:$12 sps:$4 sm:$0xff]  }
  0xb7   :  { %7388 = vmatmul.mubr.msk.bf16.gmra.mrb[84].mxu1 %vm1096_vm1, %v7698_v10 }
  0xb8   :  { %7391 = vmatprep.mubr.msk.bf16.mxu1 %vm1096_vm1, %v7703_v30 }
  0xb9   :  { %1398 = vmatmul.mubr.bf16.gmra.mrb[60].mxu0 %v7590_v21 }
  0xba   :  { %1405 = vmatprep.mubr.bf16.mxu0 %v7592_v22 }
  0xc1   :  { %1406 = vmatmul.mubr.bf16.gmra.mrb[64].mxu0 %v7595_v23 }
  0xc2   :  { %1413 = vmatprep.mubr.bf16.mxu0 %v7596_v25 }
  0xc9   :  { %1414 = vmatmul.mubr.bf16.gmra.mrb[68].mxu0 %v7598_v27 }
  0xca   :  { %1421 = vmatprep.mubr.bf16.mxu0 %v7600_v28 }
  0xd1   :  { %1422 = vmatmul.mubr.bf16.gmra.mrb[72].mxu0 %v7603_v29  ;;  %v7643_v29 = vld [vmem:[%s11313_s0 + $0x2a0] ss:$12 sps:$4 sm:$0xff]  }
  0xd2   :  { %1429 = vmatprep.mubr.bf16.mxu0 %v7604_v31 }
  0xd9   :  { %1430 = vmatmul.mubr.bf16.gmra.mrb[76].mxu0 %v7606_v33 }
  0xda   :  { %1437 = vmatprep.mubr.bf16.mxu0 %v7608_v34  ;;  %v7706_v34 = vld [vmem:[%s11313_s0 + $0x440] ss:$12 sps:$4 sm:$0xff]  }
  0xdb   :  { %7392 = vmatmul.mubr.msk.bf16.gmra.mrb[88].mxu1 %vm1096_vm1, %v7706_v34 }
  0xe1   :  { %1438 = vmatmul.mubr.bf16.gmra.mrb[80].mxu0 %v7611_v37 }
  0xe2   :  { %1445 = vmatprep.mubr.bf16.mxu0 %v7612_v38  ;;  %v8273_v44 = vpop.f32.mrb[0].mxu1 }
  0xe3   :  { %v1696_v46 = vpop.f32.mrb[1].mxu1 }
  0xe4   :  { %v8279_v47 = vpop.f32.mrb[2].mxu1 }
  0xe5   :  { %v1699_v48 = vpop.f32.mrb[3].mxu1 }
  0xe9   :  { %1446 = vmatmul.mubr.bf16.gmra.mrb[84].mxu0 %v7614_v39 }
  0xea   :  { %1453 = vmatprep.mubr.bf16.mxu0 %v7616_v40  ;;  %v8288_v51 = vpop.f32.mrb[4].mxu1 }
  0xeb   :  { %v8290_v52 = vpop.f32.mrb[5].mxu1 }
  0xec   :  { %v8292_v53 = vpop.f32.mrb[6].mxu1 }
  0xed   :  { %v8294_v54 = vpop.f32.mrb[7].mxu1 }
  0xf1   :  { %1454 = vmatmul.mubr.bf16.gmra.mrb[88].mxu0 %v7619_v41 }
  0xf2   :  { %1461 = vmatprep.mubr.bf16.mxu0 %v7620_v43  ;;  %v8305_v58 = vpop.f32.mrb[8].mxu1  ;;  %v7646_v43 = vld [vmem:[%s11313_s0 + $0x2b8] ss:$12 sps:$4 sm:$0xff]  }
  0xf3   :  { %v8310_v60 = vpop.f32.mrb[9].mxu1 }
  0xf4   :  { %v8313_v61 = vpop.f32.mrb[10].mxu1 }
  0xf5   :  { %v8316_v62 = vpop.f32.mrb[11].mxu1 }
  0xf9   :  { %1462 = vmatmul.mubr.bf16.gmra.mrb[92].mxu0 %v7622_v49 }
  0xfa   :  { %1469 = vmatprep.mubr.bf16.mxu0 %v7624_v50  ;;  %v8324_v2 = vpop.f32.mrb[12].mxu1 }
  0xfb   :  { %v8326_v3 = vpop.f32.mrb[13].mxu1 }
  0xfc   :  { %v8328_v4 = vpop.f32.mrb[14].mxu1 }
  0xfd   :  { %v8330_v5 = vpop.f32.mrb[15].mxu1 }
 0x101   :  { %1470 = vmatmul.mubr.bf16.gmra.mrb[96].mxu0 %v7627_v55 }
 0x102   :  { %1477 = vmatprep.mubr.bf16.mxu0 %v7628_v57  ;;  %v8341_v9 = vpop.f32.mrb[16].mxu1 }
 0x103   :  { %v8346_v11 = vpop.f32.mrb[17].mxu1 }
 0x104   :  { %v8349_v12 = vpop.f32.mrb[18].mxu1 }
 0x105   :  { %v8352_v13 = vpop.f32.mrb[19].mxu1 }
 0x109   :  { %1478 = vmatmul.mubr.bf16.gmra.mrb[100].mxu0 %v7630_v63 }
 0x10a   :  { %1485 = vmatprep.mubr.bf16.mxu0 %v7632_v1  ;;  %v8362_v20 = vpop.f32.mrb[20].mxu1  ;;  %v7652_v1 = vld [vmem:[%s11313_s0 + $0x2ec] ss:$12 sps:$4 sm:$0xff]  }
 0x10b   :  { %v8366_v23 = vpop.f32.mrb[21].mxu1 }
 0x10c   :  { %v8368_v24 = vpop.f32.mrb[22].mxu1 }
 0x10d   :  { %v8370_v25 = vpop.f32.mrb[23].mxu1 }
 0x111   :  { %1486 = vmatmul.mubr.bf16.gmra.mrb[104].mxu0 %v7635_v6 }
 0x112   :  { %1493 = vmatprep.mubr.bf16.mxu0 %v7636_v8  ;;  %v8384_v33 = vpop.f32.mrb[24].mxu1 }
 0x113   :  { %v8392_v37 = vpop.f32.mrb[25].mxu1 }
 0x114   :  { %v1279_v14 = vpop.f32.mrb[0].mxu0  ;;  %v8395_v38 = vpop.f32.mrb[26].mxu1 }
 0x115   :  { %v8354_v15 = vadd.f32 %v1696_v46, %v1279_v14  ;;  %v1281_v16 = vpop.f32.mrb[1].mxu0  ;;  %v8398_v39 = vpop.f32.mrb[27].mxu1 }
 0x116   :  { %v1282_v18 = vpop.f32.mrb[2].mxu0 }
 0x117   :  { %v8364_v21 = vadd.f32 %v1699_v48, %v1282_v18  ;;  %v1284_v22 = vpop.f32.mrb[3].mxu0 }
 0x119   :  { %1494 = vmatmul.mubr.bf16.gmra.mrb[108].mxu0 %v7638_v17 }
 0x11a   :  { %1501 = vmatprep.mubr.bf16.mxu0 %v7640_v19  ;;  %v8409_v46 = vpop.f32.mrb[28].mxu1 }
 0x11b   :  { %v8414_v49 = vpop.f32.mrb[29].mxu1 }
 0x11c   :  { %v1287_v26 = vpop.f32.mrb[4].mxu0  ;;  %v8416_v50 = vpop.f32.mrb[30].mxu1 }
 0x11d   :  { %v8373_v27 = vadd.f32 %v8273_v44, %v1287_v26  ;;  %v1289_v28 = vpop.f32.mrb[5].mxu0  ;;  %v7656_v26 = vld [vmem:[%s11313_s0 + $0x304] ss:$12 sps:$4 sm:$0xff]  }
 0x11e   :  { %v1290_v31 = vpop.f32.mrb[6].mxu0 }
 0x11f   :  { %11448 = vst [vmem:[#allocation4_spill] sm:$0xff] %v8373_v27  ;;  %v8390_v35 = vadd.f32 %v8279_v47, %v1290_v31  ;;  %v1292_v36 = vpop.f32.mrb[7].mxu0 }
 0x121   :  { %11449 = vst [vmem:[#allocation5_spill] sm:$0xff] %v8390_v35  ;;  %1502 = vmatmul.mubr.bf16.gmra.mrb[112].mxu0 %v7643_v29 }
 0x122   :  { %1509 = vmatprep.mubr.bf16.mxu0 %v7644_v32 }
 0x124   :  { %v1295_v40 = vpop.f32.mrb[8].mxu0 }
 0x125   :  { %v8401_v41 = vadd.f32 %v8290_v52, %v1295_v40  ;;  %v1297_v42 = vpop.f32.mrb[9].mxu0  ;;  %v8418_v52 = vpop.f32.mrb[31].mxu1 }
 0x126   :  { %v1298_v44 = vpop.f32.mrb[10].mxu0  ;;  %v8432_v6 = vpop.f32.mrb[32].mxu1  ;;  %v7659_v42 = vld [vmem:[%s11313_s0 + $0x300] ss:$12 sps:$4 sm:$0xff]  }
 0x127   :  { %v8412_v47 = vadd.f32 %v8294_v54, %v1298_v44  ;;  %v1300_v48 = vpop.f32.mrb[11].mxu0  ;;  %v7711_v54 = vld [vmem:[%s11313_s0 + $0x458] ss:$12 sps:$4 sm:$0xff]   ;;  %v8440_v10 = vpop.f32.mrb[33].mxu1 }
 0x128   :  { %7395 = vmatprep.mubr.msk.bf16.mxu1 %vm1096_vm1, %v7711_v54  ;;  %v8443_v14 = vpop.f32.mrb[34].mxu1 }
 0x129   :  { %1510 = vmatmul.mubr.bf16.gmra.mrb[116].mxu0 %v7646_v43  ;;  %v8446_v16 = vpop.f32.mrb[35].mxu1  ;;  %v7660_v43 = vld [vmem:[%s11313_s0 + $0x31c] ss:$12 sps:$4 sm:$0xff]  }
 0x12a   :  { %1517 = vmatprep.mubr.bf16.mxu0 %v7648_v45  ;;  %v8457_v28 = vpop.f32.mrb[36].mxu1 }
 0x12b   :  { %v8462_v31 = vpop.f32.mrb[37].mxu1 }
 0x12c   :  { %v1303_v55 = vpop.f32.mrb[12].mxu0 }
 0x12d   :  { %v8421_v56 = vadd.f32 %v8288_v51, %v1303_v55  ;;  %v1305_v57 = vpop.f32.mrb[13].mxu0  ;;  %v7714_v51 = vld [vmem:[%s11313_s0 + $0x470] ss:$12 sps:$4 sm:$0xff]  }
 0x12e   :  { %v1306_v63 = vpop.f32.mrb[14].mxu0  ;;  %7396 = vmatmul.mubr.msk.bf16.gmra.mrb[92].mxu1 %vm1096_vm1, %v7714_v51  ;;  %v7664_v51 = vld [vmem:[%s11313_s0 + $0x334] ss:$12 sps:$4 sm:$0xff]   ;;  %vm2389_vm1 = vcmask 1048448  }
 0x12f   :  { %11450 = vst [vmem:[#allocation6_spill] sm:$0xff] %v8421_v56  ;;  %v8438_v7 = vadd.f32 %v8292_v53, %v1306_v63  ;;  %v1308_v8 = vpop.f32.mrb[15].mxu0  ;;  %v7654_v53 = vld [vmem:[%s11313_s0 + $0x2e8] ss:$12 sps:$4 sm:$0xff]  }
 0x131   :  { %11451 = vst [vmem:[#allocation7_spill] sm:$0xff] %v8438_v7  ;;  %1518 = vmatmul.mubr.bf16.gmra.mrb[120].mxu0 %v7651_v59 }
 0x132   :  { %1525 = vmatprep.mubr.bf16.mxu0 %v7652_v1  ;;  %v7662_v1 = vld [vmem:[%s11313_s0 + $0x318] ss:$12 sps:$4 sm:$0xff]  }
 0x134   :  { %v1311_v17 = vpop.f32.mrb[16].mxu0 }
 0x135   :  { %v8449_v18 = vadd.f32 %v8310_v60, %v1311_v17  ;;  %v1313_v19 = vpop.f32.mrb[17].mxu0  ;;  %v8464_v60 = vpop.f32.mrb[38].mxu1 }
 0x136   :  { %v1314_v22 = vpop.f32.mrb[18].mxu0  ;;  %v8466_v32 = vpop.f32.mrb[39].mxu1 }
 0x137   :  { %v8460_v29 = vadd.f32 %v8316_v62, %v1314_v22  ;;  %v1316_v30 = vpop.f32.mrb[19].mxu0  ;;  %v8477_v44 = vpop.f32.mrb[40].mxu1 }
 0x138   :  { %v8482_v55 = vpop.f32.mrb[41].mxu1 }
 0x139   :  { %1526 = vmatmul.mubr.bf16.gmra.mrb[124].mxu0 %v7654_v53 }
 0x13a   :  { %1533 = vmatprep.mubr.bf16.mxu0 %v7656_v26 }
 0x13c   :  { %v1319_v34 = vpop.f32.mrb[20].mxu0 }
 0x13d   :  { %v8469_v36 = vadd.f32 %v8305_v58, %v1319_v34  ;;  %v1321_v40 = vpop.f32.mrb[21].mxu0  ;;  %v8484_v58 = vpop.f32.mrb[42].mxu1 }
 0x13e   :  { %v1322_v62 = vpop.f32.mrb[22].mxu0  ;;  %v8486_v57 = vpop.f32.mrb[43].mxu1  ;;  %v7667_v40 = vld [vmem:[%s11313_s0 + $0x330] ss:$12 sps:$4 sm:$0xff]  }
 0x13f   :  { %11452 = vst [vmem:[#allocation8_spill] sm:$0xff] %v8469_v36  ;;  %v8480_v45 = vadd.f32 %v8313_v61, %v1322_v62  ;;  %v1324_v48 = vpop.f32.mrb[23].mxu0  ;;  %v8497_v8 = vpop.f32.mrb[44].mxu1 }
 0x140   :  { %v8502_v53 = vpop.f32.mrb[45].mxu1 }
 0x141   :  { %11453 = vst [vmem:[#allocation9_spill] sm:$0xff] %v8480_v45  ;;  %1534 = vmatmul.mubr.bf16.gmra.mrb[128].mxu0 %v7659_v42  ;;  %v7668_v42 = vld [vmem:[%s11313_s0 + $0x34c] ss:$12 sps:$4 sm:$0xff]  }
 0x142   :  { %1541 = vmatprep.mubr.bf16.mxu0 %v7660_v43 }
 0x144   :  { %v1327_v59 = vpop.f32.mrb[24].mxu0 }
 0x145   :  { %v8489_v54 = vadd.f32 %v8326_v3, %v1327_v59  ;;  %v1329_v63 = vpop.f32.mrb[25].mxu0  ;;  %v8504_v3 = vpop.f32.mrb[46].mxu1 }
 0x146   :  { %v1330_v61 = vpop.f32.mrb[26].mxu0  ;;  %v8506_v22 = vpop.f32.mrb[47].mxu1 }
 0x147   :  { %v8500_v17 = vadd.f32 %v8330_v5, %v1330_v61  ;;  %v1332_v19 = vpop.f32.mrb[27].mxu0  ;;  %v8520_v48 = vpop.f32.mrb[48].mxu1  ;;  %v7670_v61 = vld [vmem:[%s11313_s0 + $0x348] ss:$12 sps:$4 sm:$0xff]  }
 0x148   :  { %v8522_v59 = vpop.f32.mrb[49].mxu1  ;;  %v7673_v19 = vld [vmem:[%s11313_s0 + $0x364] ss:$12 sps:$4 sm:$0xff]  }
 0x149   :  { %11454 = vst [vmem:[#allocation10_spill] sm:$0xff] %v8500_v17  ;;  %1542 = vmatmul.mubr.bf16.gmra.mrb[132].mxu0 %v7662_v1 }
 0x14a   :  { %1549 = vmatprep.mubr.bf16.mxu0 %v7664_v51  ;;  %v8530_v51 = vpop.f32.mrb[50].mxu1 }
 0x14c   :  { %v1335_v26 = vpop.f32.mrb[28].mxu0 }
 0x14d   :  { %v8509_v30 = vadd.f32 %v8324_v2, %v1335_v26  ;;  %v1337_v34 = vpop.f32.mrb[29].mxu0  ;;  %v8535_v26 = vpop.f32.mrb[51].mxu1 }
 0x14e   :  { %v1338_v5 = vpop.f32.mrb[30].mxu0 }
 0x14f   :  { %11455 = vst [vmem:[#allocation11_spill] sm:$0xff] %v8509_v30  ;;  %v8518_v62 = vadd.f32 %v8328_v4, %v1338_v5  ;;  %v1340_v43 = vpop.f32.mrb[31].mxu0 }
 0x150   :  { %v7675_v43 = vld [vmem:[%s11313_s0 + $0x360] ss:$12 sps:$4 sm:$0xff]  }
 0x151   :  { %11456 = vst [vmem:[#allocation12_spill] sm:$0xff] %v8518_v62  ;;  %1550 = vmatmul.mubr.bf16.gmra.mrb[136].mxu0 %v7667_v40 }
 0x152   :  { %1557 = vmatprep.mubr.bf16.mxu0 %v7668_v42 }
 0x154   :  { %v1343_v2 = vpop.f32.mrb[32].mxu0 }
 0x155   :  { %v8525_v63 = vadd.f32 %v8346_v11, %v1343_v2  ;;  %v1345_v1 = vpop.f32.mrb[33].mxu0 }
 0x156   :  { %v1346_v4 = vpop.f32.mrb[34].mxu0  ;;  %v7676_v1 = vld [vmem:[%s11313_s0 + $0x37c] ss:$12 sps:$4 sm:$0xff]  }
 0x157   :  { %11457 = vst [vmem:[#allocation13_spill] sm:$0xff] %v8525_v63  ;;  %v8538_v34 = vadd.f32 %v8352_v13, %v1346_v4  ;;  %v1348_v40 = vpop.f32.mrb[35].mxu0 }
 0x159   :  { %11458 = vst [vmem:[#allocation14_spill] sm:$0xff] %v8538_v34  ;;  %1558 = vmatmul.mubr.bf16.gmra.mrb[140].mxu0 %v7670_v61  ;;  %v8552_v61 = vpop.f32.mrb[52].mxu1 }
 0x15a   :  { %1565 = vmatprep.mubr.bf16.mxu0 %v7673_v19  ;;  %11461 = vst [vmem:[#allocation17_spill] sm:$0xff] %v8552_v61  ;;  %v8554_v19 = vpop.f32.mrb[53].mxu1 }
 0x15b   :  { %11462 = vst [vmem:[#allocation18_spill] sm:$0xff] %v8554_v19  ;;  %v8562_v0 = vpop.f32.mrb[54].mxu1 }
 0x15c   :  { %v1351_v11 = vpop.f32.mrb[36].mxu0  ;;  %11464 = vst [vmem:[#allocation20_spill] sm:$0xff] %v8562_v0  ;;  %v7683_v0 = vld [vmem:[%s11313_s0 + $0x390] ss:$12 sps:$4 sm:$0xff]  }
 0x15d   :  { %v8541_v5 = vadd.f32 %v8341_v9, %v1351_v11  ;;  %v1353_v42 = vpop.f32.mrb[37].mxu0 }
 0x15e   :  { %v1354_v2 = vpop.f32.mrb[38].mxu0  ;;  %v7678_v42 = vld [vmem:[%s11313_s0 + $0x378] ss:$12 sps:$4 sm:$0xff]  }
 0x15f   :  { %11459 = vst [vmem:[#allocation15_spill] sm:$0xff] %v8541_v5  ;;  %v8550_v13 = vadd.f32 %v8349_v12, %v1354_v2  ;;  %v1356_v4 = vpop.f32.mrb[39].mxu0  ;;  %v7680_v2 = vld [vmem:[%s11313_s0 + $0x394] ss:$12 sps:$4 sm:$0xff]  }
 0x161   :  { %11460 = vst [vmem:[#allocation16_spill] sm:$0xff] %v8550_v13  ;;  %1566 = vmatmul.mubr.bf16.gmra.mrb[144].mxu0 %v7675_v43  ;;  %v8567_v43 = vpop.f32.mrb[55].mxu1 }
 0x162   :  { %1573 = vmatprep.mubr.bf16.mxu0 %v7676_v1  ;;  %11465 = vst [vmem:[#allocation21_spill] sm:$0xff] %v8567_v43  ;;  %v7684_v43 = vld [vmem:[%s11313_s0 + $0x3ac] ss:$12 sps:$4 sm:$0xff]  }
 0x163   :  { %v11496_v34 = vld [vmem:[#allocation20_spill] sm:$0xff] }
 0x164   :  { %v1359_v9 = vpop.f32.mrb[40].mxu0 }
 0x165   :  { %v8557_v40 = vadd.f32 %v8366_v23, %v1359_v9  ;;  %v1361_v11 = vpop.f32.mrb[41].mxu0 }
 0x166   :  { %v1362_v12 = vpop.f32.mrb[42].mxu0 }
 0x167   :  { %11463 = vst [vmem:[#allocation19_spill] sm:$0xff] %v8557_v40  ;;  %v8570_v1 = vadd.f32 %v8370_v25, %v1362_v12  ;;  %v1364_v4 = vpop.f32.mrb[43].mxu0 }
 0x169   :  { %11466 = vst [vmem:[#allocation22_spill] sm:$0xff] %v8570_v1  ;;  %1574 = vmatmul.mubr.bf16.gmra.mrb[148].mxu0 %v7678_v42  ;;  %v8584_v42 = vpop.f32.mrb[56].mxu1  ;;  %v11492_v1 = vld [vmem:[#allocation18_spill] sm:$0xff] }
 0x16a   :  { %1581 = vmatprep.mubr.bf16.mxu0 %v7680_v2  ;;  %11469 = vst [vmem:[#allocation25_spill] sm:$0xff] %v8584_v42  ;;  %v8586_v2 = vpop.f32.mrb[57].mxu1 }
 0x16b   :  { %11470 = vst [vmem:[#allocation26_spill] sm:$0xff] %v8586_v2  ;;  %v8594_v19 = vpop.f32.mrb[58].mxu1 }
 0x16c   :  { %v1367_v23 = vpop.f32.mrb[44].mxu0  ;;  %11471 = vst [vmem:[#allocation27_spill] sm:$0xff] %v8594_v19 }
 0x16d   :  { %v8573_v9 = vadd.f32 %v8362_v20, %v1367_v23  ;;  %v1369_v11 = vpop.f32.mrb[45].mxu0 }
 0x16e   :  { %v1370_v61 = vpop.f32.mrb[46].mxu0  ;;  %v7686_v11 = vld [vmem:[%s11313_s0 + $0x3a8] ss:$12 sps:$4 sm:$0xff]  }
 0x16f   :  { %11467 = vst [vmem:[#allocation23_spill] sm:$0xff] %v8573_v9  ;;  %v8582_v25 = vadd.f32 %v8368_v24, %v1370_v61  ;;  %v1372_v12 = vpop.f32.mrb[47].mxu0  ;;  %v8599_v61 = vpop.f32.mrb[59].mxu1 }
 0x170   :  { %11472 = vst [vmem:[#allocation28_spill] sm:$0xff] %v8599_v61  ;;  %v7691_v61 = vld [vmem:[%s11313_s0 + $0x3c0] ss:$12 sps:$4 sm:$0xff]  }
 0x171   :  { %11468 = vst [vmem:[#allocation24_spill] sm:$0xff] %v8582_v25  ;;  %1582 = vmatmul.mubr.bf16.gmra.mrb[152].mxu0 %v7683_v0  ;;  %v7688_v0 = vld [vmem:[%s11313_s0 + $0x3c4] ss:$12 sps:$4 sm:$0xff]  }
 0x172   :  { %1589 = vmatprep.mubr.bf16.mxu0 %v7684_v43 }
 0x174   :  { %v1375_v20 = vpop.f32.mrb[48].mxu0 }
 0x175   :  { %v8589_v4 = vadd.f32 %v8392_v37, %v1375_v20  ;;  %v1377_v23 = vpop.f32.mrb[49].mxu0 }
 0x176   :  { %v1378_v24 = vpop.f32.mrb[50].mxu0 }
 0x177   :  { %v8604_v37 = vadd.f32 %v8398_v39, %v1378_v24  ;;  %v1380_v12 = vpop.f32.mrb[51].mxu0  ;;  %v7692_v39 = vld [vmem:[%s11313_s0 + $0x3dc] ss:$12 sps:$4 sm:$0xff]  }
 0x179   :  { %1590 = vmatmul.mubr.bf16.gmra.mrb[156].mxu0 %v7686_v11 }
 0x17a   :  { %1597 = vmatprep.mubr.bf16.mxu0 %v7688_v0 }
 0x17c   :  { %v1383_v23 = vpop.f32.mrb[52].mxu0 }
 0x17d   :  { %v8609_v19 = vadd.f32 %v8384_v33, %v1383_v23  ;;  %v1385_v42 = vpop.f32.mrb[53].mxu0 }
 0x17e   :  { %v1386_v2 = vpop.f32.mrb[54].mxu0  ;;  %v8624_v42 = vpop.f32.mrb[60].mxu1 }
 0x17f   :  { %11473 = vst [vmem:[#allocation29_spill] sm:$0xff] %v8609_v19  ;;  %v8620_v11 = vadd.f32 %v8395_v38, %v1386_v2  ;;  %v1388_v0 = vpop.f32.mrb[55].mxu0  ;;  %v8626_v23 = vpop.f32.mrb[61].mxu1  ;;  %v7694_v38 = vld [vmem:[%s11313_s0 + $0x3d8] ss:$12 sps:$4 sm:$0xff]  }
 0x180   :  { %v8634_v2 = vpop.f32.mrb[62].mxu1  ;;  %v7699_v19 = vld [vmem:[%s11313_s0 + $0x3f0] ss:$12 sps:$4 sm:$0xff]  }
 0x181   :  { %11474 = vst [vmem:[#allocation30_spill] sm:$0xff] %v8620_v11  ;;  %1598 = vmatmul.mubr.bf16.gmra.mrb[160].mxu0 %v7691_v61  ;;  %v7696_v61 = vld [vmem:[%s11313_s0 + $0x3f4] ss:$12 sps:$4 sm:$0xff]  }
 0x182   :  { %1605 = vmatprep.mubr.bf16.mxu0 %v7692_v39  ;;  %v8639_v39 = vpop.f32.mrb[63].mxu1 }
 0x184   :  { %v1391_v12 = vpop.f32.mrb[56].mxu0 }
 0x185   :  { %v8629_v20 = vadd.f32 %v8414_v49, %v1391_v12  ;;  %v1393_v43 = vpop.f32.mrb[57].mxu0 }
 0x186   :  { %v1394_v0 = vpop.f32.mrb[58].mxu0 }
 0x187   :  { %v8644_v49 = vadd.f32 %v8418_v52, %v1394_v0  ;;  %v1396_v43 = vpop.f32.mrb[59].mxu0  ;;  %v7700_v52 = vld [vmem:[%s11313_s0 + $0x40c] ss:$12 sps:$4 sm:$0xff]  }
 0x189   :  { %1606 = vmatmul.mubr.bf16.gmra.mrb[164].mxu0 %v7694_v38 }
 0x18a   :  { %1613 = vmatprep.mubr.bf16.mxu0 %v7696_v61 }
 0x18c   :  { %v1399_v24 = vpop.f32.mrb[60].mxu0 }
 0x18d   :  { %v8649_v11 = vadd.f32 %v8409_v46, %v1399_v24  ;;  %v1401_v35 = vpop.f32.mrb[61].mxu0 }
 0x18e   :  { %v1402_v27 = vpop.f32.mrb[62].mxu0  ;;  %v8664_v35 = vpop.f32.mrb[64].mxu1 }
 0x18f   :  { %11475 = vst [vmem:[#allocation31_spill] sm:$0xff] %v8649_v11  ;;  %v8660_v38 = vadd.f32 %v8416_v50, %v1402_v27  ;;  %v1404_v61 = vpop.f32.mrb[63].mxu0  ;;  %v8666_v43 = vpop.f32.mrb[65].mxu1  ;;  %v7702_v27 = vld [vmem:[%s11313_s0 + $0x408] ss:$12 sps:$4 sm:$0xff]  }
 0x190   :  { %v8674_v50 = vpop.f32.mrb[66].mxu1  ;;  %v7707_v11 = vld [vmem:[%s11313_s0 + $0x420] ss:$12 sps:$4 sm:$0xff]  }
 0x191   :  { %11476 = vst [vmem:[#allocation32_spill] sm:$0xff] %v8660_v38  ;;  %1614 = vmatmul.mubr.bf16.gmra.mrb[168].mxu0 %v7699_v19  ;;  %v7704_v19 = vld [vmem:[%s11313_s0 + $0x424] ss:$12 sps:$4 sm:$0xff]  }
 0x192   :  { %1621 = vmatprep.mubr.bf16.mxu0 %v7700_v52  ;;  %v8679_v52 = vpop.f32.mrb[67].mxu1 }
 0x194   :  { %v1407_v24 = vpop.f32.mrb[64].mxu0 }
 0x195   :  { %v8669_v12 = vadd.f32 %v8440_v10, %v1407_v24  ;;  %v1409_v33 = vpop.f32.mrb[65].mxu0 }
 0x196   :  { %v1410_v61 = vpop.f32.mrb[66].mxu0 }
 0x197   :  { %v8684_v10 = vadd.f32 %v8446_v16, %v1410_v61  ;;  %v1412_v33 = vpop.f32.mrb[67].mxu0  ;;  %v7708_v16 = vld [vmem:[%s11313_s0 + $0x43c] ss:$12 sps:$4 sm:$0xff]  }
 0x199   :  { %1622 = vmatmul.mubr.bf16.gmra.mrb[172].mxu0 %v7702_v27 }
 0x19a   :  { %1629 = vmatprep.mubr.bf16.mxu0 %v7704_v19 }
 0x19c   :  { %v1415_v0 = vpop.f32.mrb[68].mxu0 }
 0x19d   :  { %v8689_v38 = vadd.f32 %v8432_v6, %v1415_v0  ;;  %v1417_v7 = vpop.f32.mrb[69].mxu0 }
 0x19e   :  { %v1418_v56 = vpop.f32.mrb[70].mxu0  ;;  %v8704_v7 = vpop.f32.mrb[68].mxu1 }
 0x19f   :  { %11477 = vst [vmem:[#allocation33_spill] sm:$0xff] %v8689_v38  ;;  %v8700_v27 = vadd.f32 %v8443_v14, %v1418_v56  ;;  %v1420_v19 = vpop.f32.mrb[71].mxu0  ;;  %v8706_v33 = vpop.f32.mrb[69].mxu1  ;;  %v7710_v56 = vld [vmem:[%s11313_s0 + $0x438] ss:$12 sps:$4 sm:$0xff]  }
 0x1a0   :  { %v8714_v14 = vpop.f32.mrb[70].mxu1  ;;  %v7715_v38 = vld [vmem:[%s11313_s0 + $0x450] ss:$12 sps:$4 sm:$0xff]  }
 0x1a1   :  { %11478 = vst [vmem:[#allocation34_spill] sm:$0xff] %v8700_v27  ;;  %1630 = vmatmul.mubr.bf16.gmra.mrb[176].mxu0 %v7707_v11  ;;  %v7712_v11 = vld [vmem:[%s11313_s0 + $0x454] ss:$12 sps:$4 sm:$0xff]  }
 0x1a2   :  { %1637 = vmatprep.mubr.bf16.mxu0 %v7708_v16  ;;  %v8719_v16 = vpop.f32.mrb[71].mxu1 }
 0x1a4   :  { %v1423_v0 = vpop.f32.mrb[72].mxu0 }
 0x1a5   :  { %v8709_v24 = vadd.f32 %v8462_v31, %v1423_v0  ;;  %v1425_v46 = vpop.f32.mrb[73].mxu0 }
 0x1a6   :  { %v1426_v19 = vpop.f32.mrb[74].mxu0 }
 0x1a7   :  { %11479 = vst [vmem:[#allocation35_spill] sm:$0xff] %v8709_v24  ;;  %v8724_v31 = vadd.f32 %v8466_v32, %v1426_v19  ;;  %v1428_v46 = vpop.f32.mrb[75].mxu0  ;;  %v7716_v32 = vld [vmem:[%s11313_s0 + $0x46c] ss:$12 sps:$4 sm:$0xff]  }
 0x1a8   :  { %v8742_v46 = vpop.f32.mrb[72].mxu1 }
 0x1a9   :  { %11480 = vst [vmem:[#allocation36_spill] sm:$0xff] %v8724_v31  ;;  %1638 = vmatmul.mubr.bf16.gmra.mrb[180].mxu0 %v7710_v56 }
 0x1aa   :  { %1645 = vmatprep.mubr.bf16.mxu0 %v7712_v11 }
 0x1ac   :  { %v1431_v61 = vpop.f32.mrb[76].mxu0 }
 0x1ad   :  { %v8729_v27 = vadd.f32 %v8457_v28, %v1431_v61  ;;  %v1433_v45 = vpop.f32.mrb[77].mxu0 }
 0x1ae   :  { %v1434_v36 = vpop.f32.mrb[78].mxu0  ;;  %v8746_v45 = vpop.f32.mrb[73].mxu1 }
 0x1af   :  { %11481 = vst [vmem:[#allocation37_spill] sm:$0xff] %v8729_v27  ;;  %v8740_v56 = vadd.f32 %v8464_v60, %v1434_v36  ;;  %v1436_v11 = vpop.f32.mrb[79].mxu0  ;;  %v8748_v61 = vpop.f32.mrb[74].mxu1  ;;  %v7718_v36 = vld [vmem:[%s11313_s0 + $0x468] ss:$12 sps:$4 sm:$0xff]   ;;  %s11416_s0 = smov 44  }
 0x1b0   :  { %v8750_v0 = vpop.f32.mrb[75].mxu1 }
 0x1b1   :  { %11482 = vst [vmem:[#allocation38_spill] sm:$0xff] %v8740_v56  ;;  %1646 = vmatmul.mubr.bf16.gmra.mrb[184].mxu0 %v7715_v38 }
 0x1b2   :  { %1653 = vmatprep.mubr.bf16.mxu0 %v7716_v32 }
 0x1b4   :  { %v1439_v6 = vpop.f32.mrb[80].mxu0 }
 0x1b5   :  { %v8753_v19 = vadd.f32 %v8482_v55, %v1439_v6  ;;  %v1441_v60 = vpop.f32.mrb[81].mxu0 }
 0x1b6   :  { %v1442_v11 = vpop.f32.mrb[82].mxu0 }
 0x1b7   :  { %11483 = vst [vmem:[#allocation39_spill] sm:$0xff] %v8753_v19  ;;  %v8761_v28 = vadd.f32 %v8486_v57, %v1442_v11  ;;  %v1444_v32 = vpop.f32.mrb[83].mxu0  ;;  %v8775_v11 = vpop.f32.mrb[76].mxu1 }
 0x1b9   :  { %11484 = vst [vmem:[#allocation40_spill] sm:$0xff] %v8761_v28  ;;  %1654 = vmatmul.mubr.bf16.gmra.mrb[188].mxu0 %v7718_v36  ;;  %v8777_v36 = vpop.f32.mrb[77].mxu1 }
 0x1bc   :  { %v1447_v62 = vpop.f32.mrb[84].mxu0 }
 0x1bd   :  { %v8766_v55 = vadd.f32 %v8477_v44, %v1447_v62  ;;  %v1449_v6 = vpop.f32.mrb[85].mxu0 }
 0x1be   :  { %v1450_v60 = vpop.f32.mrb[86].mxu0  ;;  %v8782_v6 = vpop.f32.mrb[78].mxu1 }
 0x1bf   :  { %11485 = vst [vmem:[#allocation41_spill] sm:$0xff] %v8766_v55  ;;  %v8771_v30 = vadd.f32 %v8484_v58, %v1450_v60  ;;  %v1452_v38 = vpop.f32.mrb[87].mxu0  ;;  %v8784_v27 = vpop.f32.mrb[79].mxu1 }
 0x1c1   :  { %11486 = vst [vmem:[#allocation42_spill] sm:$0xff] %v8771_v30 }
 0x1c4   :  { %v1455_v32 = vpop.f32.mrb[88].mxu0 }
 0x1c5   :  { %v8780_v44 = vadd.f32 %v8502_v53, %v1455_v32  ;;  %v1457_v62 = vpop.f32.mrb[89].mxu0 }
 0x1c6   :  { %v1458_v56 = vpop.f32.mrb[90].mxu0 }
 0x1c7   :  { %11487 = vst [vmem:[#allocation43_spill] sm:$0xff] %v8780_v44  ;;  %v8789_v38 = vadd.f32 %v8506_v22, %v1458_v56  ;;  %v1460_v60 = vpop.f32.mrb[91].mxu0  ;;  %v8803_v56 = vpop.f32.mrb[80].mxu1 }
 0x1c8   :  { %v8805_v57 = vpop.f32.mrb[81].mxu1 }
 0x1c9   :  { %11488 = vst [vmem:[#allocation44_spill] sm:$0xff] %v8789_v38 }
 0x1cc   :  { %v1463_v30 = vpop.f32.mrb[92].mxu0 }
 0x1cd   :  { %v8794_v53 = vadd.f32 %v8497_v8, %v1463_v30  ;;  %v1465_v32 = vpop.f32.mrb[93].mxu0 }
 0x1ce   :  { %v1466_v62 = vpop.f32.mrb[94].mxu0  ;;  %v8810_v32 = vpop.f32.mrb[82].mxu1 }
 0x1cf   :  { %11489 = vst [vmem:[#allocation45_spill] sm:$0xff] %v8794_v53  ;;  %v8799_v55 = vadd.f32 %v8504_v3, %v1466_v62  ;;  %v1468_v58 = vpop.f32.mrb[95].mxu0  ;;  %v8812_v13 = vpop.f32.mrb[83].mxu1 }
 0x1d1   :  { %11490 = vst [vmem:[#allocation46_spill] sm:$0xff] %v8799_v55 }
 0x1d4   :  { %v1471_v60 = vpop.f32.mrb[96].mxu0 }
 0x1d5   :  { %v8808_v8 = vadd.f32 %v8522_v59, %v1471_v60  ;;  %v1473_v30 = vpop.f32.mrb[97].mxu0  ;;  %v8823_v60 = vpop.f32.mrb[84].mxu1 }
 0x1d6   :  { %v1474_v38 = vpop.f32.mrb[98].mxu0  ;;  %11491 = vst [vmem:[#allocation47_spill] sm:$0xff] %v8823_v60  ;;  %v8825_v9 = vpop.f32.mrb[85].mxu1 }
 0x1d7   :  { %v8815_v3 = vadd.f32 %v8535_v26, %v1474_v38  ;;  %v1476_v58 = vpop.f32.mrb[99].mxu0  ;;  %v8830_v38 = vpop.f32.mrb[86].mxu1 }
 0x1d8   :  { %11493 = vst [vmem:[#allocation18_spill] sm:$0xff] %v8830_v38  ;;  %v11499_v38 = vld [vmem:[#allocation26_spill] sm:$0xff] }
 0x1dc   :  { %v1479_v62 = vpop.f32.mrb[100].mxu0 }
 0x1dd   :  { %v8818_v22 = vadd.f32 %v8520_v48, %v1479_v62  ;;  %v1481_v55 = vpop.f32.mrb[101].mxu0  ;;  %v8832_v48 = vpop.f32.mrb[87].mxu1 }
 0x1de   :  { %v1482_v25 = vpop.f32.mrb[102].mxu0  ;;  %v11494_v55 = vld [vmem:[#allocation21_spill] sm:$0xff] }
 0x1df   :  { %v8821_v53 = vadd.f32 %v8530_v51, %v1482_v25  ;;  %v1484_v59 = vpop.f32.mrb[103].mxu0 }
 0x1e0   :  { %v11495_v59 = vld [vmem:[#allocation17_spill] sm:$0xff] }
 0x1e4   :  { %v1487_v30 = vpop.f32.mrb[104].mxu0 }
 0x1e5   :  { %v8828_v44 = vadd.f32 %v11492_v1, %v1487_v30  ;;  %v1489_v26 = vpop.f32.mrb[105].mxu0  ;;  %v8843_v30 = vpop.f32.mrb[88].mxu1 }
 0x1e6   :  { %v1490_v58 = vpop.f32.mrb[106].mxu0  ;;  %11497 = vst [vmem:[#allocation21_spill] sm:$0xff] %v8843_v30  ;;  %v8845_v63 = vpop.f32.mrb[89].mxu1 }
 0x1e7   :  { %v8835_v62 = vadd.f32 %v11494_v55, %v1490_v58  ;;  %v1492_v51 = vpop.f32.mrb[107].mxu0  ;;  %11498 = vst [vmem:[#allocation17_spill] sm:$0xff] %v8845_v63  ;;  %v8850_v55 = vpop.f32.mrb[90].mxu1  ;;  %v11504_v63 = vld [vmem:[#allocation27_spill] sm:$0xff] }
 0x1e8   :  { %11500 = vst [vmem:[#allocation20_spill] sm:$0xff] %v8850_v55 }
 0x1ec   :  { %v1495_v25 = vpop.f32.mrb[108].mxu0 }
 0x1ed   :  { %v8838_v40 = vadd.f32 %v11495_v59, %v1495_v25  ;;  %v1497_v5 = vpop.f32.mrb[109].mxu0  ;;  %v8852_v25 = vpop.f32.mrb[91].mxu1 }
 0x1ee   :  { %v1498_v28 = vpop.f32.mrb[110].mxu0  ;;  %11501 = vst [vmem:[#allocation26_spill] sm:$0xff] %v8852_v25  ;;  %v11502_v5 = vld [vmem:[#allocation28_spill] sm:$0xff] }
 0x1ef   :  { %v8841_v19 = vadd.f32 %v11496_v34, %v1498_v28  ;;  %v1500_v1 = vpop.f32.mrb[111].mxu0 }
 0x1f0   :  { %v11503_v1 = vld [vmem:[#allocation25_spill] sm:$0xff] }
 0x1f4   :  { %v1503_v26 = vpop.f32.mrb[112].mxu0 }
 0x1f5   :  { %v8848_v60 = vadd.f32 %v11499_v38, %v1503_v26  ;;  %v1505_v58 = vpop.f32.mrb[113].mxu0 }
 0x1f6   :  { %v1506_v51 = vpop.f32.mrb[114].mxu0 }
 0x1f7   :  { %v8855_v59 = vadd.f32 %v11502_v5, %v1506_v51  ;;  %v1508_v34 = vpop.f32.mrb[115].mxu0 }
 0x1fc   :  { %v1511_v28 = vpop.f32.mrb[116].mxu0 }
 0x1fd   :  { %v8858_v31 = vadd.f32 %v11503_v1, %v1511_v28  ;;  %v1513_v30 = vpop.f32.mrb[117].mxu0 }
 0x1fe   :  { %v1514_v17 = vpop.f32.mrb[118].mxu0 }
 0x1ff   :  { %v8861_v24 = vadd.f32 %v11504_v63, %v1514_v17  ;;  %v1516_v38 = vpop.f32.mrb[119].mxu0 }
 0x201   :  { %v8863_v26 = vpop.f32.mrb[92].mxu1 }
 0x202   :  { %11505 = vst [vmem:[#allocation28_spill] sm:$0xff] %v8863_v26  ;;  %v8865_v55 = vpop.f32.mrb[93].mxu1 }
 0x203   :  { %11506 = vst [vmem:[#allocation25_spill] sm:$0xff] %v8865_v55  ;;  %v8870_v5 = vpop.f32.mrb[94].mxu1 }
 0x204   :  { %v1519_v58 = vpop.f32.mrb[120].mxu0  ;;  %11507 = vst [vmem:[#allocation27_spill] sm:$0xff] %v8870_v5  ;;  %v8872_v28 = vpop.f32.mrb[95].mxu1 }
 0x205   :  { %v8868_v25 = vadd.f32 %v8626_v23, %v1519_v58  ;;  %v1521_v51 = vpop.f32.mrb[121].mxu0  ;;  %11508 = vst [vmem:[#allocation48_spill] sm:$0xff] %v8872_v28 }
 0x206   :  { %v1522_v34 = vpop.f32.mrb[122].mxu0 }
 0x207   :  { %v8875_v30 = vadd.f32 %v8639_v39, %v1522_v34  ;;  %v1524_v17 = vpop.f32.mrb[123].mxu0 }
 0x20c   :  { %v1527_v63 = vpop.f32.mrb[124].mxu0 }
 0x20d   :  { %v8878_v1 = vadd.f32 %v8624_v42, %v1527_v63  ;;  %v1529_v38 = vpop.f32.mrb[125].mxu0 }
 0x20e   :  { %v1530_v26 = vpop.f32.mrb[126].mxu0 }
 0x20f   :  { %v8881_v55 = vadd.f32 %v8634_v2, %v1530_v26  ;;  %v1532_v23 = vpop.f32.mrb[127].mxu0 }
 0x214   :  { %v1535_v58 = vpop.f32.mrb[128].mxu0 }
 0x215   :  { %v8884_v51 = vadd.f32 %v8666_v43, %v1535_v58  ;;  %v1537_v5 = vpop.f32.mrb[129].mxu0 }
 0x216   :  { %v1538_v28 = vpop.f32.mrb[130].mxu0 }
 0x217   :  { %v8887_v39 = vadd.f32 %v8679_v52, %v1538_v28  ;;  %v1540_v34 = vpop.f32.mrb[131].mxu0 }
 0x21c   :  { %v1543_v17 = vpop.f32.mrb[132].mxu0 }
 0x21d   :  { %v8890_v42 = vadd.f32 %v8664_v35, %v1543_v17  ;;  %v1545_v63 = vpop.f32.mrb[133].mxu0 }
 0x21e   :  { %v1546_v38 = vpop.f32.mrb[134].mxu0 }
 0x21f   :  { %v8893_v2 = vadd.f32 %v8674_v50, %v1546_v38  ;;  %v1548_v26 = vpop.f32.mrb[135].mxu0 }
 0x224   :  { %v1551_v23 = vpop.f32.mrb[136].mxu0 }
 0x225   :  { %v8896_v43 = vadd.f32 %v8706_v33, %v1551_v23  ;;  %v1553_v5 = vpop.f32.mrb[137].mxu0 }
 0x226   :  { %v1554_v58 = vpop.f32.mrb[138].mxu0 }
 0x227   :  { %11509 = vst [vmem:[#allocation49_spill] sm:$0xff] %v8896_v43  ;;  %v8899_v52 = vadd.f32 %v8719_v16, %v1554_v58  ;;  %v1556_v28 = vpop.f32.mrb[139].mxu0 }
 0x22c   :  { %v1559_v34 = vpop.f32.mrb[140].mxu0 }
 0x22d   :  { %v8902_v35 = vadd.f32 %v8704_v7, %v1559_v34  ;;  %v1561_v17 = vpop.f32.mrb[141].mxu0  ;;  %v8913_v7 = vld [vmem:[%s11314_s2] ss:$0 sm:$0xff]  ;;  %s11377_s2 = smov 108  }
 0x22e   :  { %v1562_v63 = vpop.f32.mrb[142].mxu0  ;;  %v11511_v17 = vmax.f32 %v8364_v21, %v8604_v37 }
 0x22f   :  { %v8905_v50 = vadd.f32 %v8714_v14, %v1562_v63  ;;  %v1564_v38 = vpop.f32.mrb[143].mxu0  ;;  %v11510_v14 = vmax.f32 %v8354_v15, %v8589_v4 }
 0x234   :  { %v1567_v26 = vpop.f32.mrb[144].mxu0 }
 0x235   :  { %v1985_v33 = vadd.f32 %v8746_v45, %v1567_v26  ;;  %v1569_v23 = vpop.f32.mrb[145].mxu0 }
 0x236   :  { %v1570_v5 = vpop.f32.mrb[146].mxu0 }
 0x237   :  { %v2103_v43 = vmax.f32 %v8808_v8, %v1985_v33  ;;  %v1988_v16 = vadd.f32 %v8750_v0, %v1570_v5  ;;  %v1572_v58 = vpop.f32.mrb[147].mxu0 }
 0x238   :  { %v11513_v58 = vld [vmem:[#allocation29_spill] sm:$0xff] }
 0x239   :  { %v2127_v28 = vmax.f32 %v11510_v14, %v2103_v43  ;;  %v2104_v34 = vmax.f32 %v8815_v3, %v1988_v16  ;;  %v11512_v16 = vld [vmem:[#allocation4_spill] sm:$0xff] }
 0x23a   :  { %v11514_v21 = vmax.f32 %v11512_v16, %v11513_v58 }
 0x23b   :  { %v2158_v45 = vadd.f32 %v8913_v7, %v2127_v28  ;;  %v2128_v8 = vmax.f32 %v11511_v17, %v2104_v34  ;;  %v11516_v34 = vld [vmem:[#allocation30_spill] sm:$0xff] }
 0x23c   :  { %v1575_v63 = vpop.f32.mrb[148].mxu0 }
 0x23d   :  { %v2159_v0 = vadd.f32 %v8913_v7, %v2128_v8  ;;  %v1993_v38 = vadd.f32 %v8742_v46, %v1575_v63  ;;  %v1577_v26 = vpop.f32.mrb[149].mxu0  ;;  %v2182_v23 = vmax.f32 %v2158_v45, 0.0  ;;  %v11515_v46 = vld [vmem:[#allocation5_spill] sm:$0xff] }
 0x23e   :  { %v1578_v33 = vpop.f32.mrb[150].mxu0  ;;  %v11517_v17 = vmax.f32 %v11515_v46, %v11516_v34  ;;  %v11520_v46 = vld [vmem:[#allocation6_spill] sm:$0xff]  ;;  %v11521_v34 = vld [vmem:[#allocation31_spill] sm:$0xff] }
 0x23f   :  { %v2183_v5 = vmax.f32 %v2159_v0, 0.0  ;;  %v2105_v15 = vmax.f32 %v8818_v22, %v1993_v38  ;;  %v1996_v4 = vadd.f32 %v8748_v61, %v1578_v33  ;;  %v1580_v3 = vpop.f32.mrb[151].mxu0 }
 0x241   :  { %v2206_v43 = vpack.c.bf16 %v2183_v5, %v2182_v23  ;;  %v2129_v37 = vmax.f32 %v11514_v21, %v2105_v15  ;;  %v2106_v14 = vmax.f32 %v8821_v53, %v1996_v4 }
 0x243   :  { %v2160_v28 = vadd.f32 %v8913_v7, %v2129_v37  ;;  %v2130_v45 = vmax.f32 %v11517_v17, %v2106_v14  ;;  %2247 = vrot.lane.b32.xlu1 %v2206_v43, %s11377_s2  ;;  %2297 = vrot.lane.b32.xlu0 %v2206_v43, %s11379_s30  ;;  %2235 = vst.msk [vmem:[#allocation3] sm:$0xff] %vm2234_vm2, %v2206_v43 }
 0x244   :  { %v1583_v61 = vpop.f32.mrb[152].mxu0 }
 0x245   :  { %v2161_v22 = vadd.f32 %v8913_v7, %v2130_v45  ;;  %v2001_v8 = vadd.f32 %v8777_v36, %v1583_v61  ;;  %v1585_v53 = vpop.f32.mrb[153].mxu0  ;;  %v2184_v0 = vmax.f32 %v2160_v28, 0.0  ;;  %v11518_v36 = vmax.f32 %v8401_v41, %v8629_v20 }
 0x246   :  { %v1586_v63 = vpop.f32.mrb[154].mxu0 }
 0x247   :  { %v2185_v38 = vmax.f32 %v2161_v22, 0.0  ;;  %v2107_v26 = vmax.f32 %v8828_v44, %v2001_v8  ;;  %v2004_v33 = vadd.f32 %v8784_v27, %v1586_v63  ;;  %2866 = vrot.lane.b32.xlu1 %v2206_v43, %s11363_s10  ;;  %2327 = vrot.lane.b32.xlu0 %v2206_v43, %s11418_s11  ;;  %v1588_v23 = vpop.f32.mrb[155].mxu0  ;;  %v11519_v27 = vmax.f32 %v8412_v47, %v8644_v49  ;;  %v11524_v22 = vld [vmem:[#allocation32_spill] sm:$0xff] }
 0x249   :  { %v8944_v5 = vpack.c.bf16 %v2185_v38, %v2184_v0  ;;  %v2131_v15 = vmax.f32 %v11518_v36, %v2107_v26  ;;  %v2108_v4 = vmax.f32 %v8835_v62, %v2004_v33 }
 0x24b   :  { %v2162_v3 = vadd.f32 %v8913_v7, %v2131_v15  ;;  %v2132_v44 = vmax.f32 %v11519_v27, %v2108_v4  ;;  %2890 = vrot.lane.b32.xlu1 %v2206_v43, %s11361_s12  ;;  %2272 = vrot.lane.b32.xlu0 %v2206_v43, %s11375_s13  ;;  %2236 = vst.msk [vmem:[#allocation3 + $0x40] sm:$0xff] %vm2234_vm2, %v8944_v5 }
 0x24c   :  { %v1591_v16 = vpop.f32.mrb[156].mxu0 }
 0x24d   :  { %v2163_v41 = vadd.f32 %v8913_v7, %v2132_v44  ;;  %v2009_v20 = vadd.f32 %v8775_v11, %v1591_v16  ;;  %v1593_v62 = vpop.f32.mrb[157].mxu0  ;;  %v2186_v21 = vmax.f32 %v2162_v3, 0.0  ;;  %v11522_v11 = vmax.f32 %v11520_v46, %v11521_v34 }
 0x24e   :  { %v1594_v58 = vpop.f32.mrb[158].mxu0 }
 0x24f   :  { %v2187_v37 = vmax.f32 %v2163_v41, 0.0  ;;  %v2109_v47 = vmax.f32 %v8838_v40, %v2009_v20  ;;  %v2012_v49 = vadd.f32 %v8782_v6, %v1594_v58  ;;  %2914 = vrot.lane.b32.xlu1 %v2206_v43, %s11359_s1  ;;  %2938 = vrot.lane.b32.xlu0 %v2206_v43, %s11373_s14  ;;  %v1596_v14 = vpop.f32.mrb[159].mxu0  ;;  %v11523_v40 = vld [vmem:[#allocation7_spill] sm:$0xff] }
 0x250   :  { %v11525_v6 = vmax.f32 %v11523_v40, %v11524_v22  ;;  %v11531_v14 = vld [vmem:[#allocation9_spill] sm:$0xff] }
 0x251   :  { %v8964_v28 = vpack.c.bf16 %v2187_v37, %v2186_v21  ;;  %v2133_v17 = vmax.f32 %v11522_v11, %v2109_v47  ;;  %v2110_v45 = vmax.f32 %v8841_v19, %v2012_v49  ;;  %v11528_v21 = vld [vmem:[#allocation8_spill] sm:$0xff] }
 0x253   :  { %v2164_v61 = vadd.f32 %v8913_v7, %v2133_v17  ;;  %v2134_v8 = vmax.f32 %v11525_v6, %v2110_v45  ;;  %2966 = vrot.lane.b32.xlu0 %v2206_v43, %s11371_s15  ;;  %2329 = vrot.lane.b32.xlu1 %v8944_v5, %s11418_s11  ;;  %2237 = vst.msk [vmem:[#allocation3 + $0x80] sm:$0xff] %vm2234_vm2, %v8964_v28 }
 0x254   :  { %v1599_v53 = vpop.f32.mrb[160].mxu0 }
 0x255   :  { %v2165_v63 = vadd.f32 %v8913_v7, %v2134_v8  ;;  %v2017_v19 = vadd.f32 %v8805_v57, %v1599_v53  ;;  %v1601_v0 = vpop.f32.mrb[161].mxu0  ;;  %v2188_v26 = vmax.f32 %v2164_v61, 0.0  ;;  %v11526_v57 = vmax.f32 %v8449_v18, %v8669_v12 }
 0x256   :  { %v1602_v38 = vpop.f32.mrb[162].mxu0 }
 0x257   :  { %v2189_v33 = vmax.f32 %v2165_v63, 0.0  ;;  %v2111_v23 = vmax.f32 %v8848_v60, %v2017_v19  ;;  %v2020_v36 = vadd.f32 %v8812_v13, %v1602_v38  ;;  %2940 = vrot.lane.b32.xlu1 %v8944_v5, %s11373_s14  ;;  %2299 = vrot.lane.b32.xlu0 %v8944_v5, %s11379_s30  ;;  %v1604_v43 = vpop.f32.mrb[163].mxu0  ;;  %v11527_v13 = vmax.f32 %v8460_v29, %v8684_v10 }
 0x259   :  { %v8987_v15 = vpack.c.bf16 %v2189_v33, %v2188_v26  ;;  %v2135_v4 = vmax.f32 %v11526_v57, %v2111_v23  ;;  %v2112_v3 = vmax.f32 %v8855_v59, %v2020_v36  ;;  %v11536_v26 = vld [vmem:[#allocation10_spill] sm:$0xff] }
 0x25b   :  { %v2166_v27 = vadd.f32 %v8913_v7, %v2135_v4  ;;  %v2136_v60 = vmax.f32 %v11527_v13, %v2112_v3  ;;  %2968 = vrot.lane.b32.xlu1 %v8944_v5, %s11371_s15  ;;  %2249 = vrot.lane.b32.xlu0 %v8944_v5, %s11377_s2  ;;  %2238 = vst.msk [vmem:[#allocation3 + $0xc0] sm:$0xff] %vm2234_vm2, %v8987_v15 }
 0x25c   :  { %v1607_v44 = vpop.f32.mrb[164].mxu0 }
 0x25d   :  { %v2167_v18 = vadd.f32 %v8913_v7, %v2136_v60  ;;  %v2025_v12 = vadd.f32 %v8803_v56, %v1607_v44  ;;  %v1609_v59 = vpop.f32.mrb[165].mxu0  ;;  %v2190_v41 = vmax.f32 %v2166_v27, 0.0  ;;  %v11529_v56 = vld [vmem:[#allocation33_spill] sm:$0xff]  ;;  %v11540_v60 = vld [vmem:[#allocation18_spill] sm:$0xff] }
 0x25e   :  { %v1610_v16 = vpop.f32.mrb[166].mxu0  ;;  %v11530_v37 = vmax.f32 %v11528_v21, %v11529_v56  ;;  %v11541_v59 = vld [vmem:[#allocation11_spill] sm:$0xff] }
 0x25f   :  { %v2191_v20 = vmax.f32 %v2167_v18, 0.0  ;;  %v2113_v29 = vmax.f32 %v8858_v31, %v2025_v12  ;;  %v2028_v10 = vadd.f32 %v8810_v32, %v1610_v16  ;;  %3598 = vrot.lane.b32.xlu1 %v8944_v5, %s7824_s16  ;;  %2274 = vrot.lane.b32.xlu0 %v8944_v5, %s11375_s13  ;;  %v1612_v62 = vpop.f32.mrb[167].mxu0  ;;  %v11532_v32 = vld [vmem:[#allocation34_spill] sm:$0xff]  ;;  %v11542_v16 = vld [vmem:[#allocation37_spill] sm:$0xff] }
 0x260   :  { %v11533_v46 = vmax.f32 %v11531_v14, %v11532_v32  ;;  %v11545_v62 = vld [vmem:[#allocation38_spill] sm:$0xff] }
 0x261   :  { %v9011_v58 = vpack.c.bf16 %v2191_v20, %v2190_v41  ;;  %v2137_v47 = vmax.f32 %v11530_v37, %v2113_v29  ;;  %v2114_v49 = vmax.f32 %v8861_v24, %v2028_v10  ;;  %v11543_v41 = vmax.f32 %v11541_v59, %v11542_v16  ;;  %v11544_v10 = vld [vmem:[#allocation12_spill] sm:$0xff]  ;;  %v11561_v59 = vld [vmem:[#allocation42_spill] sm:$0xff] }
 0x262   :  { %v11546_v21 = vmax.f32 %v11544_v10, %v11545_v62 }
 0x263   :  { %v2168_v31 = vadd.f32 %v8913_v7, %v2137_v47  ;;  %v2138_v34 = vmax.f32 %v11533_v46, %v2114_v49  ;;  %3622 = vrot.lane.b32.xlu1 %v8944_v5, %s11381_s17  ;;  %2868 = vrot.lane.b32.xlu0 %v8944_v5, %s11363_s10  ;;  %v11547_v47 = vld [vmem:[#allocation17_spill] sm:$0xff] }
 0x264   :  { %v1615_v11 = vpop.f32.mrb[168].mxu0 }
 0x265   :  { %v2169_v17 = vadd.f32 %v8913_v7, %v2138_v34  ;;  %v2033_v45 = vadd.f32 %v8825_v9, %v1615_v11  ;;  %v1617_v61 = vpop.f32.mrb[169].mxu0  ;;  %v2192_v40 = vmax.f32 %v2168_v31, 0.0  ;;  %v11534_v9 = vld [vmem:[#allocation35_spill] sm:$0xff]  ;;  %v11548_v11 = vld [vmem:[#allocation26_spill] sm:$0xff] }
 0x266   :  { %v1618_v24 = vpop.f32.mrb[170].mxu0  ;;  %v11535_v19 = vmax.f32 %v8489_v54, %v11534_v9  ;;  %v11539_v54 = vld [vmem:[#allocation47_spill] sm:$0xff]  ;;  %v11553_v9 = vld [vmem:[#allocation40_spill] sm:$0xff] }
 0x267   :  { %v2193_v22 = vmax.f32 %v2169_v17, 0.0  ;;  %v2115_v6 = vmax.f32 %v8868_v25, %v2033_v45  ;;  %v2036_v8 = vadd.f32 %v8832_v48, %v1618_v24  ;;  %2487 = vrot.lane.b32.xlu1 %v8944_v5, %s11399_s18  ;;  %2892 = vrot.lane.b32.xlu0 %v8944_v5, %s11361_s12  ;;  %v1620_v53 = vpop.f32.mrb[171].mxu0  ;;  %v11537_v48 = vld [vmem:[#allocation36_spill] sm:$0xff]  ;;  %v11549_v24 = vld [vmem:[#allocation13_spill] sm:$0xff] }
 0x268   :  { %v11538_v33 = vmax.f32 %v11536_v26, %v11537_v48  ;;  %v11552_v53 = vld [vmem:[#allocation14_spill] sm:$0xff] }
 0x269   :  { %v9033_v63 = vpack.c.bf16 %v2193_v22, %v2192_v40  ;;  %v2139_v0 = vmax.f32 %v11535_v19, %v2115_v6  ;;  %v2116_v38 = vmax.f32 %v8875_v30, %v2036_v8  ;;  %v11550_v40 = vld [vmem:[#allocation39_spill] sm:$0xff]  ;;  %v11554_v19 = vmax.f32 %v11552_v53, %v11553_v9 }
 0x26a   :  { %v11551_v22 = vmax.f32 %v11549_v24, %v11550_v40  ;;  %v11569_v24 = vld [vmem:[#allocation22_spill] sm:$0xff]  ;;  %v11570_v40 = vld [vmem:[#allocation44_spill] sm:$0xff] }
 0x26b   :  { %v2170_v25 = vadd.f32 %v8913_v7, %v2139_v0  ;;  %v2140_v23 = vmax.f32 %v11538_v33, %v2116_v38  ;;  %2512 = vrot.lane.b32.xlu1 %v8944_v5, %s11397_s19  ;;  %2916 = vrot.lane.b32.xlu0 %v8944_v5, %s11359_s1 }
 0x26c   :  { %v1623_v36 = vpop.f32.mrb[172].mxu0 }
 0x26d   :  { %v2171_v43 = vadd.f32 %v8913_v7, %v2140_v23  ;;  %v2041_v57 = vadd.f32 %v11539_v54, %v1623_v36  ;;  %v1625_v4 = vpop.f32.mrb[173].mxu0  ;;  %v2194_v3 = vmax.f32 %v2170_v25, 0.0  ;;  %v11555_v25 = vld [vmem:[#allocation21_spill] sm:$0xff]  ;;  %v11556_v54 = vld [vmem:[#allocation20_spill] sm:$0xff] }
 0x26e   :  { %v1626_v30 = vpop.f32.mrb[174].mxu0 }
 0x26f   :  { %v2195_v27 = vmax.f32 %v2171_v43, 0.0  ;;  %v2117_v13 = vmax.f32 %v8878_v1, %v2041_v57  ;;  %v2044_v44 = vadd.f32 %v11540_v60, %v1626_v30  ;;  %2537 = vrot.lane.b32.xlu1 %v8944_v5, %s11395_s20  ;;  %4222 = vrot.lane.b32.xlu0 %v8944_v5, %s11418_s11  ;;  %v1628_v18 = vpop.f32.mrb[175].mxu0 }
 0x270   :  { %v11560_v18 = vld [vmem:[#allocation16_spill] sm:$0xff] }
 0x271   :  { %v9055_v12 = vpack.c.bf16 %v2195_v27, %v2194_v3  ;;  %v2141_v20 = vmax.f32 %v11543_v41, %v2117_v13  ;;  %v2118_v29 = vmax.f32 %v8881_v55, %v2044_v44  ;;  %v11557_v3 = vld [vmem:[#allocation15_spill] sm:$0xff]  ;;  %v11558_v27 = vld [vmem:[#allocation41_spill] sm:$0xff]  ;;  %v11562_v16 = vmax.f32 %v11560_v18, %v11561_v59 }
 0x272   :  { %v11559_v13 = vmax.f32 %v11557_v3, %v11558_v27  ;;  %v11578_v3 = vld [vmem:[#allocation46_spill] sm:$0xff] }
 0x273   :  { %v2172_v1 = vadd.f32 %v8913_v7, %v2141_v20  ;;  %v2142_v56 = vmax.f32 %v11546_v21, %v2118_v29  ;;  %3118 = vrot.lane.b32.xlu1 %v8944_v5, %s11427_s21  ;;  %4246 = vrot.lane.b32.xlu0 %v8944_v5, %s11391_s22  ;;  %3486 = vst.msk [vmem:[#allocation3 + $0x200] sm:$0xff] %vm2234_vm2, %v9055_v12 }
 0x274   :  { %v1631_v37 = vpop.f32.mrb[176].mxu0 }
 0x275   :  { %v2173_v55 = vadd.f32 %v8913_v7, %v2142_v56  ;;  %v2049_v49 = vadd.f32 %v11547_v47, %v1631_v37  ;;  %v1633_v31 = vpop.f32.mrb[177].mxu0  ;;  %v2196_v32 = vmax.f32 %v2172_v1, 0.0  ;;  %v11564_v37 = vld [vmem:[#allocation49_spill] sm:$0xff]  ;;  %v11565_v47 = vld [vmem:[#allocation48_spill] sm:$0xff] }
 0x276   :  { %v1634_v14 = vpop.f32.mrb[178].mxu0 }
 0x277   :  { %v2197_v46 = vmax.f32 %v2173_v55, 0.0  ;;  %v2119_v34 = vmax.f32 %v8884_v51, %v2049_v49  ;;  %v2052_v17 = vadd.f32 %v11548_v11, %v1634_v14  ;;  %3142 = vrot.lane.b32.xlu1 %v8944_v5, %s11385_s23  ;;  %3698 = vrot.lane.b32.xlu0 %v8944_v5, %s11427_s21  ;;  %v1636_v45 = vpop.f32.mrb[179].mxu0 }
 0x279   :  { %v9079_v61 = vpack.c.bf16 %v2197_v46, %v2196_v32  ;;  %v2143_v6 = vmax.f32 %v11551_v22, %v2119_v34  ;;  %v2120_v8 = vmax.f32 %v8887_v39, %v2052_v17  ;;  %v11566_v32 = vld [vmem:[#allocation19_spill] sm:$0xff]  ;;  %v11571_v22 = vmax.f32 %v11569_v24, %v11570_v40 }
 0x27a   :  { %v11567_v46 = vld [vmem:[#allocation43_spill] sm:$0xff] }
 0x27b   :  { %v2174_v51 = vadd.f32 %v8913_v7, %v2143_v6  ;;  %v2144_v0 = vmax.f32 %v11554_v19, %v2120_v8  ;;  %3166 = vrot.lane.b32.xlu1 %v8944_v5, %s11383_s24  ;;  %3650 = vrot.lane.b32.xlu0 %v8944_v5, %s11426_s25  ;;  %3487 = vst.msk [vmem:[#allocation3 + $0x240] sm:$0xff] %vm2234_vm2, %v9079_v61 }
 0x27c   :  { %v1639_v38 = vpop.f32.mrb[180].mxu0  ;;  %v11568_v34 = vmax.f32 %v11566_v32, %v11567_v46 }
 0x27d   :  { %v2175_v39 = vadd.f32 %v8913_v7, %v2144_v0  ;;  %v2057_v26 = vadd.f32 %v11555_v25, %v1639_v38  ;;  %v1641_v48 = vpop.f32.mrb[181].mxu0  ;;  %v2198_v23 = vmax.f32 %v2174_v51, 0.0  ;;  %v11573_v25 = vld [vmem:[#allocation27_spill] sm:$0xff] }
 0x27e   :  { %v1642_v33 = vpop.f32.mrb[182].mxu0 }
 0x27f   :  { %v2199_v36 = vmax.f32 %v2175_v39, 0.0  ;;  %v2121_v43 = vmax.f32 %v8890_v42, %v2057_v26  ;;  %v2060_v57 = vadd.f32 %v11556_v54, %v1642_v33  ;;  %3674 = vrot.lane.b32.xlu0 %v8944_v5, %s11425_s26  ;;  %2331 = vrot.lane.b32.xlu1 %v8964_v28, %s11418_s11  ;;  %v1644_v4 = vpop.f32.mrb[183].mxu0 }
 0x280   :  { %v11577_v4 = vld [vmem:[#allocation24_spill] sm:$0xff] }
 0x281   :  { %v9103_v30 = vpack.c.bf16 %v2199_v36, %v2198_v23  ;;  %v2145_v60 = vmax.f32 %v11559_v13, %v2121_v43  ;;  %v2122_v44 = vmax.f32 %v8893_v2, %v2060_v57  ;;  %v11563_v2 = vld [vmem:[#allocation25_spill] sm:$0xff]  ;;  %v11574_v23 = vld [vmem:[#allocation23_spill] sm:$0xff]  ;;  %v11579_v27 = vmax.f32 %v11577_v4, %v11578_v3  ;;  %v7720_v4 = vld [vmem:[%s11315_s3] sm:$0xff]  }
 0x282   :  { %v11575_v36 = vld [vmem:[#allocation45_spill] sm:$0xff] }
 0x283   :  { %v2176_v42 = vadd.f32 %v8913_v7, %v2145_v60  ;;  %v2146_v41 = vmax.f32 %v11562_v16, %v2122_v44  ;;  %4322 = vrot.lane.b32.xlu0 %v8944_v5, %s11409_s27  ;;  %2870 = vrot.lane.b32.xlu1 %v8964_v28, %s11363_s10  ;;  %3488 = vst.msk [vmem:[#allocation3 + $0x280] sm:$0xff] %vm2234_vm2, %v9103_v30  ;;  %s11365_s10 = smov 96  }
 0x284   :  { %v1647_v20 = vpop.f32.mrb[184].mxu0  ;;  %v11576_v43 = vmax.f32 %v11574_v23, %v11575_v36 }
 0x285   :  { %v2177_v29 = vadd.f32 %v8913_v7, %v2146_v41  ;;  %v2065_v1 = vadd.f32 %v11563_v2, %v1647_v20  ;;  %v1649_v10 = vpop.f32.mrb[185].mxu0  ;;  %v2200_v21 = vmax.f32 %v2176_v42, 0.0 }
 0x286   :  { %v1650_v62 = vpop.f32.mrb[186].mxu0 }
 0x287   :  { %v2201_v56 = vmax.f32 %v2177_v29, 0.0  ;;  %v2123_v55 = vmax.f32 %v11564_v37, %v2065_v1  ;;  %v2068_v49 = vadd.f32 %v11565_v47, %v1650_v62  ;;  %4274 = vrot.lane.b32.xlu0 %v8944_v5, %s11420_s28  ;;  %2894 = vrot.lane.b32.xlu1 %v8964_v28, %s11361_s12  ;;  %v1652_v31 = vpop.f32.mrb[187].mxu0  ;;  %s11367_s12 = smov 116  }
 0x289   :  { %v9127_v14 = vpack.c.bf16 %v2201_v56, %v2200_v21  ;;  %v2147_v11 = vmax.f32 %v11568_v34, %v2123_v55  ;;  %v2124_v17 = vmax.f32 %v8899_v52, %v2068_v49  ;;  %v11572_v52 = vld [vmem:[#allocation28_spill] sm:$0xff] }
 0x28b   :  { %v2178_v45 = vadd.f32 %v8913_v7, %v2147_v11  ;;  %v2148_v6 = vmax.f32 %v11571_v22, %v2124_v17  ;;  %4298 = vrot.lane.b32.xlu0 %v8944_v5, %s11416_s0  ;;  %2918 = vrot.lane.b32.xlu1 %v8964_v28, %s11359_s1  ;;  %3489 = vst.msk [vmem:[#allocation3 + $0x2c0] sm:$0xff] %vm2234_vm2, %v9127_v14  ;;  %s11393_s1 = smov 28  }
 0x28c   :  { %v1655_v8 = vpop.f32.mrb[188].mxu0 }
 0x28d   :  { %v2179_v51 = vadd.f32 %v8913_v7, %v2148_v6  ;;  %v2073_v53 = vadd.f32 %v11572_v52, %v1655_v8  ;;  %v1657_v9 = vpop.f32.mrb[189].mxu0  ;;  %v2202_v0 = vmax.f32 %v2178_v45, 0.0 }
 0x28e   :  { %v1658_v19 = vpop.f32.mrb[190].mxu0 }
 0x28f   :  { %v2203_v38 = vmax.f32 %v2179_v51, 0.0  ;;  %v2125_v39 = vmax.f32 %v8902_v35, %v2073_v53  ;;  %v2076_v26 = vadd.f32 %v11573_v25, %v1658_v19  ;;  %2567 = vrot.lane.b32.xlu0 %v8944_v5, %s11389_s29  ;;  %3600 = vrot.lane.b32.xlu1 %v8964_v28, %s7824_s16  ;;  %v1660_v48 = vpop.f32.mrb[191].mxu0 }
 0x291   :  { %v9151_v33 = vpack.c.bf16 %v2203_v38, %v2202_v0  ;;  %v2149_v54 = vmax.f32 %v11576_v43, %v2125_v39  ;;  %v2126_v57 = vmax.f32 %v8905_v50, %v2076_v26 }
 0x293   :  { %v2180_v35 = vadd.f32 %v8913_v7, %v2149_v54  ;;  %v2150_v13 = vmax.f32 %v11579_v27, %v2126_v57  ;;  %2592 = vrot.lane.b32.xlu0 %v8944_v5, %s11393_s1  ;;  %3624 = vrot.lane.b32.xlu1 %v8964_v28, %s11381_s17  ;;  %v7719_v54 = vld [vmem:[%s11315_s3 + $0x40] sm:$0xff]  }
 0x294   :  { %6932 = vmatprep.subr.bf16.mxu1 %v7719_v54  ;;  %v7734_v54 = vld [vmem:[%s11315_s3 + $0x38] sm:$0xff]  }
 0x295   :  { %v2181_v60 = vadd.f32 %v8913_v7, %v2150_v13  ;;  %v2204_v44 = vmax.f32 %v2180_v35, 0.0  ;;  %6933 = vmatpush3.bf16.msra.mxu1 %v7720_v4 }
 0x297   :  { %v2205_v42 = vmax.f32 %v2181_v60, 0.0  ;;  %3194 = vrot.lane.b32.xlu0 %v8944_v5, %s11367_s12  ;;  %4224 = vrot.lane.b32.xlu1 %v8964_v28, %s11418_s11  ;;  %s11387_s12 = smov 32  }
 0x299   :  { %v9170_v50 = vpack.c.bf16 %v2205_v42, %v2204_v44 }
 0x29b   :  { %3218 = vrot.lane.b32.xlu0 %v8944_v5, %s11365_s10  ;;  %4248 = vrot.lane.b32.xlu1 %v8964_v28, %s11391_s22  ;;  %s11369_s10 = smov 42  }
 0x29f   :  { %2489 = vrot.lane.b32.xlu1 %v8964_v28, %s11399_s18  ;;  %2301 = vrot.lane.b32.xlu0 %v8964_v28, %s11379_s30 }
 0x2a3   :  { %2514 = vrot.lane.b32.xlu1 %v8964_v28, %s11397_s19  ;;  %2251 = vrot.lane.b32.xlu0 %v8964_v28, %s11377_s2 }
 0x2a7   :  { %2539 = vrot.lane.b32.xlu1 %v8964_v28, %s11395_s20  ;;  %2276 = vrot.lane.b32.xlu0 %v8964_v28, %s11375_s13 }
 0x2ab   :  { %3120 = vrot.lane.b32.xlu1 %v8964_v28, %s11427_s21  ;;  %2942 = vrot.lane.b32.xlu0 %v8964_v28, %s11373_s14 }
 0x2af   :  { %3144 = vrot.lane.b32.xlu1 %v8964_v28, %s11385_s23  ;;  %2970 = vrot.lane.b32.xlu0 %v8964_v28, %s11371_s15 }
 0x2b3   :  { %3168 = vrot.lane.b32.xlu1 %v8964_v28, %s11383_s24  ;;  %3700 = vrot.lane.b32.xlu0 %v8964_v28, %s11427_s21 }
 0x2b5   :  { %v2248_v7 = vpop.permute.xlu1 %2247  ;;  %v2298_v5 = vpop.permute.xlu0 %2297 }
 0x2b6   :  { %2260 = vst.msk [vmem:[#allocation3] sm:$0xff] %vm2259_vm3, %v2248_v7 }
 0x2b7   :  { %2312 = vst.msk [vmem:[#allocation3 + $0x8] sm:$0xff] %vm2311_vm4, %v2298_v5  ;;  %2790 = vrot.lane.b32.xlu1 %v8964_v28, %s11391_s22  ;;  %3652 = vrot.lane.b32.xlu0 %v8964_v28, %s11426_s25 }
 0x2b9   :  { %v2867_v18 = vpop.permute.xlu1 %2866  ;;  %v2328_v59 = vpop.permute.xlu0 %2327 }
 0x2ba   :  { %2878 = vst.msk [vmem:[#allocation3 + $0x100] sm:$0xff] %vm2234_vm2, %v2867_v18 }
 0x2bb   :  { %2340 = vst.msk [vmem:[#allocation3 + $0x8] sm:$0xff] %vm11438_vm5, %v2328_v59  ;;  %2818 = vrot.lane.b32.xlu1 %v8964_v28, %s11420_s28  ;;  %3676 = vrot.lane.b32.xlu0 %v8964_v28, %s11425_s26 }
 0x2bd   :  { %v2891_v16 = vpop.permute.xlu1 %2890  ;;  %v2273_v41 = vpop.permute.xlu0 %2272 }
 0x2be   :  { %2902 = vst.msk [vmem:[#allocation3 + $0x100] sm:$0xff] %vm2259_vm3, %v2891_v16  ;;  %v7721_v16 = vld [vmem:[%s11315_s3 + $0x48] sm:$0xff]  }
 0x2bf   :  { %2285 = vst.msk [vmem:[#allocation3] sm:$0xff] %vm2284_vm6, %v2273_v41  ;;  %2766 = vrot.lane.b32.xlu1 %v8964_v28, %s11418_s11  ;;  %4324 = vrot.lane.b32.xlu0 %v8964_v28, %s11409_s27 }
 0x2c0   :  { %2310 = vst.msk [vmem:[#allocation3] sm:$0xff] %vm2309_vm7, %v2298_v5  ;;  %6934 = vmatprep.subr.bf16.mxu1 %v7721_v16 }
 0x2c1   :  { %v2915_v20 = vpop.permute.xlu1 %2914  ;;  %v2939_v29 = vpop.permute.xlu0 %2938 }
 0x2c2   :  { %2926 = vst.msk [vmem:[#allocation3 + $0x100] sm:$0xff] %vm2284_vm6, %v2915_v20 }
 0x2c3   :  { %2951 = vst.msk [vmem:[#allocation3 + $0x108] sm:$0xff] %vm2311_vm4, %v2939_v29  ;;  %3414 = vrot.lane.b32.xlu1 %v8964_v28, %s11369_s10  ;;  %4276 = vrot.lane.b32.xlu0 %v8964_v28, %s11420_s28  ;;  %s11580_s10 = smov 68  }
 0x2c4   :  { %2950 = vst.msk [vmem:[#allocation3 + $0x100] sm:$0xff] %vm2309_vm7, %v2939_v29  ;;  %v7722_v29 = vld [vmem:[%s11315_s3 + $0x8] sm:$0xff]  }
 0x2c5   :  { %v2967_v2 = vpop.permute.xlu0 %2966  ;;  %v2330_v1 = vpop.permute.xlu1 %2329  ;;  %6935 = vmatpush3.bf16.msra.mxu1 %v7722_v29 }
 0x2c6   :  { %2978 = vst.msk [vmem:[#allocation3 + $0x108] sm:$0xff] %vm11438_vm5, %v2967_v2 }
 0x2c7   :  { %4300 = vrot.lane.b32.xlu0 %v8964_v28, %s11416_s0  ;;  %2333 = vrot.lane.b32.xlu1 %v8987_v15, %s11418_s11 }
 0x2c9   :  { %v2941_v10 = vpop.permute.xlu1 %2940  ;;  %v2300_v62 = vpop.permute.xlu0 %2299 }
 0x2ca   :  { %2953 = vst.msk [vmem:[#allocation3 + $0x148] sm:$0xff] %vm2311_vm4, %v2941_v10  ;;  %2314 = vst.msk [vmem:[#allocation3 + $0x48] sm:$0xff] %vm2311_vm4, %v2300_v62 }
 0x2cb   :  { %2341 = vst.msk [vmem:[#allocation3 + $0x48] sm:$0xff] %vm11438_vm5, %v2330_v1  ;;  %2742 = vrot.lane.b32.xlu0 %v8964_v28, %s11387_s12  ;;  %2944 = vrot.lane.b32.xlu1 %v8987_v15, %s11373_s14 }
 0x2cd   :  { %v2969_v21 = vpop.permute.xlu1 %2968  ;;  %v2250_v56 = vpop.permute.xlu0 %2249 }
 0x2ce   :  { %2979 = vst.msk [vmem:[#allocation3 + $0x148] sm:$0xff] %vm11438_vm5, %v2969_v21 }
 0x2cf   :  { %2261 = vst.msk [vmem:[#allocation3 + $0x40] sm:$0xff] %vm2259_vm3, %v2250_v56  ;;  %2842 = vrot.lane.b32.xlu0 %v8964_v28, %s11416_s0  ;;  %2972 = vrot.lane.b32.xlu1 %v8987_v15, %s11371_s15  ;;  %s11581_s15 = smov 30  }
 0x2d1   :  { %v9244_v37 = vpop.permute.xlu1 %3598  ;;  %v2275_v55 = vpop.permute.xlu0 %2274 }
 0x2d2   :  { %2286 = vst.msk [vmem:[#allocation3 + $0x40] sm:$0xff] %vm2284_vm6, %v2275_v55  ;;  %v7725_v55 = vld [vmem:[%s11315_s3 + $0x58] sm:$0xff]  }
 0x2d3   :  { %2313 = vst.msk [vmem:[#allocation3 + $0x40] sm:$0xff] %vm2309_vm7, %v2300_v62  ;;  %2569 = vrot.lane.b32.xlu0 %v8964_v28, %s11389_s29  ;;  %3602 = vrot.lane.b32.xlu1 %v8987_v15, %s7824_s16  ;;  %v7724_v62 = vld [vmem:[%s11315_s3 + $0x10] sm:$0xff]  }
 0x2d5   :  { %v9252_v47 = vpop.permute.xlu1 %3622  ;;  %v2869_v49 = vpop.permute.xlu0 %2868 }
 0x2d6   :  { %3635 = vst.msk [vmem:[#allocation3 + $0x210] sm:$0xff] %vm11424_vm8, %v9252_v47 }
 0x2d7   :  { %2879 = vst.msk [vmem:[#allocation3 + $0x140] sm:$0xff] %vm2234_vm2, %v2869_v49  ;;  %2594 = vrot.lane.b32.xlu0 %v8964_v28, %s11393_s1  ;;  %3626 = vrot.lane.b32.xlu1 %v8987_v15, %s11381_s17  ;;  %v7726_v49 = vld [vmem:[%s11315_s3 + $0x18] sm:$0xff]  }
 0x2d9   :  { %v9261_v31 = vpop.permute.xlu1 %2487  ;;  %v2893_v32 = vpop.permute.xlu0 %2892 }
 0x2da   :  { %2903 = vst.msk [vmem:[#allocation3 + $0x140] sm:$0xff] %vm2259_vm3, %v2893_v32 }
 0x2db   :  { %3366 = vrot.lane.b32.xlu0 %v8964_v28, %s11373_s14  ;;  %2491 = vrot.lane.b32.xlu1 %v8987_v15, %s11399_s18  ;;  %s11582_s14 = smov 10  }
 0x2dd   :  { %v9268_v46 = vpop.permute.xlu1 %2512  ;;  %v2917_v34 = vpop.permute.xlu0 %2916 }
 0x2de   :  { %2927 = vst.msk [vmem:[#allocation3 + $0x140] sm:$0xff] %vm2284_vm6, %v2917_v34 }
 0x2df   :  { %2952 = vst.msk [vmem:[#allocation3 + $0x140] sm:$0xff] %vm2309_vm7, %v2941_v10  ;;  %2516 = vrot.lane.b32.xlu1 %v8987_v15, %s11397_s19  ;;  %2303 = vrot.lane.b32.xlu0 %v8987_v15, %s11379_s30  ;;  %v7723_v10 = vld [vmem:[%s11315_s3 + $0x50] sm:$0xff]   ;;  %s11586_s30 = smov 70  }
 0x2e0   :  { %6936 = vmatprep.subr.bf16.mxu1 %v7723_v10 }
 0x2e1   :  { %v9276_v11 = vpop.permute.xlu1 %2537  ;;  %v9278_v17 = vpop.permute.xlu0 %4222  ;;  %6937 = vmatpush3.bf16.msra.mxu1 %v7724_v62 }
 0x2e2   :  { %2552 = vst.msk [vmem:[#allocation3 + $0x20] sm:$0xff] %vm11440_vm9, %v9276_v11  ;;  %6938 = vmatprep.subr.bf16.mxu1 %v7725_v55 }
 0x2e3   :  { %2541 = vrot.lane.b32.xlu1 %v8987_v15, %s11395_s20  ;;  %2253 = vrot.lane.b32.xlu0 %v8987_v15, %s11377_s2  ;;  %s11585_s2 = smov 108  }
 0x2e5   :  { %v9286_v45 = vpop.permute.xlu1 %3118  ;;  %v9288_v24 = vpop.permute.xlu0 %4246  ;;  %6939 = vmatpush3.bf16.msra.mxu1 %v7726_v49 }
 0x2e6   :  { %4259 = vst.msk [vmem:[#allocation3 + $0x310] sm:$0xff] %vm11424_vm8, %v9288_v24 }
 0x2e7   :  { %3122 = vrot.lane.b32.xlu1 %v8987_v15, %s11427_s21  ;;  %2278 = vrot.lane.b32.xlu0 %v8987_v15, %s11375_s13  ;;  %s11587_s13 = smov 100  }
 0x2e9   :  { %v9296_v40 = vpop.permute.xlu1 %3142  ;;  %v3699_v22 = vpop.permute.xlu0 %3698 }
 0x2ea   :  { %3711 = vst.msk [vmem:[#allocation3 + $0x218] sm:$0xff] %vm2471_vm10, %v3699_v22 }
 0x2eb   :  { %3146 = vrot.lane.b32.xlu1 %v8987_v15, %s11385_s23  ;;  %2872 = vrot.lane.b32.xlu0 %v8987_v15, %s11580_s10 }
 0x2ed   :  { %v9303_v6 = vpop.permute.xlu1 %3166  ;;  %v3651_v8 = vpop.permute.xlu0 %3650 }
 0x2ee   :  { %3179 = vst.msk [vmem:[#allocation3 + $0x120] sm:$0xff] %vm11440_vm9, %v9303_v6 }
 0x2ef   :  { %3662 = vst.msk [vmem:[#allocation3 + $0x210] sm:$0xff] %vm2419_vm11, %v3651_v8  ;;  %3170 = vrot.lane.b32.xlu1 %v8987_v15, %s11383_s24  ;;  %2896 = vrot.lane.b32.xlu0 %v8987_v15, %s11581_s15  ;;  %v7728_v8 = vld [vmem:[%s11315_s3 + $0x20] sm:$0xff]  }
 0x2f1   :  { %v3675_v51 = vpop.permute.xlu0 %3674  ;;  %v2332_v52 = vpop.permute.xlu1 %2331 }
 0x2f2   :  { %3686 = vst.msk [vmem:[#allocation3 + $0x210] sm:$0xff] %vm2444_vm12, %v3675_v51 }
 0x2f3   :  { %3710 = vst.msk [vmem:[#allocation3 + $0x210] sm:$0xff] %vm11441_vm13, %v3699_v22  ;;  %2792 = vrot.lane.b32.xlu1 %v8987_v15, %s11391_s22  ;;  %2920 = vrot.lane.b32.xlu0 %v8987_v15, %s11582_s14  ;;  %v7727_v22 = vld [vmem:[%s11315_s3 + $0x60] sm:$0xff]  }
 0x2f4   :  { %6940 = vmatprep.subr.bf16.mxu1 %v7727_v22 }
 0x2f5   :  { %v4323_v53 = vpop.permute.xlu0 %4322  ;;  %v2871_v9 = vpop.permute.xlu1 %2870  ;;  %6941 = vmatpush3.bf16.msra.mxu1 %v7728_v8 }
 0x2f6   :  { %4335 = vst.msk [vmem:[#allocation3 + $0x318] sm:$0xff] %vm2471_vm10, %v4323_v53 }
 0x2f7   :  { %2880 = vst.msk [vmem:[#allocation3 + $0x180] sm:$0xff] %vm2234_vm2, %v2871_v9  ;;  %2820 = vrot.lane.b32.xlu1 %v8987_v15, %s11420_s28  ;;  %4226 = vrot.lane.b32.xlu0 %v8987_v15, %s11418_s11  ;;  %v7730_v9 = vld [vmem:[%s11315_s3 + $0x28] sm:$0xff]  }
 0x2f9   :  { %v4275_v19 = vpop.permute.xlu0 %4274  ;;  %v2895_v0 = vpop.permute.xlu1 %2894 }
 0x2fa   :  { %4286 = vst.msk [vmem:[#allocation3 + $0x310] sm:$0xff] %vm2419_vm11, %v4275_v19 }
 0x2fb   :  { %2904 = vst.msk [vmem:[#allocation3 + $0x180] sm:$0xff] %vm2259_vm3, %v2895_v0  ;;  %2768 = vrot.lane.b32.xlu1 %v8987_v15, %s11418_s11  ;;  %4250 = vrot.lane.b32.xlu0 %v8987_v15, %s11391_s22 }
 0x2fd   :  { %v4299_v38 = vpop.permute.xlu0 %4298  ;;  %v2919_v39 = vpop.permute.xlu1 %2918 }
 0x2fe   :  { %4310 = vst.msk [vmem:[#allocation3 + $0x310] sm:$0xff] %vm2444_vm12, %v4299_v38  ;;  %v7731_v38 = vld [vmem:[%s11315_s3 + $0x70] sm:$0xff]  }
 0x2ff   :  { %2928 = vst.msk [vmem:[#allocation3 + $0x180] sm:$0xff] %vm2284_vm6, %v2919_v39  ;;  %3702 = vrot.lane.b32.xlu0 %v8987_v15, %s11427_s21  ;;  %3604 = vrot.lane.b32.xlu1 %v9011_v58, %s7824_s16  ;;  %v7732_v39 = vld [vmem:[%s11315_s3 + $0x30] sm:$0xff]  }
 0x300   :  { %4334 = vst.msk [vmem:[#allocation3 + $0x310] sm:$0xff] %vm11441_vm13, %v4323_v53  ;;  %v7729_v53 = vld [vmem:[%s11315_s3 + $0x68] sm:$0xff]  }
 0x301   :  { %v2568_v25 = vpop.permute.xlu0 %2567  ;;  %v9337_v26 = vpop.permute.xlu1 %3600  ;;  %6942 = vmatprep.subr.bf16.mxu1 %v7729_v53 }
 0x302   :  { %2580 = vst.msk [vmem:[#allocation3 + $0x20] sm:$0xff] %vm11423_vm14, %v2568_v25  ;;  %6943 = vmatpush3.bf16.msra.mxu1 %v7730_v9 }
 0x303   :  { %3654 = vrot.lane.b32.xlu0 %v8987_v15, %s11426_s25  ;;  %3628 = vrot.lane.b32.xlu1 %v9011_v58, %s11381_s17  ;;  %s11583_s17 = smov 52  }
 0x304   :  { %6944 = vmatprep.subr.bf16.mxu1 %v7731_v38 }
 0x305   :  { %v2593_v48 = vpop.permute.xlu0 %2592  ;;  %v9344_v23 = vpop.permute.xlu1 %3624 }
 0x306   :  { %2605 = vst.msk [vmem:[#allocation3 + $0x20] sm:$0xff] %vm11422_vm15, %v2593_v48  ;;  %6945 = vmatpush3.bf16.msra.mxu1 %v7732_v39 }
 0x307   :  { %3637 = vst.msk [vmem:[#allocation3 + $0x250] sm:$0xff] %vm11424_vm8, %v9344_v23  ;;  %3678 = vrot.lane.b32.xlu0 %v8987_v15, %s11425_s26  ;;  %4228 = vrot.lane.b32.xlu1 %v9011_v58, %s11418_s11 }
 0x309   :  { %v3195_v36 = vpop.permute.xlu0 %3194  ;;  %v9353_v43 = vpop.permute.xlu1 %4224 }
 0x30a   :  { %3206 = vst.msk [vmem:[#allocation3 + $0x120] sm:$0xff] %vm11423_vm14, %v3195_v36  ;;  %v7733_v36 = vld [vmem:[%s11315_s3 + $0x78] sm:$0xff]  }
 0x30b   :  { %4326 = vrot.lane.b32.xlu0 %v8987_v15, %s11409_s27  ;;  %4252 = vrot.lane.b32.xlu1 %v9011_v58, %s11391_s22 }
 0x30c   :  { %6946 = vmatprep.subr.bf16.mxu1 %v7733_v36 }
 0x30d   :  { %v3219_v57 = vpop.permute.xlu0 %3218  ;;  %v9363_v35 = vpop.permute.xlu1 %4248  ;;  %6947 = vmatpush3.bf16.msra.mxu1 %v7734_v54 }
 0x30e   :  { %3230 = vst.msk [vmem:[#allocation3 + $0x120] sm:$0xff] %vm11422_vm15, %v3219_v57 }
 0x30f   :  { %4261 = vst.msk [vmem:[#allocation3 + $0x350] sm:$0xff] %vm11424_vm8, %v9363_v35  ;;  %4278 = vrot.lane.b32.xlu0 %v8987_v15, %s11420_s28  ;;  %2493 = vrot.lane.b32.xlu1 %v9011_v58, %s11399_s18 }
 0x311   :  { %v9375_v3 = vpop.permute.xlu1 %2489  ;;  %v2302_v27 = vpop.permute.xlu0 %2301 }
 0x312   :  { %2316 = vst.msk [vmem:[#allocation3 + $0x88] sm:$0xff] %vm2311_vm4, %v2302_v27 }
 0x313   :  { %2342 = vst.msk [vmem:[#allocation3 + $0x88] sm:$0xff] %vm11438_vm5, %v2332_v52  ;;  %4302 = vrot.lane.b32.xlu0 %v8987_v15, %s11416_s0  ;;  %2518 = vrot.lane.b32.xlu1 %v9011_v58, %s11397_s19 }
 0x315   :  { %v9383_v13 = vpop.permute.xlu1 %2514  ;;  %v2252_v60 = vpop.permute.xlu0 %2251 }
 0x316   :  { %2262 = vst.msk [vmem:[#allocation3 + $0x80] sm:$0xff] %vm2259_vm3, %v2252_v60 }
 0x317   :  { %2744 = vrot.lane.b32.xlu0 %v8987_v15, %s11387_s12  ;;  %2543 = vrot.lane.b32.xlu1 %v9011_v58, %s11395_s20 }
 0x319   :  { %v9390_v44 = vpop.permute.xlu1 %2539  ;;  %v2277_v42 = vpop.permute.xlu0 %2276 }
 0x31a   :  { %2554 = vst.msk [vmem:[#allocation3 + $0x60] sm:$0xff] %vm11440_vm9, %v9390_v44 }
 0x31b   :  { %2287 = vst.msk [vmem:[#allocation3 + $0x80] sm:$0xff] %vm2284_vm6, %v2277_v42  ;;  %2844 = vrot.lane.b32.xlu0 %v8987_v15, %s11416_s0  ;;  %3124 = vrot.lane.b32.xlu1 %v9011_v58, %s11427_s21  ;;  %v7735_v42 = vld [vmem:[%s11315_s3 + $0x140] sm:$0xff]  }
 0x31c   :  { %2315 = vst.msk [vmem:[#allocation3 + $0x80] sm:$0xff] %vm2309_vm7, %v2302_v27  ;;  %7156 = vmatprep.subr.bf16.mxu0 %v7735_v42 }
 0x31d   :  { %v9400_v7 = vpop.permute.xlu1 %3120  ;;  %v2943_v5 = vpop.permute.xlu0 %2942 }
 0x31e   :  { %2954 = vst.msk [vmem:[#allocation3 + $0x180] sm:$0xff] %vm2309_vm7, %v2943_v5 }
 0x31f   :  { %2955 = vst.msk [vmem:[#allocation3 + $0x188] sm:$0xff] %vm2311_vm4, %v2943_v5  ;;  %2571 = vrot.lane.b32.xlu0 %v8987_v15, %s11389_s29  ;;  %3148 = vrot.lane.b32.xlu1 %v9011_v58, %s11385_s23  ;;  %v7736_v5 = vld [vmem:[%s11315_s3 + $0x100] sm:$0xff]   ;;  %s11588_s23 = smov 80  }
 0x320   :  { %7157 = vmatpush3.bf16.msra.mxu0 %v7736_v5 }
 0x321   :  { %v9408_v18 = vpop.permute.xlu1 %3144  ;;  %v2971_v59 = vpop.permute.xlu0 %2970 }
 0x322   :  { %2980 = vst.msk [vmem:[#allocation3 + $0x188] sm:$0xff] %vm11438_vm5, %v2971_v59 }
 0x323   :  { %2596 = vrot.lane.b32.xlu0 %v8987_v15, %s11393_s1  ;;  %3172 = vrot.lane.b32.xlu1 %v9011_v58, %s11383_s24  ;;  %s11584_s24 = smov 50  }
 0x325   :  { %v9418_v41 = vpop.permute.xlu1 %3168  ;;  %v3701_v20 = vpop.permute.xlu0 %3700 }
 0x326   :  { %3181 = vst.msk [vmem:[#allocation3 + $0x160] sm:$0xff] %vm11440_vm9, %v9418_v41 }
 0x327   :  { %3713 = vst.msk [vmem:[#allocation3 + $0x258] sm:$0xff] %vm2471_vm10, %v3701_v20  ;;  %3704 = vrot.lane.b32.xlu0 %v9011_v58, %s11427_s21  ;;  %4304 = vrot.lane.b32.xlu1 %v9011_v58, %s11416_s0 }
 0x329   :  { %v9430_v2 = vpop.permute.xlu1 %2790  ;;  %v3653_v1 = vpop.permute.xlu0 %3652 }
 0x32a   :  { %2803 = vst.msk [vmem:[#allocation3 + $0x38] sm:$0xff] %vm11424_vm8, %v9430_v2 }
 0x32b   :  { %3663 = vst.msk [vmem:[#allocation3 + $0x250] sm:$0xff] %vm2419_vm11, %v3653_v1  ;;  %3656 = vrot.lane.b32.xlu0 %v9011_v58, %s11426_s25  ;;  %2794 = vrot.lane.b32.xlu1 %v9011_v58, %s11391_s22 }
 0x32d   :  { %v2819_v21 = vpop.permute.xlu1 %2818  ;;  %v3677_v56 = vpop.permute.xlu0 %3676 }
 0x32e   :  { %2830 = vst.msk [vmem:[#allocation3 + $0x38] sm:$0xff] %vm2419_vm11, %v2819_v21 }
 0x32f   :  { %3687 = vst.msk [vmem:[#allocation3 + $0x250] sm:$0xff] %vm2444_vm12, %v3677_v56  ;;  %3680 = vrot.lane.b32.xlu0 %v9011_v58, %s11425_s26  ;;  %2822 = vrot.lane.b32.xlu1 %v9011_v58, %s11420_s28 }
 0x330   :  { %3712 = vst.msk [vmem:[#allocation3 + $0x250] sm:$0xff] %vm11441_vm13, %v3701_v20 }
 0x331   :  { %v9458_v32 = vpop.permute.xlu1 %2766  ;;  %v4325_v34 = vpop.permute.xlu0 %4324 }
 0x332   :  { %4337 = vst.msk [vmem:[#allocation3 + $0x358] sm:$0xff] %vm2471_vm10, %v4325_v34 }
 0x333   :  { %4328 = vrot.lane.b32.xlu0 %v9011_v58, %s11409_s27  ;;  %2770 = vrot.lane.b32.xlu1 %v9011_v58, %s11418_s11 }
 0x335   :  { %v9471_v51 = vpop.permute.xlu1 %3414  ;;  %v4277_v52 = vpop.permute.xlu0 %4276 }
 0x336   :  { %3427 = vst.msk [vmem:[#allocation3 + $0x138] sm:$0xff] %vm11424_vm8, %v9471_v51 }
 0x337   :  { %4287 = vst.msk [vmem:[#allocation3 + $0x350] sm:$0xff] %vm2419_vm11, %v4277_v52  ;;  %4280 = vrot.lane.b32.xlu0 %v9011_v58, %s11420_s28  ;;  %2796 = vrot.lane.b32.xlu1 %v9033_v63, %s11391_s22 }
 0x339   :  { %v4301_v19 = vpop.permute.xlu0 %4300  ;;  %v2334_v0 = vpop.permute.xlu1 %2333 }
 0x33a   :  { %4311 = vst.msk [vmem:[#allocation3 + $0x350] sm:$0xff] %vm2444_vm12, %v4301_v19 }
 0x33b   :  { %4336 = vst.msk [vmem:[#allocation3 + $0x350] sm:$0xff] %vm11441_vm13, %v4325_v34  ;;  %2746 = vrot.lane.b32.xlu0 %v9011_v58, %s11387_s12  ;;  %2824 = vrot.lane.b32.xlu1 %v9033_v63, %s11420_s28 }
 0x33d   :  { %v9498_v25 = vpop.permute.xlu0 %2742  ;;  %v9500_v48 = vpop.permute.xlu1 %2944 }
 0x33e   :  { %2957 = vst.msk [vmem:[#allocation3 + $0x1c8] sm:$0xff] %vm2311_vm4, %v9500_v48 }
 0x33f   :  { %2846 = vrot.lane.b32.xlu0 %v9011_v58, %s11416_s0  ;;  %2848 = vrot.lane.b32.xlu1 %v9033_v63, %s11416_s0 }
 0x341   :  { %v2843_v57 = vpop.permute.xlu0 %2842  ;;  %v2973_v4 = vpop.permute.xlu1 %2972 }
 0x342   :  { %2854 = vst.msk [vmem:[#allocation3 + $0x38] sm:$0xff] %vm2444_vm12, %v2843_v57  ;;  %v7737_v57 = vld [vmem:[%s11315_s3 + $0x148] sm:$0xff]  }
 0x343   :  { %2981 = vst.msk [vmem:[#allocation3 + $0x1c8] sm:$0xff] %vm11438_vm5, %v2973_v4  ;;  %2573 = vrot.lane.b32.xlu0 %v9011_v58, %s11389_s29  ;;  %2352 = vrot.lane.b32.xlu1 %v9055_v12, %s7824_s16  ;;  %v7738_v4 = vld [vmem:[%s11315_s3 + $0x108] sm:$0xff]   ;;  %s11596_s29 = smov 16  }
 0x344   :  { %7158 = vmatprep.subr.bf16.mxu0 %v7737_v57 }
 0x345   :  { %v2570_v27 = vpop.permute.xlu0 %2569  ;;  %v9520_v60 = vpop.permute.xlu1 %3602  ;;  %7159 = vmatpush3.bf16.msra.mxu0 %v7738_v4 }
 0x346   :  { %2581 = vst.msk [vmem:[#allocation3 + $0x60] sm:$0xff] %vm11423_vm14, %v2570_v27 }
 0x347   :  { %2598 = vrot.lane.b32.xlu0 %v9011_v58, %s11393_s1  ;;  %2377 = vrot.lane.b32.xlu1 %v9055_v12, %s11583_s17  ;;  %s11590_s1 = smov 26  }
 0x349   :  { %v2595_v59 = vpop.permute.xlu0 %2594  ;;  %v9533_v16 = vpop.permute.xlu1 %3626 }
 0x34a   :  { %2606 = vst.msk [vmem:[#allocation3 + $0x60] sm:$0xff] %vm11422_vm15, %v2595_v59 }
 0x34b   :  { %3639 = vst.msk [vmem:[#allocation3 + $0x290] sm:$0xff] %vm11424_vm8, %v9533_v16  ;;  %2748 = vrot.lane.b32.xlu0 %v9033_v63, %s11387_s12  ;;  %3574 = vrot.lane.b32.xlu1 %v9055_v12, %s11418_s11  ;;  %s11589_s12 = smov 46  }
 0x34d   :  { %v9542_v20 = vpop.permute.xlu0 %3366  ;;  %v9544_v29 = vpop.permute.xlu1 %2491 }
 0x34f   :  { %2772 = vrot.lane.b32.xlu0 %v9033_v63, %s11418_s11  ;;  %4098 = vrot.lane.b32.xlu1 %v9055_v12, %s11580_s10 }
 0x351   :  { %v9550_v1 = vpop.permute.xlu1 %2516  ;;  %v2304_v10 = vpop.permute.xlu0 %2303 }
 0x352   :  { %2318 = vst.msk [vmem:[#allocation3 + $0xc8] sm:$0xff] %vm2311_vm4, %v2304_v10 }
 0x353   :  { %2343 = vst.msk [vmem:[#allocation3 + $0xc8] sm:$0xff] %vm11438_vm5, %v2334_v0  ;;  %2990 = vrot.lane.b32.xlu0 %v9055_v12, %s11418_s11  ;;  %4122 = vrot.lane.b32.xlu1 %v9055_v12, %s11581_s15 }
 0x355   :  { %v9558_v62 = vpop.permute.xlu1 %2541  ;;  %v2254_v21 = vpop.permute.xlu0 %2253 }
 0x356   :  { %2556 = vst.msk [vmem:[#allocation3 + $0xa0] sm:$0xff] %vm11440_vm9, %v9558_v62 }
 0x357   :  { %2263 = vst.msk [vmem:[#allocation3 + $0xc0] sm:$0xff] %vm2259_vm3, %v2254_v21  ;;  %3014 = vrot.lane.b32.xlu0 %v9055_v12, %s11391_s22  ;;  %4146 = vrot.lane.b32.xlu1 %v9055_v12, %s11582_s14 }
 0x359   :  { %v9567_v56 = vpop.permute.xlu1 %3122  ;;  %v2279_v55 = vpop.permute.xlu0 %2278 }
 0x35a   :  { %2288 = vst.msk [vmem:[#allocation3 + $0xc0] sm:$0xff] %vm2284_vm6, %v2279_v55 }
 0x35b   :  { %2317 = vst.msk [vmem:[#allocation3 + $0xc0] sm:$0xff] %vm2309_vm7, %v2304_v10  ;;  %3546 = vrot.lane.b32.xlu0 %v9055_v12, %s11584_s24  ;;  %2354 = vrot.lane.b32.xlu1 %v9079_v61, %s7824_s16 }
 0x35d   :  { %v9575_v49 = vpop.permute.xlu1 %3146  ;;  %v2873_v34 = vpop.permute.xlu0 %2872 }
 0x35e   :  { %2881 = vst.msk [vmem:[#allocation3 + $0x1c0] sm:$0xff] %vm2234_vm2, %v2873_v34 }
 0x35f   :  { %3498 = vrot.lane.b32.xlu0 %v9055_v12, %s11585_s2  ;;  %2379 = vrot.lane.b32.xlu1 %v9079_v61, %s11583_s17 }
 0x361   :  { %v9582_v22 = vpop.permute.xlu1 %3170  ;;  %v2897_v8 = vpop.permute.xlu0 %2896 }
 0x362   :  { %3183 = vst.msk [vmem:[#allocation3 + $0x1a0] sm:$0xff] %vm11440_vm9, %v9582_v22 }
 0x363   :  { %2905 = vst.msk [vmem:[#allocation3 + $0x1c0] sm:$0xff] %vm2259_vm3, %v2897_v8  ;;  %3522 = vrot.lane.b32.xlu0 %v9055_v12, %s11586_s30  ;;  %2992 = vrot.lane.b32.xlu1 %v9079_v61, %s11418_s11 }
 0x365   :  { %v9591_v52 = vpop.permute.xlu1 %2792  ;;  %v2921_v53 = vpop.permute.xlu0 %2920 }
 0x366   :  { %2805 = vst.msk [vmem:[#allocation3 + $0x78] sm:$0xff] %vm11424_vm8, %v9591_v52 }
 0x367   :  { %2929 = vst.msk [vmem:[#allocation3 + $0x1c0] sm:$0xff] %vm2284_vm6, %v2921_v53  ;;  %4170 = vrot.lane.b32.xlu0 %v9055_v12, %s11587_s13  ;;  %3016 = vrot.lane.b32.xlu1 %v9079_v61, %s11391_s22  ;;  %s11401_s22 = smov 98  }
 0x368   :  { %2956 = vst.msk [vmem:[#allocation3 + $0x1c0] sm:$0xff] %vm2309_vm7, %v9500_v48 }
 0x369   :  { %v2821_v9 = vpop.permute.xlu1 %2820  ;;  %v9602_v19 = vpop.permute.xlu0 %4226 }
 0x36a   :  { %2831 = vst.msk [vmem:[#allocation3 + $0x78] sm:$0xff] %vm2419_vm11, %v2821_v9 }
 0x36b   :  { %4198 = vrot.lane.b32.xlu0 %v9055_v12, %s11588_s23  ;;  %3576 = vrot.lane.b32.xlu1 %v9079_v61, %s11418_s11 }
 0x36d   :  { %v9609_v0 = vpop.permute.xlu1 %2768  ;;  %v9611_v38 = vpop.permute.xlu0 %4250 }
 0x36e   :  { %4263 = vst.msk [vmem:[#allocation3 + $0x390] sm:$0xff] %vm11424_vm8, %v9611_v38 }
 0x36f   :  { %2457 = vrot.lane.b32.xlu0 %v9055_v12, %s11427_s21  ;;  %4172 = vrot.lane.b32.xlu1 %v9079_v61, %s11587_s13 }
 0x371   :  { %v3703_v39 = vpop.permute.xlu0 %3702  ;;  %v9619_v48 = vpop.permute.xlu1 %3604 }
 0x372   :  { %3715 = vst.msk [vmem:[#allocation3 + $0x298] sm:$0xff] %vm2471_vm10, %v3703_v39 }
 0x373   :  { %2407 = vrot.lane.b32.xlu0 %v9055_v12, %s11426_s25  ;;  %4200 = vrot.lane.b32.xlu1 %v9079_v61, %s11588_s23 }
 0x375   :  { %v3655_v36 = vpop.permute.xlu0 %3654  ;;  %v9626_v54 = vpop.permute.xlu1 %3628 }
 0x376   :  { %3664 = vst.msk [vmem:[#allocation3 + $0x290] sm:$0xff] %vm2419_vm11, %v3655_v36 }
 0x377   :  { %3641 = vst.msk [vmem:[#allocation3 + $0x2d0] sm:$0xff] %vm11424_vm8, %v9626_v54  ;;  %2432 = vrot.lane.b32.xlu0 %v9055_v12, %s11425_s26  ;;  %3726 = vrot.lane.b32.xlu1 %v9079_v61, %s11399_s18  ;;  %s11597_s18 = smov 28  }
 0x379   :  { %v3679_v27 = vpop.permute.xlu0 %3678  ;;  %v9641_v42 = vpop.permute.xlu1 %4228 }
 0x37a   :  { %3688 = vst.msk [vmem:[#allocation3 + $0x290] sm:$0xff] %vm2444_vm12, %v3679_v27 }
 0x37b   :  { %3714 = vst.msk [vmem:[#allocation3 + $0x290] sm:$0xff] %vm11441_vm13, %v3703_v39  ;;  %3090 = vrot.lane.b32.xlu0 %v9055_v12, %s11409_s27  ;;  %3750 = vrot.lane.b32.xlu1 %v9079_v61, %s11397_s19  ;;  %s11599_s19 = smov 86  }
 0x37d   :  { %v4327_v5 = vpop.permute.xlu0 %4326  ;;  %v9649_v59 = vpop.permute.xlu1 %4252 }
 0x37e   :  { %4339 = vst.msk [vmem:[#allocation3 + $0x398] sm:$0xff] %vm2471_vm10, %v4327_v5 }
 0x37f   :  { %4265 = vst.msk [vmem:[#allocation3 + $0x3d0] sm:$0xff] %vm11424_vm8, %v9649_v59  ;;  %3042 = vrot.lane.b32.xlu0 %v9055_v12, %s11420_s28  ;;  %3774 = vrot.lane.b32.xlu1 %v9079_v61, %s11395_s20  ;;  %s11412_s20 = smov 118  }
 0x381   :  { %v4279_v10 = vpop.permute.xlu0 %4278  ;;  %v9658_v21 = vpop.permute.xlu1 %2493 }
 0x382   :  { %4288 = vst.msk [vmem:[#allocation3 + $0x390] sm:$0xff] %vm2419_vm11, %v4279_v10 }
 0x383   :  { %3066 = vrot.lane.b32.xlu0 %v9055_v12, %s11416_s0  ;;  %4350 = vrot.lane.b32.xlu1 %v9079_v61, %s11427_s21 }
 0x385   :  { %v4303_v55 = vpop.permute.xlu0 %4302  ;;  %v9665_v34 = vpop.permute.xlu1 %2518 }
 0x386   :  { %4312 = vst.msk [vmem:[#allocation3 + $0x390] sm:$0xff] %vm2444_vm12, %v4303_v55 }
 0x387   :  { %4338 = vst.msk [vmem:[#allocation3 + $0x390] sm:$0xff] %vm11441_vm13, %v4327_v5  ;;  %3548 = vrot.lane.b32.xlu0 %v9079_v61, %s11584_s24  ;;  %4374 = vrot.lane.b32.xlu1 %v9079_v61, %s11589_s12 }
 0x389   :  { %v9673_v8 = vpop.permute.xlu0 %2744  ;;  %v9675_v53 = vpop.permute.xlu1 %2543 }
 0x38a   :  { %2558 = vst.msk [vmem:[#allocation3 + $0xe0] sm:$0xff] %vm11440_vm9, %v9675_v53 }
 0x38b   :  { %3500 = vrot.lane.b32.xlu0 %v9079_v61, %s11585_s2  ;;  %4398 = vrot.lane.b32.xlu1 %v9079_v61, %s11590_s1 }
 0x38d   :  { %v2845_v12 = vpop.permute.xlu0 %2844  ;;  %v9683_v9 = vpop.permute.xlu1 %3124 }
 0x38e   :  { %2855 = vst.msk [vmem:[#allocation3 + $0x78] sm:$0xff] %vm2444_vm12, %v2845_v12  ;;  %v7739_v12 = vld [vmem:[%s11315_s3 + $0x150] sm:$0xff]  }
 0x38f   :  { %3524 = vrot.lane.b32.xlu0 %v9079_v61, %s11586_s30  ;;  %2666 = vrot.lane.b32.xlu1 %v9079_v61, %s11581_s15 }
 0x390   :  { %7160 = vmatprep.subr.bf16.mxu0 %v7739_v12 }
 0x391   :  { %v2572_v39 = vpop.permute.xlu0 %2571  ;;  %v9690_v36 = vpop.permute.xlu1 %3148 }
 0x392   :  { %2582 = vst.msk [vmem:[#allocation3 + $0xa0] sm:$0xff] %vm11423_vm14, %v2572_v39  ;;  %v7740_v39 = vld [vmem:[%s11315_s3 + $0x110] sm:$0xff]  }
 0x393   :  { %4100 = vrot.lane.b32.xlu0 %v9079_v61, %s11580_s10  ;;  %2690 = vrot.lane.b32.xlu1 %v9079_v61, %s11582_s14 }
 0x394   :  { %7161 = vmatpush3.bf16.msra.mxu0 %v7740_v39 }
 0x395   :  { %v2597_v57 = vpop.permute.xlu0 %2596  ;;  %v9697_v4 = vpop.permute.xlu1 %3172 }
 0x396   :  { %11591 = vst [vmem:[#allocation4_spill] sm:$0xff] %v9697_v4  ;;  %2607 = vst.msk [vmem:[#allocation3 + $0xa0] sm:$0xff] %vm11422_vm15, %v2597_v57 }
 0x397   :  { %3185 = vst.msk [vmem:[#allocation3 + $0x1e0] sm:$0xff] %vm11440_vm9, %v9697_v4  ;;  %4124 = vrot.lane.b32.xlu0 %v9079_v61, %s11581_s15  ;;  %2714 = vrot.lane.b32.xlu1 %v9079_v61, %s11587_s13 }
 0x399   :  { %v3705_v27 = vpop.permute.xlu0 %3704  ;;  %v4305_v5 = vpop.permute.xlu1 %4304 }
 0x39a   :  { %3717 = vst.msk [vmem:[#allocation3 + $0x2d8] sm:$0xff] %vm2471_vm10, %v3705_v27 }
 0x39b   :  { %4148 = vrot.lane.b32.xlu0 %v9079_v61, %s11582_s14  ;;  %3290 = vrot.lane.b32.xlu1 %v9079_v61, %s11401_s22  ;;  %s11405_s22 = smov 60  }
 0x39d   :  { %v3657_v10 = vpop.permute.xlu0 %3656  ;;  %v9711_v55 = vpop.permute.xlu1 %2794 }
 0x39e   :  { %11592 = vst [vmem:[#allocation29_spill] sm:$0xff] %v9711_v55  ;;  %3665 = vst.msk [vmem:[#allocation3 + $0x2d0] sm:$0xff] %vm2419_vm11, %v3657_v10  ;;  %v7741_v10 = vld [vmem:[%s11315_s3 + $0x158] sm:$0xff]  }
 0x39f   :  { %2807 = vst.msk [vmem:[#allocation3 + $0xb8] sm:$0xff] %vm11424_vm8, %v9711_v55  ;;  %2459 = vrot.lane.b32.xlu0 %v9079_v61, %s11427_s21  ;;  %3314 = vrot.lane.b32.xlu1 %v9079_v61, %s11405_s22  ;;  %v7742_v55 = vld [vmem:[%s11315_s3 + $0x118] sm:$0xff]   ;;  %s11407_s22 = smov 40  }
 0x3a0   :  { %7162 = vmatprep.subr.bf16.mxu0 %v7741_v10 }
 0x3a1   :  { %v3681_v57 = vpop.permute.xlu0 %3680  ;;  %v2823_v4 = vpop.permute.xlu1 %2822  ;;  %7163 = vmatpush3.bf16.msra.mxu0 %v7742_v55  ;;  %v7745_v55 = vld [vmem:[%s11315_s3 + $0x168] sm:$0xff]  }
 0x3a2   :  { %3689 = vst.msk [vmem:[#allocation3 + $0x2d0] sm:$0xff] %vm2444_vm12, %v3681_v57 }
 0x3a3   :  { %2832 = vst.msk [vmem:[#allocation3 + $0xb8] sm:$0xff] %vm2419_vm11, %v2823_v4  ;;  %2409 = vrot.lane.b32.xlu0 %v9079_v61, %s11426_s25  ;;  %3338 = vrot.lane.b32.xlu1 %v9079_v61, %s11407_s22  ;;  %v7743_v4 = vld [vmem:[%s11315_s3 + $0x160] sm:$0xff]   ;;  %s11598_s22 = smov 124  }
 0x3a4   :  { %3716 = vst.msk [vmem:[#allocation3 + $0x2d0] sm:$0xff] %vm11441_vm13, %v3705_v27  ;;  %v7744_v27 = vld [vmem:[%s11315_s3 + $0x120] sm:$0xff]   ;;  %7164 = vmatprep.subr.bf16.mxu0 %v7743_v4 }
 0x3a5   :  { %v4329_v12 = vpop.permute.xlu0 %4328  ;;  %v9739_v39 = vpop.permute.xlu1 %2770  ;;  %7165 = vmatpush3.bf16.msra.mxu0 %v7744_v27 }
 0x3a6   :  { %11593 = vst [vmem:[#allocation5_spill] sm:$0xff] %v9739_v39  ;;  %4341 = vst.msk [vmem:[#allocation3 + $0x3d8] sm:$0xff] %vm2471_vm10, %v4329_v12  ;;  %v7746_v39 = vld [vmem:[%s11315_s3 + $0x128] sm:$0xff]   ;;  %7166 = vmatprep.subr.bf16.mxu0 %v7745_v55 }
 0x3a7   :  { %2434 = vrot.lane.b32.xlu0 %v9079_v61, %s11425_s26  ;;  %2356 = vrot.lane.b32.xlu1 %v9103_v30, %s7824_s16 }
 0x3a9   :  { %v4281_v57 = vpop.permute.xlu0 %4280  ;;  %v9752_v10 = vpop.permute.xlu1 %2796  ;;  %7167 = vmatpush3.bf16.msra.mxu0 %v7746_v39  ;;  %v7749_v39 = vld [vmem:[%s11315_s3 + $0x178] sm:$0xff]  }
 0x3aa   :  { %11594 = vst [vmem:[#allocation30_spill] sm:$0xff] %v9752_v10  ;;  %4289 = vst.msk [vmem:[#allocation3 + $0x3d0] sm:$0xff] %vm2419_vm11, %v4281_v57  ;;  %v7747_v57 = vld [vmem:[%s11315_s3 + $0x170] sm:$0xff]  }
 0x3ab   :  { %2809 = vst.msk [vmem:[#allocation3 + $0xf8] sm:$0xff] %vm11424_vm8, %v9752_v10  ;;  %3092 = vrot.lane.b32.xlu0 %v9079_v61, %s11409_s27  ;;  %2381 = vrot.lane.b32.xlu1 %v9103_v30, %s11583_s17  ;;  %s11414_s27 = smov 88  }
 0x3ac   :  { %4313 = vst.msk [vmem:[#allocation3 + $0x3d0] sm:$0xff] %vm2444_vm12, %v4305_v5  ;;  %v7748_v5 = vld [vmem:[%s11315_s3 + $0x130] sm:$0xff]   ;;  %7168 = vmatprep.subr.bf16.mxu0 %v7747_v57 }
 0x3ad   :  { %4340 = vst.msk [vmem:[#allocation3 + $0x3d0] sm:$0xff] %vm11441_vm13, %v4329_v12  ;;  %v9769_v4 = vpop.permute.xlu0 %2746  ;;  %v2825_v27 = vpop.permute.xlu1 %2824  ;;  %7169 = vmatpush3.bf16.msra.mxu0 %v7748_v5 }
 0x3ae   :  { %2833 = vst.msk [vmem:[#allocation3 + $0xf8] sm:$0xff] %vm2419_vm11, %v2825_v27  ;;  %v7750_v27 = vld [vmem:[%s11315_s3 + $0x138] sm:$0xff]   ;;  %7170 = vmatprep.subr.bf16.mxu0 %v7749_v39 }
 0x3af   :  { %3044 = vrot.lane.b32.xlu0 %v9079_v61, %s11420_s28  ;;  %3578 = vrot.lane.b32.xlu1 %v9103_v30, %s11418_s11  ;;  %s11602_s28 = smov 82  }
 0x3b1   :  { %v2847_v12 = vpop.permute.xlu0 %2846  ;;  %v2849_v55 = vpop.permute.xlu1 %2848  ;;  %7171 = vmatpush3.bf16.msra.mxu0 %v7750_v27 }
 0x3b2   :  { %2856 = vst.msk [vmem:[#allocation3 + $0xb8] sm:$0xff] %vm2444_vm12, %v2847_v12  ;;  %2857 = vst.msk [vmem:[#allocation3 + $0xf8] sm:$0xff] %vm2444_vm12, %v2849_v55 }
 0x3b3   :  { %3068 = vrot.lane.b32.xlu0 %v9079_v61, %s11416_s0  ;;  %4102 = vrot.lane.b32.xlu1 %v9103_v30, %s11580_s10  ;;  %s11429_s0 = smov 62  }
 0x3b5   :  { %v2574_v57 = vpop.permute.xlu0 %2573  ;;  %v2353_v5 = vpop.permute.xlu1 %2352 }
 0x3b6   :  { %2583 = vst.msk [vmem:[#allocation3 + $0xe0] sm:$0xff] %vm11423_vm14, %v2574_v57  ;;  %vm2524_vm14 = vcmask 785856  }
 0x3b7   :  { %2365 = vst.msk [vmem:[#allocation3 + $0x8] sm:$0xff] %vm2364_vm0, %v2353_v5  ;;  %2642 = vrot.lane.b32.xlu0 %v9079_v61, %s11580_s10  ;;  %4126 = vrot.lane.b32.xlu1 %v9103_v30, %s11581_s15 }
 0x3b9   :  { %v2599_v12 = vpop.permute.xlu0 %2598  ;;  %v2378_v55 = vpop.permute.xlu1 %2377 }
 0x3ba   :  { %2608 = vst.msk [vmem:[#allocation3 + $0xe0] sm:$0xff] %vm11422_vm15, %v2599_v12  ;;  %vm2499_vm15 = vcmask 457856  }
 0x3bb   :  { %2390 = vst.msk [vmem:[#allocation3 + $0x8] sm:$0xff] %vm2389_vm1, %v2378_v55  ;;  %2617 = vrot.lane.b32.xlu0 %v9079_v61, %s11414_s27  ;;  %4150 = vrot.lane.b32.xlu1 %v9103_v30, %s11582_s14  ;;  %s11604_s27 = smov 44  }
 0x3bc   :  { %2392 = vst.msk [vmem:[#allocation3 + $0x10] sm:$0xff] %vm11424_vm8, %v2378_v55  ;;  %v4714_v55 = vld [vmem:[#allocation3] sm:$0xff] }
 0x3bd   :  { %v9807_v39 = vpop.permute.xlu0 %2748  ;;  %v3575_v27 = vpop.permute.xlu1 %3574 }
 0x3be   :  { %11595 = vst [vmem:[#allocation6_spill] sm:$0xff] %v9807_v39 }
 0x3bf   :  { %3266 = vrot.lane.b32.xlu0 %v9079_v61, %s11412_s20  ;;  %3728 = vrot.lane.b32.xlu1 %v9103_v30, %s11596_s29  ;;  %s11600_s20 = smov 102  }
 0x3c1   :  { %v9813_v57 = vpop.permute.xlu0 %2772  ;;  %v4099_v5 = vpop.permute.xlu1 %4098 }
 0x3c2   :  { %v4715_v12 = vld [vmem:[#allocation3 + $0x8] sm:$0xff]  ;;  %4110 = vst.msk [vmem:[#allocation3 + $0x300] sm:$0xff] %vm2234_vm2, %v4099_v5 }
 0x3c3   :  { %5427 = vmatprep.mubr.bf16.mxu1 %v4715_v12  ;;  %3242 = vrot.lane.b32.xlu0 %v9079_v61, %s11597_s18 }
 0x3c4   :  { %5428 = vmatmul.mubr.bf16.vlgmr.msra.gmra.mrb[96].mxu1 %v4714_v55  ;;  %3752 = vrot.lane.b32.xlu1 %v9103_v30, %s11598_s22 }
 0x3c5   :  { %v2991_v10 = vpop.permute.xlu0 %2990  ;;  %v4123_v39 = vpop.permute.xlu1 %4122 }
 0x3c6   :  { %3002 = vst.msk [vmem:[#allocation3 + $0x108] sm:$0xff] %vm2364_vm0, %v2991_v10  ;;  %v7751_v10 = vld [vmem:[%s11315_s3 + $0xc0] sm:$0xff]  }
 0x3c7   :  { %4134 = vst.msk [vmem:[#allocation3 + $0x300] sm:$0xff] %vm2259_vm3, %v4123_v39  ;;  %2994 = vrot.lane.b32.xlu0 %v9103_v30, %s11418_s11  ;;  %7044 = vmatprep.subr.bf16.mxu1 %v7751_v10  ;;  %s11605_s11 = smov 60  }
 0x3c8   :  { %3776 = vrot.lane.b32.xlu1 %v9103_v30, %s11599_s19 }
 0x3c9   :  { %v3015_v5 = vpop.permute.xlu0 %3014  ;;  %v4147_v12 = vpop.permute.xlu1 %4146 }
 0x3ca   :  { %3026 = vst.msk [vmem:[#allocation3 + $0x108] sm:$0xff] %vm2389_vm1, %v3015_v5 }
 0x3cb   :  { %3027 = vst.msk [vmem:[#allocation3 + $0x110] sm:$0xff] %vm11424_vm8, %v3015_v5  ;;  %3018 = vrot.lane.b32.xlu0 %v9103_v30, %s11600_s20  ;;  %v7752_v5 = vld [vmem:[%s11315_s3 + $0x80] sm:$0xff]  }
 0x3cc   :  { %4158 = vst.msk [vmem:[#allocation3 + $0x300] sm:$0xff] %vm2284_vm6, %v4147_v12  ;;  %4352 = vrot.lane.b32.xlu1 %v9103_v30, %s11427_s21  ;;  %7045 = vmatpush3.bf16.msra.mxu1 %v7752_v5 }
 0x3cd   :  { %v3547_v39 = vpop.permute.xlu0 %3546  ;;  %v2355_v55 = vpop.permute.xlu1 %2354 }
 0x3ce   :  { %3559 = vst.msk [vmem:[#allocation3 + $0x208] sm:$0xff] %vm2311_vm4, %v3547_v39 }
 0x3cf   :  { %2366 = vst.msk [vmem:[#allocation3 + $0x48] sm:$0xff] %vm2364_vm0, %v2355_v55  ;;  %3550 = vrot.lane.b32.xlu0 %v9103_v30, %s11584_s24 }
 0x3d0   :  { %3586 = vst.msk [vmem:[#allocation3 + $0x208] sm:$0xff] %vm11438_vm5, %v3575_v27  ;;  %4376 = vrot.lane.b32.xlu1 %v9103_v30, %s11589_s12 }
 0x3d1   :  { %3610 = vst.msk [vmem:[#allocation3 + $0x208] sm:$0xff] %vm2364_vm0, %v9244_v37  ;;  %v3499_v12 = vpop.permute.xlu0 %3498  ;;  %v2380_v10 = vpop.permute.xlu1 %2379 }
 0x3d2   :  { %3634 = vst.msk [vmem:[#allocation3 + $0x208] sm:$0xff] %vm2389_vm1, %v9252_v47  ;;  %2393 = vst.msk [vmem:[#allocation3 + $0x48] sm:$0xff] %vm2389_vm1, %v2380_v10 }
 0x3d3   :  { %3510 = vst.msk [vmem:[#allocation3 + $0x200] sm:$0xff] %vm2259_vm3, %v3499_v12  ;;  %3502 = vrot.lane.b32.xlu0 %v9103_v30, %s11585_s2  ;;  %v4722_v12 = vld [vmem:[#allocation3 + $0x40] sm:$0xff] }
 0x3d4   :  { %2394 = vst.msk [vmem:[#allocation3 + $0x50] sm:$0xff] %vm11424_vm8, %v2380_v10  ;;  %4400 = vrot.lane.b32.xlu1 %v9103_v30, %s11590_s1 }
 0x3d5   :  { %v3523_v37 = vpop.permute.xlu0 %3522  ;;  %v2993_v27 = vpop.permute.xlu1 %2992 }
 0x3d6   :  { %3534 = vst.msk [vmem:[#allocation3 + $0x200] sm:$0xff] %vm2284_vm6, %v3523_v37 }
 0x3d7   :  { %3003 = vst.msk [vmem:[#allocation3 + $0x148] sm:$0xff] %vm2364_vm0, %v2993_v27  ;;  %3526 = vrot.lane.b32.xlu0 %v9103_v30, %s11586_s30  ;;  %v7754_v27 = vld [vmem:[%s11315_s3 + $0x88] sm:$0xff]  }
 0x3d8   :  { %3558 = vst.msk [vmem:[#allocation3 + $0x200] sm:$0xff] %vm2309_vm7, %v3547_v39  ;;  %2668 = vrot.lane.b32.xlu1 %v9103_v30, %s11581_s15  ;;  %v7753_v39 = vld [vmem:[%s11315_s3 + $0xc8] sm:$0xff]  }
 0x3d9   :  { %v4171_v47 = vpop.permute.xlu0 %4170  ;;  %v3017_v55 = vpop.permute.xlu1 %3016  ;;  %v4723_v5 = vld [vmem:[#allocation3 + $0x48] sm:$0xff]  ;;  %7046 = vmatprep.subr.bf16.mxu1 %v7753_v39 }
 0x3da   :  { %4182 = vst.msk [vmem:[#allocation3 + $0x300] sm:$0xff] %vm2309_vm7, %v4171_v47  ;;  %5435 = vmatprep.mubr.bf16.mxu1 %v4723_v5  ;;  %7047 = vmatpush3.bf16.msra.mxu1 %v7754_v27  ;;  %v7757_v27 = vld [vmem:[%s11315_s3 + $0xd8] sm:$0xff]  }
 0x3db   :  { %4183 = vst.msk [vmem:[#allocation3 + $0x308] sm:$0xff] %vm2311_vm4, %v4171_v47  ;;  %5436 = vmatmul.mubr.bf16.gmra.mrb[100].mxu1 %v4722_v12  ;;  %4174 = vrot.lane.b32.xlu0 %v9103_v30, %s11587_s13 }
 0x3dc   :  { %3028 = vst.msk [vmem:[#allocation3 + $0x148] sm:$0xff] %vm2389_vm1, %v3017_v55  ;;  %2692 = vrot.lane.b32.xlu1 %v9103_v30, %s11582_s14 }
 0x3dd   :  { %3029 = vst.msk [vmem:[#allocation3 + $0x150] sm:$0xff] %vm11424_vm8, %v3017_v55  ;;  %v4199_v10 = vpop.permute.xlu0 %4198  ;;  %v9875_v37 = vpop.permute.xlu1 %3576  ;;  %vm2549_vm8 = vcmask 1048320  }
 0x3de   :  { %4210 = vst.msk [vmem:[#allocation3 + $0x308] sm:$0xff] %vm11438_vm5, %v4199_v10 }
 0x3df   :  { %4234 = vst.msk [vmem:[#allocation3 + $0x308] sm:$0xff] %vm2364_vm0, %v9278_v17  ;;  %4202 = vrot.lane.b32.xlu0 %v9103_v30, %s11588_s23 }
 0x3e0   :  { %4258 = vst.msk [vmem:[#allocation3 + $0x308] sm:$0xff] %vm2389_vm1, %v9288_v24  ;;  %2716 = vrot.lane.b32.xlu1 %v9103_v30, %s11587_s13 }
 0x3e1   :  { %v2458_v47 = vpop.permute.xlu0 %2457  ;;  %v9889_v55 = vpop.permute.xlu1 %4172 }
 0x3e2   :  { %2472 = vst.msk [vmem:[#allocation3 + $0x18] sm:$0xff] %vm2471_vm10, %v2458_v47 }
 0x3e3   :  { %4185 = vst.msk [vmem:[#allocation3 + $0x348] sm:$0xff] %vm2311_vm4, %v9889_v55  ;;  %2461 = vrot.lane.b32.xlu0 %v9103_v30, %s11427_s21  ;;  %s11608_s21 = smov 42  }
 0x3e4   :  { %2500 = vst.msk [vmem:[#allocation3 + $0x18] sm:$0xff] %vm2499_vm15, %v9261_v31  ;;  %2358 = vrot.lane.b32.xlu1 %v9127_v14, %s7824_s16  ;;  %s11431_s16 = smov 4  }
 0x3e5   :  { %2525 = vst.msk [vmem:[#allocation3 + $0x18] sm:$0xff] %vm2524_vm14, %v9268_v46  ;;  %v2408_v17 = vpop.permute.xlu0 %2407  ;;  %v4201_v24 = vpop.permute.xlu1 %4200 }
 0x3e6   :  { %2550 = vst.msk [vmem:[#allocation3 + $0x18] sm:$0xff] %vm2549_vm8, %v9276_v11 }
 0x3e7   :  { %2420 = vst.msk [vmem:[#allocation3 + $0x10] sm:$0xff] %vm2419_vm11, %v2408_v17  ;;  %2411 = vrot.lane.b32.xlu0 %v9103_v30, %s11426_s25  ;;  %s11606_s25 = smov 40  }
 0x3e8   :  { %4211 = vst.msk [vmem:[#allocation3 + $0x348] sm:$0xff] %vm11438_vm5, %v4201_v24  ;;  %2383 = vrot.lane.b32.xlu1 %v9127_v14, %s11583_s17  ;;  %s11601_s17 = smov 24  }
 0x3e9   :  { %4235 = vst.msk [vmem:[#allocation3 + $0x348] sm:$0xff] %vm2364_vm0, %v9353_v43  ;;  %v2433_v31 = vpop.permute.xlu0 %2432  ;;  %v3727_v46 = vpop.permute.xlu1 %3726 }
 0x3ea   :  { %4260 = vst.msk [vmem:[#allocation3 + $0x348] sm:$0xff] %vm2389_vm1, %v9363_v35  ;;  %v7755_v35 = vld [vmem:[%s11315_s3 + $0xd0] sm:$0xff]  }
 0x3eb   :  { %2445 = vst.msk [vmem:[#allocation3 + $0x10] sm:$0xff] %vm2444_vm12, %v2433_v31  ;;  %2436 = vrot.lane.b32.xlu0 %v9103_v30, %s11425_s26  ;;  %7048 = vmatprep.subr.bf16.mxu1 %v7755_v35  ;;  %s11603_s26 = smov 98  }
 0x3ec   :  { %3738 = vst.msk [vmem:[#allocation3 + $0x218] sm:$0xff] %vm2499_vm15, %v3727_v46  ;;  %3442 = vrot.lane.b32.xlu1 %v8964_v28, %s11431_s16  ;;  %s11607_s16 = smov 88  }
 0x3ed   :  { %2470 = vst.msk [vmem:[#allocation3 + $0x10] sm:$0xff] %vm11441_vm13, %v2458_v47  ;;  %v3091_v11 = vpop.permute.xlu0 %3090  ;;  %v3751_v43 = vpop.permute.xlu1 %3750 }
 0x3ee   :  { %3103 = vst.msk [vmem:[#allocation3 + $0x118] sm:$0xff] %vm2471_vm10, %v3091_v11 }
 0x3ef   :  { %3762 = vst.msk [vmem:[#allocation3 + $0x218] sm:$0xff] %vm2524_vm14, %v3751_v43  ;;  %3094 = vrot.lane.b32.xlu0 %v9103_v30, %s11601_s17 }
 0x3f0   :  { %3130 = vst.msk [vmem:[#allocation3 + $0x118] sm:$0xff] %vm2499_vm15, %v9286_v45  ;;  %3390 = vrot.lane.b32.xlu1 %v8964_v28, %s11429_s0  ;;  %v7756_v45 = vld [vmem:[%s11315_s3 + $0x90] sm:$0xff]   ;;  %s11609_s0 = smov 118  }
 0x3f1   :  { %3154 = vst.msk [vmem:[#allocation3 + $0x118] sm:$0xff] %vm2524_vm14, %v9296_v40  ;;  %v3043_v5 = vpop.permute.xlu0 %3042  ;;  %v3775_v12 = vpop.permute.xlu1 %3774  ;;  %7049 = vmatpush3.bf16.msra.mxu1 %v7756_v45  ;;  %v7761_v45 = vld [vmem:[%s11315_s3 + $0xe8] sm:$0xff]  }
 0x3f2   :  { %3178 = vst.msk [vmem:[#allocation3 + $0x118] sm:$0xff] %vm2549_vm8, %v9303_v6  ;;  %3786 = vst.msk [vmem:[#allocation3 + $0x218] sm:$0xff] %vm2549_vm8, %v3775_v12  ;;  %7050 = vmatprep.subr.bf16.mxu1 %v7757_v27 }
 0x3f3   :  { %3054 = vst.msk [vmem:[#allocation3 + $0x110] sm:$0xff] %vm2419_vm11, %v3043_v5  ;;  %3046 = vrot.lane.b32.xlu0 %v9103_v30, %s11602_s28  ;;  %v7759_v5 = vld [vmem:[%s11315_s3 + $0xe0] sm:$0xff]  }
 0x3f4   :  { %3787 = vst.msk [vmem:[#allocation3 + $0x220] sm:$0xff] %vm11440_vm9, %v3775_v12  ;;  %3292 = vrot.lane.b32.xlu1 %v9103_v30, %s11603_s26  ;;  %s11622_s26 = smov 66  }
 0x3f5   :  { %v3067_v40 = vpop.permute.xlu0 %3066  ;;  %v4351_v6 = vpop.permute.xlu1 %4350 }
 0x3f6   :  { %3078 = vst.msk [vmem:[#allocation3 + $0x110] sm:$0xff] %vm2444_vm12, %v3067_v40  ;;  %v7762_v40 = vld [vmem:[%s11315_s3 + $0xa8] sm:$0xff]  }
 0x3f7   :  { %4362 = vst.msk [vmem:[#allocation3 + $0x318] sm:$0xff] %vm2499_vm15, %v4351_v6  ;;  %3070 = vrot.lane.b32.xlu0 %v9103_v30, %s11604_s27 }
 0x3f8   :  { %3102 = vst.msk [vmem:[#allocation3 + $0x110] sm:$0xff] %vm11441_vm13, %v3091_v11  ;;  %3316 = vrot.lane.b32.xlu1 %v9103_v30, %s11605_s11  ;;  %s11614_s11 = smov 62  }
 0x3f9   :  { %v3549_v39 = vpop.permute.xlu0 %3548  ;;  %v4375_v10 = vpop.permute.xlu1 %4374 }
 0x3fa   :  { %3561 = vst.msk [vmem:[#allocation3 + $0x248] sm:$0xff] %vm2311_vm4, %v3549_v39 }
 0x3fb   :  { %4386 = vst.msk [vmem:[#allocation3 + $0x318] sm:$0xff] %vm2524_vm14, %v4375_v10  ;;  %2644 = vrot.lane.b32.xlu0 %v9103_v30, %s11580_s10 }
 0x3fc   :  { %3587 = vst.msk [vmem:[#allocation3 + $0x248] sm:$0xff] %vm11438_vm5, %v9875_v37  ;;  %3340 = vrot.lane.b32.xlu1 %v9103_v30, %s11606_s25  ;;  %s11636_s25 = smov 40  }
 0x3fd   :  { %3611 = vst.msk [vmem:[#allocation3 + $0x248] sm:$0xff] %vm2364_vm0, %v9337_v26  ;;  %v3501_v47 = vpop.permute.xlu0 %3500  ;;  %v4399_v17 = vpop.permute.xlu1 %4398  ;;  %v7758_v26 = vld [vmem:[%s11315_s3 + $0x98] sm:$0xff]  }
 0x3fe   :  { %3636 = vst.msk [vmem:[#allocation3 + $0x248] sm:$0xff] %vm2389_vm1, %v9344_v23  ;;  %7051 = vmatpush3.bf16.msra.mxu1 %v7758_v26 }
 0x3ff   :  { %3511 = vst.msk [vmem:[#allocation3 + $0x240] sm:$0xff] %vm2259_vm3, %v3501_v47  ;;  %2619 = vrot.lane.b32.xlu0 %v9103_v30, %s11607_s16  ;;  %7052 = vmatprep.subr.bf16.mxu1 %v7759_v5 }
 0x400   :  { %4410 = vst.msk [vmem:[#allocation3 + $0x318] sm:$0xff] %vm2549_vm8, %v4399_v17  ;;  %3416 = vrot.lane.b32.xlu1 %v8987_v15, %s11608_s21 }
 0x401   :  { %4411 = vst.msk [vmem:[#allocation3 + $0x320] sm:$0xff] %vm11440_vm9, %v4399_v17  ;;  %v3525_v23 = vpop.permute.xlu0 %3524  ;;  %v9978_v37 = vpop.permute.xlu1 %2666 }
 0x402   :  { %3535 = vst.msk [vmem:[#allocation3 + $0x240] sm:$0xff] %vm2284_vm6, %v3525_v23  ;;  %v7763_v23 = vld [vmem:[%s11315_s3 + $0xf0] sm:$0xff]  }
 0x403   :  { %3560 = vst.msk [vmem:[#allocation3 + $0x240] sm:$0xff] %vm2309_vm7, %v3549_v39  ;;  %3268 = vrot.lane.b32.xlu0 %v9103_v30, %s11609_s0  ;;  %s11642_s0 = smov 118  }
 0x404   :  { %2996 = vrot.lane.b32.xlu1 %v9127_v14, %s11610_s6 }
 0x405   :  { %v4101_v24 = vpop.permute.xlu0 %4100  ;;  %v9986_v31 = vpop.permute.xlu1 %2690 }
 0x406   :  { %4111 = vst.msk [vmem:[#allocation3 + $0x340] sm:$0xff] %vm2234_vm2, %v4101_v24 }
 0x407   :  { %3466 = vrot.lane.b32.xlu0 %v8964_v28, %s11434_s8  ;;  %s11612_s8 = smov 4  }
 0x408   :  { %3020 = vrot.lane.b32.xlu1 %v9127_v14, %s11600_s20 }
 0x409   :  { %v4125_v46 = vpop.permute.xlu0 %4124  ;;  %v9993_v11 = vpop.permute.xlu1 %2714 }
 0x40a   :  { %4135 = vst.msk [vmem:[#allocation3 + $0x340] sm:$0xff] %vm2259_vm3, %v4125_v46 }
 0x40b   :  { %2727 = vst.msk [vmem:[#allocation3 + $0x30] sm:$0xff] %vm2311_vm4, %v9993_v11  ;;  %3196 = vrot.lane.b32.xlu0 %v8964_v28, %s11611_s9 }
 0x40c   :  { %2754 = vst.msk [vmem:[#allocation3 + $0x30] sm:$0xff] %vm11438_vm5, %v9498_v25  ;;  %3444 = vrot.lane.b32.xlu1 %v8987_v15, %s11612_s8 }
 0x40d   :  { %2778 = vst.msk [vmem:[#allocation3 + $0x30] sm:$0xff] %vm2364_vm0, %v9458_v32  ;;  %v4149_v43 = vpop.permute.xlu0 %4148  ;;  %v10008_v35 = vpop.permute.xlu1 %3290 }
 0x40e   :  { %2802 = vst.msk [vmem:[#allocation3 + $0x30] sm:$0xff] %vm2389_vm1, %v9430_v2  ;;  %v7760_v2 = vld [vmem:[%s11315_s3 + $0xa0] sm:$0xff]  }
 0x40f   :  { %4159 = vst.msk [vmem:[#allocation3 + $0x340] sm:$0xff] %vm2284_vm6, %v4149_v43  ;;  %3220 = vrot.lane.b32.xlu0 %v8964_v28, %s11613_s5  ;;  %7053 = vmatpush3.bf16.msra.mxu1 %v7760_v2 }
 0x410   :  { %4184 = vst.msk [vmem:[#allocation3 + $0x340] sm:$0xff] %vm2309_vm7, %v9889_v55  ;;  %3392 = vrot.lane.b32.xlu1 %v8987_v15, %s11614_s11  ;;  %7054 = vmatprep.subr.bf16.mxu1 %v7761_v45 }
 0x411   :  { %v2460_v32 = vpop.permute.xlu0 %2459  ;;  %v10023_v25 = vpop.permute.xlu1 %3314 }
 0x412   :  { %2474 = vst.msk [vmem:[#allocation3 + $0x58] sm:$0xff] %vm2471_vm10, %v2460_v32 }
 0x413   :  { %2501 = vst.msk [vmem:[#allocation3 + $0x58] sm:$0xff] %vm2499_vm15, %v9375_v3  ;;  %3244 = vrot.lane.b32.xlu0 %v9103_v30, %s11597_s18  ;;  %7055 = vmatpush3.bf16.msra.mxu1 %v7762_v40 }
 0x414   :  { %2526 = vst.msk [vmem:[#allocation3 + $0x58] sm:$0xff] %vm2524_vm14, %v9383_v13  ;;  %3580 = vrot.lane.b32.xlu1 %v9127_v14, %s11610_s6  ;;  %7056 = vmatprep.subr.bf16.mxu1 %v7763_v23 }
 0x415   :  { %2553 = vst.msk [vmem:[#allocation3 + $0x58] sm:$0xff] %vm2549_vm8, %v9390_v44  ;;  %v2410_v55 = vpop.permute.xlu0 %2409  ;;  %v10036_v12 = vpop.permute.xlu1 %3338 }
 0x416   :  { %2421 = vst.msk [vmem:[#allocation3 + $0x50] sm:$0xff] %vm2419_vm11, %v2410_v55 }
 0x417   :  { %3351 = vst.msk [vmem:[#allocation3 + $0x130] sm:$0xff] %vm2311_vm4, %v10036_v12  ;;  %3368 = vrot.lane.b32.xlu0 %v8987_v15, %s11587_s13 }
 0x418   :  { %3378 = vst.msk [vmem:[#allocation3 + $0x130] sm:$0xff] %vm11438_vm5, %v9542_v20  ;;  %3418 = vrot.lane.b32.xlu1 %v9011_v58, %s11608_s21  ;;  %vm11616_vm5 = vcmask 195584  }
 0x419   :  { %v2435_v3 = vpop.permute.xlu0 %2434  ;;  %v2357_v13 = vpop.permute.xlu1 %2356 }
 0x41a   :  { %2446 = vst.msk [vmem:[#allocation3 + $0x50] sm:$0xff] %vm2444_vm12, %v2435_v3 }
 0x41b   :  { %2367 = vst.msk [vmem:[#allocation3 + $0x88] sm:$0xff] %vm2364_vm0, %v2357_v13  ;;  %3468 = vrot.lane.b32.xlu0 %v8987_v15, %s11615_s4  ;;  %v11618_v13 = vmov 0  }
 0x41c   :  { %2473 = vst.msk [vmem:[#allocation3 + $0x50] sm:$0xff] %vm11441_vm13, %v2460_v32  ;;  %3446 = vrot.lane.b32.xlu1 %v9011_v58, %s11612_s8 }
 0x41d   :  { %v3093_v44 = vpop.permute.xlu0 %3092  ;;  %v2382_v20 = vpop.permute.xlu1 %2381 }
 0x41e   :  { %3105 = vst.msk [vmem:[#allocation3 + $0x158] sm:$0xff] %vm2471_vm10, %v3093_v44 }
 0x41f   :  { %2395 = vst.msk [vmem:[#allocation3 + $0x88] sm:$0xff] %vm2389_vm1, %v2382_v20  ;;  %3552 = vrot.lane.b32.xlu0 %v9127_v14, %s11584_s24  ;;  %s11623_s24 = smov 84  }
 0x420   :  { %2396 = vst.msk [vmem:[#allocation3 + $0x90] sm:$0xff] %vm11616_vm5, %v2382_v20  ;;  %3394 = vrot.lane.b32.xlu1 %v9011_v58, %s11614_s11  ;;  %vm11439_vm5 = vcmask 1048256  }
 0x421   :  { %3131 = vst.msk [vmem:[#allocation3 + $0x158] sm:$0xff] %vm2499_vm15, %v9400_v7  ;;  %v3045_v6 = vpop.permute.xlu0 %3044  ;;  %v10073_v39 = vpop.permute.xlu1 %3578 }
 0x422   :  { %3155 = vst.msk [vmem:[#allocation3 + $0x158] sm:$0xff] %vm2524_vm14, %v9408_v18 }
 0x423   :  { %3180 = vst.msk [vmem:[#allocation3 + $0x158] sm:$0xff] %vm2549_vm8, %v9418_v41  ;;  %3504 = vrot.lane.b32.xlu0 %v9127_v14, %s11585_s2  ;;  %v4730_v41 = vld [vmem:[#allocation3 + $0x80] sm:$0xff]  ;;  %s11624_s2 = smov 14  }
 0x424   :  { %3055 = vst.msk [vmem:[#allocation3 + $0x150] sm:$0xff] %vm2419_vm11, %v3045_v6  ;;  %4176 = vrot.lane.b32.xlu1 %v9127_v14, %s11587_s13 }
 0x425   :  { %v3069_v7 = vpop.permute.xlu0 %3068  ;;  %v4103_v18 = vpop.permute.xlu1 %4102 }
 0x426   :  { %v4731_v10 = vld [vmem:[#allocation3 + $0x88] sm:$0xff]  ;;  %3079 = vst.msk [vmem:[#allocation3 + $0x150] sm:$0xff] %vm2444_vm12, %v3069_v7 }
 0x427   :  { %4112 = vst.msk [vmem:[#allocation3 + $0x380] sm:$0xff] %vm2234_vm2, %v4103_v18  ;;  %5443 = vmatprep.mubr.bf16.mxu1 %v4731_v10  ;;  %3528 = vrot.lane.b32.xlu0 %v9127_v14, %s11586_s30  ;;  %v4738_v10 = vld [vmem:[#allocation3 + $0xc0] sm:$0xff]  ;;  %s11625_s30 = smov 122  }
 0x428   :  { %3104 = vst.msk [vmem:[#allocation3 + $0x150] sm:$0xff] %vm11441_vm13, %v3093_v44  ;;  %5444 = vmatmul.mubr.bf16.gmra.mrb[104].mxu1 %v4730_v41  ;;  %4204 = vrot.lane.b32.xlu1 %v9127_v14, %s11588_s23  ;;  %v4747_v41 = vld [vmem:[#allocation3 + $0x108] sm:$0xff]  ;;  %s11627_s23 = smov 32  }
 0x429   :  { %v2643_v27 = vpop.permute.xlu0 %2642  ;;  %v4127_v47 = vpop.permute.xlu1 %4126 }
 0x42a   :  { %2654 = vst.msk [vmem:[#allocation3 + $0x28] sm:$0xff] %vm2234_vm2, %v2643_v27 }
 0x42b   :  { %4136 = vst.msk [vmem:[#allocation3 + $0x380] sm:$0xff] %vm2259_vm3, %v4127_v47  ;;  %2678 = vst.msk [vmem:[#allocation3 + $0x28] sm:$0xff] %vm2259_vm3, %v9978_v37  ;;  %3198 = vrot.lane.b32.xlu0 %v8987_v15, %s11611_s9  ;;  %v7764_v37 = vld [vmem:[%s11315_s3 + $0xb0] sm:$0xff]   ;;  %v4755_v47 = vld [vmem:[#allocation3 + $0x148] sm:$0xff] }
 0x42c   :  { %2702 = vst.msk [vmem:[#allocation3 + $0x28] sm:$0xff] %vm2284_vm6, %v9986_v31  ;;  %3420 = vrot.lane.b32.xlu1 %v9033_v63, %s11608_s21  ;;  %7057 = vmatpush3.bf16.msra.mxu1 %v7764_v37 }
 0x42d   :  { %2726 = vst.msk [vmem:[#allocation3 + $0x28] sm:$0xff] %vm2309_vm7, %v9993_v11  ;;  %v2618_v17 = vpop.permute.xlu0 %2617  ;;  %v4151_v26 = vpop.permute.xlu1 %4150 }
 0x42e   :  { %2630 = vst.msk [vmem:[#allocation3 + $0x20] sm:$0xff] %vm11439_vm5, %v2618_v17 }
 0x42f   :  { %4160 = vst.msk [vmem:[#allocation3 + $0x380] sm:$0xff] %vm2284_vm6, %v4151_v26  ;;  %3222 = vrot.lane.b32.xlu0 %v8987_v15, %s11613_s5 }
 0x430   :  { %3448 = vrot.lane.b32.xlu1 %v9033_v63, %s11612_s8 }
 0x431   :  { %v3267_v24 = vpop.permute.xlu0 %3266  ;;  %v3729_v31 = vpop.permute.xlu1 %3728 }
 0x432   :  { %3278 = vst.msk [vmem:[#allocation3 + $0x128] sm:$0xff] %vm2234_vm2, %v3267_v24  ;;  %v4754_v24 = vld [vmem:[#allocation3 + $0x140] sm:$0xff] }
 0x433   :  { %3739 = vst.msk [vmem:[#allocation3 + $0x258] sm:$0xff] %vm2499_vm15, %v3729_v31  ;;  %3370 = vrot.lane.b32.xlu0 %v9011_v58, %s11587_s13 }
 0x434   :  { %3302 = vst.msk [vmem:[#allocation3 + $0x128] sm:$0xff] %vm2259_vm3, %v10008_v35  ;;  %3472 = vrot.lane.b32.xlu1 %v9033_v63, %s11615_s4  ;;  %v4719_v46 = vld [vmem:[#allocation3 + $0x28] sm:$0xff] }
 0x435   :  { %3326 = vst.msk [vmem:[#allocation3 + $0x128] sm:$0xff] %vm2284_vm6, %v10023_v25  ;;  %v3243_v11 = vpop.permute.xlu0 %3242  ;;  %5749 = vmatprep.mubr.bf16.mxu0 %v4719_v46  ;;  %v4718_v43 = vld [vmem:[#allocation3 + $0x20] sm:$0xff]  ;;  %v7765_v25 = vld [vmem:[%s11315_s3 + $0xf8] sm:$0xff]  }
 0x436   :  { %3350 = vst.msk [vmem:[#allocation3 + $0x128] sm:$0xff] %vm2309_vm7, %v10036_v12  ;;  %v3753_v5 = vpop.permute.xlu1 %3752  ;;  %5750 = vmatmul.mubr.bf16.vlgmr.msra.gmra.mrb[192].mxu0 %v4718_v43  ;;  %v7766_v12 = vld [vmem:[%s11315_s3 + $0xb8] sm:$0xff]   ;;  %7058 = vmatprep.subr.bf16.mxu1 %v7765_v25 }
 0x437   :  { %3254 = vst.msk [vmem:[#allocation3 + $0x120] sm:$0xff] %vm11439_vm5, %v3243_v11  ;;  %3470 = vrot.lane.b32.xlu0 %v9011_v58, %s11615_s4  ;;  %vm11617_vm5 = vcmask 195584   ;;  %7059 = vmatpush3.bf16.msra.mxu1 %v7766_v12 }
 0x438   :  { %3763 = vst.msk [vmem:[#allocation3 + $0x258] sm:$0xff] %vm2524_vm14, %v3753_v5  ;;  %3898 = vrot.lane.b32.xlu1 %v8964_v28, %s11581_s15  ;;  %5878 = vmatprep.subr.bf16.mxu1 %v11618_v13 }
 0x439   :  { %v2995_v35 = vpop.permute.xlu0 %2994 }
 0x43a   :  { %3004 = vst.msk [vmem:[#allocation3 + $0x188] sm:$0xff] %vm2364_vm0, %v2995_v35  ;;  %v3777_v2 = vpop.permute.xlu1 %3776 }
 0x43b   :  { %3788 = vst.msk [vmem:[#allocation3 + $0x258] sm:$0xff] %vm2549_vm8, %v3777_v2  ;;  %3200 = vrot.lane.b32.xlu0 %v9011_v58, %s11611_s9 }
 0x43c   :  { %3789 = vst.msk [vmem:[#allocation3 + $0x260] sm:$0xff] %vm11440_vm9, %v3777_v2  ;;  %3922 = vrot.lane.b32.xlu1 %v8964_v28, %s11582_s14 }
 0x43d   :  { %v3019_v32 = vpop.permute.xlu0 %3018 }
 0x43e   :  { %3030 = vst.msk [vmem:[#allocation3 + $0x188] sm:$0xff] %vm2389_vm1, %v3019_v32  ;;  %v4353_v55 = vpop.permute.xlu1 %4352 }
 0x43f   :  { %3031 = vst.msk [vmem:[#allocation3 + $0x190] sm:$0xff] %vm11617_vm5, %v3019_v32  ;;  %4104 = vrot.lane.b32.xlu0 %v9127_v14, %s11580_s10  ;;  %vm11619_vm5 = vcmask 589056   ;;  %v4762_v32 = vld [vmem:[#allocation3 + $0x180] sm:$0xff] }
 0x440   :  { %4363 = vst.msk [vmem:[#allocation3 + $0x358] sm:$0xff] %vm2499_vm15, %v4353_v55  ;;  %3946 = vrot.lane.b32.xlu1 %v8964_v28, %s11587_s13 }
 0x441   :  { %v3551_v3 = vpop.permute.xlu0 %3550 }
 0x442   :  { %3563 = vst.msk [vmem:[#allocation3 + $0x288] sm:$0xff] %vm2311_vm4, %v3551_v3  ;;  %v4377_v44 = vpop.permute.xlu1 %4376 }
 0x443   :  { %3588 = vst.msk [vmem:[#allocation3 + $0x288] sm:$0xff] %vm11619_vm5, %v10073_v39  ;;  %4128 = vrot.lane.b32.xlu0 %v9127_v14, %s11581_s15 }
 0x444   :  { %4387 = vst.msk [vmem:[#allocation3 + $0x358] sm:$0xff] %vm2524_vm14, %v4377_v44  ;;  %4022 = vrot.lane.b32.xlu1 %v9103_v30, %s11600_s20 }
 0x445   :  { %3612 = vst.msk [vmem:[#allocation3 + $0x288] sm:$0xff] %vm2364_vm0, %v9520_v60  ;;  %v3503_v20 = vpop.permute.xlu0 %3502  ;;  %v4763_v31 = vld [vmem:[#allocation3 + $0x188] sm:$0xff] }
 0x446   :  { %3638 = vst.msk [vmem:[#allocation3 + $0x288] sm:$0xff] %vm2389_vm1, %v9533_v16  ;;  %v4401_v45 = vpop.permute.xlu1 %4400 }
 0x447   :  { %3512 = vst.msk [vmem:[#allocation3 + $0x280] sm:$0xff] %vm2259_vm3, %v3503_v20  ;;  %4152 = vrot.lane.b32.xlu0 %v9127_v14, %s11582_s14  ;;  %v4770_v20 = vld [vmem:[#allocation3 + $0x1c0] sm:$0xff] }
 0x448   :  { %4412 = vst.msk [vmem:[#allocation3 + $0x358] sm:$0xff] %vm2549_vm8, %v4401_v45  ;;  %4050 = vrot.lane.b32.xlu1 %v9103_v30, %s11602_s28 }
 0x449   :  { %4413 = vst.msk [vmem:[#allocation3 + $0x360] sm:$0xff] %vm11440_vm9, %v4401_v45  ;;  %v3527_v60 = vpop.permute.xlu0 %3526  ;;  %vm11620_vm9 = vmmov %vm11619_vm5  ;;  %v4779_v45 = vld [vmem:[#allocation3 + $0x208] sm:$0xff] }
 0x44a   :  { %3536 = vst.msk [vmem:[#allocation3 + $0x280] sm:$0xff] %vm2284_vm6, %v3527_v60  ;;  %v10170_v40 = vpop.permute.xlu1 %2668 }
 0x44b   :  { %3562 = vst.msk [vmem:[#allocation3 + $0x280] sm:$0xff] %vm2309_vm7, %v3551_v3  ;;  %3224 = vrot.lane.b32.xlu0 %v9011_v58, %s11613_s5 }
 0x44c   :  { %3998 = vrot.lane.b32.xlu1 %v9103_v30, %s11610_s6 }
 0x44d   :  { %v4175_v16 = vpop.permute.xlu0 %4174 }
 0x44e   :  { %4186 = vst.msk [vmem:[#allocation3 + $0x380] sm:$0xff] %vm2309_vm7, %v4175_v16  ;;  %v10179_v6 = vpop.permute.xlu1 %2692 }
 0x44f   :  { %4187 = vst.msk [vmem:[#allocation3 + $0x388] sm:$0xff] %vm2311_vm4, %v4175_v16  ;;  %3372 = vrot.lane.b32.xlu0 %v9033_v63, %s11587_s13 }
 0x450   :  { %3900 = vrot.lane.b32.xlu1 %v8987_v15, %s11581_s15 }
 0x451   :  { %v4203_v39 = vpop.permute.xlu0 %4202 }
 0x452   :  { %4212 = vst.msk [vmem:[#allocation3 + $0x388] sm:$0xff] %vm11619_vm5, %v4203_v39  ;;  %v10186_v7 = vpop.permute.xlu1 %2716  ;;  %vm11626_vm5 = vcmask 1048256   ;;  %v4778_v39 = vld [vmem:[#allocation3 + $0x200] sm:$0xff] }
 0x453   :  { %4236 = vst.msk [vmem:[#allocation3 + $0x388] sm:$0xff] %vm2364_vm0, %v9602_v19  ;;  %3396 = vrot.lane.b32.xlu0 %v9033_v63, %s11614_s11 }
 0x454   :  { %2729 = vst.msk [vmem:[#allocation3 + $0x70] sm:$0xff] %vm2311_vm4, %v10186_v7  ;;  %3924 = vrot.lane.b32.xlu1 %v8987_v15, %s11582_s14 }
 0x455   :  { %4262 = vst.msk [vmem:[#allocation3 + $0x388] sm:$0xff] %vm2389_vm1, %v9611_v38  ;;  %v2462_v18 = vpop.permute.xlu0 %2461 }
 0x456   :  { %2755 = vst.msk [vmem:[#allocation3 + $0x70] sm:$0xff] %vm11620_vm9, %v9673_v8  ;;  %v2359_v19 = vpop.permute.xlu1 %2358  ;;  %vm11621_vm9 = vcmask 195584  }
 0x457   :  { %2779 = vst.msk [vmem:[#allocation3 + $0x70] sm:$0xff] %vm2364_vm0, %v9609_v0  ;;  %2368 = vst.msk [vmem:[#allocation3 + $0xc8] sm:$0xff] %vm2364_vm0, %v2359_v19  ;;  %3874 = vrot.lane.b32.xlu0 %v8964_v28, %s11580_s10 }
 0x458   :  { %2804 = vst.msk [vmem:[#allocation3 + $0x70] sm:$0xff] %vm2389_vm1, %v9591_v52  ;;  %3948 = vrot.lane.b32.xlu1 %v8987_v15, %s11587_s13 }
 0x459   :  { %2476 = vst.msk [vmem:[#allocation3 + $0x98] sm:$0xff] %vm2471_vm10, %v2462_v18  ;;  %v2412_v52 = vpop.permute.xlu0 %2411 }
 0x45a   :  { %2502 = vst.msk [vmem:[#allocation3 + $0x98] sm:$0xff] %vm2499_vm15, %v9544_v29  ;;  %v2384_v0 = vpop.permute.xlu1 %2383 }
 0x45b   :  { %2527 = vst.msk [vmem:[#allocation3 + $0x98] sm:$0xff] %vm2524_vm14, %v9550_v1  ;;  %3802 = vrot.lane.b32.xlu0 %v9079_v61, %s11622_s26 }
 0x45c   :  { %2555 = vst.msk [vmem:[#allocation3 + $0x98] sm:$0xff] %vm2549_vm8, %v9558_v62  ;;  %3902 = vrot.lane.b32.xlu1 %v9011_v58, %s11581_s15 }
 0x45d   :  { %2422 = vst.msk [vmem:[#allocation3 + $0x90] sm:$0xff] %vm2419_vm11, %v2412_v52  ;;  %v2437_v29 = vpop.permute.xlu0 %2436 }
 0x45e   :  { %2397 = vst.msk [vmem:[#allocation3 + $0xc8] sm:$0xff] %vm2389_vm1, %v2384_v0  ;;  %v3443_v1 = vpop.permute.xlu1 %3442 }
 0x45f   :  { %2398 = vst.msk [vmem:[#allocation3 + $0xd0] sm:$0xff] %vm11621_vm9, %v2384_v0  ;;  %2463 = vrot.lane.b32.xlu0 %v9127_v14, %s11623_s24 }
 0x460   :  { %2447 = vst.msk [vmem:[#allocation3 + $0x90] sm:$0xff] %vm2444_vm12, %v2437_v29  ;;  %3926 = vrot.lane.b32.xlu1 %v9011_v58, %s11582_s14  ;;  %v4786_v29 = vld [vmem:[#allocation3 + $0x240] sm:$0xff] }
 0x461   :  { %2475 = vst.msk [vmem:[#allocation3 + $0x90] sm:$0xff] %vm11441_vm13, %v2462_v18  ;;  %v3095_v62 = vpop.permute.xlu0 %3094 }
 0x462   :  { %3454 = vst.msk [vmem:[#allocation3 + $0x138] sm:$0xff] %vm2419_vm11, %v3443_v1  ;;  %v3391_v38 = vpop.permute.xlu1 %3390  ;;  %v4795_v1 = vld [vmem:[#allocation3 + $0x288] sm:$0xff] }
 0x463   :  { %3107 = vst.msk [vmem:[#allocation3 + $0x198] sm:$0xff] %vm2471_vm10, %v3095_v62  ;;  %2413 = vrot.lane.b32.xlu0 %v9127_v14, %s11624_s2 }
 0x464   :  { %3132 = vst.msk [vmem:[#allocation3 + $0x198] sm:$0xff] %vm2499_vm15, %v9567_v56  ;;  %3730 = vrot.lane.b32.xlu1 %v9127_v14, %s11596_s29 }
 0x465   :  { %v4739_v8 = vld [vmem:[#allocation3 + $0xc8] sm:$0xff]  ;;  %3402 = vst.msk [vmem:[#allocation3 + $0x130] sm:$0xff] %vm2364_vm0, %v3391_v38  ;;  %v3047_v56 = vpop.permute.xlu0 %3046 }
 0x466   :  { %5451 = vmatprep.mubr.bf16.mxu1 %v4739_v8  ;;  %3156 = vst.msk [vmem:[#allocation3 + $0x198] sm:$0xff] %vm2524_vm14, %v9575_v49  ;;  %v3293_v27 = vpop.permute.xlu1 %3292 }
 0x467   :  { %3426 = vst.msk [vmem:[#allocation3 + $0x130] sm:$0xff] %vm2389_vm1, %v9471_v51  ;;  %5452 = vmatmul.mubr.bf16.gmra.mrb[108].mxu1 %v4738_v10  ;;  %2438 = vrot.lane.b32.xlu0 %v9127_v14, %s11625_s30  ;;  %s11699_s30 = sld [smem:[#allocation54_spill]] }
 0x468   :  { %3182 = vst.msk [vmem:[#allocation3 + $0x198] sm:$0xff] %vm2549_vm8, %v9582_v22  ;;  %5459 = vmatprep.mubr.bf16.mxu1 %v4747_v41  ;;  %3754 = vrot.lane.b32.xlu1 %v9127_v14, %s11598_s22  ;;  %v4746_v22 = vld [vmem:[#allocation3 + $0x100] sm:$0xff] }
 0x469   :  { %3056 = vst.msk [vmem:[#allocation3 + $0x190] sm:$0xff] %vm2419_vm11, %v3047_v56  ;;  %v3071_v51 = vpop.permute.xlu0 %3070 }
 0x46a   :  { %3080 = vst.msk [vmem:[#allocation3 + $0x190] sm:$0xff] %vm2444_vm12, %v3071_v51  ;;  %v3317_v49 = vpop.permute.xlu1 %3316 }
 0x46b   :  { %3106 = vst.msk [vmem:[#allocation3 + $0x190] sm:$0xff] %vm11441_vm13, %v3095_v62  ;;  %3826 = vrot.lane.b32.xlu0 %v9079_v61, %s11597_s18  ;;  %vm11634_vm13 = vcmask 195584  }
 0x46c   :  { %3778 = vrot.lane.b32.xlu1 %v9127_v14, %s11599_s19 }
 0x46d   :  { %v2645_v17 = vpop.permute.xlu0 %2644 }
 0x46e   :  { %2655 = vst.msk [vmem:[#allocation3 + $0x68] sm:$0xff] %vm2234_vm2, %v2645_v17  ;;  %v3341_v26 = vpop.permute.xlu1 %3340 }
 0x46f   :  { %5460 = vmatmul.mubr.bf16.gmra.mrb[112].mxu1 %v4746_v22  ;;  %2679 = vst.msk [vmem:[#allocation3 + $0x68] sm:$0xff] %vm2259_vm3, %v10170_v40  ;;  %3850 = vrot.lane.b32.xlu0 %v8964_v28, %s11607_s16 }
 0x470   :  { %5467 = vmatprep.mubr.bf16.mxu1 %v4755_v47  ;;  %3353 = vst.msk [vmem:[#allocation3 + $0x170] sm:$0xff] %vm2311_vm4, %v3341_v26  ;;  %4354 = vrot.lane.b32.xlu1 %v9127_v14, %s11623_s24 }
 0x471   :  { %2703 = vst.msk [vmem:[#allocation3 + $0x68] sm:$0xff] %vm2284_vm6, %v10179_v6  ;;  %v2620_v23 = vpop.permute.xlu0 %2619 }
 0x472   :  { %2728 = vst.msk [vmem:[#allocation3 + $0x68] sm:$0xff] %vm2309_vm7, %v10186_v7  ;;  %v3417_v37 = vpop.permute.xlu1 %3416  ;;  %v4787_v7 = vld [vmem:[#allocation3 + $0x248] sm:$0xff] }
 0x473   :  { %2631 = vst.msk [vmem:[#allocation3 + $0x60] sm:$0xff] %vm11626_vm5, %v2620_v23  ;;  %3974 = vrot.lane.b32.xlu0 %v9103_v30, %s11627_s23  ;;  %vm11628_vm5 = vmmov %vm11621_vm9  ;;  %v4811_v23 = vld [vmem:[#allocation3 + $0x308] sm:$0xff] }
 0x474   :  { %3429 = vst.msk [vmem:[#allocation3 + $0x178] sm:$0xff] %vm11621_vm9, %v3417_v37  ;;  %4378 = vrot.lane.b32.xlu1 %v9127_v14, %s11589_s12  ;;  %vm11629_vm9 = vcmask 392256  }
 0x475   :  { %v3269_v46 = vpop.permute.xlu0 %3268 }
 0x476   :  { %3279 = vst.msk [vmem:[#allocation3 + $0x168] sm:$0xff] %vm2234_vm2, %v3269_v46  ;;  %v2997_v11 = vpop.permute.xlu1 %2996 }
 0x477   :  { %5468 = vmatmul.mubr.bf16.gmra.mrb[116].mxu1 %v4754_v24  ;;  %3303 = vst.msk [vmem:[#allocation3 + $0x168] sm:$0xff] %vm2259_vm3, %v3293_v27  ;;  %3876 = vrot.lane.b32.xlu0 %v8987_v15, %s11580_s10 }
 0x478   :  { %5475 = vmatprep.mubr.bf16.mxu1 %v4763_v31  ;;  %3005 = vst.msk [vmem:[#allocation3 + $0x1c8] sm:$0xff] %vm2364_vm0, %v2997_v11  ;;  %4402 = vrot.lane.b32.xlu1 %v9127_v14, %s11590_s1  ;;  %v4810_v11 = vld [vmem:[#allocation3 + $0x300] sm:$0xff] }
 0x479   :  { %3327 = vst.msk [vmem:[#allocation3 + $0x168] sm:$0xff] %vm2284_vm6, %v3317_v49  ;;  %v4727_v43 = vld [vmem:[#allocation3 + $0x68] sm:$0xff]  ;;  %v3467_v5 = vpop.permute.xlu0 %3466  ;;  %v4794_v49 = vld [vmem:[#allocation3 + $0x280] sm:$0xff] }
 0x47a   :  { %3352 = vst.msk [vmem:[#allocation3 + $0x168] sm:$0xff] %vm2309_vm7, %v3341_v26  ;;  %5757 = vmatprep.mubr.bf16.mxu0 %v4727_v43  ;;  %v4726_v35 = vld [vmem:[#allocation3 + $0x60] sm:$0xff]  ;;  %v3021_v2 = vpop.permute.xlu1 %3020  ;;  %v4819_v43 = vld [vmem:[#allocation3 + $0x348] sm:$0xff] }
 0x47b   :  { %3478 = vst.msk [vmem:[#allocation3 + $0x138] sm:$0xff] %vm2444_vm12, %v3467_v5  ;;  %5758 = vmatmul.mubr.bf16.gmra.mrb[196].mxu0 %v4726_v35  ;;  %4074 = vrot.lane.b32.xlu0 %v9103_v30, %s11604_s27 }
 0x47c   :  { %3032 = vst.msk [vmem:[#allocation3 + $0x1c8] sm:$0xff] %vm2389_vm1, %v3021_v2  ;;  %2670 = vrot.lane.b32.xlu1 %v9127_v14, %s11581_s15 }
 0x47d   :  { %3033 = vst.msk [vmem:[#allocation3 + $0x1d0] sm:$0xff] %vm11628_vm5, %v3021_v2  ;;  %v3197_v25 = vpop.permute.xlu0 %3196  ;;  %vm11630_vm5 = vcmask 720256  }
 0x47e   :  { %3207 = vst.msk [vmem:[#allocation3 + $0x160] sm:$0xff] %vm11629_vm9, %v3197_v25  ;;  %v3445_v55 = vpop.permute.xlu1 %3444  ;;  %vm11631_vm9 = vcmask 1048256  }
 0x47f   :  { %5476 = vmatmul.mubr.bf16.gmra.mrb[120].mxu1 %v4762_v32  ;;  %3455 = vst.msk [vmem:[#allocation3 + $0x178] sm:$0xff] %vm2419_vm11, %v3445_v55  ;;  %3096 = vrot.lane.b32.xlu0 %v9127_v14, %s11601_s17  ;;  %s11632_s17 = smov 98  }
 0x480   :  { %2694 = vrot.lane.b32.xlu1 %v9127_v14, %s11582_s14 }
 0x481   :  { %v3221_v12 = vpop.permute.xlu0 %3220 }
 0x482   :  { %3231 = vst.msk [vmem:[#allocation3 + $0x160] sm:$0xff] %vm11630_vm5, %v3221_v12  ;;  %v3393_v3 = vpop.permute.xlu1 %3392  ;;  %vm11633_vm5 = vcmask 589056  }
 0x483   :  { %v4771_v44 = vld [vmem:[#allocation3 + $0x1c8] sm:$0xff]  ;;  %3048 = vrot.lane.b32.xlu0 %v9127_v14, %s11602_s28 }
 0x484   :  { %5483 = vmatprep.mubr.bf16.mxu1 %v4771_v44  ;;  %2718 = vrot.lane.b32.xlu1 %v9127_v14, %s11587_s13 }
 0x485   :  { %v3245_v60 = vpop.permute.xlu0 %3244 }
 0x486   :  { %3255 = vst.msk [vmem:[#allocation3 + $0x160] sm:$0xff] %vm11631_vm9, %v3245_v60  ;;  %v3581_v40 = vpop.permute.xlu1 %3580  ;;  %vm11638_vm9 = vmmov %vm11633_vm5  ;;  %v4827_v60 = vld [vmem:[#allocation3 + $0x388] sm:$0xff] }
 0x487   :  { %5484 = vmatmul.mubr.bf16.gmra.mrb[124].mxu1 %v4770_v20  ;;  %3072 = vrot.lane.b32.xlu0 %v9127_v14, %s11604_s27 }
 0x488   :  { %5491 = vmatprep.mubr.bf16.mxu1 %v4779_v45  ;;  %3294 = vrot.lane.b32.xlu1 %v9127_v14, %s11632_s17  ;;  %v4818_v45 = vld [vmem:[#allocation3 + $0x340] sm:$0xff] }
 0x489   :  { %v3369_v16 = vpop.permute.xlu0 %3368 }
 0x48a   :  { %3379 = vst.msk [vmem:[#allocation3 + $0x170] sm:$0xff] %vm11633_vm5, %v3369_v16  ;;  %v10306_v6 = vpop.permute.xlu1 %3418 }
 0x48b   :  { %3403 = vst.msk [vmem:[#allocation3 + $0x170] sm:$0xff] %vm2364_vm0, %v3393_v3  ;;  %3804 = vrot.lane.b32.xlu0 %v9103_v30, %s11622_s26 }
 0x48c   :  { %3431 = vst.msk [vmem:[#allocation3 + $0x1b8] sm:$0xff] %vm11634_vm13, %v10306_v6  ;;  %3318 = vrot.lane.b32.xlu1 %v9127_v14, %s11635_s7  ;;  %vm11637_vm13 = vmmov %vm11633_vm5  ;;  %vm11639_vm5 = vcmask 392256  }
 0x48d   :  { %3428 = vst.msk [vmem:[#allocation3 + $0x170] sm:$0xff] %vm2389_vm1, %v3417_v37  ;;  %v3469_v18 = vpop.permute.xlu0 %3468 }
 0x48e   :  { %3479 = vst.msk [vmem:[#allocation3 + $0x178] sm:$0xff] %vm2444_vm12, %v3469_v18  ;;  %v3447_v19 = vpop.permute.xlu1 %3446  ;;  %v4826_v18 = vld [vmem:[#allocation3 + $0x380] sm:$0xff] }
 0x48f   :  { %5492 = vmatmul.mubr.bf16.gmra.mrb[128].mxu1 %v4778_v39  ;;  %3456 = vst.msk [vmem:[#allocation3 + $0x1b8] sm:$0xff] %vm2419_vm11, %v3447_v19  ;;  %3828 = vrot.lane.b32.xlu0 %v9103_v30, %s11597_s18 }
 0x490   :  { %5499 = vmatprep.mubr.bf16.mxu1 %v4787_v7  ;;  %3342 = vrot.lane.b32.xlu1 %v9127_v14, %s11636_s25 }
 0x491   :  { %v3553_v52 = vpop.permute.xlu0 %3552 }
 0x492   :  { %3565 = vst.msk [vmem:[#allocation3 + $0x2c8] sm:$0xff] %vm2311_vm4, %v3553_v52  ;;  %v10323_v0 = vpop.permute.xlu1 %3394 }
 0x493   :  { %3589 = vst.msk [vmem:[#allocation3 + $0x2c8] sm:$0xff] %vm11637_vm13, %v3581_v40  ;;  %3852 = vrot.lane.b32.xlu0 %v8987_v15, %s11607_s16  ;;  %vm11640_vm13 = vcmask 195584  }
 0x494   :  { %3613 = vst.msk [vmem:[#allocation3 + $0x2c8] sm:$0xff] %vm2364_vm0, %v9619_v48  ;;  %4024 = vrot.lane.b32.xlu1 %v9127_v14, %s11600_s20 }
 0x495   :  { %3640 = vst.msk [vmem:[#allocation3 + $0x2c8] sm:$0xff] %vm2389_vm1, %v9626_v54  ;;  %v3505_v62 = vpop.permute.xlu0 %3504 }
 0x496   :  { %3513 = vst.msk [vmem:[#allocation3 + $0x2c0] sm:$0xff] %vm2259_vm3, %v3505_v62  ;;  %v10335_v38 = vpop.permute.xlu1 %4176 }
 0x497   :  { %5500 = vmatmul.mubr.bf16.gmra.mrb[132].mxu1 %v4786_v29  ;;  %v6948_v8 = vpop.f32.mrb[96].mxu1  ;;  %4189 = vst.msk [vmem:[#allocation3 + $0x3c8] sm:$0xff] %vm2311_vm4, %v10335_v38  ;;  %3878 = vrot.lane.b32.xlu0 %v9011_v58, %s11580_s10 }
 0x498   :  { %5507 = vmatprep.mubr.bf16.mxu1 %v4795_v1  ;;  %v6949_v10 = vpop.f32.mrb[97].mxu1  ;;  %4052 = vrot.lane.b32.xlu1 %v9127_v14, %s11602_s28 }
 0x499   :  { %v10341_v48 = vadd.f32 %v6949_v10, %v6948_v8  ;;  %v6951_v54 = vpop.f32.mrb[98].mxu1  ;;  %v3529_v56 = vpop.permute.xlu0 %3528  ;;  %v4717_v8 = vld [vmem:[#allocation3 + $0x18] sm:$0xff] }
 0x49a   :  { %v6952_v41 = vpop.f32.mrb[99].mxu1  ;;  %3537 = vst.msk [vmem:[#allocation3 + $0x2c0] sm:$0xff] %vm2284_vm6, %v3529_v56  ;;  %v4205_v51 = vpop.permute.xlu1 %4204  ;;  %v7767_v56 = vld [vmem:[%s11315_s3 + $0x180] sm:$0xff]  }
 0x49b   :  { %v10345_v27 = vadd.f32 %v6952_v41, %v6951_v54  ;;  %3564 = vst.msk [vmem:[#allocation3 + $0x2c0] sm:$0xff] %vm2309_vm7, %v3553_v52  ;;  %2646 = vrot.lane.b32.xlu0 %v9127_v14, %s11580_s10 }
 0x49c   :  { %4213 = vst.msk [vmem:[#allocation3 + $0x3c8] sm:$0xff] %vm11638_vm9, %v4205_v51  ;;  %4000 = vrot.lane.b32.xlu1 %v9127_v14, %s11610_s6  ;;  %v4803_v22 = vld [vmem:[#allocation3 + $0x2c8] sm:$0xff]  ;;  %vm11641_vm9 = vcmask 720256  }
 0x49d   :  { %4237 = vst.msk [vmem:[#allocation3 + $0x3c8] sm:$0xff] %vm2364_vm0, %v9641_v42  ;;  %v3199_v47 = vpop.permute.xlu0 %3198 }
 0x49e   :  { %4264 = vst.msk [vmem:[#allocation3 + $0x3c8] sm:$0xff] %vm2389_vm1, %v9649_v59  ;;  %v10359_v17 = vpop.permute.xlu1 %3420 }
 0x49f   :  { %5508 = vmatmul.mubr.bf16.gmra.mrb[136].mxu1 %v4794_v49  ;;  %3208 = vst.msk [vmem:[#allocation3 + $0x1a0] sm:$0xff] %vm11639_vm5, %v3199_v47  ;;  %2621 = vrot.lane.b32.xlu0 %v9127_v14, %s11607_s16  ;;  %v4716_v49 = vld [vmem:[#allocation3 + $0x10] sm:$0xff] }
 0x4a0   :  { %5515 = vmatprep.mubr.bf16.mxu1 %v4803_v22  ;;  %3433 = vst.msk [vmem:[#allocation3 + $0x1f8] sm:$0xff] %vm11640_vm13, %v10359_v17  ;;  %3732 = vrot.lane.b32.xlu1 %v9151_v33, %s11596_s29  ;;  %v4725_v22 = vld [vmem:[#allocation3 + $0x58] sm:$0xff] }
 0x4a1   :  { %v3223_v42 = vpop.permute.xlu0 %3222 }
 0x4a2   :  { %3232 = vst.msk [vmem:[#allocation3 + $0x1a0] sm:$0xff] %vm11641_vm9, %v3223_v42  ;;  %v3449_v26 = vpop.permute.xlu1 %3448  ;;  %v4802_v59 = vld [vmem:[#allocation3 + $0x2c0] sm:$0xff]  ;;  %v7768_v42 = vld [vmem:[%s11315_s3 + $0x188] sm:$0xff]  }
 0x4a3   :  { %3457 = vst.msk [vmem:[#allocation3 + $0x1f8] sm:$0xff] %vm2419_vm11, %v3449_v26  ;;  %3270 = vrot.lane.b32.xlu0 %v9127_v14, %s11642_s0 }
 0x4a4   :  { %3756 = vrot.lane.b32.xlu1 %v9151_v33, %s11598_s22 }
 0x4a5   :  { %v10373_v37 = vpop.permute.xlu0 %3370  ;;  %v4835_v19 = vld [vmem:[#allocation3 + $0x3c8] sm:$0xff] }
 0x4a6   :  { %v3473_v24 = vpop.permute.xlu1 %3472 }
 0x4a7   :  { %5516 = vmatmul.mubr.bf16.gmra.mrb[140].mxu1 %v4802_v59  ;;  %3481 = vst.msk [vmem:[#allocation3 + $0x1f8] sm:$0xff] %vm2444_vm12, %v3473_v24  ;;  %3246 = vrot.lane.b32.xlu0 %v9127_v14, %s11597_s18 }
 0x4a8   :  { %5523 = vmatprep.mubr.bf16.mxu1 %v4811_v23  ;;  %3780 = vrot.lane.b32.xlu1 %v9151_v33, %s11599_s19  ;;  %v7769_v23 = vld [vmem:[%s11315_s3 + $0x190] sm:$0xff]  }
 0x4a9   :  { %v3471_v31 = vpop.permute.xlu0 %3470 }
 0x4aa   :  { %3480 = vst.msk [vmem:[#allocation3 + $0x1b8] sm:$0xff] %vm2444_vm12, %v3471_v31  ;;  %v10381_v46 = vpop.permute.xlu1 %3898  ;;  %v4724_v31 = vld [vmem:[#allocation3 + $0x50] sm:$0xff] }
 0x4ab   :  { %3976 = vrot.lane.b32.xlu0 %v9127_v14, %s11627_s23 }
 0x4ac   :  { %3950 = vrot.lane.b32.xlu1 %v9011_v58, %s11587_s13 }
 0x4ad   :  { %v3201_v5 = vpop.permute.xlu0 %3200 }
 0x4ae   :  { %3209 = vst.msk [vmem:[#allocation3 + $0x1e0] sm:$0xff] %vm11639_vm5, %v3201_v5  ;;  %v3923_v35 = vpop.permute.xlu1 %3922  ;;  %v6954_v2 = vpop.f32.mrb[100].mxu1 }
 0x4af   :  { %5524 = vmatmul.mubr.bf16.gmra.mrb[144].mxu1 %v4810_v11  ;;  %v6955_v32 = vpop.f32.mrb[101].mxu1  ;;  %4076 = vrot.lane.b32.xlu0 %v9127_v14, %s11604_s27 }
 0x4b0   :  { %5531 = vmatprep.mubr.bf16.mxu1 %v4819_v43  ;;  %v10390_v25 = vadd.f32 %v6955_v32, %v6954_v2  ;;  %4356 = vrot.lane.b32.xlu1 %v9151_v33, %s11623_s24  ;;  %v6957_v55 = vpop.f32.mrb[102].mxu1 }
 0x4b1   :  { %v6958_v12 = vpop.f32.mrb[103].mxu1  ;;  %v4105_v3 = vpop.permute.xlu0 %4104 }
 0x4b2   :  { %v10394_v44 = vadd.f32 %v6958_v12, %v6957_v55  ;;  %4113 = vst.msk [vmem:[#allocation3 + $0x3c0] sm:$0xff] %vm2234_vm2, %v4105_v3  ;;  %v3947_v20 = vpop.permute.xlu1 %3946  ;;  %v7772_v55 = vld [vmem:[%s11315_s3 + $0x1a8] sm:$0xff]  }
 0x4b3   :  { %3959 = vst.msk [vmem:[#allocation3 + $0x230] sm:$0xff] %vm2311_vm4, %v3947_v20  ;;  %3806 = vrot.lane.b32.xlu0 %v9127_v14, %s11622_s26 }
 0x4b4   :  { %4380 = vrot.lane.b32.xlu1 %v9151_v33, %s11589_s12 }
 0x4b5   :  { %v4129_v40 = vpop.permute.xlu0 %4128 }
 0x4b6   :  { %4137 = vst.msk [vmem:[#allocation3 + $0x3c0] sm:$0xff] %vm2259_vm3, %v4129_v40  ;;  %v10403_v16 = vpop.permute.xlu1 %4022  ;;  %v4749_v40 = vld [vmem:[#allocation3 + $0x118] sm:$0xff] }
 0x4b7   :  { %5532 = vmatmul.mubr.bf16.gmra.mrb[148].mxu1 %v4818_v45  ;;  %4035 = vst.msk [vmem:[#allocation3 + $0x238] sm:$0xff] %vm11640_vm13, %v10403_v16  ;;  %3830 = vrot.lane.b32.xlu0 %v9127_v14, %s11597_s18  ;;  %vm11643_vm13 = vcmask 1048384  }
 0x4b8   :  { %5539 = vmatprep.mubr.bf16.mxu1 %v4827_v60  ;;  %2672 = vrot.lane.b32.xlu1 %v9151_v33, %s11581_s15 }
 0x4b9   :  { %v4153_v39 = vpop.permute.xlu0 %4152 }
 0x4ba   :  { %4161 = vst.msk [vmem:[#allocation3 + $0x3c0] sm:$0xff] %vm2284_vm6, %v4153_v39  ;;  %v4051_v7 = vpop.permute.xlu1 %4050 }
 0x4bb   :  { %4188 = vst.msk [vmem:[#allocation3 + $0x3c0] sm:$0xff] %vm2309_vm7, %v10335_v38  ;;  %3854 = vrot.lane.b32.xlu0 %v9011_v58, %s11607_s16 }
 0x4bc   :  { %4062 = vst.msk [vmem:[#allocation3 + $0x238] sm:$0xff] %vm2419_vm11, %v4051_v7  ;;  %2696 = vrot.lane.b32.xlu1 %v9151_v33, %s11582_s14  ;;  %v7774_v7 = vld [vmem:[%s11315_s3 + $0x1b8] sm:$0xff]  }
 0x4bd   :  { %v3225_v52 = vpop.permute.xlu0 %3224 }
 0x4be   :  { %3233 = vst.msk [vmem:[#allocation3 + $0x1e0] sm:$0xff] %vm11641_vm9, %v3225_v52  ;;  %v10420_v29 = vpop.permute.xlu1 %3998  ;;  %v7775_v52 = vld [vmem:[%s11315_s3 + $0x1c0] sm:$0xff]  }
 0x4bf   :  { %5540 = vmatmul.mubr.bf16.gmra.mrb[152].mxu1 %v4826_v18  ;;  %3880 = vrot.lane.b32.xlu0 %v9033_v63, %s11580_s10 }
 0x4c0   :  { %5547 = vmatprep.mubr.bf16.mxu1 %v4835_v19  ;;  %2720 = vrot.lane.b32.xlu1 %v9151_v33, %s11587_s13 }
 0x4c1   :  { %v10426_v1 = vpop.permute.xlu0 %3372 }
 0x4c2   :  { %v10428_v62 = vpop.permute.xlu1 %3900  ;;  %v4834_v38 = vld [vmem:[#allocation3 + $0x3c0] sm:$0xff] }
 0x4c3   :  { %4404 = vrot.lane.b32.xlu0 %v9151_v33, %s11590_s1 }
 0x4c4   :  { %3296 = vrot.lane.b32.xlu1 %v9151_v33, %s11632_s17 }
 0x4c5   :  { %v10434_v10 = vpop.permute.xlu0 %3396 }
 0x4c6   :  { %v10436_v54 = vpop.permute.xlu1 %3924 }
 0x4c7   :  { %5548 = vmatmul.mubr.bf16.gmra.mrb[156].mxu1 %v4834_v38  ;;  %2648 = vrot.lane.b32.xlu0 %v9151_v33, %s11580_s10  ;;  %v4757_v38 = vld [vmem:[#allocation3 + $0x158] sm:$0xff]  ;;  %s11700_s10 = sld [smem:[#allocation55_spill]] }
 0x4c8   :  { %5588 = vmatprep.mubr.bf16.mxu1 %v4717_v8  ;;  %3320 = vrot.lane.b32.xlu1 %v9151_v33, %s11635_s7  ;;  %v7776_v8 = vld [vmem:[%s11315_s3 + $0x1c8] sm:$0xff]  }
 0x4c9   :  { %v3875_v41 = vpop.permute.xlu0 %3874 }
 0x4ca   :  { %3886 = vst.msk [vmem:[#allocation3 + $0x228] sm:$0xff] %vm2234_vm2, %v3875_v41  ;;  %v10446_v51 = vpop.permute.xlu1 %3948 }
 0x4cb   :  { %3910 = vst.msk [vmem:[#allocation3 + $0x228] sm:$0xff] %vm2259_vm3, %v10381_v46  ;;  %2623 = vrot.lane.b32.xlu0 %v9151_v33, %s11607_s16  ;;  %v4733_v46 = vld [vmem:[#allocation3 + $0x98] sm:$0xff] }
 0x4cc   :  { %3961 = vst.msk [vmem:[#allocation3 + $0x270] sm:$0xff] %vm2311_vm4, %v10446_v51  ;;  %3344 = vrot.lane.b32.xlu1 %v9151_v33, %s11636_s25 }
 0x4cd   :  { %3934 = vst.msk [vmem:[#allocation3 + $0x228] sm:$0xff] %vm2284_vm6, %v3923_v35  ;;  %v3803_v47 = vpop.permute.xlu0 %3802  ;;  %v4732_v35 = vld [vmem:[#allocation3 + $0x90] sm:$0xff] }
 0x4ce   :  { %3958 = vst.msk [vmem:[#allocation3 + $0x228] sm:$0xff] %vm2309_vm7, %v3947_v20  ;;  %v10462_v26 = vpop.permute.xlu1 %3902  ;;  %v7773_v20 = vld [vmem:[%s11315_s3 + $0x1b0] sm:$0xff]  }
 0x4cf   :  { %5589 = vmatmul.mubr.bf16.vlgmr.msra.gmra.mrb[160].mxu1 %v4716_v49  ;;  %3814 = vst.msk [vmem:[#allocation3 + $0x220] sm:$0xff] %vm11639_vm5, %v3803_v47  ;;  %3272 = vrot.lane.b32.xlu0 %v9151_v33, %s11642_s0  ;;  %vm11644_vm5 = vcmask 64512   ;;  %v4756_v49 = vld [vmem:[#allocation3 + $0x150] sm:$0xff]  ;;  %v11647_v47 = vld [vmem:[#allocation4_spill] sm:$0xff] }
 0x4d0   :  { %5596 = vmatprep.mubr.bf16.mxu1 %v4725_v22  ;;  %5879 = vmatpush1.bf16.msra.mxu1 %v7767_v56  ;;  %v7777_v56 = vld [vmem:[%s11315_s3 + $0x1d0] sm:$0xff]   ;;  %v4765_v22 = vld [vmem:[#allocation3 + $0x198] sm:$0xff] }
 0x4d1   :  { %5880 = vmatprep.subr.bf16.mxu1 %v11618_v13  ;;  %4026 = vrot.lane.b32.xlu1 %v9151_v33, %s11600_s20  ;;  %v2464_v59 = vpop.permute.xlu0 %2463 }
 0x4d2   :  { %2478 = vst.msk [vmem:[#allocation3 + $0xd8] sm:$0xff] %vm2471_vm10, %v2464_v59  ;;  %v10473_v24 = vpop.permute.xlu1 %3926 }
 0x4d3   :  { %2503 = vst.msk [vmem:[#allocation3 + $0xd8] sm:$0xff] %vm2499_vm15, %v9658_v21  ;;  %3248 = vrot.lane.b32.xlu0 %v9151_v33, %s11597_s18  ;;  %v7770_v21 = vld [vmem:[%s11315_s3 + $0x198] sm:$0xff]  }
 0x4d4   :  { %5881 = vmatpush1.bf16.msra.mxu1 %v7768_v42  ;;  %2528 = vst.msk [vmem:[#allocation3 + $0xd8] sm:$0xff] %vm2524_vm14, %v9665_v34 }
 0x4d5   :  { %5882 = vmatprep.subr.bf16.mxu1 %v11618_v13  ;;  %4054 = vrot.lane.b32.xlu1 %v9151_v33, %s11602_s28  ;;  %2557 = vst.msk [vmem:[#allocation3 + $0xd8] sm:$0xff] %vm2549_vm8, %v9675_v53  ;;  %v2414_v11 = vpop.permute.xlu0 %2413  ;;  %v7771_v53 = vld [vmem:[%s11315_s3 + $0x1a0] sm:$0xff]  }
 0x4d6   :  { %2423 = vst.msk [vmem:[#allocation3 + $0xd0] sm:$0xff] %vm2419_vm11, %v2414_v11  ;;  %v3731_v43 = vpop.permute.xlu1 %3730 }
 0x4d7   :  { %5597 = vmatmul.mubr.bf16.gmra.mrb[164].mxu1 %v4724_v31  ;;  %3740 = vst.msk [vmem:[#allocation3 + $0x298] sm:$0xff] %vm2499_vm15, %v3731_v43  ;;  %3978 = vrot.lane.b32.xlu0 %v9151_v33, %s11627_s23  ;;  %v7779_v31 = vld [vmem:[%s11315_s3 + $0x1e0] sm:$0xff]   ;;  %v4764_v43 = vld [vmem:[#allocation3 + $0x190] sm:$0xff] }
 0x4d8   :  { %5604 = vmatprep.mubr.bf16.mxu1 %v4733_v46  ;;  %5883 = vmatpush1.bf16.msra.mxu1 %v7769_v23  ;;  %v11650_v46 = vld [vmem:[#allocation29_spill] sm:$0xff] }
 0x4d9   :  { %5884 = vmatprep.subr.bf16.mxu1 %v11618_v13  ;;  %4002 = vrot.lane.b32.xlu1 %v9151_v33, %s11610_s6  ;;  %v2439_v34 = vpop.permute.xlu0 %2438 }
 0x4da   :  { %2448 = vst.msk [vmem:[#allocation3 + $0xd0] sm:$0xff] %vm2444_vm12, %v2439_v34  ;;  %v3755_v5 = vpop.permute.xlu1 %3754 }
 0x4db   :  { %2477 = vst.msk [vmem:[#allocation3 + $0xd0] sm:$0xff] %vm11643_vm13, %v2464_v59  ;;  %4078 = vrot.lane.b32.xlu0 %v9151_v33, %s11604_s27  ;;  %vm11645_vm13 = vcmask 1048256  }
 0x4dc   :  { %5885 = vmatpush1.bf16.msra.mxu1 %v7770_v21  ;;  %3764 = vst.msk [vmem:[#allocation3 + $0x298] sm:$0xff] %vm2524_vm14, %v3755_v5  ;;  %v4741_v2 = vld [vmem:[#allocation3 + $0xd8] sm:$0xff] }
 0x4dd   :  { %5886 = vmatprep.subr.bf16.mxu1 %v11618_v13  ;;  %3904 = vrot.lane.b32.xlu1 %v9033_v63, %s11581_s15  ;;  %v3827_v32 = vpop.permute.xlu0 %3826 }
 0x4de   :  { %3838 = vst.msk [vmem:[#allocation3 + $0x220] sm:$0xff] %vm11641_vm9, %v3827_v32  ;;  %v3779_v12 = vpop.permute.xlu1 %3778  ;;  %vm11646_vm9 = vcmask 589056   ;;  %v7780_v32 = vld [vmem:[%s11315_s3 + $0x1e8] sm:$0xff]  }
 0x4df   :  { %5605 = vmatmul.mubr.bf16.gmra.mrb[168].mxu1 %v4732_v35  ;;  %3790 = vst.msk [vmem:[#allocation3 + $0x298] sm:$0xff] %vm2549_vm8, %v3779_v12  ;;  %3808 = vrot.lane.b32.xlu0 %v9151_v33, %s11622_s26 }
 0x4e0   :  { %5612 = vmatprep.mubr.bf16.mxu1 %v4741_v2  ;;  %5887 = vmatpush1.bf16.msra.mxu1 %v7771_v53  ;;  %3791 = vst.msk [vmem:[#allocation3 + $0x2a0] sm:$0xff] %vm11644_vm5, %v3779_v12  ;;  %v7781_v12 = vld [vmem:[%s11315_s3 + $0x1f0] ss:$0 sps:$4 sm:$0xff]  }
 0x4e1   :  { %5888 = vmatprep.subr.bf16.mxu1 %v11618_v13  ;;  %3928 = vrot.lane.b32.xlu1 %v9033_v63, %s11582_s14  ;;  %v3851_v3 = vpop.permute.xlu0 %3850  ;;  %s11697_s14 = sld [smem:[#allocation52_spill]] }
 0x4e2   :  { %3862 = vst.msk [vmem:[#allocation3 + $0x220] sm:$0xff] %vm11645_vm13, %v3851_v3  ;;  %v4355_v45 = vpop.permute.xlu1 %4354  ;;  %v4740_v60 = vld [vmem:[#allocation3 + $0xd0] sm:$0xff]  ;;  %vm11651_vm13 = vcmask 1048384  }
 0x4e3   :  { %4364 = vst.msk [vmem:[#allocation3 + $0x398] sm:$0xff] %vm2499_vm15, %v4355_v45  ;;  %3832 = vrot.lane.b32.xlu0 %v9151_v33, %s11597_s18 }
 0x4e4   :  { %5889 = vmatpush1.bf16.msra.mxu1 %v7772_v55 }
 0x4e5   :  { %5890 = vmatprep.subr.bf16.mxu1 %v11618_v13  ;;  %3952 = vrot.lane.b32.xlu1 %v9033_v63, %s11587_s13  ;;  %v3975_v39 = vpop.permute.xlu0 %3974 }
 0x4e6   :  { %3986 = vst.msk [vmem:[#allocation3 + $0x230] sm:$0xff] %vm11646_vm9, %v3975_v39  ;;  %v4379_v18 = vpop.permute.xlu1 %4378 }
 0x4e7   :  { %5613 = vmatmul.mubr.bf16.gmra.mrb[172].mxu1 %v4740_v60  ;;  %4010 = vst.msk [vmem:[#allocation3 + $0x230] sm:$0xff] %vm2364_vm0, %v10420_v29  ;;  %3856 = vrot.lane.b32.xlu0 %v9033_v63, %s11607_s16 }
 0x4e8   :  { %5620 = vmatprep.mubr.bf16.mxu1 %v4749_v40  ;;  %5891 = vmatpush1.bf16.msra.mxu1 %v7773_v20  ;;  %4388 = vst.msk [vmem:[#allocation3 + $0x398] sm:$0xff] %vm2524_vm14, %v4379_v18  ;;  %v4780_v18 = vld [vmem:[#allocation3 + $0x210] sm:$0xff] }
 0x4e9   :  { %5892 = vmatprep.subr.bf16.mxu1 %v11618_v13  ;;  %4034 = vst.msk [vmem:[#allocation3 + $0x230] sm:$0xff] %vm2389_vm1, %v10403_v16  ;;  %4028 = vrot.lane.b32.xlu1 %v9170_v50, %s11600_s20  ;;  %v3877_v19 = vpop.permute.xlu0 %3876  ;;  %v4748_v16 = vld [vmem:[#allocation3 + $0x110] sm:$0xff] }
 0x4ea   :  { %3887 = vst.msk [vmem:[#allocation3 + $0x268] sm:$0xff] %vm2234_vm2, %v3877_v19  ;;  %v4403_v29 = vpop.permute.xlu1 %4402 }
 0x4eb   :  { %3911 = vst.msk [vmem:[#allocation3 + $0x268] sm:$0xff] %vm2259_vm3, %v10428_v62  ;;  %3980 = vrot.lane.b32.xlu0 %v9170_v50, %s11627_s23 }
 0x4ec   :  { %5893 = vmatpush1.bf16.msra.mxu1 %v7774_v7  ;;  %4414 = vst.msk [vmem:[#allocation3 + $0x398] sm:$0xff] %vm2549_vm8, %v4403_v29 }
 0x4ed   :  { %5894 = vmatprep.subr.bf16.mxu1 %v11618_v13  ;;  %4415 = vst.msk [vmem:[#allocation3 + $0x3a0] sm:$0xff] %vm11644_vm5, %v4403_v29  ;;  %4056 = vrot.lane.b32.xlu1 %v9170_v50, %s11602_s28  ;;  %v4075_v62 = vpop.permute.xlu0 %4074  ;;  %vm5391_vm5 = vcmask 1043456  }
 0x4ee   :  { %3935 = vst.msk [vmem:[#allocation3 + $0x268] sm:$0xff] %vm2284_vm6, %v10436_v54  ;;  %v10563_v41 = vpop.permute.xlu1 %2670  ;;  %v5393_v60 = vsel %vm5391_vm5, %v7781_v12, 0  ;;  %vm11656_vm5 = vcmask 195584  }
 0x4ef   :  { %5621 = vmatmul.mubr.bf16.gmra.mrb[176].mxu1 %v4748_v16  ;;  %3960 = vst.msk [vmem:[#allocation3 + $0x268] sm:$0xff] %vm2309_vm7, %v10446_v51  ;;  %4004 = vrot.lane.b32.xlu0 %v9170_v50, %s11610_s6  ;;  %s11696_s6 = sld [smem:[#allocation51_spill]] }
 0x4f0   :  { %5628 = vmatprep.mubr.bf16.mxu1 %v4757_v38  ;;  %5895 = vmatpush1.bf16.msra.mxu1 %v7775_v52  ;;  %4086 = vst.msk [vmem:[#allocation3 + $0x238] sm:$0xff] %vm2444_vm12, %v4075_v62  ;;  %v4789_v52 = vld [vmem:[#allocation3 + $0x258] sm:$0xff] }
 0x4f1   :  { %5896 = vmatprep.subr.bf16.mxu1 %v11618_v13  ;;  %4080 = vrot.lane.b32.xlu1 %v9170_v50, %s11604_s27  ;;  %v3097_v54 = vpop.permute.xlu0 %3096  ;;  %s11698_s27 = sld [smem:[#allocation53_spill]] }
 0x4f2   :  { %3109 = vst.msk [vmem:[#allocation3 + $0x1d8] sm:$0xff] %vm2471_vm10, %v3097_v54  ;;  %v10574_v51 = vpop.permute.xlu1 %2694  ;;  %vm11648_vm10 = vmmov %vm11646_vm9  ;;  %vm11652_vm9 = vcmask 392256  }
 0x4f3   :  { %3133 = vst.msk [vmem:[#allocation3 + $0x1d8] sm:$0xff] %vm2499_vm15, %v9683_v9  ;;  %4498 = vrot.lane.b32.xlu0 %v8964_v28, %s11642_s0  ;;  %v7778_v9 = vld [vmem:[%s11315_s3 + $0x1d8] sm:$0xff]  }
 0x4f4   :  { %5897 = vmatpush1.bf16.msra.mxu1 %v7776_v8  ;;  %3157 = vst.msk [vmem:[#allocation3 + $0x1d8] sm:$0xff] %vm2524_vm14, %v9690_v36  ;;  %v11649_v36 = vld [vmem:[#allocation5_spill] sm:$0xff]  ;;  %v4788_v8 = vld [vmem:[#allocation3 + $0x250] sm:$0xff] }
 0x4f5   :  { %5898 = vmatprep.subr.bf16.mxu1 %v11618_v13  ;;  %4522 = vrot.lane.b32.xlu1 %v8964_v28, %s11632_s17  ;;  %3184 = vst.msk [vmem:[#allocation3 + $0x1d8] sm:$0xff] %vm2549_vm8, %v11647_v47  ;;  %v3049_v42 = vpop.permute.xlu0 %3048 }
 0x4f6   :  { %3057 = vst.msk [vmem:[#allocation3 + $0x1d0] sm:$0xff] %vm2419_vm11, %v3049_v42  ;;  %v10591_v59 = vpop.permute.xlu1 %2718 }
 0x4f7   :  { %5629 = vmatmul.mubr.bf16.gmra.mrb[180].mxu1 %v4756_v49  ;;  %2731 = vst.msk [vmem:[#allocation3 + $0xb0] sm:$0xff] %vm2311_vm4, %v10591_v59  ;;  %4426 = vrot.lane.b32.xlu0 %v9079_v61, %s11611_s9 }
 0x4f8   :  { %5636 = vmatprep.mubr.bf16.mxu1 %v4765_v22  ;;  %5899 = vmatpush1.bf16.msra.mxu1 %v7777_v56  ;;  %2756 = vst.msk [vmem:[#allocation3 + $0xb0] sm:$0xff] %vm11648_vm10, %v9769_v4  ;;  %vm11653_vm10 = vcmask 720256  }
 0x4f9   :  { %5900 = vmatprep.subr.bf16.mxu1 %v11618_v13  ;;  %4546 = vrot.lane.b32.xlu1 %v8964_v28, %s11635_s7  ;;  %2780 = vst.msk [vmem:[#allocation3 + $0xb0] sm:$0xff] %vm2364_vm0, %v11649_v36  ;;  %v3073_v23 = vpop.permute.xlu0 %3072 }
 0x4fa   :  { %2806 = vst.msk [vmem:[#allocation3 + $0xb0] sm:$0xff] %vm2389_vm1, %v11650_v46  ;;  %v10610_v11 = vpop.permute.xlu1 %3294 }
 0x4fb   :  { %3081 = vst.msk [vmem:[#allocation3 + $0x1d0] sm:$0xff] %vm2444_vm12, %v3073_v23  ;;  %v6960_v4 = vpop.f32.mrb[104].mxu1  ;;  %4450 = vrot.lane.b32.xlu0 %v9079_v61, %s11613_s5  ;;  %v4804_v23 = vld [vmem:[#allocation3 + $0x2d0] sm:$0xff] }
 0x4fc   :  { %5901 = vmatpush1.bf16.msra.mxu1 %v7778_v9  ;;  %3108 = vst.msk [vmem:[#allocation3 + $0x1d0] sm:$0xff] %vm11651_vm13, %v3097_v54  ;;  %v6961_v21 = vpop.f32.mrb[105].mxu1  ;;  %v4773_v5 = vld [vmem:[#allocation3 + $0x1d8] sm:$0xff]  ;;  %vm11654_vm13 = vcmask 589056  }
 0x4fd   :  { %5902 = vmatprep.subr.bf16.mxu1 %v11618_v13  ;;  %v10616_v34 = vadd.f32 %v6961_v21, %v6960_v4  ;;  %4570 = vrot.lane.b32.xlu1 %v8964_v28, %s11636_s25  ;;  %v6963_v53 = vpop.f32.mrb[106].mxu1  ;;  %v3805_v2 = vpop.permute.xlu0 %3804 }
 0x4fe   :  { %v6964_v35 = vpop.f32.mrb[107].mxu1  ;;  %3815 = vst.msk [vmem:[#allocation3 + $0x260] sm:$0xff] %vm11652_vm9, %v3805_v2  ;;  %v10626_v61 = vpop.permute.xlu1 %3318  ;;  %vm11655_vm9 = vcmask 1048256  }
 0x4ff   :  { %5637 = vmatmul.mubr.bf16.gmra.mrb[184].mxu1 %v4764_v43  ;;  %v10623_v55 = vadd.f32 %v6964_v35, %v6963_v53  ;;  %4474 = vrot.lane.b32.xlu0 %v8964_v28, %s11597_s18  ;;  %v4781_v28 = vld [vmem:[#allocation3 + $0x218] sm:$0xff]  ;;  %v4812_v43 = vld [vmem:[#allocation3 + $0x310] sm:$0xff] }
 0x500   :  { %5644 = vmatprep.mubr.bf16.mxu1 %v4773_v5  ;;  %5903 = vmatpush1.bf16.msra.mxu1 %v7779_v31  ;;  %v4813_v31 = vld [vmem:[#allocation3 + $0x318] sm:$0xff] }
 0x501   :  { %5904 = vmatprep.subr.bf16.mxu1 %v11618_v13  ;;  %4646 = vrot.lane.b32.xlu1 %v9103_v30, %s11608_s21  ;;  %v3829_v3 = vpop.permute.xlu0 %3828  ;;  %v4821_v53 = vld [vmem:[#allocation3 + $0x358] sm:$0xff] }
 0x502   :  { %3839 = vst.msk [vmem:[#allocation3 + $0x260] sm:$0xff] %vm11653_vm10, %v3829_v3  ;;  %v10637_v20 = vpop.permute.xlu1 %3342  ;;  %vm11657_vm10 = vmmov %vm11655_vm9  ;;  %v11666_v3 = vld [vmem:[#allocation30_spill] sm:$0xff] }
 0x503   :  { %v4772_v45 = vld [vmem:[#allocation3 + $0x1d0] sm:$0xff]  ;;  %3355 = vst.msk [vmem:[#allocation3 + $0x1b0] sm:$0xff] %vm2311_vm4, %v10637_v20  ;;  %4598 = vrot.lane.b32.xlu0 %v9103_v30, %s11587_s13 }
 0x504   :  { %5905 = vmatpush1.bf16.msra.mxu1 %v7780_v32  ;;  %3380 = vst.msk [vmem:[#allocation3 + $0x1b0] sm:$0xff] %vm11654_vm13, %v10373_v37  ;;  %vm11658_vm13 = vmmov %vm11655_vm9  ;;  %v4820_v32 = vld [vmem:[#allocation3 + $0x350] sm:$0xff] }
 0x505   :  { %5906 = vmatprep.subr.bf16.mxu1 %v11618_v13  ;;  %4674 = vrot.lane.b32.xlu1 %v9103_v30, %s11612_s8  ;;  %3404 = vst.msk [vmem:[#allocation3 + $0x1b0] sm:$0xff] %vm2364_vm0, %v10323_v0  ;;  %v3853_v13 = vpop.permute.xlu0 %3852 }
 0x506   :  { %3430 = vst.msk [vmem:[#allocation3 + $0x1b0] sm:$0xff] %vm2389_vm1, %v10306_v6  ;;  %v10653_v40 = vpop.permute.xlu1 %4024 }
 0x507   :  { %5645 = vmatmul.mubr.bf16.gmra.mrb[188].mxu1 %v4772_v45  ;;  %3863 = vst.msk [vmem:[#allocation3 + $0x260] sm:$0xff] %vm11655_vm9, %v3853_v13  ;;  %4500 = vrot.lane.b32.xlu0 %v8987_v15, %s11642_s0  ;;  %vm11659_vm9 = vcmask 64512  }
 0x508   :  { %5652 = vmatprep.mubr.bf16.mxu1 %v4781_v28  ;;  %5907 = vmatpush1.bf16.msra.mxu1 %v5393_v60  ;;  %4037 = vst.msk [vmem:[#allocation3 + $0x278] sm:$0xff] %vm11656_vm5, %v10653_v40  ;;  %vm11660_vm5 = vcmask 589056  }
 0x509   :  { %4622 = vrot.lane.b32.xlu1 %v9103_v30, %s11614_s11  ;;  %v3879_v0 = vpop.permute.xlu0 %3878  ;;  %v7172_v37 = vpop.f32.mrb[192].mxu0 }
 0x50a   :  { %3888 = vst.msk [vmem:[#allocation3 + $0x2a8] sm:$0xff] %vm2234_vm2, %v3879_v0  ;;  %v4053_v39 = vpop.permute.xlu1 %4052  ;;  %v7173_v7 = vpop.f32.mrb[193].mxu0 }
 0x50b   :  { %3912 = vst.msk [vmem:[#allocation3 + $0x2a8] sm:$0xff] %vm2259_vm3, %v10462_v26  ;;  %v10665_v6 = vadd.f32 %v7173_v7, %v7172_v37  ;;  %4698 = vrot.lane.b32.xlu0 %v9103_v30, %s11615_s4  ;;  %v7175_v19 = vpop.f32.mrb[194].mxu0 }
 0x50c   :  { %4063 = vst.msk [vmem:[#allocation3 + $0x278] sm:$0xff] %vm2419_vm11, %v4053_v39  ;;  %v7176_v29 = vpop.f32.mrb[195].mxu0  ;;  %v4828_v39 = vld [vmem:[#allocation3 + $0x390] sm:$0xff] }
 0x50d   :  { %3936 = vst.msk [vmem:[#allocation3 + $0x2a8] sm:$0xff] %vm2284_vm6, %v10473_v24  ;;  %4524 = vrot.lane.b32.xlu1 %v8987_v15, %s11632_s17  ;;  %v10673_v26 = vadd.f32 %v7176_v29, %v7175_v19  ;;  %v2647_v16 = vpop.permute.xlu0 %2646 }
 0x50e   :  { %2656 = vst.msk [vmem:[#allocation3 + $0xa8] sm:$0xff] %vm2234_vm2, %v2647_v16  ;;  %v4001_v38 = vpop.permute.xlu1 %4000 }
 0x50f   :  { %5653 = vmatmul.mubr.bf16.gmra.mrb[192].mxu1 %v4780_v18  ;;  %2680 = vst.msk [vmem:[#allocation3 + $0xa8] sm:$0xff] %vm2259_vm3, %v10563_v41  ;;  %4428 = vrot.lane.b32.xlu0 %v9103_v30, %s11611_s9  ;;  %v4797_v41 = vld [vmem:[#allocation3 + $0x298] sm:$0xff] }
 0x510   :  { %5660 = vmatprep.mubr.bf16.mxu1 %v4789_v52  ;;  %2704 = vst.msk [vmem:[#allocation3 + $0xa8] sm:$0xff] %vm2284_vm6, %v10574_v51 }
 0x511   :  { %4548 = vrot.lane.b32.xlu1 %v8987_v15, %s11635_s7  ;;  %2730 = vst.msk [vmem:[#allocation3 + $0xa8] sm:$0xff] %vm2309_vm7, %v10591_v59  ;;  %v2622_v24 = vpop.permute.xlu0 %2621 }
 0x512   :  { %2632 = vst.msk [vmem:[#allocation3 + $0xa0] sm:$0xff] %vm11657_vm10, %v2622_v24  ;;  %v3733_v62 = vpop.permute.xlu1 %3732  ;;  %vm11661_vm10 = vcmask 392256  }
 0x513   :  { %3741 = vst.msk [vmem:[#allocation3 + $0x2d8] sm:$0xff] %vm2499_vm15, %v3733_v62  ;;  %4452 = vrot.lane.b32.xlu0 %v9103_v30, %s11613_s5 }
 0x515   :  { %4572 = vrot.lane.b32.xlu1 %v8987_v15, %s11636_s25  ;;  %v3271_v54 = vpop.permute.xlu0 %3270 }
 0x516   :  { %3280 = vst.msk [vmem:[#allocation3 + $0x1a8] sm:$0xff] %vm2234_vm2, %v3271_v54  ;;  %v3757_v56 = vpop.permute.xlu1 %3756 }
 0x517   :  { %5661 = vmatmul.mubr.bf16.gmra.mrb[196].mxu1 %v4788_v8  ;;  %3304 = vst.msk [vmem:[#allocation3 + $0x1a8] sm:$0xff] %vm2259_vm3, %v10610_v11  ;;  %4476 = vrot.lane.b32.xlu0 %v8987_v15, %s11597_s18  ;;  %v4796_v15 = vld [vmem:[#allocation3 + $0x290] sm:$0xff] }
 0x518   :  { %5668 = vmatprep.mubr.bf16.mxu1 %v4797_v41  ;;  %3765 = vst.msk [vmem:[#allocation3 + $0x2d8] sm:$0xff] %vm2524_vm14, %v3757_v56  ;;  %v4735_v30 = vld [vmem:[#allocation3 + $0xa8] sm:$0xff]  ;;  %v4836_v41 = vld [vmem:[#allocation3 + $0x3d0] sm:$0xff] }
 0x519   :  { %3328 = vst.msk [vmem:[#allocation3 + $0x1a8] sm:$0xff] %vm2284_vm6, %v10626_v61  ;;  %4648 = vrot.lane.b32.xlu1 %v9127_v14, %s11608_s21  ;;  %v3247_v51 = vpop.permute.xlu0 %3246  ;;  %5765 = vmatprep.mubr.bf16.mxu0 %v4735_v30  ;;  %v4734_v49 = vld [vmem:[#allocation3 + $0xa0] sm:$0xff]  ;;  %v11664_v61 = vld [vmem:[#allocation6_spill] sm:$0xff] }
 0x51a   :  { %3354 = vst.msk [vmem:[#allocation3 + $0x1a8] sm:$0xff] %vm2309_vm7, %v10637_v20  ;;  %v3781_v22 = vpop.permute.xlu1 %3780  ;;  %5766 = vmatmul.mubr.bf16.gmra.mrb[200].mxu0 %v4734_v49 }
 0x51b   :  { %3256 = vst.msk [vmem:[#allocation3 + $0x1a0] sm:$0xff] %vm11658_vm13, %v3247_v51  ;;  %4600 = vrot.lane.b32.xlu0 %v9127_v14, %s11587_s13 }
 0x51c   :  { %3792 = vst.msk [vmem:[#allocation3 + $0x2d8] sm:$0xff] %vm2549_vm8, %v3781_v22 }
 0x51d   :  { %3793 = vst.msk [vmem:[#allocation3 + $0x2e0] sm:$0xff] %vm11659_vm9, %v3781_v22  ;;  %4676 = vrot.lane.b32.xlu1 %v9127_v14, %s11612_s8  ;;  %v3977_v47 = vpop.permute.xlu0 %3976 }
 0x51e   :  { %3987 = vst.msk [vmem:[#allocation3 + $0x270] sm:$0xff] %vm11660_vm5, %v3977_v47  ;;  %v3951_v42 = vpop.permute.xlu1 %3950 }
 0x51f   :  { %5669 = vmatmul.mubr.bf16.gmra.mrb[200].mxu1 %v4796_v15  ;;  %4011 = vst.msk [vmem:[#allocation3 + $0x270] sm:$0xff] %vm2364_vm0, %v4001_v38  ;;  %4624 = vrot.lane.b32.xlu0 %v9127_v14, %s11614_s11 }
 0x520   :  { %3962 = vst.msk [vmem:[#allocation3 + $0x2a8] sm:$0xff] %vm2309_vm7, %v3951_v42 }
 0x521   :  { %3963 = vst.msk [vmem:[#allocation3 + $0x2b0] sm:$0xff] %vm2311_vm4, %v3951_v42  ;;  %4700 = vrot.lane.b32.xlu1 %v9127_v14, %s11615_s4  ;;  %v4077_v9 = vpop.permute.xlu0 %4076 }
 0x522   :  { %4036 = vst.msk [vmem:[#allocation3 + $0x270] sm:$0xff] %vm2389_vm1, %v10653_v40  ;;  %v4357_v59 = vpop.permute.xlu1 %4356 }
 0x523   :  { %4087 = vst.msk [vmem:[#allocation3 + $0x278] sm:$0xff] %vm2444_vm12, %v4077_v9  ;;  %v4805_v36 = vld [vmem:[#allocation3 + $0x2d8] sm:$0xff]  ;;  %4502 = vrot.lane.b32.xlu0 %v9011_v58, %s11642_s0 }
 0x524   :  { %4365 = vst.msk [vmem:[#allocation3 + $0x3d8] sm:$0xff] %vm2499_vm15, %v4357_v59  ;;  %5676 = vmatprep.mubr.bf16.mxu1 %v4805_v36  ;;  %vm11662_vm15 = vcmask 720256   ;;  %v4720_v36 = vld [vmem:[#allocation3 + $0x30] sm:$0xff] }
 0x525   :  { %4526 = vrot.lane.b32.xlu1 %v9011_v58, %s11632_s17  ;;  %v3807_v46 = vpop.permute.xlu0 %3806 }
 0x526   :  { %3816 = vst.msk [vmem:[#allocation3 + $0x2a0] sm:$0xff] %vm11661_vm10, %v3807_v46  ;;  %v4381_v11 = vpop.permute.xlu1 %4380  ;;  %vm5342_vm10 = vcmask 850944   ;;  %v4750_v46 = vld [vmem:[#allocation3 + $0x120] sm:$0xff] }
 0x527   :  { %5677 = vmatmul.mubr.bf16.gmra.mrb[204].mxu1 %v4804_v23  ;;  %4389 = vst.msk [vmem:[#allocation3 + $0x3d8] sm:$0xff] %vm2524_vm14, %v4381_v11  ;;  %4430 = vrot.lane.b32.xlu0 %v9127_v14, %s11611_s9  ;;  %vm11663_vm14 = vmmov %vm11658_vm13 }
 0x528   :  { %5684 = vmatprep.mubr.bf16.mxu1 %v4813_v31  ;;  %vm11665_vm13 = vmmov %vm11660_vm5 }
 0x529   :  { %4550 = vrot.lane.b32.xlu1 %v9011_v58, %s11635_s7  ;;  %v3831_v4 = vpop.permute.xlu0 %3830 }
 0x52a   :  { %3840 = vst.msk [vmem:[#allocation3 + $0x2a0] sm:$0xff] %vm11662_vm15, %v3831_v4  ;;  %v2673_v21 = vpop.permute.xlu1 %2672  ;;  %vm11668_vm15 = vcmask 195584  }
 0x52b   :  { %4454 = vrot.lane.b32.xlu0 %v9127_v14, %s11613_s5 }
 0x52d   :  { %4574 = vrot.lane.b32.xlu1 %v9011_v58, %s11636_s25  ;;  %v3855_v5 = vpop.permute.xlu0 %3854 }
 0x52e   :  { %3864 = vst.msk [vmem:[#allocation3 + $0x2a0] sm:$0xff] %vm11663_vm14, %v3855_v5  ;;  %v2697_v35 = vpop.permute.xlu1 %2696 }
 0x52f   :  { %5685 = vmatmul.mubr.bf16.gmra.mrb[208].mxu1 %v4812_v43  ;;  %4478 = vrot.lane.b32.xlu0 %v9011_v58, %s11597_s18  ;;  %v4829_v58 = vld [vmem:[#allocation3 + $0x398] sm:$0xff] }
 0x530   :  { %5692 = vmatprep.mubr.bf16.mxu1 %v4821_v53 }
 0x531   :  { %4650 = vrot.lane.b32.xlu1 %v9151_v33, %s11608_s21  ;;  %v3881_v2 = vpop.permute.xlu0 %3880 }
 0x532   :  { %3889 = vst.msk [vmem:[#allocation3 + $0x2e8] sm:$0xff] %vm2234_vm2, %v3881_v2  ;;  %v2721_v14 = vpop.permute.xlu1 %2720 }
 0x533   :  { %2733 = vst.msk [vmem:[#allocation3 + $0xf0] sm:$0xff] %vm2311_vm4, %v2721_v14  ;;  %4602 = vrot.lane.b32.xlu0 %v9151_v33, %s11587_s13 }
 0x534   :  { %2757 = vst.msk [vmem:[#allocation3 + $0xf0] sm:$0xff] %vm11665_vm13, %v11664_v61  ;;  %vm11670_vm13 = vmmov %vm11660_vm5 }
 0x535   :  { %4678 = vrot.lane.b32.xlu1 %v9151_v33, %s11612_s8  ;;  %2781 = vst.msk [vmem:[#allocation3 + $0xf0] sm:$0xff] %vm2364_vm0, %v9813_v57  ;;  %v4405_v12 = vpop.permute.xlu0 %4404 }
 0x536   :  { %2808 = vst.msk [vmem:[#allocation3 + $0xf0] sm:$0xff] %vm2389_vm1, %v11666_v3  ;;  %v3297_v20 = vpop.permute.xlu1 %3296 }
 0x537   :  { %5693 = vmatmul.mubr.bf16.gmra.mrb[212].mxu1 %v4820_v32  ;;  %4416 = vst.msk [vmem:[#allocation3 + $0x3d8] sm:$0xff] %vm2549_vm8, %v4405_v12  ;;  %4504 = vrot.lane.b32.xlu0 %v9033_v63, %s11642_s0  ;;  %vm11667_vm8 = vmmov %vm11663_vm14 }
 0x538   :  { %5700 = vmatprep.mubr.bf16.mxu1 %v4829_v58  ;;  %4417 = vst.msk [vmem:[#allocation3 + $0x3e0] sm:$0xff] %vm11659_vm9, %v4405_v12  ;;  %vm11669_vm14 = vmmov %vm11667_vm8  ;;  %vm11671_vm9 = vcmask 392256  }
 0x539   :  { %4626 = vrot.lane.b32.xlu1 %v9151_v33, %s11614_s11  ;;  %v2649_v13 = vpop.permute.xlu0 %2648 }
 0x53a   :  { %v6966_v45 = vpop.f32.mrb[108].mxu1  ;;  %2657 = vst.msk [vmem:[#allocation3 + $0xe8] sm:$0xff] %vm2234_vm2, %v2649_v13  ;;  %v3321_v0 = vpop.permute.xlu1 %3320 }
 0x53b   :  { %v6967_v60 = vpop.f32.mrb[109].mxu1  ;;  %2681 = vst.msk [vmem:[#allocation3 + $0xe8] sm:$0xff] %vm2259_vm3, %v2673_v21  ;;  %4702 = vrot.lane.b32.xlu0 %v9151_v33, %s11615_s4  ;;  %v4759_v21 = vld [vmem:[#allocation3 + $0x168] sm:$0xff] }
 0x53c   :  { %v10761_v28 = vadd.f32 %v6967_v60, %v6966_v45  ;;  %v6969_v57 = vpop.f32.mrb[110].mxu1  ;;  %2705 = vst.msk [vmem:[#allocation3 + $0xe8] sm:$0xff] %vm2284_vm6, %v2697_v35  ;;  %v4728_v45 = vld [vmem:[#allocation3 + $0x70] sm:$0xff]  ;;  %v4737_v60 = vld [vmem:[#allocation3 + $0xb8] sm:$0xff] }
 0x53d   :  { %v6970_v40 = vpop.f32.mrb[111].mxu1  ;;  %4528 = vrot.lane.b32.xlu1 %v9033_v63, %s11632_s17  ;;  %2732 = vst.msk [vmem:[#allocation3 + $0xe8] sm:$0xff] %vm2309_vm7, %v2721_v14  ;;  %v2624_v7 = vpop.permute.xlu0 %2623 }
 0x53e   :  { %v10764_v37 = vadd.f32 %v6970_v40, %v6969_v57  ;;  %v4837_v18 = vld [vmem:[#allocation3 + $0x3d8] sm:$0xff]  ;;  %2633 = vst.msk [vmem:[#allocation3 + $0xe0] sm:$0xff] %vm11667_vm8, %v2624_v7  ;;  %v3345_v19 = vpop.permute.xlu1 %3344  ;;  %v4758_v57 = vld [vmem:[#allocation3 + $0x160] sm:$0xff]  ;;  %vm11672_vm8 = vcmask 720256   ;;  %v4767_v40 = vld [vmem:[#allocation3 + $0x1a8] sm:$0xff] }
 0x53f   :  { %5701 = vmatmul.mubr.bf16.gmra.mrb[216].mxu1 %v4828_v39  ;;  %3357 = vst.msk [vmem:[#allocation3 + $0x1f0] sm:$0xff] %vm2311_vm4, %v3345_v19  ;;  %4432 = vrot.lane.b32.xlu0 %v9151_v33, %s11611_s9 }
 0x540   :  { %5708 = vmatprep.mubr.bf16.mxu1 %v4837_v18  ;;  %3381 = vst.msk [vmem:[#allocation3 + $0x1f0] sm:$0xff] %vm11660_vm5, %v10426_v1  ;;  %vm11673_vm5 = vmmov %vm11669_vm14 }
 0x541   :  { %4552 = vrot.lane.b32.xlu1 %v9033_v63, %s11635_s7  ;;  %3405 = vst.msk [vmem:[#allocation3 + $0x1f0] sm:$0xff] %vm2364_vm0, %v10434_v10  ;;  %v3273_v24 = vpop.permute.xlu0 %3272 }
 0x542   :  { %v6972_v52 = vpop.f32.mrb[112].mxu1  ;;  %3432 = vst.msk [vmem:[#allocation3 + $0x1f0] sm:$0xff] %vm2389_vm1, %v10359_v17  ;;  %v4721_v17 = vld [vmem:[#allocation3 + $0x38] sm:$0xff] }
 0x543   :  { %v6973_v29 = vpop.f32.mrb[113].mxu1  ;;  %3281 = vst.msk [vmem:[#allocation3 + $0x1e8] sm:$0xff] %vm2234_vm2, %v3273_v24  ;;  %v4027_v8 = vpop.permute.xlu1 %4026  ;;  %4456 = vrot.lane.b32.xlu0 %v9151_v33, %s11613_s5  ;;  %v4751_v33 = vld [vmem:[#allocation3 + $0x128] sm:$0xff]  ;;  %v4736_v24 = vld [vmem:[#allocation3 + $0xb0] sm:$0xff] }
 0x544   :  { %v10783_v16 = vadd.f32 %v6973_v29, %v6972_v52  ;;  %v6975_v38 = vpop.f32.mrb[114].mxu1  ;;  %3305 = vst.msk [vmem:[#allocation3 + $0x1e8] sm:$0xff] %vm2259_vm3, %v3297_v20  ;;  %v4743_v10 = vld [vmem:[#allocation3 + $0xe8] sm:$0xff] }
 0x545   :  { %v6976_v62 = vpop.f32.mrb[115].mxu1  ;;  %4039 = vst.msk [vmem:[#allocation3 + $0x2b8] sm:$0xff] %vm11668_vm15, %v4027_v8  ;;  %4576 = vrot.lane.b32.xlu1 %v9033_v63, %s11636_s25  ;;  %v3249_v54 = vpop.permute.xlu0 %3248  ;;  %5773 = vmatprep.mubr.bf16.mxu0 %v4743_v10  ;;  %v4742_v56 = vld [vmem:[#allocation3 + $0xe0] sm:$0xff] }
 0x546   :  { %v10788_v1 = vadd.f32 %v6976_v62, %v6975_v38  ;;  %3329 = vst.msk [vmem:[#allocation3 + $0x1e8] sm:$0xff] %vm2284_vm6, %v3321_v0  ;;  %5774 = vmatmul.mubr.bf16.gmra.mrb[204].mxu0 %v4742_v56  ;;  %v4745_v62 = vld [vmem:[#allocation3 + $0xf8] sm:$0xff] }
 0x547   :  { %5709 = vmatmul.mubr.bf16.gmra.mrb[220].mxu1 %v4836_v41  ;;  %3356 = vst.msk [vmem:[#allocation3 + $0x1e8] sm:$0xff] %vm2309_vm7, %v3345_v19  ;;  %v4055_v30 = vpop.permute.xlu1 %4054  ;;  %5781 = vmatprep.mubr.bf16.mxu0 %v4751_v33  ;;  %v4766_v41 = vld [vmem:[#allocation3 + $0x1a0] sm:$0xff] }
 0x548   :  { %6833 = vmatprep.mubr.msk.bf16.mxu1 %vm5342_vm10, %v4721_v17  ;;  %3257 = vst.msk [vmem:[#allocation3 + $0x1e0] sm:$0xff] %vm11669_vm14, %v3249_v54  ;;  %4480 = vrot.lane.b32.xlu0 %v9033_v63, %s11597_s18  ;;  %v4729_v63 = vld [vmem:[#allocation3 + $0x78] sm:$0xff]  ;;  %vm11674_vm14 = vmmov %vm11670_vm13 }
 0x549   :  { %4064 = vst.msk [vmem:[#allocation3 + $0x2b8] sm:$0xff] %vm2419_vm11, %v4055_v30  ;;  %4652 = vrot.lane.b32.xlu1 %v9170_v50, %s11608_s21  ;;  %v3979_v47 = vpop.permute.xlu0 %3978 }
 0x54a   :  { %v6978_v51 = vpop.f32.mrb[116].mxu1  ;;  %3988 = vst.msk [vmem:[#allocation3 + $0x2b0] sm:$0xff] %vm11670_vm13, %v3979_v47  ;;  %vm11675_vm13 = vmmov %vm11671_vm9 }
 0x54b   :  { %v6979_v49 = vpop.f32.mrb[117].mxu1  ;;  %v4003_v9 = vpop.permute.xlu1 %4002 }
 0x54c   :  { %v10805_v22 = vadd.f32 %v6979_v49, %v6978_v51  ;;  %v6981_v15 = vpop.f32.mrb[118].mxu1  ;;  %4012 = vst.msk [vmem:[#allocation3 + $0x2b0] sm:$0xff] %vm2364_vm0, %v4003_v9  ;;  %4604 = vrot.lane.b32.xlu0 %v9170_v50, %s11587_s13  ;;  %v4753_v9 = vld [vmem:[#allocation3 + $0x138] sm:$0xff]  ;;  %s11686_s13 = sld [smem:[#allocation50_spill]] }
 0x54d   :  { %v6982_v42 = vpop.f32.mrb[119].mxu1  ;;  %4038 = vst.msk [vmem:[#allocation3 + $0x2b0] sm:$0xff] %vm2389_vm1, %v4027_v8  ;;  %4680 = vrot.lane.b32.xlu1 %v9170_v50, %s11612_s8  ;;  %v4079_v23 = vpop.permute.xlu0 %4078 }
 0x54e   :  { %v10808_v59 = vadd.f32 %v6982_v42, %v6981_v15  ;;  %v7178_v31 = vpop.f32.mrb[196].mxu0  ;;  %4088 = vst.msk [vmem:[#allocation3 + $0x2b8] sm:$0xff] %vm2444_vm12, %v4079_v23  ;;  %5782 = vmatmul.mubr.bf16.gmra.mrb[208].mxu0 %v4750_v46  ;;  %v4775_v10 = vld [vmem:[#allocation3 + $0x1e8] sm:$0xff]  ;;  %v4744_v42 = vld [vmem:[#allocation3 + $0xf0] sm:$0xff] }
 0x54f   :  { %5911 = vmatmul.mubr.bf16.vlgmr.msra.gmra.mrb[224].mxu1 %v4720_v36  ;;  %v3905_v11 = vpop.permute.xlu1 %3904  ;;  %v7179_v4 = vpop.f32.mrb[197].mxu0  ;;  %5789 = vmatprep.mubr.bf16.mxu0 %v4759_v21 }
 0x550   :  { %6834 = vmatprep.mubr.msk.bf16.mxu1 %vm5342_vm10, %v4729_v63  ;;  %3913 = vst.msk [vmem:[#allocation3 + $0x2e8] sm:$0xff] %vm2259_vm3, %v3905_v11  ;;  %v10819_v53 = vadd.f32 %v7179_v4, %v7178_v31  ;;  %4628 = vrot.lane.b32.xlu0 %v9170_v50, %s11614_s11  ;;  %v7181_v5 = vpop.f32.mrb[198].mxu0  ;;  %v4774_v63 = vld [vmem:[#allocation3 + $0x1e0] sm:$0xff]  ;;  %v4783_v31 = vld [vmem:[#allocation3 + $0x228] sm:$0xff] }
 0x551   :  { %4704 = vrot.lane.b32.xlu1 %v9170_v50, %s11615_s4  ;;  %v7182_v2 = vpop.f32.mrb[199].mxu0  ;;  %v3809_v58 = vpop.permute.xlu0 %3808 }
 0x552   :  { %v6984_v43 = vpop.f32.mrb[120].mxu1  ;;  %v10827_v61 = vadd.f32 %v7182_v2, %v7181_v5  ;;  %3817 = vst.msk [vmem:[#allocation3 + $0x2e0] sm:$0xff] %vm11671_vm9, %v3809_v58  ;;  %v4761_v58 = vld [vmem:[#allocation3 + $0x178] sm:$0xff]  ;;  %vm11676_vm9 = vmmov %vm11672_vm8 }
 0x553   :  { %v6985_v35 = vpop.f32.mrb[121].mxu1  ;;  %v3929_v3 = vpop.permute.xlu1 %3928 }
 0x554   :  { %v10825_v14 = vadd.f32 %v6985_v35, %v6984_v43  ;;  %v6987_v32 = vpop.f32.mrb[122].mxu1  ;;  %3937 = vst.msk [vmem:[#allocation3 + $0x2e8] sm:$0xff] %vm2284_vm6, %v3929_v3  ;;  %v4782_v3 = vld [vmem:[#allocation3 + $0x220] sm:$0xff] }
 0x555   :  { %v6988_v12 = vpop.f32.mrb[123].mxu1  ;;  %v3833_v50 = vpop.permute.xlu0 %3832 }
 0x556   :  { %v10830_v20 = vadd.f32 %v6988_v12, %v6987_v32  ;;  %3841 = vst.msk [vmem:[#allocation3 + $0x2e0] sm:$0xff] %vm11672_vm8, %v3833_v50  ;;  %5790 = vmatmul.mubr.bf16.gmra.mrb[212].mxu0 %v4758_v57  ;;  %v4752_v32 = vld [vmem:[#allocation3 + $0x130] sm:$0xff]  ;;  %vm11677_vm8 = vmmov %vm11673_vm5 }
 0x557   :  { %5919 = vmatmul.mubr.bf16.gmra.mrb[228].mxu1 %v4728_v45  ;;  %v3953_v13 = vpop.permute.xlu1 %3952  ;;  %5797 = vmatprep.mubr.bf16.mxu0 %v4767_v40 }
 0x558   :  { %6835 = vmatprep.mubr.msk.bf16.mxu1 %vm5342_vm10, %v4737_v60  ;;  %3964 = vst.msk [vmem:[#allocation3 + $0x2e8] sm:$0xff] %vm2309_vm7, %v3953_v13  ;;  %v4791_v60 = vld [vmem:[#allocation3 + $0x268] sm:$0xff] }
 0x559   :  { %3965 = vst.msk [vmem:[#allocation3 + $0x2f0] sm:$0xff] %vm2311_vm4, %v3953_v13  ;;  %v3857_v19 = vpop.permute.xlu0 %3856 }
 0x55a   :  { %v6990_v0 = vpop.f32.mrb[124].mxu1  ;;  %3865 = vst.msk [vmem:[#allocation3 + $0x2e0] sm:$0xff] %vm11673_vm5, %v3857_v19  ;;  %vm11678_vm5 = vmmov %vm11668_vm15 }
 0x55b   :  { %v6991_v39 = vpop.f32.mrb[125].mxu1  ;;  %v4029_v29 = vpop.permute.xlu1 %4028 }
 0x55c   :  { %v10837_v7 = vadd.f32 %v6991_v39, %v6990_v0  ;;  %v6993_v18 = vpop.f32.mrb[126].mxu1  ;;  %4041 = vst.msk [vmem:[#allocation3 + $0x2f8] sm:$0xff] %vm11668_vm15, %v4029_v29  ;;  %vm11679_vm15 = vmmov %vm11674_vm14 }
 0x55d   :  { %v6994_v52 = vpop.f32.mrb[127].mxu1  ;;  %v3981_v8 = vpop.permute.xlu0 %3980 }
 0x55e   :  { %v10840_v38 = vadd.f32 %v6994_v52, %v6993_v18  ;;  %3989 = vst.msk [vmem:[#allocation3 + $0x2f0] sm:$0xff] %vm11674_vm14, %v3981_v8  ;;  %5798 = vmatmul.mubr.bf16.gmra.mrb[216].mxu0 %v4766_v41  ;;  %v4760_v52 = vld [vmem:[#allocation3 + $0x170] sm:$0xff]  ;;  %v4799_v41 = vld [vmem:[#allocation3 + $0x2a8] sm:$0xff]  ;;  %vm11680_vm14 = vmmov %vm11675_vm13 }
 0x55f   :  { %5927 = vmatmul.mubr.bf16.gmra.mrb[232].mxu1 %v4736_v24  ;;  %v4057_v17 = vpop.permute.xlu1 %4056  ;;  %5805 = vmatprep.mubr.bf16.mxu0 %v4775_v10 }
 0x560   :  { %6836 = vmatprep.mubr.msk.bf16.mxu1 %vm5342_vm10, %v4745_v62  ;;  %4065 = vst.msk [vmem:[#allocation3 + $0x2f8] sm:$0xff] %vm2419_vm11, %v4057_v17  ;;  %v4790_v62 = vld [vmem:[#allocation3 + $0x260] sm:$0xff] }
 0x561   :  { %v4005_v51 = vpop.permute.xlu0 %4004 }
 0x562   :  { %v6996_v54 = vpop.f32.mrb[128].mxu1  ;;  %4013 = vst.msk [vmem:[#allocation3 + $0x2f0] sm:$0xff] %vm2364_vm0, %v4005_v51 }
 0x563   :  { %v6997_v56 = vpop.f32.mrb[129].mxu1  ;;  %v4081_v15 = vpop.permute.xlu1 %4080  ;;  %4040 = vst.msk [vmem:[#allocation3 + $0x2f0] sm:$0xff] %vm2389_vm1, %v4029_v29  ;;  %v4769_v29 = vld [vmem:[#allocation3 + $0x1b8] sm:$0xff] }
 0x564   :  { %v10846_v30 = vadd.f32 %v6997_v56, %v6996_v54  ;;  %v6999_v33 = vpop.f32.mrb[130].mxu1  ;;  %4089 = vst.msk [vmem:[#allocation3 + $0x2f8] sm:$0xff] %vm2444_vm12, %v4081_v15 }
 0x565   :  { %v7000_v49 = vpop.f32.mrb[131].mxu1  ;;  %v4499_v36 = vpop.permute.xlu0 %4498 }
 0x566   :  { %v10849_v47 = vadd.f32 %v7000_v49, %v6999_v33  ;;  %4510 = vst.msk [vmem:[#allocation3 + $0x328] sm:$0xff] %vm2234_vm2, %v4499_v36  ;;  %5806 = vmatmul.mubr.bf16.gmra.mrb[220].mxu0 %v4774_v63  ;;  %v4798_v63 = vld [vmem:[#allocation3 + $0x2a0] sm:$0xff] }
 0x567   :  { %5935 = vmatmul.mubr.bf16.gmra.mrb[236].mxu1 %v4744_v42  ;;  %v4523_v23 = vpop.permute.xlu1 %4522  ;;  %5813 = vmatprep.mubr.bf16.mxu0 %v4783_v31  ;;  %v4768_v42 = vld [vmem:[#allocation3 + $0x1b0] sm:$0xff]  ;;  %v4807_v31 = vld [vmem:[#allocation3 + $0x2e8] sm:$0xff] }
 0x568   :  { %6837 = vmatprep.mubr.msk.bf16.mxu1 %vm5342_vm10, %v4753_v9  ;;  %4534 = vst.msk [vmem:[#allocation3 + $0x328] sm:$0xff] %vm2259_vm3, %v4523_v23  ;;  %v4777_v9 = vld [vmem:[#allocation3 + $0x1f8] sm:$0xff] }
 0x569   :  { %v4427_v43 = vpop.permute.xlu0 %4426 }
 0x56a   :  { %v7002_v46 = vpop.f32.mrb[132].mxu1  ;;  %4438 = vst.msk [vmem:[#allocation3 + $0x320] sm:$0xff] %vm11675_vm13, %v4427_v43  ;;  %vm11681_vm13 = vmmov %vm11676_vm9 }
 0x56b   :  { %v7003_v11 = vpop.f32.mrb[133].mxu1  ;;  %v4547_v35 = vpop.permute.xlu1 %4546 }
 0x56c   :  { %v10856_v4 = vadd.f32 %v7003_v11, %v7002_v46  ;;  %v7005_v21 = vpop.f32.mrb[134].mxu1  ;;  %4558 = vst.msk [vmem:[#allocation3 + $0x328] sm:$0xff] %vm2284_vm6, %v4547_v35 }
 0x56d   :  { %v7006_v5 = vpop.f32.mrb[135].mxu1  ;;  %v4451_v12 = vpop.permute.xlu0 %4450 }
 0x56e   :  { %v10859_v2 = vadd.f32 %v7006_v5, %v7005_v21  ;;  %4462 = vst.msk [vmem:[#allocation3 + $0x320] sm:$0xff] %vm11676_vm9, %v4451_v12  ;;  %5814 = vmatmul.mubr.bf16.gmra.mrb[224].mxu0 %v4782_v3  ;;  %v4776_v12 = vld [vmem:[#allocation3 + $0x1f0] sm:$0xff]  ;;  %v4785_v3 = vld [vmem:[#allocation3 + $0x238] sm:$0xff]  ;;  %vm11682_vm9 = vmmov %vm11677_vm8 }
 0x56f   :  { %5943 = vmatmul.mubr.bf16.gmra.mrb[240].mxu1 %v4752_v32  ;;  %v4571_v45 = vpop.permute.xlu1 %4570  ;;  %5821 = vmatprep.mubr.bf16.mxu0 %v4791_v60  ;;  %v4806_v60 = vld [vmem:[#allocation3 + $0x2e0] sm:$0xff] }
 0x570   :  { %6838 = vmatprep.mubr.msk.bf16.mxu1 %vm5342_vm10, %v4761_v58  ;;  %4582 = vst.msk [vmem:[#allocation3 + $0x328] sm:$0xff] %vm2309_vm7, %v4571_v45 }
 0x571   :  { %4583 = vst.msk [vmem:[#allocation3 + $0x330] sm:$0xff] %vm2311_vm4, %v4571_v45  ;;  %v4475_v0 = vpop.permute.xlu0 %4474 }
 0x572   :  { %v7008_v50 = vpop.f32.mrb[136].mxu1  ;;  %4486 = vst.msk [vmem:[#allocation3 + $0x320] sm:$0xff] %vm11677_vm8, %v4475_v0  ;;  %vm11683_vm8 = vmmov %vm11678_vm5 }
 0x573   :  { %v7009_v57 = vpop.f32.mrb[137].mxu1  ;;  %v4647_v18 = vpop.permute.xlu1 %4646 }
 0x574   :  { %v10866_v13 = vadd.f32 %v7009_v57, %v7008_v50  ;;  %v7011_v40 = vpop.f32.mrb[138].mxu1  ;;  %4659 = vst.msk [vmem:[#allocation3 + $0x338] sm:$0xff] %vm11678_vm5, %v4647_v18  ;;  %vm11684_vm5 = vmmov %vm11679_vm15 }
 0x575   :  { %v7012_v39 = vpop.f32.mrb[139].mxu1  ;;  %v4599_v24 = vpop.permute.xlu0 %4598 }
 0x576   :  { %v10869_v19 = vadd.f32 %v7012_v39, %v7011_v40  ;;  %4610 = vst.msk [vmem:[#allocation3 + $0x330] sm:$0xff] %vm11679_vm15, %v4599_v24  ;;  %5822 = vmatmul.mubr.bf16.gmra.mrb[228].mxu0 %v4790_v62  ;;  %vm11685_vm15 = vmmov %vm11680_vm14 }
 0x577   :  { %5951 = vmatmul.mubr.bf16.gmra.mrb[244].mxu1 %v4760_v52  ;;  %v4675_v8 = vpop.permute.xlu1 %4674  ;;  %5829 = vmatprep.mubr.bf16.mxu0 %v4799_v41  ;;  %v4815_v57 = vld [vmem:[#allocation3 + $0x328] sm:$0xff]  ;;  %v4793_v41 = vld [vmem:[#allocation3 + $0x278] sm:$0xff] }
 0x578   :  { %6839 = vmatprep.mubr.msk.bf16.mxu1 %vm5342_vm10, %v4769_v29  ;;  %4686 = vst.msk [vmem:[#allocation3 + $0x338] sm:$0xff] %vm2419_vm11, %v4675_v8  ;;  %v4784_v8 = vld [vmem:[#allocation3 + $0x230] sm:$0xff] }
 0x579   :  { %v4501_v33 = vpop.permute.xlu0 %4500 }
 0x57a   :  { %v7014_v17 = vpop.f32.mrb[140].mxu1  ;;  %4511 = vst.msk [vmem:[#allocation3 + $0x368] sm:$0xff] %vm2234_vm2, %v4501_v33 }
 0x57b   :  { %v7015_v10 = vpop.f32.mrb[141].mxu1  ;;  %v4623_v49 = vpop.permute.xlu1 %4622 }
 0x57c   :  { %v10875_v54 = vadd.f32 %v7015_v10, %v7014_v17  ;;  %v7017_v56 = vpop.f32.mrb[142].mxu1  ;;  %4634 = vst.msk [vmem:[#allocation3 + $0x330] sm:$0xff] %vm2364_vm0, %v4623_v49  ;;  %v4814_v10 = vld [vmem:[#allocation3 + $0x320] sm:$0xff] }
 0x57d   :  { %v7018_v51 = vpop.f32.mrb[143].mxu1  ;;  %4658 = vst.msk [vmem:[#allocation3 + $0x330] sm:$0xff] %vm2389_vm1, %v4647_v18  ;;  %v4699_v36 = vpop.permute.xlu0 %4698 }
 0x57e   :  { %v10878_v15 = vadd.f32 %v7018_v51, %v7017_v56  ;;  %4710 = vst.msk [vmem:[#allocation3 + $0x338] sm:$0xff] %vm2444_vm12, %v4699_v36  ;;  %5830 = vmatmul.mubr.bf16.gmra.mrb[232].mxu0 %v4798_v63 }
 0x57f   :  { %5959 = vmatmul.mubr.bf16.gmra.mrb[248].mxu1 %v4768_v42  ;;  %v4525_v23 = vpop.permute.xlu1 %4524  ;;  %5837 = vmatprep.mubr.bf16.mxu0 %v4807_v31 }
 0x580   :  { %6840 = vmatprep.mubr.msk.bf16.mxu1 %vm5342_vm10, %v4777_v9  ;;  %4535 = vst.msk [vmem:[#allocation3 + $0x368] sm:$0xff] %vm2259_vm3, %v4525_v23 }
 0x581   :  { %v4429_v5 = vpop.permute.xlu0 %4428 }
 0x582   :  { %v7020_v46 = vpop.f32.mrb[144].mxu1  ;;  %4439 = vst.msk [vmem:[#allocation3 + $0x360] sm:$0xff] %vm11680_vm14, %v4429_v5  ;;  %vm11687_vm14 = vmmov %vm11681_vm13 }
 0x583   :  { %v7021_v11 = vpop.f32.mrb[145].mxu1  ;;  %v4549_v32 = vpop.permute.xlu1 %4548 }
 0x584   :  { %v10885_v21 = vadd.f32 %v7021_v11, %v7020_v46  ;;  %v7023_v43 = vpop.f32.mrb[146].mxu1  ;;  %4559 = vst.msk [vmem:[#allocation3 + $0x368] sm:$0xff] %vm2284_vm6, %v4549_v32  ;;  %v4792_v46 = vld [vmem:[#allocation3 + $0x270] sm:$0xff]  ;;  %v4801_v11 = vld [vmem:[#allocation3 + $0x2b8] sm:$0xff] }
 0x585   :  { %v7024_v35 = vpop.f32.mrb[147].mxu1  ;;  %v4453_v45 = vpop.permute.xlu0 %4452 }
 0x586   :  { %v10888_v58 = vadd.f32 %v7024_v35, %v7023_v43  ;;  %4463 = vst.msk [vmem:[#allocation3 + $0x360] sm:$0xff] %vm11681_vm13, %v4453_v45  ;;  %5838 = vmatmul.mubr.bf16.gmra.mrb[236].mxu0 %v4806_v60  ;;  %vm11688_vm13 = vmmov %vm11682_vm9 }
 0x587   :  { %5967 = vmatmul.mubr.bf16.gmra.mrb[252].mxu1 %v4776_v12  ;;  %v4573_v50 = vpop.permute.xlu1 %4572  ;;  %5845 = vmatprep.mubr.bf16.mxu0 %v4815_v57 }
 0x588   :  { %6841 = vmatprep.mubr.msk.bf16.mxu1 %vm5342_vm10, %v4785_v3  ;;  %4584 = vst.msk [vmem:[#allocation3 + $0x368] sm:$0xff] %vm2309_vm7, %v4573_v50 }
 0x589   :  { %4585 = vst.msk [vmem:[#allocation3 + $0x370] sm:$0xff] %vm2311_vm4, %v4573_v50  ;;  %v4477_v52 = vpop.permute.xlu0 %4476 }
 0x58a   :  { %v7026_v40 = vpop.f32.mrb[148].mxu1  ;;  %4487 = vst.msk [vmem:[#allocation3 + $0x360] sm:$0xff] %vm11682_vm9, %v4477_v52  ;;  %v7852_v52 = vmov 0.0   ;;  %vm11689_vm9 = vmmov %vm11683_vm8 }
 0x58b   :  { %v7027_v0 = vpop.f32.mrb[149].mxu1  ;;  %v4649_v24 = vpop.permute.xlu1 %4648  ;;  %7399 = vmatprep.subr.bf16.mxu0 %v7852_v52  ;;  %7413 = vmatprep.subr.bf16.mxu1 %v7852_v52 }
 0x58c   :  { %v10895_v39 = vadd.f32 %v7027_v0, %v7026_v40  ;;  %v7029_v18 = vpop.f32.mrb[150].mxu1  ;;  %4661 = vst.msk [vmem:[#allocation3 + $0x378] sm:$0xff] %vm11683_vm8, %v4649_v24  ;;  %v4800_v0 = vld [vmem:[#allocation3 + $0x2b0] sm:$0xff]  ;;  %vm11690_vm8 = vmmov %vm11684_vm5 }
 0x58d   :  { %v7030_v29 = vpop.f32.mrb[151].mxu1  ;;  %v4601_v17 = vpop.permute.xlu0 %4600 }
 0x58e   :  { %v10898_v62 = vadd.f32 %v7030_v29, %v7029_v18  ;;  %4611 = vst.msk [vmem:[#allocation3 + $0x370] sm:$0xff] %vm11684_vm5, %v4601_v17  ;;  %5846 = vmatmul.mubr.bf16.gmra.mrb[240].mxu0 %v4814_v10  ;;  %v4809_v18 = vld [vmem:[#allocation3 + $0x2f8] sm:$0xff]  ;;  %v7782_v29 = vld [vmem:[%s11686_s13 + $0x28] sm:$0xff]   ;;  %vm11694_vm5 = vmmov %vm11689_vm9 }
 0x58f   :  { %5975 = vmatmul.mubr.bf16.gmra.mrb[0].mxu1 %v4784_v8  ;;  %v4677_v56 = vpop.permute.xlu1 %4676  ;;  %v4823_v33 = vld [vmem:[#allocation3 + $0x368] sm:$0xff]  ;;  %v7783_v8 = vld [vmem:[%s11686_s13] sm:$0xff]   ;;  %7400 = vmatpush3.bf16.msra.mxu0 %v7782_v29 }
 0x590   :  { %6842 = vmatprep.mubr.msk.bf16.mxu1 %vm5342_vm10, %v4793_v41  ;;  %4687 = vst.msk [vmem:[#allocation3 + $0x378] sm:$0xff] %vm2419_vm11, %v4677_v56  ;;  %5853 = vmatprep.mubr.bf16.mxu0 %v4823_v33 }
 0x591   :  { %v4625_v36 = vpop.permute.xlu0 %4624  ;;  %v4822_v5 = vld [vmem:[#allocation3 + $0x360] sm:$0xff]  ;;  %7414 = vmatpush3.bf16.msra.mxu1 %v7783_v8  ;;  %7401 = vmatprep.subr.bf16.mxu0 %v7852_v52 }
 0x592   :  { %v7032_v51 = vpop.f32.mrb[152].mxu1  ;;  %4635 = vst.msk [vmem:[#allocation3 + $0x370] sm:$0xff] %vm2364_vm0, %v4625_v36  ;;  %7415 = vmatprep.subr.bf16.mxu1 %v7852_v52 }
 0x593   :  { %v7033_v49 = vpop.f32.mrb[153].mxu1  ;;  %v4701_v23 = vpop.permute.xlu1 %4700  ;;  %4660 = vst.msk [vmem:[#allocation3 + $0x370] sm:$0xff] %vm2389_vm1, %v4649_v24 }
 0x594   :  { %v10904_v42 = vadd.f32 %v7033_v49, %v7032_v51  ;;  %v7035_v9 = vpop.f32.mrb[154].mxu1  ;;  %4711 = vst.msk [vmem:[#allocation3 + $0x378] sm:$0xff] %vm2444_vm12, %v4701_v23  ;;  %v4808_v49 = vld [vmem:[#allocation3 + $0x2f0] sm:$0xff] }
 0x595   :  { %v7036_v63 = vpop.f32.mrb[155].mxu1  ;;  %v4503_v43 = vpop.permute.xlu0 %4502 }
 0x596   :  { %v10907_v31 = vadd.f32 %v7036_v63, %v7035_v9  ;;  %4512 = vst.msk [vmem:[#allocation3 + $0x3a8] sm:$0xff] %vm2234_vm2, %v4503_v43  ;;  %5854 = vmatmul.mubr.bf16.gmra.mrb[244].mxu0 %v4822_v5  ;;  %v4817_v63 = vld [vmem:[#allocation3 + $0x338] sm:$0xff] }
 0x597   :  { %5983 = vmatmul.mubr.bf16.gmra.mrb[4].mxu1 %v4792_v46  ;;  %v4527_v35 = vpop.permute.xlu1 %4526 }
 0x598   :  { %6843 = vmatprep.mubr.msk.bf16.mxu1 %vm5342_vm10, %v4801_v11  ;;  %4536 = vst.msk [vmem:[#allocation3 + $0x3a8] sm:$0xff] %vm2259_vm3, %v4527_v35 }
 0x599   :  { %v4431_v60 = vpop.permute.xlu0 %4430 }
 0x59a   :  { %v7038_v32 = vpop.f32.mrb[156].mxu1  ;;  %4440 = vst.msk [vmem:[#allocation3 + $0x3a0] sm:$0xff] %vm11685_vm15, %v4431_v60 }
 0x59b   :  { %v7039_v12 = vpop.f32.mrb[157].mxu1  ;;  %v4551_v57 = vpop.permute.xlu1 %4550  ;;  %v4825_v29 = vld [vmem:[#allocation3 + $0x378] sm:$0xff] }
 0x59c   :  { %v10914_v3 = vadd.f32 %v7039_v12, %v7038_v32  ;;  %v7041_v45 = vpop.f32.mrb[158].mxu1  ;;  %4560 = vst.msk [vmem:[#allocation3 + $0x3a8] sm:$0xff] %vm2284_vm6, %v4551_v57 }
 0x59d   :  { %v7042_v50 = vpop.f32.mrb[159].mxu1  ;;  %v4455_v24 = vpop.permute.xlu0 %4454 }
 0x59e   :  { %v10917_v40 = vadd.f32 %v7042_v50, %v7041_v45  ;;  %4464 = vst.msk [vmem:[#allocation3 + $0x3a0] sm:$0xff] %vm11687_vm14, %v4455_v24 }
 0x59f   :  { %5991 = vmatmul.mubr.bf16.gmra.mrb[8].mxu1 %v4800_v0  ;;  %v4575_v41 = vpop.permute.xlu1 %4574  ;;  %v4816_v0 = vld [vmem:[#allocation3 + $0x330] sm:$0xff] }
 0x5a0   :  { %6844 = vmatprep.mubr.msk.bf16.mxu1 %vm5342_vm10, %v4809_v18  ;;  %4586 = vst.msk [vmem:[#allocation3 + $0x3a8] sm:$0xff] %vm2309_vm7, %v4575_v41 }
 0x5a1   :  { %4587 = vst.msk [vmem:[#allocation3 + $0x3b0] sm:$0xff] %vm2311_vm4, %v4575_v41  ;;  %v4479_v51 = vpop.permute.xlu0 %4478 }
 0x5a2   :  { %v7060_v17 = vpop.f32.mrb[160].mxu1  ;;  %4488 = vst.msk [vmem:[#allocation3 + $0x3a0] sm:$0xff] %vm11688_vm13, %v4479_v51 }
 0x5a3   :  { %v7061_v10 = vpop.f32.mrb[161].mxu1  ;;  %v4651_v36 = vpop.permute.xlu1 %4650 }
 0x5a4   :  { %v7062_v56 = vadd.f32 %v7061_v10, %v7060_v17  ;;  %v7063_v33 = vpop.f32.mrb[162].mxu1  ;;  %4663 = vst.msk [vmem:[#allocation3 + $0x3b8] sm:$0xff] %vm11689_vm9, %v4651_v36 }
 0x5a5   :  { %v7064_v9 = vpop.f32.mrb[163].mxu1  ;;  %v4603_v43 = vpop.permute.xlu0 %4602 }
 0x5a6   :  { %v5591_v23 = vadd.f32 %v7062_v56, %v10341_v48  ;;  %v7065_v46 = vadd.f32 %v7064_v9, %v7063_v33  ;;  %4612 = vst.msk [vmem:[#allocation3 + $0x3b0] sm:$0xff] %vm11690_vm8, %v4603_v43 }
 0x5a7   :  { %5999 = vmatmul.mubr.bf16.gmra.mrb[12].mxu1 %v4808_v49  ;;  %v4679_v35 = vpop.permute.xlu1 %4678  ;;  %v4831_v32 = vld [vmem:[#allocation3 + $0x3a8] sm:$0xff] }
 0x5a8   :  { %v5594_v11 = vadd.f32 %v7065_v46, %v10345_v27  ;;  %6845 = vmatprep.mubr.msk.bf16.mxu1 %vm5342_vm10, %v4817_v63  ;;  %v10940_v5 = vadd.f32 %v10665_v6, %v5591_v23  ;;  %4688 = vst.msk [vmem:[#allocation3 + $0x3b8] sm:$0xff] %vm2419_vm11, %v4679_v35  ;;  %5861 = vmatprep.mubr.bf16.mxu0 %v4831_v32  ;;  %v4824_v23 = vld [vmem:[#allocation3 + $0x370] sm:$0xff] }
 0x5a9   :  { %v4505_v50 = vpop.permute.xlu0 %4504  ;;  %v4830_v57 = vld [vmem:[#allocation3 + $0x3a0] sm:$0xff] }
 0x5aa   :  { %v7066_v12 = vpop.f32.mrb[164].mxu1  ;;  %v10945_v48 = vadd.f32 %v10673_v26, %v5594_v11  ;;  %4513 = vst.msk [vmem:[#allocation3 + $0x3e8] sm:$0xff] %vm2234_vm2, %v4505_v50  ;;  %5862 = vmatmul.mubr.bf16.gmra.mrb[248].mxu0 %v4830_v57  ;;  %vm11691_vm2 = vmmov %vm11685_vm15 }
 0x5ab   :  { %v7067_v45 = vpop.f32.mrb[165].mxu1  ;;  %v4627_v6 = vpop.permute.xlu1 %4626 }
 0x5ac   :  { %v7068_v60 = vadd.f32 %v7067_v45, %v7066_v12  ;;  %v7069_v27 = vpop.f32.mrb[166].mxu1  ;;  %4636 = vst.msk [vmem:[#allocation3 + $0x3b0] sm:$0xff] %vm2364_vm0, %v4627_v6 }
 0x5ad   :  { %v7070_v18 = vpop.f32.mrb[167].mxu1  ;;  %4662 = vst.msk [vmem:[#allocation3 + $0x3b0] sm:$0xff] %vm2389_vm1, %v4651_v36  ;;  %v4703_v41 = vpop.permute.xlu0 %4702 }
 0x5ae   :  { %v5599_v24 = vadd.f32 %v7068_v60, %v10390_v25  ;;  %v7071_v8 = vadd.f32 %v7070_v18, %v7069_v27  ;;  %4712 = vst.msk [vmem:[#allocation3 + $0x3b8] sm:$0xff] %vm2444_vm12, %v4703_v41 }
 0x5af   :  { %6007 = vmatmul.mubr.bf16.gmra.mrb[16].mxu1 %v4816_v0  ;;  %v4529_v10 = vpop.permute.xlu1 %4528 }
 0x5b0   :  { %v5602_v26 = vadd.f32 %v7071_v8, %v10394_v44  ;;  %6846 = vmatprep.mubr.msk.bf16.mxu1 %vm5342_vm10, %v4825_v29  ;;  %v10954_v17 = vadd.f32 %v10819_v53, %v5599_v24  ;;  %4537 = vst.msk [vmem:[#allocation3 + $0x3e8] sm:$0xff] %vm2259_vm3, %v4529_v10  ;;  %vm11692_vm3 = vmmov %vm11687_vm14 }
 0x5b1   :  { %v4433_v9 = vpop.permute.xlu0 %4432 }
 0x5b2   :  { %v7072_v25 = vpop.f32.mrb[168].mxu1  ;;  %v10959_v56 = vadd.f32 %v10827_v61, %v5602_v26  ;;  %4441 = vst.msk [vmem:[#allocation3 + $0x3e0] sm:$0xff] %vm11691_vm2, %v4433_v9  ;;  %v7784_v61 = vld [vmem:[%s11686_s13 + $0x30] sm:$0xff]  }
 0x5b3   :  { %v7073_v33 = vpop.f32.mrb[169].mxu1  ;;  %v4553_v36 = vpop.permute.xlu1 %4552  ;;  %7402 = vmatpush3.bf16.msra.mxu0 %v7784_v61 }
 0x5b4   :  { %v7074_v51 = vadd.f32 %v7073_v33, %v7072_v25  ;;  %v7075_v49 = vpop.f32.mrb[170].mxu1  ;;  %4561 = vst.msk [vmem:[#allocation3 + $0x3e8] sm:$0xff] %vm2284_vm6, %v4553_v36  ;;  %7403 = vmatprep.subr.bf16.mxu0 %v7852_v52  ;;  %vm11693_vm6 = vmmov %vm11688_vm13  ;;  %v4832_v18 = vld [vmem:[#allocation3 + $0x3b0] sm:$0xff] }
 0x5b5   :  { %v7076_v44 = vpop.f32.mrb[171].mxu1  ;;  %v4457_v11 = vpop.permute.xlu0 %4456  ;;  %v4833_v43 = vld [vmem:[#allocation3 + $0x3b8] sm:$0xff] }
 0x5b6   :  { %v10963_v53 = vadd.f32 %v7074_v51, %v10616_v34  ;;  %v7077_v63 = vadd.f32 %v7076_v44, %v7075_v49  ;;  %v7785_v34 = vld [vmem:[%s11686_s13 + $0x8] sm:$0xff]   ;;  %4465 = vst.msk [vmem:[#allocation3 + $0x3e0] sm:$0xff] %vm11692_vm3, %v4457_v11 }
 0x5b7   :  { %6015 = vmatmul.mubr.bf16.gmra.mrb[20].mxu1 %v4824_v23  ;;  %v4577_v35 = vpop.permute.xlu1 %4576 }
 0x5b8   :  { %v10970_v46 = vadd.f32 %v7077_v63, %v10623_v55  ;;  %6847 = vmatprep.mubr.msk.bf16.mxu1 %vm5342_vm10, %v4833_v43  ;;  %4588 = vst.msk [vmem:[#allocation3 + $0x3e8] sm:$0xff] %vm2309_vm7, %v4577_v35  ;;  %7416 = vmatpush3.bf16.msra.mxu1 %v7785_v34  ;;  %vm7853_vm7 = vmmov 0  }
 0x5b9   :  { %4589 = vst.msk [vmem:[#allocation3 + $0x3f0] sm:$0xff] %vm2311_vm4, %v4577_v35  ;;  %7417 = vmatprep.subr.bf16.mxu1 %v7852_v52  ;;  %vm11695_vm4 = vmmov %vm11690_vm8 }
 0x5ba   :  { %v7078_v55 = vpop.f32.mrb[172].mxu1  ;;  %v4481_v60 = vpop.permute.xlu0 %4480 }
 0x5bb   :  { %v7079_v32 = vpop.f32.mrb[173].mxu1  ;;  %4489 = vst.msk [vmem:[#allocation3 + $0x3e0] sm:$0xff] %vm11693_vm6, %v4481_v60  ;;  %v4653_v50 = vpop.permute.xlu1 %4652 }
 0x5bc   :  { %v7080_v12 = vadd.f32 %v7079_v32, %v7078_v55  ;;  %v7081_v45 = vpop.f32.mrb[174].mxu1  ;;  %4665 = vst.msk [vmem:[#allocation3 + $0x3f8] sm:$0xff] %vm11694_vm5, %v4653_v50 }
 0x5bd   :  { %v7082_v27 = vpop.f32.mrb[175].mxu1 }
 0x5be   :  { %v10983_v57 = vadd.f32 %v7080_v12, %v10761_v28  ;;  %v7083_v0 = vadd.f32 %v7082_v27, %v7081_v45  ;;  %v4605_v29 = vpop.permute.xlu0 %4604  ;;  %v7787_v27 = vld [vmem:[%s11686_s13 + $0x10] sm:$0xff]  }
 0x5bf   :  { %6023 = vmatmul.mubr.bf16.gmra.mrb[24].mxu1 %v4832_v18  ;;  %4613 = vst.msk [vmem:[#allocation3 + $0x3f0] sm:$0xff] %vm11695_vm4, %v4605_v29  ;;  %v4681_v24 = vpop.permute.xlu1 %4680  ;;  %v4839_v8 = vld [vmem:[#allocation3 + $0x3e8] sm:$0xff] }
 0x5c0   :  { %v10987_v6 = vadd.f32 %v7083_v0, %v10764_v37  ;;  %4689 = vst.msk [vmem:[#allocation3 + $0x3f8] sm:$0xff] %vm2419_vm11, %v4681_v24  ;;  %5869 = vmatprep.mubr.bf16.mxu0 %v4839_v8  ;;  %7418 = vmatpush3.bf16.msra.mxu1 %v7787_v27  ;;  %vm6140_vm11 = vcmask 654336  }
 0x5c1   :  { %7419 = vmatprep.subr.bf16.mxu1 %v7852_v52 }
 0x5c2   :  { %v7084_v26 = vpop.f32.mrb[176].mxu1  ;;  %v4629_v25 = vpop.permute.xlu0 %4628  ;;  %v4838_v33 = vld [vmem:[#allocation3 + $0x3e0] sm:$0xff] }
 0x5c3   :  { %v7085_v41 = vpop.f32.mrb[177].mxu1  ;;  %4637 = vst.msk [vmem:[#allocation3 + $0x3f0] sm:$0xff] %vm2364_vm0, %v4629_v25  ;;  %v4705_v49 = vpop.permute.xlu1 %4704  ;;  %5870 = vmatmul.mubr.bf16.gmra.mrb[252].mxu0 %v4838_v33  ;;  %vm6478_vm0 = vcmask 408576  }
 0x5c4   :  { %v7086_v28 = vadd.f32 %v7085_v41, %v7084_v26  ;;  %v7087_v10 = vpop.f32.mrb[178].mxu1  ;;  %4664 = vst.msk [vmem:[#allocation3 + $0x3f0] sm:$0xff] %vm2389_vm1, %v4653_v50  ;;  %7409 = vmatprep.mubr.msk.bf16.mxu0 %vm7853_vm7, %v7852_v52  ;;  %vm6527_vm1 = vcmask 80896  }
 0x5c5   :  { %v7088_v51 = vpop.f32.mrb[179].mxu1  ;;  %4713 = vst.msk [vmem:[#allocation3 + $0x3f8] sm:$0xff] %vm2444_vm12, %v4705_v49  ;;  %vm6482_vm12 = vcmask 1040384  }
 0x5c6   :  { %v10993_v37 = vadd.f32 %v7086_v28, %v10783_v16  ;;  %v7089_v9 = vadd.f32 %v7088_v51, %v7087_v10 }
 0x5c8   :  { %v10998_v44 = vadd.f32 %v7089_v9, %v10788_v1  ;;  %v7786_v1 = vld [vmem:[%s11686_s13 + $0x38] sm:$0xff]  }
 0x5c9   :  { %7404 = vmatpush3.bf16.msra.mxu0 %v7786_v1 }
 0x5ca   :  { %v7090_v36 = vpop.f32.mrb[180].mxu1  ;;  %7405 = vmatprep.subr.bf16.mxu0 %v7852_v52 }
 0x5cb   :  { %v7091_v63 = vpop.f32.mrb[181].mxu1  ;;  %v4840_v34 = vld [vmem:[#allocation3 + $0x3f0] sm:$0xff] }
 0x5cc   :  { %v7092_v23 = vadd.f32 %v7091_v63, %v7090_v36  ;;  %v7093_v61 = vpop.f32.mrb[182].mxu1  ;;  %v4841_v43 = vld [vmem:[#allocation3 + $0x3f8] sm:$0xff] }
 0x5cd   :  { %v7094_v11 = vpop.f32.mrb[183].mxu1  ;;  %6848 = vmatprep.mubr.msk.bf16.mxu1 %vm5342_vm10, %v4841_v43 }
 0x5ce   :  { %v11001_v35 = vadd.f32 %v7092_v23, %v10805_v22  ;;  %v7095_v16 = vadd.f32 %v7094_v11, %v7093_v61  ;;  %6031 = vmatmul.mubr.bf16.gmra.mrb[28].mxu1 %v4840_v34  ;;  %v7789_v23 = vld [vmem:[%s11686_s13 + $0x18] sm:$0xff]  }
 0x5cf   :  { %7420 = vmatpush3.bf16.msra.mxu1 %v7789_v23  ;;  %7423 = vmatprep.mubr.msk.bf16.mxu1 %vm7853_vm7, %v7852_v52 }
 0x5d0   :  { %v11005_v55 = vadd.f32 %v7095_v16, %v10808_v59  ;;  %7421 = vmatprep.subr.bf16.mxu1 %v7852_v52 }
 0x5d2   :  { %v7096_v32 = vpop.f32.mrb[184].mxu1 }
 0x5d3   :  { %v7097_v12 = vpop.f32.mrb[185].mxu1 }
 0x5d4   :  { %v7098_v45 = vadd.f32 %v7097_v12, %v7096_v32  ;;  %v7099_v60 = vpop.f32.mrb[186].mxu1 }
 0x5d5   :  { %v7100_v22 = vpop.f32.mrb[187].mxu1 }
 0x5d6   :  { %v11015_v50 = vadd.f32 %v7098_v45, %v10825_v14  ;;  %v7101_v59 = vadd.f32 %v7100_v22, %v7099_v60 }
 0x5d8   :  { %v11018_v0 = vadd.f32 %v7101_v59, %v10830_v20 }
 0x5da   :  { %v7102_v18 = vpop.f32.mrb[188].mxu1 }
 0x5db   :  { %v7103_v29 = vpop.f32.mrb[189].mxu1 }
 0x5dc   :  { %v7104_v24 = vadd.f32 %v7103_v29, %v7102_v18  ;;  %v7105_v8 = vpop.f32.mrb[190].mxu1 }
 0x5dd   :  { %v7106_v26 = vpop.f32.mrb[191].mxu1 }
 0x5de   :  { %v11022_v41 = vadd.f32 %v7104_v24, %v10837_v7  ;;  %v7107_v28 = vadd.f32 %v7106_v26, %v7105_v8  ;;  %v7788_v7 = vld [vmem:[%s11686_s13 + $0x40] sm:$0xff]  }
 0x5df   :  { %7406 = vmatpush3.bf16.msra.mxu0 %v7788_v7 }
 0x5e0   :  { %v11025_v10 = vadd.f32 %v7107_v28, %v10840_v38  ;;  %7407 = vmatprep.subr.bf16.mxu0 %v7852_v52 }
 0x5e2   :  { %v7108_v14 = vpop.f32.mrb[192].mxu1 }
 0x5e3   :  { %v7109_v25 = vpop.f32.mrb[193].mxu1 }
 0x5e4   :  { %v7110_v33 = vadd.f32 %v7109_v25, %v7108_v14  ;;  %v7111_v51 = vpop.f32.mrb[194].mxu1 }
 0x5e5   :  { %v7112_v20 = vpop.f32.mrb[195].mxu1 }
 0x5e6   :  { %v11028_v49 = vadd.f32 %v7110_v33, %v10846_v30  ;;  %v7113_v9 = vadd.f32 %v7112_v20, %v7111_v51 }
 0x5e8   :  { %v11031_v36 = vadd.f32 %v7113_v9, %v10849_v47 }
 0x5ea   :  { %v7114_v63 = vpop.f32.mrb[196].mxu1 }
 0x5eb   :  { %v7115_v38 = vpop.f32.mrb[197].mxu1 }
 0x5ec   :  { %v7116_v61 = vadd.f32 %v7115_v38, %v7114_v63  ;;  %v7117_v30 = vpop.f32.mrb[198].mxu1 }
 0x5ed   :  { %v7118_v11 = vpop.f32.mrb[199].mxu1  ;;  %v7184_v16 = vpop.f32.mrb[200].mxu0 }
 0x5ee   :  { %v11041_v47 = vadd.f32 %v7116_v61, %v10856_v4  ;;  %v7119_v43 = vadd.f32 %v7118_v11, %v7117_v30  ;;  %v7185_v1 = vpop.f32.mrb[201].mxu0 }
 0x5ef   :  { %v7186_v12 = vadd.f32 %v7185_v1, %v7184_v16  ;;  %v7187_v45 = vpop.f32.mrb[202].mxu0  ;;  %v7791_v1 = vld [vmem:[%s11686_s13 + $0x20] sm:$0xff]  }
 0x5f0   :  { %v11045_v34 = vadd.f32 %v7119_v43, %v10859_v2  ;;  %v7188_v22 = vpop.f32.mrb[203].mxu0  ;;  %7422 = vmatpush3.bf16.msra.mxu1 %v7791_v1 }
 0x5f1   :  { %v7189_v18 = vadd.f32 %v7188_v22, %v7187_v45  ;;  %v11048_v29 = vadd.f32 %v7186_v12, %v10963_v53  ;;  %7441 = vmatprep.subr.bf16.mxu1 %v7852_v52 }
 0x5f2   :  { %v7120_v32 = vpop.f32.mrb[200].mxu1 }
 0x5f3   :  { %v7121_v60 = vpop.f32.mrb[201].mxu1  ;;  %v11054_v2 = vadd.f32 %v7189_v18, %v10970_v46 }
 0x5f4   :  { %v7122_v27 = vadd.f32 %v7121_v60, %v7120_v32  ;;  %v7123_v59 = vpop.f32.mrb[202].mxu1 }
 0x5f5   :  { %v7124_v4 = vpop.f32.mrb[203].mxu1 }
 0x5f6   :  { %v11051_v24 = vadd.f32 %v7122_v27, %v10866_v13  ;;  %v7125_v8 = vadd.f32 %v7124_v4, %v7123_v59 }
 0x5f8   :  { %v11057_v26 = vadd.f32 %v7125_v8, %v10869_v19 }
 0x5fa   :  { %v7126_v28 = vpop.f32.mrb[204].mxu1 }
 0x5fb   :  { %v7127_v14 = vpop.f32.mrb[205].mxu1 }
 0x5fc   :  { %v7128_v25 = vadd.f32 %v7127_v14, %v7126_v28  ;;  %v7129_v33 = vpop.f32.mrb[206].mxu1 }
 0x5fd   :  { %v7130_v51 = vpop.f32.mrb[207].mxu1 }
 0x5fe   :  { %v11060_v20 = vadd.f32 %v7128_v25, %v10875_v54  ;;  %v7131_v53 = vadd.f32 %v7130_v51, %v7129_v33  ;;  %v7790_v54 = vld [vmem:[%s11686_s13 + $0x48] sm:$0xff]  }
 0x5ff   :  { %7408 = vmatpush3.bf16.msra.mxu0 %v7790_v54 }
 0x600   :  { %v11063_v9 = vadd.f32 %v7131_v53, %v10878_v15  ;;  %7427 = vmatprep.subr.bf16.mxu0 %v7852_v52 }
 0x602   :  { %v7132_v13 = vpop.f32.mrb[208].mxu1 }
 0x603   :  { %v7133_v7 = vpop.f32.mrb[209].mxu1 }
 0x604   :  { %v7134_v63 = vadd.f32 %v7133_v7, %v7132_v13  ;;  %v7135_v46 = vpop.f32.mrb[210].mxu1 }
 0x605   :  { %v7136_v38 = vpop.f32.mrb[211].mxu1 }
 0x606   :  { %v11066_v19 = vadd.f32 %v7134_v63, %v10885_v21  ;;  %v7137_v23 = vadd.f32 %v7136_v38, %v7135_v46 }
 0x608   :  { %v11069_v61 = vadd.f32 %v7137_v23, %v10888_v58 }
 0x60a   :  { %v7138_v30 = vpop.f32.mrb[212].mxu1 }
 0x60b   :  { %v7139_v11 = vpop.f32.mrb[213].mxu1 }
 0x60c   :  { %v7140_v15 = vadd.f32 %v7139_v11, %v7138_v30  ;;  %v7141_v43 = vpop.f32.mrb[214].mxu1 }
 0x60d   :  { %v7142_v16 = vpop.f32.mrb[215].mxu1 }
 0x60e   :  { %v11078_v21 = vadd.f32 %v7140_v15, %v10895_v39  ;;  %v7143_v32 = vadd.f32 %v7142_v16, %v7141_v43 }
 0x610   :  { %v11082_v58 = vadd.f32 %v7143_v32, %v10898_v62 }
 0x612   :  { %v7144_v12 = vpop.f32.mrb[216].mxu1 }
 0x613   :  { %v7145_v45 = vpop.f32.mrb[217].mxu1 }
 0x614   :  { %v7146_v39 = vadd.f32 %v7145_v45, %v7144_v12  ;;  %v7147_v60 = vpop.f32.mrb[218].mxu1 }
 0x615   :  { %v7148_v22 = vpop.f32.mrb[219].mxu1 }
 0x616   :  { %v11090_v27 = vadd.f32 %v7146_v39, %v10904_v42  ;;  %v7149_v59 = vadd.f32 %v7148_v22, %v7147_v60 }
 0x618   :  { %v11093_v62 = vadd.f32 %v7149_v59, %v10907_v31 }
 0x619   :  { %v7190_v14 = vpop.f32.mrb[204].mxu0 }
 0x61a   :  { %v7150_v18 = vpop.f32.mrb[220].mxu1  ;;  %v7191_v33 = vpop.f32.mrb[205].mxu0 }
 0x61b   :  { %v7151_v4 = vpop.f32.mrb[221].mxu1  ;;  %v7192_v13 = vadd.f32 %v7191_v33, %v7190_v14  ;;  %v7193_v7 = vpop.f32.mrb[206].mxu0 }
 0x61c   :  { %v7152_v8 = vadd.f32 %v7151_v4, %v7150_v18  ;;  %v7153_v28 = vpop.f32.mrb[222].mxu1  ;;  %v7194_v63 = vpop.f32.mrb[207].mxu0 }
 0x61d   :  { %v7154_v25 = vpop.f32.mrb[223].mxu1  ;;  %v7195_v46 = vadd.f32 %v7194_v63, %v7193_v7  ;;  %v5776_v31 = vadd.f32 %v7192_v13, %v10983_v57 }
 0x61e   :  { %v11096_v51 = vadd.f32 %v7152_v8, %v10914_v3  ;;  %v7155_v53 = vadd.f32 %v7154_v25, %v7153_v28 }
 0x61f   :  { %v5779_v23 = vadd.f32 %v7195_v46, %v10987_v6 }
 0x620   :  { %v11099_v42 = vadd.f32 %v7155_v53, %v10917_v40 }
 0x621   :  { %v7196_v3 = vpop.f32.mrb[208].mxu0 }
 0x622   :  { %v5912_v38 = vpop.f32.mrb[224].mxu1  ;;  %v7197_v16 = vpop.f32.mrb[209].mxu0 }
 0x623   :  { %v11104_v30 = vadd.f32 %v5912_v38, %v10940_v5  ;;  %v5914_v11 = vpop.f32.mrb[225].mxu1  ;;  %v7198_v1 = vadd.f32 %v7197_v16, %v7196_v3  ;;  %v7199_v40 = vpop.f32.mrb[210].mxu0 }
 0x624   :  { %v5915_v54 = vpop.f32.mrb[226].mxu1  ;;  %v7200_v32 = vpop.f32.mrb[211].mxu0 }
 0x625   :  { %v11107_v15 = vadd.f32 %v5915_v54, %v10945_v48  ;;  %v5917_v43 = vpop.f32.mrb[227].mxu1  ;;  %v7201_v12 = vadd.f32 %v7200_v32, %v7199_v40  ;;  %v5784_v57 = vadd.f32 %v7198_v1, %v10993_v37 }
 0x627   :  { %v5787_v6 = vadd.f32 %v7201_v12, %v10998_v44 }
 0x629   :  { %v7202_v22 = vpop.f32.mrb[212].mxu0 }
 0x62a   :  { %v5920_v45 = vpop.f32.mrb[228].mxu1  ;;  %v7203_v18 = vpop.f32.mrb[213].mxu0 }
 0x62b   :  { %v11112_v5 = vadd.f32 %v5920_v45, %v10954_v17  ;;  %v5922_v39 = vpop.f32.mrb[229].mxu1  ;;  %v7204_v4 = vadd.f32 %v7203_v18, %v7202_v22  ;;  %v7205_v8 = vpop.f32.mrb[214].mxu0 }
 0x62c   :  { %v5923_v60 = vpop.f32.mrb[230].mxu1  ;;  %v7206_v28 = vpop.f32.mrb[215].mxu0 }
 0x62d   :  { %v11115_v48 = vadd.f32 %v5923_v60, %v10959_v56  ;;  %v5925_v59 = vpop.f32.mrb[231].mxu1  ;;  %v7207_v14 = vadd.f32 %v7206_v28, %v7205_v8  ;;  %v5792_v37 = vadd.f32 %v7204_v4, %v11001_v35 }
 0x62f   :  { %v5795_v44 = vadd.f32 %v7207_v14, %v11005_v55 }
 0x631   :  { %v7208_v13 = vpop.f32.mrb[216].mxu0 }
 0x632   :  { %v5928_v25 = vpop.f32.mrb[232].mxu1  ;;  %v7209_v63 = vpop.f32.mrb[217].mxu0 }
 0x633   :  { %v11120_v17 = vadd.f32 %v5928_v25, %v11048_v29  ;;  %v5930_v33 = vpop.f32.mrb[233].mxu1  ;;  %v7210_v46 = vadd.f32 %v7209_v63, %v7208_v13  ;;  %v7211_v38 = vpop.f32.mrb[218].mxu0 }
 0x634   :  { %v5931_v53 = vpop.f32.mrb[234].mxu1  ;;  %v7212_v11 = vpop.f32.mrb[219].mxu0 }
 0x635   :  { %v11123_v56 = vadd.f32 %v5931_v53, %v11054_v2  ;;  %v5933_v7 = vpop.f32.mrb[235].mxu1  ;;  %v7213_v54 = vadd.f32 %v7212_v11, %v7211_v38  ;;  %v5800_v35 = vadd.f32 %v7210_v46, %v11015_v50 }
 0x637   :  { %v5803_v55 = vadd.f32 %v7213_v54, %v11018_v0 }
 0x639   :  { %v7214_v1 = vpop.f32.mrb[220].mxu0 }
 0x63a   :  { %v5936_v3 = vpop.f32.mrb[236].mxu1  ;;  %v7215_v32 = vpop.f32.mrb[221].mxu0 }
 0x63b   :  { %v11127_v43 = vadd.f32 %v5936_v3, %v5776_v31  ;;  %v5938_v29 = vpop.f32.mrb[237].mxu1  ;;  %v7216_v12 = vadd.f32 %v7215_v32, %v7214_v1  ;;  %v7217_v45 = vpop.f32.mrb[222].mxu0 }
 0x63c   :  { %v5939_v16 = vpop.f32.mrb[238].mxu1  ;;  %v7218_v39 = vpop.f32.mrb[223].mxu0 }
 0x63d   :  { %v11129_v40 = vadd.f32 %v5939_v16, %v5779_v23  ;;  %v5941_v2 = vpop.f32.mrb[239].mxu1  ;;  %v7219_v60 = vadd.f32 %v7218_v39, %v7217_v45  ;;  %v5808_v22 = vadd.f32 %v7216_v12, %v11022_v41 }
 0x63f   :  { %v5811_v50 = vadd.f32 %v7219_v60, %v11025_v10 }
 0x641   :  { %v7220_v4 = vpop.f32.mrb[224].mxu0 }
 0x642   :  { %v5944_v59 = vpop.f32.mrb[240].mxu1  ;;  %v7221_v14 = vpop.f32.mrb[225].mxu0 }
 0x643   :  { %v11133_v18 = vadd.f32 %v5944_v59, %v5784_v57  ;;  %v5946_v0 = vpop.f32.mrb[241].mxu1  ;;  %v7222_v25 = vadd.f32 %v7221_v14, %v7220_v4  ;;  %v7223_v33 = vpop.f32.mrb[226].mxu0 }
 0x644   :  { %v5947_v31 = vpop.f32.mrb[242].mxu1  ;;  %v7224_v53 = vpop.f32.mrb[227].mxu0 }
 0x645   :  { %v6039_v23 = vmax.f32 %v11104_v30, %v11133_v18  ;;  %v11137_v8 = vadd.f32 %v5947_v31, %v5787_v6  ;;  %v5949_v28 = vpop.f32.mrb[243].mxu1  ;;  %v7225_v13 = vadd.f32 %v7224_v53, %v7223_v33  ;;  %v5816_v10 = vadd.f32 %v7222_v25, %v11028_v49  ;;  %v7794_v30 = vld [vmem:[%s11686_s13 + $0x78] sm:$0xff]  }
 0x647   :  { %v6040_v41 = vmax.f32 %v11107_v15, %v11137_v8  ;;  %v5819_v7 = vadd.f32 %v7225_v13, %v11031_v36 }
 0x649   :  { %v7226_v6 = vpop.f32.mrb[228].mxu0 }
 0x64a   :  { %v5952_v57 = vpop.f32.mrb[244].mxu1  ;;  %v7227_v29 = vpop.f32.mrb[229].mxu0 }
 0x64b   :  { %v11143_v63 = vadd.f32 %v5952_v57, %v5792_v37  ;;  %v5954_v46 = vpop.f32.mrb[245].mxu1  ;;  %v7228_v16 = vadd.f32 %v7227_v29, %v7226_v6  ;;  %v7229_v1 = vpop.f32.mrb[230].mxu0 }
 0x64c   :  { %v5955_v38 = vpop.f32.mrb[246].mxu1  ;;  %v7230_v2 = vpop.f32.mrb[231].mxu0 }
 0x64d   :  { %v6041_v11 = vmax.f32 %v11112_v5, %v11143_v63  ;;  %v11147_v54 = vadd.f32 %v5955_v38, %v5795_v44  ;;  %v5957_v3 = vpop.f32.mrb[247].mxu1  ;;  %v7231_v32 = vadd.f32 %v7230_v2, %v7229_v1  ;;  %v5824_v36 = vadd.f32 %v7228_v16, %v11041_v47 }
 0x64f   :  { %v6042_v49 = vmax.f32 %v11115_v48, %v11147_v54  ;;  %v5827_v12 = vadd.f32 %v7231_v32, %v11045_v34 }
 0x651   :  { %v7232_v44 = vpop.f32.mrb[232].mxu0 }
 0x652   :  { %v5960_v37 = vpop.f32.mrb[248].mxu1  ;;  %v7233_v4 = vpop.f32.mrb[233].mxu0 }
 0x653   :  { %v11153_v45 = vadd.f32 %v5960_v37, %v5800_v35  ;;  %v5962_v39 = vpop.f32.mrb[249].mxu1  ;;  %v7234_v28 = vadd.f32 %v7233_v4, %v7232_v44  ;;  %v7235_v14 = vpop.f32.mrb[234].mxu0 }
 0x654   :  { %v5963_v60 = vpop.f32.mrb[250].mxu1  ;;  %v7236_v25 = vpop.f32.mrb[235].mxu0 }
 0x655   :  { %v6043_v59 = vmax.f32 %v11120_v17, %v11153_v45  ;;  %v11157_v0 = vadd.f32 %v5963_v60, %v5803_v55  ;;  %v5965_v31 = vpop.f32.mrb[251].mxu1  ;;  %v7237_v33 = vadd.f32 %v7236_v25, %v7235_v14  ;;  %v5832_v34 = vadd.f32 %v7234_v28, %v11051_v24  ;;  %v7793_v17 = vld [vmem:[%s11686_s13 + $0x58] sm:$0xff]   ;;  %v7800_v45 = vld [vmem:[%s11686_s13 + $0x90] sm:$0xff]  }
 0x657   :  { %v6044_v47 = vmax.f32 %v11123_v56, %v11157_v0  ;;  %v5835_v53 = vadd.f32 %v7237_v33, %v11057_v26 }
 0x659   :  { %v7238_v55 = vpop.f32.mrb[236].mxu0 }
 0x65a   :  { %v5968_v35 = vpop.f32.mrb[252].mxu1  ;;  %v7239_v29 = vpop.f32.mrb[237].mxu0 }
 0x65b   :  { %v11163_v13 = vadd.f32 %v5968_v35, %v5808_v22  ;;  %v5970_v57 = vpop.f32.mrb[253].mxu1  ;;  %v7240_v16 = vadd.f32 %v7239_v29, %v7238_v55  ;;  %v7241_v1 = vpop.f32.mrb[238].mxu0 }
 0x65c   :  { %v5971_v46 = vpop.f32.mrb[254].mxu1  ;;  %v7242_v2 = vpop.f32.mrb[239].mxu0 }
 0x65d   :  { %v6045_v38 = vmax.f32 %v11127_v43, %v11163_v13  ;;  %v11167_v6 = vadd.f32 %v5971_v46, %v5811_v50  ;;  %v5973_v3 = vpop.f32.mrb[255].mxu1  ;;  %v7243_v32 = vadd.f32 %v7242_v2, %v7241_v1  ;;  %v5840_v26 = vadd.f32 %v7240_v16, %v11060_v20  ;;  %v7803_v13 = vld [vmem:[%s11697_s14 + $0x8] sm:$0xff]  }
 0x65f   :  { %v6046_v24 = vmax.f32 %v11129_v40, %v11167_v6  ;;  %v5843_v37 = vadd.f32 %v7243_v32, %v11063_v9  ;;  %v7802_v40 = vld [vmem:[%s11697_s14] sm:$0xff]   ;;  %v7805_v6 = vld [vmem:[%s11697_s14 + $0x18] ss:$0 sps:$4 sm:$0x11]  }
 0x661   :  { %v7244_v31 = vpop.f32.mrb[240].mxu0 }
 0x662   :  { %v5976_v22 = vpop.f32.mrb[0].mxu1  ;;  %v7245_v28 = vpop.f32.mrb[241].mxu0 }
 0x663   :  { %v5977_v39 = vadd.f32 %v5976_v22, %v5816_v10  ;;  %v5978_v60 = vpop.f32.mrb[1].mxu1  ;;  %v7246_v14 = vadd.f32 %v7245_v28, %v7244_v31  ;;  %v7247_v25 = vpop.f32.mrb[242].mxu0 }
 0x664   :  { %v5979_v44 = vpop.f32.mrb[2].mxu1  ;;  %v7248_v33 = vpop.f32.mrb[243].mxu0 }
 0x665   :  { %v5980_v50 = vadd.f32 %v5979_v44, %v5819_v7  ;;  %v5981_v4 = vpop.f32.mrb[3].mxu1  ;;  %v7249_v35 = vadd.f32 %v7248_v33, %v7247_v25  ;;  %v5848_v57 = vadd.f32 %v7246_v14, %v11066_v19 }
 0x667   :  { %v5851_v55 = vadd.f32 %v7249_v35, %v11069_v61 }
 0x669   :  { %v7250_v9 = vpop.f32.mrb[244].mxu0 }
 0x66a   :  { %v5984_v46 = vpop.f32.mrb[4].mxu1  ;;  %v7251_v1 = vpop.f32.mrb[245].mxu0 }
 0x66b   :  { %v5985_v20 = vadd.f32 %v5984_v46, %v5824_v36  ;;  %v5986_v3 = vpop.f32.mrb[5].mxu1  ;;  %v7252_v2 = vadd.f32 %v7251_v1, %v7250_v9  ;;  %v7253_v7 = vpop.f32.mrb[246].mxu0 }
 0x66c   :  { %v5987_v29 = vpop.f32.mrb[6].mxu1  ;;  %v7254_v32 = vpop.f32.mrb[247].mxu0 }
 0x66d   :  { %v5988_v10 = vadd.f32 %v5987_v29, %v5827_v12  ;;  %v5989_v16 = vpop.f32.mrb[7].mxu1  ;;  %v7255_v22 = vadd.f32 %v7254_v32, %v7253_v7  ;;  %v5856_v60 = vadd.f32 %v7252_v2, %v11078_v21 }
 0x66f   :  { %v5859_v31 = vadd.f32 %v7255_v22, %v11082_v58 }
 0x672   :  { %v5992_v44 = vpop.f32.mrb[8].mxu1 }
 0x673   :  { %v11177_v19 = vadd.f32 %v5992_v44, %v5832_v34  ;;  %v5994_v4 = vpop.f32.mrb[9].mxu1 }
 0x674   :  { %v5995_v61 = vpop.f32.mrb[10].mxu1 }
 0x675   :  { %v11179_v36 = vadd.f32 %v5995_v61, %v5835_v53  ;;  %v5997_v28 = vpop.f32.mrb[11].mxu1 }
 0x67a   :  { %v6000_v14 = vpop.f32.mrb[12].mxu1 }
 0x67b   :  { %v11181_v12 = vadd.f32 %v6000_v14, %v5840_v26  ;;  %v6002_v25 = vpop.f32.mrb[13].mxu1 }
 0x67c   :  { %v6003_v33 = vpop.f32.mrb[14].mxu1 }
 0x67d   :  { %v11183_v35 = vadd.f32 %v6003_v33, %v5843_v37  ;;  %v6005_v46 = vpop.f32.mrb[15].mxu1  ;;  %v7256_v3 = vpop.f32.mrb[248].mxu0  ;;  %v11189_v37 = vld [vmem:[%s11696_s6] ss:$0 sm:$0xff] }
 0x67e   :  { %v7257_v21 = vpop.f32.mrb[249].mxu0 }
 0x67f   :  { %v7258_v29 = vadd.f32 %v7257_v21, %v7256_v3  ;;  %v7259_v58 = vpop.f32.mrb[250].mxu0 }
 0x680   :  { %v7260_v1 = vpop.f32.mrb[251].mxu0 }
 0x681   :  { %v7261_v2 = vadd.f32 %v7260_v1, %v7259_v58  ;;  %v5864_v7 = vadd.f32 %v7258_v29, %v11090_v27  ;;  %v7792_v29 = vld [vmem:[%s11686_s13 + $0x50] sm:$0xff]  }
 0x682   :  { %v6008_v9 = vpop.f32.mrb[16].mxu1 }
 0x683   :  { %v6009_v34 = vadd.f32 %v6008_v9, %v5848_v57  ;;  %v6010_v16 = vpop.f32.mrb[17].mxu1  ;;  %v5867_v44 = vadd.f32 %v7261_v2, %v11093_v62  ;;  %v7798_v9 = vld [vmem:[%s11686_s13 + $0x88] sm:$0xff]  }
 0x684   :  { %v6011_v53 = vpop.f32.mrb[18].mxu1 }
 0x685   :  { %v6047_v32 = vmax.f32 %v5977_v39, %v6009_v34  ;;  %v6012_v26 = vadd.f32 %v6011_v53, %v5851_v55  ;;  %v6013_v22 = vpop.f32.mrb[19].mxu1 }
 0x686   :  { %v7795_v22 = vld [vmem:[%s11686_s13 + $0x60] sm:$0xff]  }
 0x687   :  { %v6055_v57 = vmax.f32 %v6039_v23, %v6047_v32  ;;  %v6048_v4 = vmax.f32 %v5980_v50, %v6012_v26 }
 0x689   :  { %v6070_v61 = vadd.f32 %v11189_v37, %v6055_v57  ;;  %v6056_v27 = vmax.f32 %v6040_v41, %v6048_v4  ;;  %v7801_v57 = vld [vmem:[%s11686_s13 + $0x98] sm:$0xff]  }
 0x68a   :  { %v6016_v39 = vpop.f32.mrb[20].mxu1 }
 0x68b   :  { %v6071_v55 = vadd.f32 %v11189_v37, %v6056_v27  ;;  %v6017_v28 = vadd.f32 %v6016_v39, %v5856_v60  ;;  %v6018_v14 = vpop.f32.mrb[21].mxu1  ;;  %v6078_v33 = vmax.f32 %v6070_v61, 0.0  ;;  %v7797_v61 = vld [vmem:[%s11686_s13 + $0x68] sm:$0xff]  }
 0x68c   :  { %v6019_v25 = vpop.f32.mrb[22].mxu1 }
 0x68d   :  { %v6079_v46 = vmax.f32 %v6071_v55, 0.0  ;;  %v6049_v62 = vmax.f32 %v5985_v20, %v6017_v28  ;;  %v6020_v3 = vadd.f32 %v6019_v25, %v5859_v31  ;;  %v6021_v21 = vpop.f32.mrb[23].mxu1  ;;  %v7796_v20 = vld [vmem:[%s11686_s13 + $0x80] sm:$0xff]   ;;  %v7799_v25 = vld [vmem:[%s11686_s13 + $0x70] sm:$0xff]  }
 0x68f   :  { %v6086_v18 = vpack.c.bf16 %v6079_v46, %v6078_v33  ;;  %v6057_v15 = vmax.f32 %v6041_v11, %v6049_v62  ;;  %v6050_v23 = vmax.f32 %v5988_v10, %v6020_v3 }
 0x691   :  { %v6072_v8 = vadd.f32 %v11189_v37, %v6057_v15  ;;  %v6058_v41 = vmax.f32 %v6042_v49, %v6050_v23  ;;  %7424 = vmatmul.mubr.msk.bf16.vlgmr.msra.gmra.mrb[32].mxu1 %vm6140_vm11, %v6086_v18 }
 0x692   :  { %v6024_v50 = vpop.f32.mrb[24].mxu1  ;;  %7442 = vmatpush3.bf16.msra.mxu1 %v7794_v30  ;;  %7451 = vmatprep.mubr.msk.bf16.mxu1 %vm7853_vm7, %v7852_v52 }
 0x693   :  { %v6073_v5 = vadd.f32 %v11189_v37, %v6058_v41  ;;  %v6025_v63 = vadd.f32 %v6024_v50, %v5864_v7  ;;  %v6026_v11 = vpop.f32.mrb[25].mxu1  ;;  %7443 = vmatprep.subr.bf16.mxu1 %v7852_v52  ;;  %v6080_v48 = vmax.f32 %v6072_v8, 0.0 }
 0x694   :  { %v6027_v10 = vpop.f32.mrb[26].mxu1 }
 0x695   :  { %v6081_v54 = vmax.f32 %v6073_v5, 0.0  ;;  %v6051_v49 = vmax.f32 %v11177_v19, %v6025_v63  ;;  %v6028_v60 = vadd.f32 %v6027_v10, %v5867_v44  ;;  %v6029_v31 = vpop.f32.mrb[27].mxu1 }
 0x696   :  { %7444 = vmatpush3.bf16.msra.mxu1 %v7796_v20  ;;  %v7262_v19 = vpop.f32.mrb[252].mxu0 }
 0x697   :  { %v6087_v58 = vpack.c.bf16 %v6081_v54, %v6080_v48  ;;  %v6059_v34 = vmax.f32 %v6043_v59, %v6051_v49  ;;  %v6052_v16 = vmax.f32 %v11179_v36, %v6028_v60  ;;  %7445 = vmatprep.subr.bf16.mxu1 %v7852_v52  ;;  %v7263_v53 = vpop.f32.mrb[253].mxu0  ;;  %v6874_v60 = vld [vmem:[%s11698_s27] ss:$0 sm:$0xff] }
 0x698   :  { %v7264_v7 = vadd.f32 %v7263_v53, %v7262_v19  ;;  %v7265_v32 = vpop.f32.mrb[254].mxu0 }
 0x699   :  { %v6074_v1 = vadd.f32 %v11189_v37, %v6059_v34  ;;  %v6060_v2 = vmax.f32 %v6044_v47, %v6052_v16  ;;  %7410 = vmatmul.mubr.msk.bf16.vlgmr.msra.gmra.mrb[0].mxu0 %vm6140_vm11, %v6087_v58  ;;  %v7266_v36 = vpop.f32.mrb[255].mxu0 }
 0x69a   :  { %7428 = vmatpush3.bf16.msra.mxu0 %v7792_v29  ;;  %7446 = vmatpush3.bf16.msra.mxu1 %v7798_v9  ;;  %v7267_v56 = vadd.f32 %v7266_v36, %v7265_v32  ;;  %v5872_v0 = vadd.f32 %v7264_v7, %v11096_v51  ;;  %v6875_v7 = vld [vmem:[%s11699_s30] ss:$0 sm:$0xff] }
 0x69b   :  { %v6075_v59 = vadd.f32 %v11189_v37, %v6060_v2  ;;  %7429 = vmatprep.subr.bf16.mxu0 %v7852_v52  ;;  %7447 = vmatprep.subr.bf16.mxu1 %v7852_v52  ;;  %v6082_v47 = vmax.f32 %v6074_v1, 0.0 }
 0x69c   :  { %7437 = vmatprep.mubr.msk.bf16.mxu0 %vm7853_vm7, %v7852_v52  ;;  %v5875_v44 = vadd.f32 %v7267_v56, %v11099_v42 }
 0x69d   :  { %v6083_v26 = vmax.f32 %v6075_v59, 0.0 }
 0x69e   :  { %7430 = vmatpush3.bf16.msra.mxu0 %v7793_v17  ;;  %7448 = vmatpush3.bf16.msra.mxu1 %v7800_v45 }
 0x69f   :  { %v6088_v4 = vpack.c.bf16 %v6083_v26, %v6082_v47  ;;  %7431 = vmatprep.subr.bf16.mxu0 %v7852_v52  ;;  %7449 = vmatprep.subr.bf16.mxu1 %v7852_v52 }
 0x6a1   :  { %v6032_v51 = vpop.f32.mrb[28].mxu1 }
 0x6a2   :  { %7432 = vmatpush3.bf16.msra.mxu0 %v7795_v22  ;;  %7450 = vmatpush3.bf16.msra.mxu1 %v7801_v57  ;;  %v6033_v27 = vadd.f32 %v6032_v51, %v5872_v0  ;;  %v6034_v39 = vpop.f32.mrb[29].mxu1 }
 0x6a3   :  { %7433 = vmatprep.subr.bf16.mxu0 %v7852_v52  ;;  %v6035_v42 = vpop.f32.mrb[30].mxu1 }
 0x6a4   :  { %v6053_v55 = vmax.f32 %v11181_v12, %v6033_v27  ;;  %v6036_v28 = vadd.f32 %v6035_v42, %v5875_v44  ;;  %v6037_v14 = vpop.f32.mrb[31].mxu1 }
 0x6a6   :  { %7434 = vmatpush3.bf16.msra.mxu0 %v7797_v61  ;;  %v6061_v33 = vmax.f32 %v6045_v38, %v6053_v55  ;;  %v6054_v46 = vmax.f32 %v11183_v35, %v6036_v28  ;;  %v7804_v38 = vld [vmem:[%s11697_s14 + $0x10] sm:$0xff]  }
 0x6a7   :  { %7435 = vmatprep.subr.bf16.mxu0 %v7852_v52 }
 0x6a8   :  { %v6076_v62 = vadd.f32 %v11189_v37, %v6061_v33  ;;  %v6062_v12 = vmax.f32 %v6046_v24, %v6054_v46  ;;  %v6484_v24 = vsel %vm6482_vm12, %v7805_v6, 0 }
 0x6aa   :  { %7436 = vmatpush3.bf16.msra.mxu0 %v7799_v25  ;;  %v6077_v3 = vadd.f32 %v11189_v37, %v6062_v12  ;;  %v6084_v21 = vmax.f32 %v6076_v62, 0.0 }
 0x6ab   :  { %7455 = vmatprep.subr.bf16.mxu0 %v7852_v52 }
 0x6ac   :  { %v6085_v30 = vmax.f32 %v6077_v3, 0.0 }
 0x6ad   :  { %7438 = vmatmul.mubr.msk.bf16.vlgmr.msra.gmra.mrb[4].mxu0 %vm6140_vm11, %v6088_v4 }
 0x6ae   :  { %7463 = vmatprep.mubr.msk.bf16.mxu0 %vm7853_vm7, %v7852_v52  ;;  %v6089_v43 = vpack.c.bf16 %v6085_v30, %v6084_v21  ;;  %7456 = vmatpush3.bf16.msra.mxu0 %v7802_v40 }
 0x6af   :  { %7457 = vmatprep.subr.bf16.mxu0 %v7852_v52 }
 0x6b0   :  { %7452 = vmatmul.mubr.msk.bf16.vlgmr.msra.gmra.mrb[36].mxu1 %vm6140_vm11, %v6089_v43 }
 0x6b2   :  { %7458 = vmatpush3.bf16.msra.mxu0 %v7803_v13 }
 0x6b3   :  { %7459 = vmatprep.subr.bf16.mxu0 %v7852_v52 }
 0x6b6   :  { %7460 = vmatpush3.bf16.msra.mxu0 %v7804_v38 }
 0x6b7   :  { %7461 = vmatprep.subr.bf16.mxu0 %v7852_v52 }
 0x6ba   :  { %7462 = vmatpush3.bf16.msra.mxu0 %v6484_v24 }
 0x764   :  { %v6252_v35 = vpop.f32.mrb[32].mxu1 }
 0x765   :  { %v7425_v37 = vpop.f32.mrb[33].mxu1 }
 0x766   :  { %v6255_v18 = vpop.f32.mrb[34].mxu1 }
 0x767   :  { %v7426_v15 = vpop.f32.mrb[35].mxu1 }
 0x76c   :  { %v6178_v23 = vpop.f32.mrb[0].mxu0 }
 0x76d   :  { %v6253_v8 = vadd.f32 %v6252_v35, %v6178_v23  ;;  %v7411_v41 = vpop.f32.mrb[1].mxu0 }
 0x76e   :  { %v6181_v50 = vpop.f32.mrb[2].mxu0 }
 0x76f   :  { %v6256_v20 = vadd.f32 %v6255_v18, %v6181_v50  ;;  %v7412_v5 = vpop.f32.mrb[3].mxu0 }
 0x780   :  { %v6336_v63 = vpop.f32.mrb[4].mxu0 }
 0x781   :  { %v6343_v11 = vadd.f32 %v6336_v63, %v6253_v8  ;;  %v7439_v52 = vpop.f32.mrb[5].mxu0 }
 0x782   :  { %v6339_v10 = vpop.f32.mrb[6].mxu0 }
 0x783   :  { %v6344_v48 = vadd.f32 %v6339_v10, %v6256_v20  ;;  %v7440_v54 = vpop.f32.mrb[7].mxu0  ;;  %v6422_v49 = vpop.f32.mrb[36].mxu1 }
 0x784   :  { %v6429_v31 = vadd.f32 %v6422_v49, %v6343_v11  ;;  %v7453_v29 = vpop.f32.mrb[37].mxu1 }
 0x785   :  { %v6425_v9 = vpop.f32.mrb[38].mxu1 }
 0x786   :  { %v6438_v58 = vadd.f32 %v6874_v60, %v6429_v31  ;;  %v6430_v34 = vadd.f32 %v6425_v9, %v6344_v48  ;;  %v7454_v16 = vpop.f32.mrb[39].mxu1 }
 0x788   :  { %v6439_v19 = vadd.f32 %v6874_v60, %v6430_v34  ;;  %v6440_v1 = vmax.f32 %v6438_v58, 0.0 }
 0x78a   :  { %v6441_v2 = vmax.f32 %v6439_v19, 0.0 }
 0x78c   :  { %v6442_v53 = vpack.c.bf16 %v6441_v2, %v6440_v1 }
 0x78e   :  { %7464 = vmatmul.mubr.msk.bf16.vlgmr.msra.gmra.mrb[8].mxu0 %vm6478_vm0, %v6442_v53 }
 0x861   :  { %v6520_v32 = vpop.f32.mrb[8].mxu0 }
 0x862   :  { %v6521_v17 = vadd.f32 %v6875_v7, %v6520_v32  ;;  %v7465_v45 = vpop.f32.mrb[9].mxu0 }
 0x863   :  { %v6523_v59 = vpop.f32.mrb[10].mxu0 }
 0x864   :  { %v6524_v36 = vadd.f32 %v6875_v7, %v6523_v59  ;;  %v7466_v56 = vpop.f32.mrb[11].mxu0  ;;  %v6528_v0 = vsel %vm6527_vm1, %v6521_v17, -inf }
 0x865   :  { %6529 = vmax.xlane.f32.xlu0 %v6528_v0 }
 0x866   :  { %v6531_v47 = vsel %vm6527_vm1, %v6524_v36, -inf }
 0x867   :  { %6532 = vmax.xlane.f32.xlu1 %v6531_v47 }
 0x8f2   :  { %v6530_v26 = vpop.xlane.xlu0 %6529 }
 0x8f3   :  { %v6534_v22 = vsub.f32 %v6521_v17, %v6530_v26 }
 0x8f4   :  { %v6533_v44 = vpop.xlane.xlu1 %6532 }
 0x8f5   :  { %v6536_v57 = vmul.f32 1.442695, %v6534_v22  ;;  %v6535_v4 = vsub.f32 %v6524_v36, %v6533_v44 }
 0x8f7   :  { %7806 = vpow2.f32 %v6536_v57  ;;  %v6538_v51 = vmul.f32 1.442695, %v6535_v4 }
 0x8f9   :  { %7808 = vpow2.f32 %v6538_v51 }
 0x901   :  { %v7807_v61 = vpop.eup %7806 }
 0x902   :  { %v6540_v27 = vsel %vm6527_vm1, %v7807_v61, 0.0 }
 0x903   :  { %v7809_v39 = vpop.eup %7808  ;;  %6541 = vadd.xlane.f32.xlu0 %v6540_v27 }
 0x904   :  { %v6543_v42 = vsel %vm6527_vm1, %v7809_v39, 0.0 }
 0x907   :  { %6544 = vadd.xlane.f32.xlu0 %v6543_v42 }
 0x990   :  { %v6542_v55 = vpop.xlane.xlu0 %6541 }
 0x991   :  { %7810 = vlog2.f32 %v6542_v55 }
 0x994   :  { %v6545_v28 = vpop.xlane.xlu0 %6544 }
 0x995   :  { %7812 = vlog2.f32 %v6545_v28 }
 0x99b   :  { %v7811_v14 = vpop.eup %7810 }
 0x99c   :  { %v6547_v25 = vmul.f32 0.6931472, %v7811_v14 }
 0x99e   :  { %v6550_v33 = vsub.f32 %v6534_v22, %v6547_v25 }
 0x99f   :  { %v7813_v46 = vpop.eup %7812 }
 0x9a0   :  { %6552 = vst.msk [vmem:[%s11700_s10] sm:$0xff] %vm6527_vm1, %v6550_v33  ;;  %v6549_v62 = vmul.f32 0.6931472, %v7813_v46 }
 0x9a2   :  { %v6551_v12 = vsub.f32 %v6535_v4, %v6549_v62 }
 0x9a4   :  { %6553 = vst.msk [vmem:[%s11700_s10 + $0x8] sm:$0xff] %vm6527_vm1, %v6551_v12 }

</bundles_post_ra>
